<compile_context>
chip_gen: v5e
topology: v5e:2x2
jax: 0.10.0
libtpu: 0.0.40
codegen_flags: <defaults>
</compile_context>

<pallas_src>
import jax
import jax.numpy as jnp
from jax.experimental import pallas as pl
from jax.experimental.pallas import tpu as pltpu

SELU_ALPHA = 1.6732632423543772
SELU_SCALE = 1.0507009873554805


def _selu(x):
    # f32 activation math; the unselected exp branch is discarded by the select.
    return SELU_SCALE * jnp.where(x > 0, x, SELU_ALPHA * (jnp.exp(x) - 1.0))


def _round_up(n, m):
    return ((n + m - 1) // m) * m


def _disc_kernel(x_ref,
                 w1_ref, b1_ref,
                 w2_ref, b2_ref,
                 w3_ref, b3_ref,
                 w4t_ref, b4_ref,
                 o_ref):
    # Fused MLP for one batch tile: bf16 MXU matmuls with f32 accumulation,
    # SELU / sigmoid kept in f32 (v5e-safe).
    x = x_ref[...]                                                     # (tb, 784) bf16

    h = jnp.dot(x, w1_ref[...], preferred_element_type=jnp.float32) + b1_ref[...]
    h = _selu(h)

    h = jnp.dot(h.astype(jnp.bfloat16), w2_ref[...],
                preferred_element_type=jnp.float32) + b2_ref[...]
    h = _selu(h)

    h = jnp.dot(h.astype(jnp.bfloat16), w3_ref[...],
                preferred_element_type=jnp.float32) + b3_ref[...]
    h = _selu(h)                                                       # (tb, 128) f32

    # Final 128 -> 1 layer: trivial FLOPs — VPU multiply + XLU lane reduction,
    # keeps it off the MXU push/drain path.
    logit = jnp.sum(h * w4t_ref[...], axis=-1, keepdims=True) + b4_ref[...]
    o_ref[...] = 1.0 / (1.0 + jnp.exp(-logit))


def vanilla_discriminator(x, params, *, tile_b=256):
    """x: any shape with prod(shape) % 784 == 0 (flattened to (-1, 784), like `input.view(-1, 784)`)."""
    (w1, b1), (w2, b2), (w3, b3), (w4, b4) = params
    x = x.reshape(-1, 784).astype(jnp.float32)
    B = x.shape[0]

    # Clamp the tile to the (sublane-aligned) batch and pad the batch to a tile multiple.
    tile_b = min(tile_b, _round_up(B, 8))
    B_pad = _round_up(B, tile_b)
    if B_pad != B:
        x = jnp.pad(x, ((0, B_pad - B), (0, 0)))

    # bf16 matmul inputs (f32 accumulation in-kernel); biases and the tiny last layer stay f32.
    x_bf = x.astype(jnp.bfloat16)
    w1b = w1.astype(jnp.bfloat16)
    w2b = w2.astype(jnp.bfloat16)
    w3b = w3.astype(jnp.bfloat16)
    w4t = w4.T.astype(jnp.float32)          # (1, 128): lane-dense row for the VPU path

    full = lambda a: pl.BlockSpec(a.shape, lambda i: (0, 0))  # grid-invariant -> DMA'd once

    out = pl.pallas_call(
        _disc_kernel,
        out_shape=jax.ShapeDtypeStruct((B_pad, 1), jnp.float32),
        grid_spec=pltpu.PrefetchScalarGridSpec(
            num_scalar_prefetch=0,
            grid=(B_pad // tile_b,),
            in_specs=[
                pl.BlockSpec((tile_b, 784), lambda i: (i, 0)),  # x batch tile
                full(w1b), full(b1),
                full(w2b), full(b2),
                full(w3b), full(b3),
                full(w4t), full(b4),
            ],
            out_specs=pl.BlockSpec((tile_b, 1), lambda i: (i, 0)),
        ),
        compiler_params=pltpu.CompilerParams(
            dimension_semantics=("parallel",),     # batch tiles shard across TCs on v7x
            vmem_limit_bytes=32 * 1024 * 1024,
        ),
    )(x_bf, w1b, b1, w2b, b2, w3b, b3, w4t, b4)
    return out[:B]


def init_params(key):
    """Deterministic init mimicking PyTorch Linear default: U(-1/sqrt(fan_in), +1/sqrt(fan_in))."""
    dims = [784, 1024, 512, 128, 1]
    params = []
    for fan_in, fan_out in zip(dims[:-1], dims[1:]):
        kw, kb, key = jax.random.split(key, 3)
        bound = 1.0 / (fan_in ** 0.5)
        w = jax.random.uniform(kw, (fan_in, fan_out), jnp.float32, -bound, bound)
        b = jax.random.uniform(kb, (1, fan_out), jnp.float32, -bound, bound)
        params.append((w, b))
    return params


def reference_forward(x, params):
    x = x.reshape(-1, 784).astype(jnp.float32)
    (w1, b1), (w2, b2), (w3, b3), (w4, b4) = params
    h = _selu(x @ w1 + b1)
    h = _selu(h @ w2 + b2)
    h = _selu(h @ w3 + b3)
    return jax.nn.sigmoid(h @ w4 + b4)


if __name__ == "__main__":
    key = jax.random.PRNGKey(0)
    kx, kp = jax.random.split(key)

    # Small MNIST-like batch: (B, 1, 28, 28) -> view(-1, 784).
    # B is deliberately not a multiple of 8 to exercise the padding path.
    B = 50
    x = jax.random.normal(kx, (B, 1, 28, 28), jnp.float32)
    params = init_params(kp)

    ref = reference_forward(x, params)

    # Default tile (clamped to the small batch) -> single grid step.
    out = jax.block_until_ready(vanilla_discriminator(x, params))
    assert out.shape == (B, 1), out.shape
    # bf16 matmul inputs -> looser tolerance vs. the f32 reference.
    assert jnp.allclose(out, ref, atol=2e-2, rtol=0.0), float(jnp.max(jnp.abs(out - ref)))

    # Small explicit tile to exercise the multi-step pipelined grid path.
    out2 = jax.block_until_ready(vanilla_discriminator(x, params, tile_b=16))
    assert out2.shape == (B, 1), out2.shape
    assert jnp.allclose(out2, ref, atol=2e-2, rtol=0.0), float(jnp.max(jnp.abs(out2 - ref)))

    print("KERNEL_OK")
</pallas_src>

<mosaic_0001>
module attributes {stable_mosaic.version = 11 : i64} {
  func.func @_disc_kernel(%arg0: i32, %arg1: memref<56x784xbf16, #tpu.memory_space<vmem>>, %arg2: memref<784x1024xbf16, #tpu.memory_space<vmem>>, %arg3: memref<1x1024xf32, #tpu.memory_space<vmem>>, %arg4: memref<1024x512xbf16, #tpu.memory_space<vmem>>, %arg5: memref<1x512xf32, #tpu.memory_space<vmem>>, %arg6: memref<512x128xbf16, #tpu.memory_space<vmem>>, %arg7: memref<1x128xf32, #tpu.memory_space<vmem>>, %arg8: memref<1x128xf32, #tpu.memory_space<vmem>>, %arg9: memref<1x1xf32, #tpu.memory_space<vmem>>, %arg10: memref<56x1xf32, #tpu.memory_space<vmem>>) attributes {dimension_semantics = [#tpu.dimension_semantics<parallel>], iteration_bounds = array<i64: 1>, scalar_prefetch = 0 : i64, scratch_operands = 0 : i64, tpu.core_type = #tpu.core_type<tc>, window_params = [{transform_indices = @transform_0, window_bounds = array<i64: 56, 784>}, {pipeline_mode = #tpu.pipeline_mode<synchronous>, transform_indices = @transform_1, window_bounds = array<i64: 784, 1024>}, {pipeline_mode = #tpu.pipeline_mode<synchronous>, transform_indices = @transform_2, window_bounds = array<i64: 1, 1024>}, {pipeline_mode = #tpu.pipeline_mode<synchronous>, transform_indices = @transform_3, window_bounds = array<i64: 1024, 512>}, {pipeline_mode = #tpu.pipeline_mode<synchronous>, transform_indices = @transform_4, window_bounds = array<i64: 1, 512>}, {pipeline_mode = #tpu.pipeline_mode<synchronous>, transform_indices = @transform_5, window_bounds = array<i64: 512, 128>}, {pipeline_mode = #tpu.pipeline_mode<synchronous>, transform_indices = @transform_6, window_bounds = array<i64: 1, 128>}, {pipeline_mode = #tpu.pipeline_mode<synchronous>, transform_indices = @transform_7, window_bounds = array<i64: 1, 128>}, {pipeline_mode = #tpu.pipeline_mode<synchronous>, transform_indices = @transform_8, window_bounds = array<i64: 1, 1>}, {transform_indices = @transform_9, window_bounds = array<i64: 56, 1>}]} {
    %c0 = arith.constant 0 : index
    %c0_0 = arith.constant 0 : index
    %0 = vector.load %arg1[%c0, %c0_0] : memref<56x784xbf16, #tpu.memory_space<vmem>>, vector<56x784xbf16>
    %c0_1 = arith.constant 0 : index
    %c0_2 = arith.constant 0 : index
    %1 = vector.load %arg2[%c0_1, %c0_2] : memref<784x1024xbf16, #tpu.memory_space<vmem>>, vector<784x1024xbf16>
    %cst = arith.constant dense<0.000000e+00> : vector<56x1024xf32>
    %2 = tpu.matmul %0, %1, %cst {dimension_numbers = #tpu.dot_dimension_numbers<[1], [0], [0], [1], [0, 0, 1, 1], [], []>} : vector<56x784xbf16>, vector<784x1024xbf16>, vector<56x1024xf32> -> vector<56x1024xf32>
    %c0_3 = arith.constant 0 : index
    %c0_4 = arith.constant 0 : index
    %3 = vector.load %arg3[%c0_3, %c0_4] : memref<1x1024xf32, #tpu.memory_space<vmem>>, vector<1x1024xf32>
    %4 = vector.broadcast %3 : vector<1x1024xf32> to vector<56x1024xf32>
    %5 = arith.addf %2, %4 : vector<56x1024xf32>
    %cst_5 = arith.constant 0.000000e+00 : f32
    %6 = vector.broadcast %cst_5 : f32 to vector<56x1024xf32>
    %7 = arith.cmpf ogt, %5, %6 : vector<56x1024xf32>
    %8 = math.exp %5 : vector<56x1024xf32>
    %cst_6 = arith.constant 1.000000e+00 : f32
    %9 = vector.broadcast %cst_6 : f32 to vector<56x1024xf32>
    %10 = arith.subf %8, %9 : vector<56x1024xf32>
    %cst_7 = arith.constant 1.67326319 : f32
    %11 = vector.broadcast %cst_7 : f32 to vector<56x1024xf32>
    %12 = arith.mulf %11, %10 : vector<56x1024xf32>
    %13 = arith.select %7, %5, %12 : vector<56x1024xi1>, vector<56x1024xf32>
    %cst_8 = arith.constant 1.05070102 : f32
    %14 = vector.broadcast %cst_8 : f32 to vector<56x1024xf32>
    %15 = arith.mulf %14, %13 : vector<56x1024xf32>
    %16 = arith.truncf %15 : vector<56x1024xf32> to vector<56x1024xbf16>
    %c0_9 = arith.constant 0 : index
    %c0_10 = arith.constant 0 : index
    %17 = vector.load %arg4[%c0_9, %c0_10] : memref<1024x512xbf16, #tpu.memory_space<vmem>>, vector<1024x512xbf16>
    %cst_11 = arith.constant dense<0.000000e+00> : vector<56x512xf32>
    %18 = tpu.matmul %16, %17, %cst_11 {dimension_numbers = #tpu.dot_dimension_numbers<[1], [0], [0], [1], [0, 0, 1, 1], [], []>} : vector<56x1024xbf16>, vector<1024x512xbf16>, vector<56x512xf32> -> vector<56x512xf32>
    %c0_12 = arith.constant 0 : index
    %c0_13 = arith.constant 0 : index
    %19 = vector.load %arg5[%c0_12, %c0_13] : memref<1x512xf32, #tpu.memory_space<vmem>>, vector<1x512xf32>
    %20 = vector.broadcast %19 : vector<1x512xf32> to vector<56x512xf32>
    %21 = arith.addf %18, %20 : vector<56x512xf32>
    %cst_14 = arith.constant 0.000000e+00 : f32
    %22 = vector.broadcast %cst_14 : f32 to vector<56x512xf32>
    %23 = arith.cmpf ogt, %21, %22 : vector<56x512xf32>
    %24 = math.exp %21 : vector<56x512xf32>
    %cst_15 = arith.constant 1.000000e+00 : f32
    %25 = vector.broadcast %cst_15 : f32 to vector<56x512xf32>
    %26 = arith.subf %24, %25 : vector<56x512xf32>
    %cst_16 = arith.constant 1.67326319 : f32
    %27 = vector.broadcast %cst_16 : f32 to vector<56x512xf32>
    %28 = arith.mulf %27, %26 : vector<56x512xf32>
    %29 = arith.select %23, %21, %28 : vector<56x512xi1>, vector<56x512xf32>
    %cst_17 = arith.constant 1.05070102 : f32
    %30 = vector.broadcast %cst_17 : f32 to vector<56x512xf32>
    %31 = arith.mulf %30, %29 : vector<56x512xf32>
    %32 = arith.truncf %31 : vector<56x512xf32> to vector<56x512xbf16>
    %c0_18 = arith.constant 0 : index
    %c0_19 = arith.constant 0 : index
    %33 = vector.load %arg6[%c0_18, %c0_19] : memref<512x128xbf16, #tpu.memory_space<vmem>>, vector<512x128xbf16>
    %cst_20 = arith.constant dense<0.000000e+00> : vector<56x128xf32>
    %34 = tpu.matmul %32, %33, %cst_20 {dimension_numbers = #tpu.dot_dimension_numbers<[1], [0], [0], [1], [0, 0, 1, 1], [], []>} : vector<56x512xbf16>, vector<512x128xbf16>, vector<56x128xf32> -> vector<56x128xf32>
    %c0_21 = arith.constant 0 : index
    %c0_22 = arith.constant 0 : index
    %35 = vector.load %arg7[%c0_21, %c0_22] : memref<1x128xf32, #tpu.memory_space<vmem>>, vector<1x128xf32>
    %36 = vector.broadcast %35 : vector<1x128xf32> to vector<56x128xf32>
    %37 = arith.addf %34, %36 : vector<56x128xf32>
    %cst_23 = arith.constant 0.000000e+00 : f32
    %38 = vector.broadcast %cst_23 : f32 to vector<56x128xf32>
    %39 = arith.cmpf ogt, %37, %38 : vector<56x128xf32>
    %40 = math.exp %37 : vector<56x128xf32>
    %cst_24 = arith.constant 1.000000e+00 : f32
    %41 = vector.broadcast %cst_24 : f32 to vector<56x128xf32>
    %42 = arith.subf %40, %41 : vector<56x128xf32>
    %cst_25 = arith.constant 1.67326319 : f32
    %43 = vector.broadcast %cst_25 : f32 to vector<56x128xf32>
    %44 = arith.mulf %43, %42 : vector<56x128xf32>
    %45 = arith.select %39, %37, %44 : vector<56x128xi1>, vector<56x128xf32>
    %cst_26 = arith.constant 1.05070102 : f32
    %46 = vector.broadcast %cst_26 : f32 to vector<56x128xf32>
    %47 = arith.mulf %46, %45 : vector<56x128xf32>
    %c0_27 = arith.constant 0 : index
    %c0_28 = arith.constant 0 : index
    %48 = vector.load %arg8[%c0_27, %c0_28] : memref<1x128xf32, #tpu.memory_space<vmem>>, vector<1x128xf32>
    %49 = vector.broadcast %48 : vector<1x128xf32> to vector<56x128xf32>
    %50 = arith.mulf %47, %49 : vector<56x128xf32>
    %cst_29 = arith.constant dense<0.000000e+00> : vector<56xf32>
    %51 = vector.multi_reduction <add>, %50, %cst_29 [1] : vector<56x128xf32> to vector<56xf32>
    %52 = vector.shape_cast %51 : vector<56xf32> to vector<56x1xf32>
    %c0_30 = arith.constant 0 : index
    %c0_31 = arith.constant 0 : index
    %53 = vector.load %arg9[%c0_30, %c0_31] : memref<1x1xf32, #tpu.memory_space<vmem>>, vector<1x1xf32>
    %54 = vector.broadcast %53 : vector<1x1xf32> to vector<56x1xf32>
    %55 = arith.addf %52, %54 : vector<56x1xf32>
    %cst_32 = arith.constant 0.000000e+00 : f32
    %56 = vector.broadcast %cst_32 : f32 to vector<56x1xf32>
    %57 = arith.subf %56, %55 : vector<56x1xf32>
    %58 = math.exp %57 : vector<56x1xf32>
    %cst_33 = arith.constant 1.000000e+00 : f32
    %59 = vector.broadcast %cst_33 : f32 to vector<56x1xf32>
    %60 = arith.addf %59, %58 : vector<56x1xf32>
    %cst_34 = arith.constant 1.000000e+00 : f32
    %61 = vector.broadcast %cst_34 : f32 to vector<56x1xf32>
    %62 = arith.divf %61, %60 : vector<56x1xf32>
    %c0_35 = arith.constant 0 : index
    %c0_36 = arith.constant 0 : index
    %63 = vector.load %arg10[%c0_35, %c0_36] : memref<56x1xf32, #tpu.memory_space<vmem>>, vector<56x1xf32>
    tpu.vector_store %arg10[%c0_35, %c0_36], %62 {strides = array<i32>} : memref<56x1xf32, #tpu.memory_space<vmem>>, vector<56x1xf32>,
    return
  }
  func.func @transform_0(%arg0: i32) -> (i32, i32) {
    %c0_i32 = arith.constant 0 : i32
    %c0_i32_0 = arith.constant 0 : i32
    return %arg0, %c0_i32 : i32, i32
  }
  func.func @transform_1(%arg0: i32) -> (i32, i32) {
    %c0_i32 = arith.constant 0 : i32
    %c0_i32_0 = arith.constant 0 : i32
    %c0_i32_1 = arith.constant 0 : i32
    return %c0_i32, %c0_i32_0 : i32, i32
  }
  func.func @transform_2(%arg0: i32) -> (i32, i32) {
    %c0_i32 = arith.constant 0 : i32
    %c0_i32_0 = arith.constant 0 : i32
    %c0_i32_1 = arith.constant 0 : i32
    return %c0_i32, %c0_i32_0 : i32, i32
  }
  func.func @transform_3(%arg0: i32) -> (i32, i32) {
    %c0_i32 = arith.constant 0 : i32
    %c0_i32_0 = arith.constant 0 : i32
    %c0_i32_1 = arith.constant 0 : i32
    return %c0_i32, %c0_i32_0 : i32, i32
  }
  func.func @transform_4(%arg0: i32) -> (i32, i32) {
    %c0_i32 = arith.constant 0 : i32
    %c0_i32_0 = arith.constant 0 : i32
    %c0_i32_1 = arith.constant 0 : i32
    return %c0_i32, %c0_i32_0 : i32, i32
  }
  func.func @transform_5(%arg0: i32) -> (i32, i32) {
    %c0_i32 = arith.constant 0 : i32
    %c0_i32_0 = arith.constant 0 : i32
    %c0_i32_1 = arith.constant 0 : i32
    return %c0_i32, %c0_i32_0 : i32, i32
  }
  func.func @transform_6(%arg0: i32) -> (i32, i32) {
    %c0_i32 = arith.constant 0 : i32
    %c0_i32_0 = arith.constant 0 : i32
    %c0_i32_1 = arith.constant 0 : i32
    return %c0_i32, %c0_i32_0 : i32, i32
  }
  func.func @transform_7(%arg0: i32) -> (i32, i32) {
    %c0_i32 = arith.constant 0 : i32
    %c0_i32_0 = arith.constant 0 : i32
    %c0_i32_1 = arith.constant 0 : i32
    return %c0_i32, %c0_i32_0 : i32, i32
  }
  func.func @transform_8(%arg0: i32) -> (i32, i32) {
    %c0_i32 = arith.constant 0 : i32
    %c0_i32_0 = arith.constant 0 : i32
    %c0_i32_1 = arith.constant 0 : i32
    return %c0_i32, %c0_i32_0 : i32, i32
  }
  func.func @transform_9(%arg0: i32) -> (i32, i32) {
    %c0_i32 = arith.constant 0 : i32
    %c0_i32_0 = arith.constant 0 : i32
    return %arg0, %c0_i32 : i32, i32
  }
}

</mosaic_0001>

<bundles_post_ra>
// kernel: tpu_custom_call.1
= control target key start
LH: loop header
LB: loop body
LE: loop exit
PB: predicated region body
PF: predicated region fallthrough
CT: control target
= control target key end

     0   :  { %s13664_s0 = inlined_call_operand.hbm [shape: bf16[56,784], index: 0, kind: input, shape index: {}]   ;;  %s13665_s1 = inlined_call_operand.hbm [shape: bf16[784,1024], index: 1, kind: input, shape index: {}]   ;;  %s13666_s2 = inlined_call_operand.hbm [shape: f32[1,1024], index: 2, kind: input, shape index: {}]   ;;  %s13667_s3 = inlined_call_operand.hbm [shape: bf16[1024,512], index: 3, kind: input, shape index: {}]   ;;  %s13668_s4 = inlined_call_operand.hbm [shape: f32[1,512], index: 4, kind: input, shape index: {}]   ;;  %s13669_s5 = inlined_call_operand.hbm [shape: bf16[512,128], index: 5, kind: input, shape index: {}]   ;;  %s13670_s6 = inlined_call_operand.hbm [shape: f32[1,128], index: 6, kind: input, shape index: {}]   ;;  %s13671_s7 = inlined_call_operand.hbm [shape: f32[1,128], index: 7, kind: input, shape index: {}]   ;;  %s13672_s8 = inlined_call_operand.<no memory space> [shape: f32[1,1], index: 8, kind: input, shape index: {}]   ;;  %s13673_s9 = inlined_call_operand.vmem [shape: f32[56,1], index: 9, kind: output, shape index: {}]  }
   0x1   :  { %v14_v0 = vstv %s13672_s8 }
   0x2   :  { %15 = vst [vmem:[#allocation2] sm:$0x1] %v14_v0 }
   0x3   :  { %16 = vsyncpa [#allocation4], 0 }
   0x4   :  { %17 = vsyncpa [#allocation6], 0 }
   0x5   :  { %18 = vsyncpa [#allocation9], 0 }
   0x6   :  { %19 = vsyncpa [#allocation12], 0  ;;  %s38_s13 = sshll.u32 %s13665_s1, 4  ;;  %s39_s13 = int_to_ptr.hbm [resolvable:$true] %s38_s13 }
   0x7   :  { %20 = vsyncpa [#allocation15], 0  ;;  %s12008_s14 = smov [#allocation5]   ;;  %s62_s18 = sshll.u32 %s13667_s3, 4  ;;  %s63_s18 = int_to_ptr.hbm [resolvable:$true] %s62_s18 }
   0x8   :  { %s40_s15 = sshll.u32 %s12008_s14, 4  ;;  %s12009_s19 = smov 512   ;;  %s41_s15 = int_to_ptr.vmem [resolvable:$true] %s40_s15 }
   0x9   :  { %s12010_s8 = smov 32   ;;  %s12011_s20 = smov [#allocation8]  }
   0xa   :  { %46 = dma.hbm_to_vmem [thread:$0]  %s39_s13, 50176, %s41_s15, [#allocation6], %s12009_s19, %s12009_s19, %s12010_s8  }
   0xb   :  { %s64_s21 = sshll.u32 %s12011_s20, 4  ;;  %s12012_s22 = smov 256   ;;  %s65_s21 = int_to_ptr.vmem [resolvable:$true] %s64_s21 }
   0xc   :  { %s12013_s23 = smov 16   ;;  %s86_s25 = sshll.u32 %s13669_s5, 4  ;;  %s87_s25 = int_to_ptr.hbm [resolvable:$true] %s86_s25 }
   0xd   :  { %70 = dma.hbm_to_vmem [thread:$0]  %s63_s18, 32768, %s65_s21, [#allocation9], %s12012_s22, %s12012_s22, %s12013_s23  }
   0xe   :  { %s12014_s26 = smov [#allocation11]   ;;  %s25_s29 = sshll.u32 %s13664_s0, 4  ;;  %s26_s29 = int_to_ptr.hbm [resolvable:$true] %s25_s29 }
   0xf   :  { %s88_s27 = sshll.u32 %s12014_s26, 4  ;;  %s12015_s30 = smov 64   ;;  %s89_s27 = int_to_ptr.vmem [resolvable:$true] %s88_s27 }
  0x10   :  { %s12016_s10 = smov 4   ;;  %s12017_s11 = smov [#allocation3]  }
  0x11   :  { %94 = dma.hbm_to_vmem [thread:$0]  %s87_s25, 4096, %s89_s27, [#allocation12], %s12015_s30, %s12015_s30, %s12016_s10  }
  0x12   :  { %s27_s12 = sshll.u32 %s12017_s11, 4  ;;  %s12018_s13 = smov 448   ;;  %s28_s12 = int_to_ptr.vmem [resolvable:$true] %s27_s12 }
  0x13   :  { %s12019_s14 = smov 28   ;;  %s52_s16 = sshll.u32 %s13666_s2, 4  ;;  %s53_s16 = int_to_ptr.hbm [resolvable:$true] %s52_s16 }
  0x14   :  { %33 = dma.hbm_to_vmem [thread:$0]  %s26_s29, 3136, %s28_s12, [#allocation4], %s12018_s13, %s12018_s13, %s12019_s14  }
  0x15   :  { %s12020_s17 = smov [#allocation7]   ;;  %s76_s8 = sshll.u32 %s13668_s4, 4  ;;  %s77_s8 = int_to_ptr.hbm [resolvable:$true] %s76_s8 }
  0x16   :  { %s54_s18 = sshll.u32 %s12020_s17, 4  ;;  %s12021_s20 = smov [#allocation10]   ;;  %s55_s18 = int_to_ptr.vmem [resolvable:$true] %s54_s18 }
  0x17   :  { %57 = dma.hbm_to_vmem [thread:$0]  %s53_s16, 128, %s55_s18, [#allocation6]  }
  0x18   :  { %s78_s21 = sshll.u32 %s12021_s20, 4  ;;  %s100_s1 = sshll.u32 %s13670_s6, 4  ;;  %s79_s21 = int_to_ptr.vmem [resolvable:$true] %s78_s21  ;;  %s101_s1 = int_to_ptr.hbm [resolvable:$true] %s100_s1 }
  0x19   :  { %81 = dma.hbm_to_vmem [thread:$0]  %s77_s8, 64, %s79_s21, [#allocation9]  }
  0x1a   :  { %s111_s25 = sshll.u32 %s13671_s7, 4  ;;  %s12022_s26 = smov [#allocation13]   ;;  %s112_s25 = int_to_ptr.hbm [resolvable:$true] %s111_s25 }
  0x1b   :  { %s102_s27 = sshll.u32 %s12022_s26, 4  ;;  %s12023_s4 = smov [#allocation14]   ;;  %s103_s27 = int_to_ptr.vmem [resolvable:$true] %s102_s27 }
  0x1c   :  { %105 = dma.hbm_to_vmem [thread:$0]  %s101_s1, 16, %s103_s27, [#allocation12]  }
  0x1d   :  { %s113_s28 = sshll.u32 %s12023_s4, 4  ;;  %s114_s28 = int_to_ptr.vmem [resolvable:$true] %s113_s28 }
  0x1e   :  { %116 = dma.hbm_to_vmem [thread:$0]  %s112_s25, 16, %s114_s28, [#allocation15]  }
  0x1f   :  { %11998 = dma.done.wait [#allocation4], 3136  }
  0x20   :  { %11999 = vsyncadd [#allocation4], 4294964160 }
  0x21   :  { %12000 = dma.done.wait [#allocation6], 50304  }
  0x22   :  { %12001 = vsyncadd [#allocation6], 4294916992 }
  0x23   :  { %12002 = dma.done.wait [#allocation9], 32832  }
  0x24   :  { %12003 = vsyncadd [#allocation9], 4294934464 }
  0x25   :  { %12004 = dma.done.wait [#allocation12], 4112  }
  0x26   :  { %12005 = vsyncadd [#allocation12], 4294963184 }
  0x27   :  { %12006 = dma.done.wait [#allocation15], 16  }
  0x28   :  { %12007 = vsyncadd [#allocation15], 4294967280  ;;  %v8255_v1 = vld [vmem:[#allocation5 + $0x1c0] sm:$0xf]  ;;  %vm2679_vm0 = vcmask 130048  }
  0x29   :  { %v10953_v2 = vld [vmem:[#allocation5 + $0x1dc] sm:$0xf0] }
  0x2a   :  { %v8511_v3 = vld [vmem:[#allocation5 + $0x3c0] sm:$0xf]  ;;  %v8256_v4 = vor.u32 %v10953_v2, %v8255_v1 }
  0x2b   :  { %v11017_v5 = vld [vmem:[#allocation5 + $0x3dc] sm:$0xf0] }
  0x2c   :  { %v8767_v6 = vld [vmem:[#allocation5 + $0x5c0] sm:$0xf]  ;;  %v8512_v8 = vor.u32 %v11017_v5, %v8511_v3  ;;  %2692 = vmatpush.bf16.msra.mxu0 %v8256_v4 }
  0x2d   :  { %v11081_v7 = vld [vmem:[#allocation5 + $0x5dc] sm:$0xf0] }
  0x2e   :  { %v8768_v9 = vor.u32 %v11081_v7, %v8767_v6  ;;  %v9023_v10 = vld [vmem:[#allocation5 + $0x7c0] sm:$0xf]  ;;  %2720 = vmatpush.bf16.msra.mxu1 %v8512_v8 }
  0x2f   :  { %v11145_v11 = vld [vmem:[#allocation5 + $0x7dc] sm:$0xf0] }
  0x30   :  { %v8223_v12 = vld [vmem:[#allocation5 + $0x180] sm:$0xf]  ;;  %v9024_v13 = vor.u32 %v11145_v11, %v9023_v10  ;;  %2748 = vmatpush.bf16.msra.mxu2 %v8768_v9 }
  0x31   :  { %v10945_v14 = vld [vmem:[#allocation5 + $0x19c] sm:$0xf0] }
  0x32   :  { %v8479_v15 = vld [vmem:[#allocation5 + $0x380] sm:$0xf]  ;;  %v8224_v17 = vor.u32 %v10945_v14, %v8223_v12  ;;  %2776 = vmatpush.bf16.msra.mxu3 %v9024_v13 }
  0x33   :  { %v11009_v16 = vld [vmem:[#allocation5 + $0x39c] sm:$0xf0] }
  0x34   :  { %v8480_v18 = vor.u32 %v11009_v16, %v8479_v15  ;;  %v8735_v19 = vld [vmem:[#allocation5 + $0x580] sm:$0xf]  ;;  %2693 = vmatpush.bf16.msra.mxu0 %v8224_v17 }
  0x35   :  { %v11073_v20 = vld [vmem:[#allocation5 + $0x59c] sm:$0xf0] }
  0x36   :  { %v8991_v21 = vld [vmem:[#allocation5 + $0x780] sm:$0xf]  ;;  %v8736_v22 = vor.u32 %v11073_v20, %v8735_v19  ;;  %2721 = vmatpush.bf16.msra.mxu1 %v8480_v18 }
  0x37   :  { %v11137_v23 = vld [vmem:[#allocation5 + $0x79c] sm:$0xf0] }
  0x38   :  { %v8191_v24 = vld [vmem:[#allocation5 + $0x140] sm:$0xf]  ;;  %v8992_v26 = vor.u32 %v11137_v23, %v8991_v21  ;;  %2749 = vmatpush.bf16.msra.mxu2 %v8736_v22 }
  0x39   :  { %v10937_v25 = vld [vmem:[#allocation5 + $0x15c] sm:$0xf0] }
  0x3a   :  { %v8447_v27 = vld [vmem:[#allocation5 + $0x340] sm:$0xf]  ;;  %v8192_v30 = vor.u32 %v10937_v25, %v8191_v24  ;;  %2777 = vmatpush.bf16.msra.mxu3 %v8992_v26 }
  0x3b   :  { %v11001_v28 = vld [vmem:[#allocation5 + $0x35c] sm:$0xf0] }
  0x3c   :  { %v8703_v29 = vld [vmem:[#allocation5 + $0x540] sm:$0xf]  ;;  %v8448_v34 = vor.u32 %v11001_v28, %v8447_v27  ;;  %2694 = vmatpush.bf16.msra.mxu0 %v8192_v30  ;;  %v10875_v30 = vld [vmem:[#allocation3 + $0x18] sm:$0xf0] }
  0x3d   :  { %v11065_v31 = vld [vmem:[#allocation5 + $0x55c] sm:$0xf0] }
  0x3e   :  { %v8959_v32 = vld [vmem:[#allocation5 + $0x740] sm:$0xf]  ;;  %v8704_v35 = vor.u32 %v11065_v31, %v8703_v29  ;;  %2722 = vmatpush.bf16.msra.mxu1 %v8448_v34  ;;  %v7947_v29 = vld [vmem:[#allocation3] sm:$0xf] }
  0x3f   :  { %v11129_v33 = vld [vmem:[#allocation5 + $0x75c] sm:$0xf0] }
  0x40   :  { %v8159_v36 = vld [vmem:[#allocation5 + $0x100] sm:$0xf]  ;;  %v8960_v39 = vor.u32 %v11129_v33, %v8959_v32  ;;  %2750 = vmatpush.bf16.msra.mxu2 %v8704_v35  ;;  %v7949_v35 = vld [vmem:[#allocation3 + $0x1c] sm:$0xf0] }
  0x41   :  { %v10929_v37 = vld [vmem:[#allocation5 + $0x11c] sm:$0xf0] }
  0x42   :  { %v8415_v38 = vld [vmem:[#allocation5 + $0x300] sm:$0xf]  ;;  %v8160_v45 = vor.u32 %v10929_v37, %v8159_v36  ;;  %2778 = vmatpush.bf16.msra.mxu3 %v8960_v39  ;;  %v10949_v36 = vld [vmem:[#allocation5 + $0x1c4] sm:$0xf] }
  0x43   :  { %v10993_v40 = vld [vmem:[#allocation5 + $0x31c] sm:$0xf0]  ;;  %v8257_v37 = vld [vmem:[#allocation5 + $0x1e0] sm:$0xf0] }
  0x44   :  { %v8671_v41 = vld [vmem:[#allocation5 + $0x500] sm:$0xf]  ;;  %v8416_v46 = vor.u32 %v10993_v40, %v8415_v38  ;;  %2695 = vmatpush.bf16.msra.mxu0 %v8160_v45  ;;  %v7955_v40 = vld [vmem:[#allocation3 + $0x8] sm:$0xf] }
  0x45   :  { %v11057_v42 = vld [vmem:[#allocation5 + $0x51c] sm:$0xf0] }
  0x46   :  { %v8927_v43 = vld [vmem:[#allocation5 + $0x700] sm:$0xf]  ;;  %v8672_v47 = vor.u32 %v11057_v42, %v8671_v41  ;;  %2723 = vmatpush.bf16.msra.mxu1 %v8416_v46  ;;  %v10873_v42 = vld [vmem:[#allocation3 + $0xc] sm:$0xf] }
  0x47   :  { %v11121_v44 = vld [vmem:[#allocation5 + $0x71c] sm:$0xf0] }
  0x48   :  { %v8127_v48 = vld [vmem:[#allocation5 + $0xc0] sm:$0xf]  ;;  %v8928_v51 = vor.u32 %v11121_v44, %v8927_v43  ;;  %2751 = vmatpush.bf16.msra.mxu2 %v8672_v47  ;;  %v7957_v44 = vld [vmem:[#allocation3 + $0x24] sm:$0xf0] }
  0x49   :  { %v10921_v49 = vld [vmem:[#allocation5 + $0xdc] sm:$0xf0] }
  0x4a   :  { %v8383_v50 = vld [vmem:[#allocation5 + $0x2c0] sm:$0xf]  ;;  %v8128_v57 = vor.u32 %v10921_v49, %v8127_v48  ;;  %2779 = vmatpush.bf16.msra.mxu3 %v8928_v51  ;;  %v12101_v48 = vor.u32 %v10875_v30, %v7947_v29  ;;  %v8260_v49 = vor.u32 %v10949_v36, %v8257_v37 }
  0x4b   :  { %v10985_v52 = vld [vmem:[#allocation5 + $0x2dc] sm:$0xf0] }
  0x4c   :  { %v8639_v53 = vld [vmem:[#allocation5 + $0x4c0] sm:$0xf]  ;;  %v8384_v58 = vor.u32 %v10985_v52, %v8383_v50  ;;  %2696 = vmatpush.bf16.msra.mxu0 %v8128_v57 }
  0x4d   :  { %v11049_v54 = vld [vmem:[#allocation5 + $0x4dc] sm:$0xf0] }
  0x4e   :  { %v8895_v55 = vld [vmem:[#allocation5 + $0x6c0] sm:$0xf]  ;;  %v8640_v59 = vor.u32 %v11049_v54, %v8639_v53  ;;  %2724 = vmatpush.bf16.msra.mxu1 %v8384_v58  ;;  %v10941_v54 = vld [vmem:[#allocation5 + $0x184] sm:$0xf] }
  0x4f   :  { %v11113_v56 = vld [vmem:[#allocation5 + $0x6dc] sm:$0xf0] }
  0x50   :  { %v8095_v60 = vld [vmem:[#allocation5 + $0x80] sm:$0xf]  ;;  %v8896_v63 = vor.u32 %v11113_v56, %v8895_v55  ;;  %2752 = vmatpush.bf16.msra.mxu2 %v8640_v59  ;;  %v8225_v55 = vld [vmem:[#allocation5 + $0x1a0] sm:$0xf0]  ;;  %v12107_v56 = vor.u32 %v10873_v42, %v7957_v44 }
  0x51   :  { %v10913_v61 = vld [vmem:[#allocation5 + $0x9c] sm:$0xf0] }
  0x52   :  { %v8351_v62 = vld [vmem:[#allocation5 + $0x280] sm:$0xf]  ;;  %v8096_v5 = vor.u32 %v10913_v61, %v8095_v60  ;;  %2780 = vmatpush.bf16.msra.mxu3 %v8896_v63  ;;  %v8228_v61 = vor.u32 %v10941_v54, %v8225_v55 }
  0x53   :  { %v10977_v0 = vld [vmem:[#allocation5 + $0x29c] sm:$0xf0] }
  0x54   :  { %v8607_v1 = vld [vmem:[#allocation5 + $0x480] sm:$0xf]  ;;  %v8352_v6 = vor.u32 %v10977_v0, %v8351_v62  ;;  %2697 = vmatpush.bf16.msra.mxu0 %v8096_v5  ;;  %v10933_v0 = vld [vmem:[#allocation5 + $0x144] sm:$0xf] }
  0x55   :  { %v11041_v2 = vld [vmem:[#allocation5 + $0x49c] sm:$0xf0] }
  0x56   :  { %v8863_v3 = vld [vmem:[#allocation5 + $0x680] sm:$0xf]  ;;  %v8608_v7 = vor.u32 %v11041_v2, %v8607_v1  ;;  %2725 = vmatpush.bf16.msra.mxu1 %v8352_v6  ;;  %v8193_v1 = vld [vmem:[#allocation5 + $0x160] sm:$0xf0] }
  0x57   :  { %v11105_v4 = vld [vmem:[#allocation5 + $0x69c] sm:$0xf0]  ;;  %v8196_v6 = vor.u32 %v10933_v0, %v8193_v1 }
  0x58   :  { %v8063_v8 = vld [vmem:[#allocation5 + $0x40] sm:$0xf]  ;;  %v8864_v11 = vor.u32 %v11105_v4, %v8863_v3  ;;  %2753 = vmatpush.bf16.msra.mxu2 %v8608_v7 }
  0x59   :  { %v10905_v9 = vld [vmem:[#allocation5 + $0x5c] sm:$0xf0] }
  0x5a   :  { %v8319_v10 = vld [vmem:[#allocation5 + $0x240] sm:$0xf]  ;;  %v8064_v18 = vor.u32 %v10905_v9, %v8063_v8  ;;  %2781 = vmatpush.bf16.msra.mxu3 %v8864_v11  ;;  %v10925_v9 = vld [vmem:[#allocation5 + $0x104] sm:$0xf] }
  0x5b   :  { %v10969_v12 = vld [vmem:[#allocation5 + $0x25c] sm:$0xf0] }
  0x5c   :  { %v8575_v13 = vld [vmem:[#allocation5 + $0x440] sm:$0xf]  ;;  %v8320_v22 = vor.u32 %v10969_v12, %v8319_v10  ;;  %2698 = vmatpush.bf16.msra.mxu0 %v8064_v18  ;;  %v8161_v10 = vld [vmem:[#allocation5 + $0x120] sm:$0xf0]  ;;  %v7975_v12 = vld [vmem:[#allocation3 + $0x38] sm:$0xf] }
  0x5d   :  { %v11033_v14 = vld [vmem:[#allocation5 + $0x45c] sm:$0xf0]  ;;  %v10879_v18 = vld [vmem:[#allocation3 + $0x3c] sm:$0xf] }
  0x5e   :  { %v8831_v15 = vld [vmem:[#allocation5 + $0x640] sm:$0xf]  ;;  %v8576_v23 = vor.u32 %v11033_v14, %v8575_v13  ;;  %2726 = vmatpush.bf16.msra.mxu1 %v8320_v22  ;;  %v10882_v13 = vld [vmem:[#allocation3 + $0x50] sm:$0xf0]  ;;  %v10917_v22 = vld [vmem:[#allocation5 + $0xc4] sm:$0xf] }
  0x5f   :  { %v11097_v16 = vld [vmem:[#allocation5 + $0x65c] sm:$0xf0] }
  0x60   :  { %v8031_v17 = vld [vmem:[#allocation5] sm:$0xf]  ;;  %v8832_v27 = vor.u32 %v11097_v16, %v8831_v15  ;;  %2754 = vmatpush.bf16.msra.mxu2 %v8576_v23  ;;  %v8129_v23 = vld [vmem:[#allocation5 + $0xe0] sm:$0xf0] }
  0x61   :  { %v10897_v19 = vld [vmem:[#allocation5 + $0x1c] sm:$0xf0] }
  0x62   :  { %v8287_v20 = vld [vmem:[#allocation5 + $0x200] sm:$0xf]  ;;  %v8032_v34 = vor.u32 %v10897_v19, %v8031_v17  ;;  %2782 = vmatpush.bf16.msra.mxu3 %v8832_v27  ;;  %v7977_v19 = vld [vmem:[#allocation3 + $0x54] sm:$0xf0] }
  0x63   :  { %v10961_v21 = vld [vmem:[#allocation5 + $0x21c] sm:$0xf0]  ;;  %v12115_v36 = vor.u32 %v10879_v18, %v7977_v19 }
  0x64   :  { %v8543_v24 = vld [vmem:[#allocation5 + $0x400] sm:$0xf]  ;;  %v8288_v38 = vor.u32 %v10961_v21, %v8287_v20  ;;  %2699 = vmatpush.bf16.msra.mxu0 %v8032_v34  ;;  %v8164_v20 = vor.u32 %v10925_v9, %v8161_v10  ;;  %v8005_v9 = vld [vmem:[#allocation3 + $0x8c] sm:$0xf0]  ;;  %v8011_v10 = vld [vmem:[#allocation3 + $0x78] sm:$0xf] }
  0x65   :  { %v11025_v25 = vld [vmem:[#allocation5 + $0x41c] sm:$0xf0] }
  0x66   :  { %v8799_v26 = vld [vmem:[#allocation5 + $0x600] sm:$0xf]  ;;  %v8544_v39 = vor.u32 %v11025_v25, %v8543_v24  ;;  %2727 = vmatpush.bf16.msra.mxu1 %v8288_v38  ;;  %v7983_v24 = vld [vmem:[#allocation3 + $0x40] sm:$0xf]  ;;  %v10883_v25 = vld [vmem:[#allocation3 + $0x58] sm:$0xf0] }
  0x67   :  { %v11089_v28 = vld [vmem:[#allocation5 + $0x61c] sm:$0xf0]  ;;  %2700 = vmatmul.bf16.vlgmr.msra.gmra.mxu0 %v12101_v48  ;;  %v12117_v37 = vor.u32 %v10883_v25, %v7983_v24  ;;  %v10909_v38 = vld [vmem:[#allocation5 + $0x84] sm:$0xf] }
  0x68   :  { %v10872_v31 = vld [vmem:[#allocation3 + $0x4] sm:$0xf]  ;;  %v8800_v43 = vor.u32 %v11089_v28, %v8799_v26  ;;  %2755 = vmatpush.bf16.msra.mxu2 %v8544_v39  ;;  %v7985_v28 = vld [vmem:[#allocation3 + $0x5c] sm:$0xf0]  ;;  %v8097_v39 = vld [vmem:[#allocation5 + $0xa0] sm:$0xf0] }
  0x69   :  { %v9567_v32 = vld [vmem:[#allocation5 + $0xc00] sm:$0xf]  ;;  %v12103_v52 = vor.u32 %v10872_v31, %v7949_v35  ;;  %v8513_v25 = vld [vmem:[#allocation5 + $0x3e0] sm:$0xf0] }
  0x6a   :  { %v11281_v33 = vld [vmem:[#allocation5 + $0xc1c] sm:$0xf0]  ;;  %2783 = vmatpush.bf16.msra.mxu3 %v8800_v43 }
  0x6b   :  { %v10876_v41 = vld [vmem:[#allocation3 + $0x20] sm:$0xf0]  ;;  %v9568_v45 = vor.u32 %v11281_v33, %v9567_v32  ;;  %2728 = vmatmul.bf16.vlgmr.msra.gmra.mxu1 %v12103_v52  ;;  %v12113_v32 = vor.u32 %v10882_v13, %v7975_v12  ;;  %v8132_v33 = vor.u32 %v10917_v22, %v8129_v23  ;;  %v10887_v13 = vld [vmem:[#allocation3 + $0x7c] sm:$0xf]  ;;  %v11013_v22 = vld [vmem:[#allocation5 + $0x3c4] sm:$0xf] }
  0x6c   :  { %v9279_v46 = vld [vmem:[#allocation5 + $0x9c0] sm:$0xf]  ;;  %v12105_v53 = vor.u32 %v10876_v41, %v7955_v40  ;;  %v176_v23 = vld [vmem:[#allocation3 + $0xa8] sm:$0xff] }
  0x6d   :  { %v11209_v47 = vld [vmem:[#allocation5 + $0x9dc] sm:$0xf0]  ;;  %2867 = vmatpush.bf16.msrb.mxu2 %v9568_v45  ;;  %2784 = vmatmul.bf16.vlgmr.msra.gmra.mxu3 %v12107_v56  ;;  %v8100_v45 = vor.u32 %v10909_v38, %v8097_v39  ;;  %v8993_v38 = vld [vmem:[#allocation5 + $0x7a0] sm:$0xf0] }
  0x6e   :  { %v9535_v50 = vld [vmem:[#allocation5 + $0xbc0] sm:$0xf]  ;;  %v9280_v57 = vor.u32 %v11209_v47, %v9279_v46  ;;  %2888 = vmatpush.bf16.msrb.mxu3 %v8260_v49  ;;  %2756 = vmatmul.bf16.vlgmr.msra.gmra.mxu2 %v12105_v53  ;;  %v11005_v39 = vld [vmem:[#allocation5 + $0x384] sm:$0xf] }
  0x6f   :  { %v11273_v51 = vld [vmem:[#allocation5 + $0xbdc] sm:$0xf0] }
  0x70   :  { %v9536_v58 = vor.u32 %v11273_v51, %v9535_v50  ;;  %v9247_v59 = vld [vmem:[#allocation5 + $0x980] sm:$0xf]  ;;  %2804 = vmatpush.bf16.msrb.mxu0 %v9280_v57  ;;  %v10901_v50 = vld [vmem:[#allocation5 + $0x44] sm:$0xf] }
  0x71   :  { %v11201_v60 = vld [vmem:[#allocation5 + $0x99c] sm:$0xf0]  ;;  %v8065_v57 = vld [vmem:[#allocation5 + $0x60] sm:$0xf0] }
  0x72   :  { %v9503_v62 = vld [vmem:[#allocation5 + $0xb80] sm:$0xf]  ;;  %v9248_v2 = vor.u32 %v11201_v60, %v9247_v59  ;;  %2832 = vmatpush.bf16.msrb.mxu1 %v9536_v58  ;;  %2889 = vmatpush.bf16.msrb.mxu3 %v8228_v61  ;;  %v8068_v58 = vor.u32 %v10901_v50, %v8065_v57  ;;  %v10893_v61 = vld [vmem:[#allocation5 + $0x4] sm:$0xf]  ;;  %v660_v50 = vunpack.c.l.b16 %v176_v23 }
  0x73   :  { %v11265_v63 = vld [vmem:[#allocation5 + $0xb9c] sm:$0xf0] }
  0x74   :  { %v9504_v3 = vor.u32 %v11265_v63, %v9503_v62  ;;  %v9215_v4 = vld [vmem:[#allocation5 + $0x940] sm:$0xf]  ;;  %2805 = vmatpush.bf16.msrb.mxu0 %v9248_v2  ;;  %v8033_v62 = vld [vmem:[#allocation5 + $0x20] sm:$0xf0] }
  0x75   :  { %v11193_v5 = vld [vmem:[#allocation5 + $0x95c] sm:$0xf0] }
  0x76   :  { %v9471_v7 = vld [vmem:[#allocation5 + $0xb40] sm:$0xf]  ;;  %v9216_v11 = vor.u32 %v11193_v5, %v9215_v4  ;;  %2833 = vmatpush.bf16.msrb.mxu1 %v9504_v3  ;;  %2890 = vmatpush.bf16.msrb.mxu3 %v8196_v6  ;;  %v8036_v3 = vor.u32 %v10893_v61, %v8033_v62  ;;  %v8003_v6 = vld [vmem:[#allocation3 + $0x70] sm:$0xf]  ;;  %v11125_v62 = vld [vmem:[#allocation5 + $0x744] sm:$0xf] }
  0x77   :  { %v11257_v8 = vld [vmem:[#allocation5 + $0xb5c] sm:$0xf0]  ;;  %2705 = vmatmul.bf16.gmra.mxu0 %v12113_v32 }
  0x78   :  { %v9472_v14 = vor.u32 %v11257_v8, %v9471_v7  ;;  %v9183_v15 = vld [vmem:[#allocation5 + $0x900] sm:$0xf]  ;;  %2806 = vmatpush.bf16.msrb.mxu0 %v9216_v11  ;;  %v10889_v7 = vld [vmem:[#allocation3 + $0x88] sm:$0xf0]  ;;  %v10886_v8 = vld [vmem:[#allocation3 + $0x74] sm:$0xf] }
  0x79   :  { %v11185_v16 = vld [vmem:[#allocation5 + $0x91c] sm:$0xf0]  ;;  %v10890_v11 = vld [vmem:[#allocation3 + $0x90] sm:$0xf0] }
  0x7a   :  { %v9439_v17 = vld [vmem:[#allocation5 + $0xb00] sm:$0xf]  ;;  %v9184_v27 = vor.u32 %v11185_v16, %v9183_v15  ;;  %2834 = vmatpush.bf16.msrb.mxu1 %v9472_v14  ;;  %2891 = vmatpush.bf16.msrb.mxu3 %v8164_v20  ;;  %v8013_v14 = vld [vmem:[#allocation3 + $0x94] sm:$0xf0]  ;;  %v12125_v16 = vor.u32 %v10889_v7, %v8003_v6  ;;  %v12129_v18 = vor.u32 %v10890_v11, %v8011_v10  ;;  %v11141_v20 = vld [vmem:[#allocation5 + $0x7c4] sm:$0xf] }
  0x7b   :  { %v11249_v21 = vld [vmem:[#allocation5 + $0xb1c] sm:$0xf0]  ;;  %2733 = vmatmul.bf16.gmra.mxu1 %v12115_v36  ;;  %v12131_v19 = vor.u32 %v10887_v13, %v8013_v14  ;;  %v11061_v7 = vld [vmem:[#allocation5 + $0x544] sm:$0xf] }
  0x7c   :  { %v10880_v26 = vld [vmem:[#allocation3 + $0x44] sm:$0xf]  ;;  %v9440_v29 = vor.u32 %v11249_v21, %v9439_v17  ;;  %2807 = vmatpush.bf16.msrb.mxu0 %v9184_v27  ;;  %v12127_v17 = vor.u32 %v10886_v8, %v8005_v9  ;;  %v9025_v21 = vld [vmem:[#allocation5 + $0x7e0] sm:$0xf0] }
  0x7d   :  { %v9151_v30 = vld [vmem:[#allocation5 + $0x8c0] sm:$0xf]  ;;  %v12119_v40 = vor.u32 %v10880_v26, %v7985_v28  ;;  %v9028_v24 = vor.u32 %v11141_v20, %v9025_v21  ;;  %v11205_v26 = vld [vmem:[#allocation5 + $0x9c4] sm:$0xf]  ;;  %v177_v28 = vld [vmem:[#allocation3 + $0xb0] sm:$0xff] }
  0x7e   :  { %v11177_v31 = vld [vmem:[#allocation5 + $0x8dc] sm:$0xf0]  ;;  %2835 = vmatpush.bf16.msrb.mxu1 %v9440_v29  ;;  %2892 = vmatpush.bf16.msrb.mxu3 %v8132_v33  ;;  %v9281_v27 = vld [vmem:[#allocation5 + $0x9e0] sm:$0xf0]  ;;  %v8516_v29 = vor.u32 %v11013_v22, %v8513_v25  ;;  %v663_v57 = vunpack.c.h.b16 %v177_v28 }
  0x7f   :  { %v9407_v34 = vld [vmem:[#allocation5 + $0xac0] sm:$0xf]  ;;  %v9152_v41 = vor.u32 %v11177_v31, %v9151_v30  ;;  %2761 = vmatmul.bf16.gmra.mxu2 %v12117_v37  ;;  %2789 = vmatmul.bf16.gmra.mxu3 %v12119_v40  ;;  %v9284_v30 = vor.u32 %v11205_v26, %v9281_v27  ;;  %v11077_v31 = vld [vmem:[#allocation5 + $0x5c4] sm:$0xf]  ;;  %v7963_v26 = vld [vmem:[#allocation3 + $0x10] sm:$0xf] }
  0x80   :  { %v11241_v35 = vld [vmem:[#allocation5 + $0xadc] sm:$0xf0]  ;;  %v8769_v33 = vld [vmem:[#allocation5 + $0x5e0] sm:$0xf0]  ;;  %2972 = vmatpush.bf16.msra.mxu2 %v9028_v24  ;;  %v12143_v61 = vpack.c.b16 %v663_v57, %v663_v57  ;;  %v10877_v27 = vld [vmem:[#allocation3 + $0x28] sm:$0xf0] }
  0x81   :  { %v9408_v42 = vor.u32 %v11241_v35, %v9407_v34  ;;  %v9119_v43 = vld [vmem:[#allocation5 + $0x880] sm:$0xf]  ;;  %2808 = vmatpush.bf16.msrb.mxu0 %v9152_v41  ;;  %v11133_v34 = vld [vmem:[#allocation5 + $0x784] sm:$0xf]  ;;  %v8772_v35 = vor.u32 %v11077_v31, %v8769_v33  ;;  %v10878_v31 = vld [vmem:[#allocation3 + $0x30] sm:$0xf0]  ;;  %v12149_v33 = vor.u32 %v10877_v27, %v7963_v26 }
  0x82   :  { %v11169_v44 = vld [vmem:[#allocation5 + $0x89c] sm:$0xf0]  ;;  %2893 = vmatpush.bf16.msrb.mxu3 %v8100_v45  ;;  %v8481_v41 = vld [vmem:[#allocation5 + $0x3a0] sm:$0xf0] }
  0x83   :  { %v9375_v46 = vld [vmem:[#allocation5 + $0xa80] sm:$0xf]  ;;  %v9120_v49 = vor.u32 %v11169_v44, %v9119_v43  ;;  %2836 = vmatpush.bf16.msrb.mxu1 %v9408_v42  ;;  %v8996_v42 = vor.u32 %v11133_v34, %v8993_v38  ;;  %v8484_v43 = vor.u32 %v11005_v39, %v8481_v41  ;;  %v11197_v44 = vld [vmem:[#allocation5 + $0x984] sm:$0xf] }
  0x84   :  { %v11233_v47 = vld [vmem:[#allocation5 + $0xa9c] sm:$0xf0]  ;;  %v9249_v45 = vld [vmem:[#allocation5 + $0x9a0] sm:$0xf0] }
  0x85   :  { %v9376_v51 = vor.u32 %v11233_v47, %v9375_v46  ;;  %v9087_v54 = vld [vmem:[#allocation5 + $0x840] sm:$0xf]  ;;  %2809 = vmatpush.bf16.msrb.mxu0 %v9120_v49  ;;  %v11069_v46 = vld [vmem:[#allocation5 + $0x584] sm:$0xf]  ;;  %v9252_v47 = vor.u32 %v11197_v44, %v9249_v45  ;;  %2973 = vmatpush.bf16.msra.mxu2 %v8996_v42 }
  0x86   :  { %v11161_v55 = vld [vmem:[#allocation5 + $0x85c] sm:$0xf0]  ;;  %2894 = vmatpush.bf16.msrb.mxu3 %v8068_v58  ;;  %v8737_v49 = vld [vmem:[#allocation5 + $0x5a0] sm:$0xf0]  ;;  %v12137_v58 = vpack.c.b16 %v660_v50, %v660_v50 }
  0x87   :  { %v9343_v59 = vld [vmem:[#allocation5 + $0xa40] sm:$0xf]  ;;  %v9088_v63 = vor.u32 %v11161_v55, %v9087_v54  ;;  %2837 = vmatpush.bf16.msrb.mxu1 %v9376_v51  ;;  %2710 = vmatmul.bf16.gmra.mxu0 %v12125_v16  ;;  %v8740_v51 = vor.u32 %v11069_v46, %v8737_v49  ;;  %v661_v54 = vunpack.c.h.b16 %v176_v23  ;;  %v662_v55 = vunpack.c.l.b16 %v177_v28  ;;  %v8705_v8 = vld [vmem:[#allocation5 + $0x560] sm:$0xf0]  ;;  %v10874_v28 = vld [vmem:[#allocation3 + $0x14] sm:$0xf] }
  0x88   :  { %v11225_v60 = vld [vmem:[#allocation5 + $0xa5c] sm:$0xf0]  ;;  %v11117_v9 = vld [vmem:[#allocation5 + $0x704] sm:$0xf]  ;;  %v8708_v10 = vor.u32 %v11061_v7, %v8705_v8 }
  0x89   :  { %v9344_v0 = vor.u32 %v11225_v60, %v9343_v59  ;;  %v9055_v1 = vld [vmem:[#allocation5 + $0x800] sm:$0xf]  ;;  %2810 = vmatpush.bf16.msrb.mxu0 %v9088_v63  ;;  %v12139_v59 = vpack.c.b16 %v661_v54, %v661_v54  ;;  %v12141_v60 = vpack.c.b16 %v662_v55, %v662_v55  ;;  %v8961_v63 = vld [vmem:[#allocation5 + $0x760] sm:$0xf0] }
  0x8a   :  { %v11153_v2 = vld [vmem:[#allocation5 + $0x81c] sm:$0xf0]  ;;  %2895 = vmatpush.bf16.msrb.mxu3 %v8036_v3  ;;  %v11189_v3 = vld [vmem:[#allocation5 + $0x944] sm:$0xf] }
  0x8b   :  { %v9311_v4 = vld [vmem:[#allocation5 + $0xa00] sm:$0xf]  ;;  %v9056_v12 = vor.u32 %v11153_v2, %v9055_v1  ;;  %2838 = vmatpush.bf16.msrb.mxu1 %v9344_v0  ;;  %v10997_v0 = vld [vmem:[#allocation5 + $0x344] sm:$0xf]  ;;  %v8964_v1 = vor.u32 %v11125_v62, %v8961_v63 }
  0x8c   :  { %v11217_v5 = vld [vmem:[#allocation5 + $0xa1c] sm:$0xf0]  ;;  %2738 = vmatmul.bf16.gmra.mxu1 %v12127_v17  ;;  %v8449_v2 = vld [vmem:[#allocation5 + $0x360] sm:$0xf0] }
  0x8d   :  { %v9312_v15 = vor.u32 %v11217_v5, %v9311_v4  ;;  %2811 = vmatpush.bf16.msrb.mxu0 %v9056_v12  ;;  %v9217_v4 = vld [vmem:[#allocation5 + $0x960] sm:$0xf0]  ;;  %v8452_v5 = vor.u32 %v10997_v0, %v8449_v2  ;;  %2974 = vmatpush.bf16.msra.mxu2 %v8964_v1  ;;  %v10884_v8 = vld [vmem:[#allocation3 + $0x60] sm:$0xf0] }
  0x8e   :  { %3000 = vmatpush.bf16.msra.mxu3 %v9284_v30  ;;  %v9220_v6 = vor.u32 %v11189_v3, %v9217_v4  ;;  %v8929_v11 = vld [vmem:[#allocation5 + $0x720] sm:$0xf0]  ;;  %v7971_v30 = vld [vmem:[#allocation3 + $0x18] sm:$0xf] }
  0x8f   :  { %2839 = vmatpush.bf16.msrb.mxu1 %v9312_v15  ;;  %2766 = vmatmul.bf16.gmra.mxu2 %v12129_v18  ;;  %v10989_v12 = vld [vmem:[#allocation5 + $0x304] sm:$0xf]  ;;  %v8932_v14 = vor.u32 %v11117_v9, %v8929_v11  ;;  %v10881_v9 = vld [vmem:[#allocation3 + $0x4c] sm:$0xf]  ;;  %v7999_v11 = vld [vmem:[#allocation3 + $0x50] sm:$0xf] }
  0x90   :  { %2794 = vmatmul.bf16.gmra.mxu3 %v12131_v19  ;;  %v8417_v13 = vld [vmem:[#allocation5 + $0x320] sm:$0xf0] }
  0x91   :  { %2916 = vmatpush.bf16.msra.mxu0 %v8516_v29  ;;  %v8420_v15 = vor.u32 %v10989_v12, %v8417_v13  ;;  %v11181_v20 = vld [vmem:[#allocation5 + $0x904] sm:$0xf]  ;;  %2975 = vmatpush.bf16.msra.mxu2 %v8932_v14  ;;  %v7965_v29 = vld [vmem:[#allocation3 + $0x2c] sm:$0xf0]  ;;  %v10885_v12 = vld [vmem:[#allocation3 + $0x68] sm:$0xf0] }
  0x92   :  { %3001 = vmatpush.bf16.msra.mxu3 %v9252_v47  ;;  %v9185_v21 = vld [vmem:[#allocation5 + $0x920] sm:$0xf0]  ;;  %v12151_v34 = vor.u32 %v10874_v28, %v7965_v29 }
  0x93   :  { %2944 = vmatpush.bf16.msra.mxu1 %v8772_v35  ;;  %v11053_v22 = vld [vmem:[#allocation5 + $0x504] sm:$0xf]  ;;  %v9188_v23 = vor.u32 %v11181_v20, %v9185_v21  ;;  %v12153_v35 = vor.u32 %v10878_v31, %v7971_v30 }
  0x94   :  { %v8673_v24 = vld [vmem:[#allocation5 + $0x520] sm:$0xf0] }
  0x95   :  { %2917 = vmatpush.bf16.msra.mxu0 %v8484_v43  ;;  %v8676_v25 = vor.u32 %v11053_v22, %v8673_v24  ;;  %v11109_v38 = vld [vmem:[#allocation5 + $0x6c4] sm:$0xf] }
  0x96   :  { %3002 = vmatpush.bf16.msra.mxu3 %v9220_v6  ;;  %v8897_v39 = vld [vmem:[#allocation5 + $0x6e0] sm:$0xf0] }
  0x97   :  { %2945 = vmatpush.bf16.msra.mxu1 %v8740_v51  ;;  %2715 = vmatmul.bf16.gmra.mxu0 %v12137_v58  ;;  %v10981_v41 = vld [vmem:[#allocation5 + $0x2c4] sm:$0xf]  ;;  %v8900_v42 = vor.u32 %v11109_v38, %v8897_v39 }
  0x98   :  { %v8385_v43 = vld [vmem:[#allocation5 + $0x2e0] sm:$0xf0] }
  0x99   :  { %2918 = vmatpush.bf16.msra.mxu0 %v8452_v5  ;;  %v11173_v44 = vld [vmem:[#allocation5 + $0x8c4] sm:$0xf]  ;;  %v8388_v46 = vor.u32 %v10981_v41, %v8385_v43  ;;  %2976 = vmatpush.bf16.msra.mxu2 %v8900_v42 }
  0x9a   :  { %3003 = vmatpush.bf16.msra.mxu3 %v9188_v23  ;;  %v9153_v45 = vld [vmem:[#allocation5 + $0x8e0] sm:$0xf0] }
  0x9b   :  { %2946 = vmatpush.bf16.msra.mxu1 %v8708_v10  ;;  %v9156_v47 = vor.u32 %v11173_v44, %v9153_v45  ;;  %v11045_v49 = vld [vmem:[#allocation5 + $0x4c4] sm:$0xf] }
  0x9c   :  { %2743 = vmatmul.bf16.gmra.mxu1 %v12139_v59  ;;  %v8641_v50 = vld [vmem:[#allocation5 + $0x4e0] sm:$0xf0] }
  0x9d   :  { %2919 = vmatpush.bf16.msra.mxu0 %v8420_v15  ;;  %v11101_v51 = vld [vmem:[#allocation5 + $0x684] sm:$0xf]  ;;  %v8644_v54 = vor.u32 %v11045_v49, %v8641_v50  ;;  %v12164_v15 = vor.u32 %v10885_v12, %v7999_v11 }
  0x9e   :  { %v8865_v55 = vld [vmem:[#allocation5 + $0x6a0] sm:$0xf0]  ;;  %3004 = vmatpush.bf16.msra.mxu3 %v9156_v47 }
  0x9f   :  { %2771 = vmatmul.bf16.gmra.mxu2 %v12141_v60  ;;  %2947 = vmatpush.bf16.msra.mxu1 %v8676_v25  ;;  %v10973_v57 = vld [vmem:[#allocation5 + $0x284] sm:$0xf]  ;;  %v8868_v63 = vor.u32 %v11101_v51, %v8865_v55  ;;  %v10891_v55 = vld [vmem:[#allocation3 + $0x98] sm:$0xf0] }
  0xa0   :  { %2799 = vmatmul.bf16.gmra.mxu3 %v12143_v61  ;;  %v8353_v62 = vld [vmem:[#allocation5 + $0x2a0] sm:$0xf0] }
  0xa1   :  { %2920 = vmatpush.bf16.msra.mxu0 %v8388_v46  ;;  %v8356_v0 = vor.u32 %v10973_v57, %v8353_v62  ;;  %v11165_v1 = vld [vmem:[#allocation5 + $0x884] sm:$0xf]  ;;  %2977 = vmatpush.bf16.msra.mxu2 %v8868_v63  ;;  %v10888_v57 = vld [vmem:[#allocation3 + $0x84] sm:$0xf]  ;;  %v8021_v62 = vld [vmem:[#allocation3 + $0x9c] sm:$0xf0] }
  0xa2   :  { %v9121_v2 = vld [vmem:[#allocation5 + $0x8a0] sm:$0xf0] }
  0xa3   :  { %v11037_v3 = vld [vmem:[#allocation5 + $0x484] sm:$0xf]  ;;  %2948 = vmatpush.bf16.msra.mxu1 %v8644_v54  ;;  %v9124_v4 = vor.u32 %v11165_v1, %v9121_v2  ;;  %v8019_v54 = vld [vmem:[#allocation3 + $0x80] sm:$0xf]  ;;  %v12173_v2 = vor.u32 %v10888_v57, %v8021_v62  ;;  %v11002_v57 = vld [vmem:[#allocation5 + $0x364] sm:$0xf0] }
  0xa4   :  { %v8609_v5 = vld [vmem:[#allocation5 + $0x4a0] sm:$0xf0]  ;;  %v12171_v1 = vor.u32 %v10891_v55, %v8019_v54  ;;  %v8455_v55 = vld [vmem:[#allocation5 + $0x348] sm:$0xf] }
  0xa5   :  { %v8612_v6 = vor.u32 %v11037_v3, %v8609_v5  ;;  %v7991_v7 = vld [vmem:[#allocation3 + $0x48] sm:$0xf]  ;;  %2921 = vmatpush.bf16.msra.mxu0 %v8356_v0  ;;  %3005 = vmatpush.bf16.msra.mxu3 %v9124_v4  ;;  %v10892_v0 = vld [vmem:[#allocation3 + $0xa0] sm:$0xf0]  ;;  %v8263_v4 = vld [vmem:[#allocation5 + $0x1c8] sm:$0xf] }
  0xa6   :  { %v7993_v10 = vld [vmem:[#allocation3 + $0x64] sm:$0xf0]  ;;  %v12160_v13 = vor.u32 %v10884_v8, %v7991_v7  ;;  %v10954_v5 = vld [vmem:[#allocation5 + $0x1e4] sm:$0xf0] }
  0xa7   :  { %2812 = vmatmul.bf16.vlgmr.msrb.gmra.mxu0 %v12149_v33  ;;  %2949 = vmatpush.bf16.msra.mxu1 %v8612_v6  ;;  %v12162_v14 = vor.u32 %v10881_v9, %v7993_v10  ;;  %v11093_v20 = vld [vmem:[#allocation5 + $0x644] sm:$0xf]  ;;  %v8264_v7 = vor.u32 %v10954_v5, %v8263_v4  ;;  %v8519_v9 = vld [vmem:[#allocation5 + $0x3c8] sm:$0xf] }
  0xa8   :  { %v8833_v21 = vld [vmem:[#allocation5 + $0x660] sm:$0xf0]  ;;  %v11018_v10 = vld [vmem:[#allocation5 + $0x3e4] sm:$0xf0] }
  0xa9   :  { %v10965_v22 = vld [vmem:[#allocation5 + $0x244] sm:$0xf]  ;;  %v8836_v23 = vor.u32 %v11093_v20, %v8833_v21  ;;  %v8520_v12 = vor.u32 %v11018_v10, %v8519_v9  ;;  %v178_v20 = vld [vmem:[#allocation3 + $0xb8] sm:$0xff]  ;;  %v179_v21 = vld [vmem:[#allocation3 + $0xc0] sm:$0xf] }
  0xaa   :  { %v8321_v24 = vld [vmem:[#allocation5 + $0x260] sm:$0xf0]  ;;  %v8167_v4 = vld [vmem:[#allocation5 + $0x108] sm:$0xf] }
  0xab   :  { %v11157_v25 = vld [vmem:[#allocation5 + $0x844] sm:$0xf]  ;;  %v8324_v27 = vor.u32 %v10965_v22, %v8321_v24  ;;  %2978 = vmatpush.bf16.msra.mxu2 %v8836_v23  ;;  %v664_v24 = vunpack.c.l.b16 %v178_v20  ;;  %v10930_v5 = vld [vmem:[#allocation5 + $0x124] sm:$0xf0] }
  0xac   :  { %2840 = vmatmul.bf16.vlgmr.msrb.gmra.mxu1 %v12151_v34  ;;  %v9089_v26 = vld [vmem:[#allocation5 + $0x860] sm:$0xf0]  ;;  %v8423_v9 = vld [vmem:[#allocation5 + $0x308] sm:$0xf] }
  0xad   :  { %v9092_v28 = vor.u32 %v11157_v25, %v9089_v26  ;;  %v11029_v29 = vld [vmem:[#allocation5 + $0x444] sm:$0xf]  ;;  %2922 = vmatpush.bf16.msra.mxu0 %v8324_v27  ;;  %v8231_v26 = vld [vmem:[#allocation5 + $0x188] sm:$0xf] }
  0xae   :  { %v8577_v30 = vld [vmem:[#allocation5 + $0x460] sm:$0xf0]  ;;  %v10946_v27 = vld [vmem:[#allocation5 + $0x1a4] sm:$0xf0] }
  0xaf   :  { %9597 = vmatmul.msk.bf16.vlgmr.msrb.gmra.mxu2 %vm2679_vm0, %v12153_v35  ;;  %v11085_v31 = vld [vmem:[#allocation5 + $0x604] sm:$0xf]  ;;  %v8580_v38 = vor.u32 %v11029_v29, %v8577_v30  ;;  %3006 = vmatpush.bf16.msra.mxu3 %v9092_v28  ;;  %v665_v29 = vunpack.c.h.b16 %v178_v20  ;;  %v666_v30 = vunpack.c.l.b16 %v179_v21  ;;  %v10994_v10 = vld [vmem:[#allocation5 + $0x324] sm:$0xf0] }
  0xb0   :  { %2896 = vmatmul.bf16.vlgmr.msrb.gmra.mxu3 %v12101_v48  ;;  %v8801_v39 = vld [vmem:[#allocation5 + $0x620] sm:$0xf0]  ;;  %v8424_v20 = vor.u32 %v10994_v10, %v8423_v9 }
  0xb1   :  { %v10957_v41 = vld [vmem:[#allocation5 + $0x204] sm:$0xf]  ;;  %v8804_v43 = vor.u32 %v11085_v31, %v8801_v39  ;;  %2950 = vmatpush.bf16.msra.mxu1 %v8580_v38  ;;  %v8232_v31 = vor.u32 %v10946_v27, %v8231_v26  ;;  %v8487_v39 = vld [vmem:[#allocation5 + $0x388] sm:$0xf] }
  0xb2   :  { %v8289_v42 = vld [vmem:[#allocation5 + $0x220] sm:$0xf0]  ;;  %v10922_v26 = vld [vmem:[#allocation5 + $0xe4] sm:$0xf0] }
  0xb3   :  { %v8292_v44 = vor.u32 %v10957_v41, %v8289_v42  ;;  %v11149_v45 = vld [vmem:[#allocation5 + $0x804] sm:$0xf]  ;;  %2979 = vmatpush.bf16.msra.mxu2 %v8804_v43  ;;  %v11010_v41 = vld [vmem:[#allocation5 + $0x3a4] sm:$0xf0] }
  0xb4   :  { %v9057_v46 = vld [vmem:[#allocation5 + $0x820] sm:$0xf0]  ;;  %v8488_v43 = vor.u32 %v11010_v41, %v8487_v39 }
  0xb5   :  { %v11021_v47 = vld [vmem:[#allocation5 + $0x404] sm:$0xf]  ;;  %v9060_v49 = vor.u32 %v11149_v45, %v9057_v46  ;;  %2923 = vmatpush.bf16.msra.mxu0 %v8292_v44  ;;  %v12182_v44 = vpack.c.b16 %v664_v24, %v664_v24  ;;  %v12184_v45 = vpack.c.b16 %v665_v29, %v665_v29  ;;  %v12186_v46 = vpack.c.b16 %v666_v30, %v666_v30  ;;  %v8391_v30 = vld [vmem:[#allocation5 + $0x2c8] sm:$0xf] }
  0xb6   :  { %v8545_v50 = vld [vmem:[#allocation5 + $0x420] sm:$0xf0] }
  0xb7   :  { %2817 = vmatmul.bf16.gmra.mxu0 %v12160_v13  ;;  %v8548_v51 = vor.u32 %v11021_v47, %v8545_v50  ;;  %v8027_v63 = vld [vmem:[#allocation3 + $0x88] sm:$0xf]  ;;  %3007 = vmatpush.bf16.msra.mxu3 %v9060_v49  ;;  %v8199_v47 = vld [vmem:[#allocation5 + $0x148] sm:$0xf] }
  0xb8   :  { %v12175_v3 = vor.u32 %v10892_v0, %v8027_v63  ;;  %v11269_v6 = vld [vmem:[#allocation5 + $0xbc4] sm:$0xf]  ;;  %3084 = vmatpush.bf16.msrb.mxu2 %v8264_v7  ;;  %v10938_v49 = vld [vmem:[#allocation5 + $0x164] sm:$0xf0]  ;;  %v8456_v63 = vor.u32 %v11002_v57, %v8455_v55  ;;  %v8168_v7 = vor.u32 %v10930_v5, %v8167_v4 }
  0xb9   :  { %2951 = vmatpush.bf16.msra.mxu1 %v8548_v51  ;;  %v9537_v8 = vld [vmem:[#allocation5 + $0xbe0] sm:$0xf0]  ;;  %v8200_v51 = vor.u32 %v10938_v49, %v8199_v47  ;;  %v8103_v55 = vld [vmem:[#allocation5 + $0x88] sm:$0xf] }
  0xba   :  { %v9540_v11 = vor.u32 %v11269_v6, %v9537_v8  ;;  %v11277_v22 = vld [vmem:[#allocation5 + $0xc04] sm:$0xf]  ;;  %v10914_v57 = vld [vmem:[#allocation5 + $0xa4] sm:$0xf0] }
  0xbb   :  { %3112 = vmatpush.bf16.msrb.mxu3 %v8520_v12  ;;  %v9569_v23 = vld [vmem:[#allocation5 + $0xc20] sm:$0xf0]  ;;  %v8359_v5 = vld [vmem:[#allocation5 + $0x288] sm:$0xf] }
  0xbc   :  { %2845 = vmatmul.bf16.gmra.mxu1 %v12162_v14  ;;  %3028 = vmatpush.bf16.msrb.mxu0 %v9540_v11  ;;  %v9572_v25 = vor.u32 %v11277_v22, %v9569_v23  ;;  %v11261_v28 = vld [vmem:[#allocation5 + $0xb84] sm:$0xf] }
  0xbd   :  { %v9505_v38 = vld [vmem:[#allocation5 + $0xba0] sm:$0xf0]  ;;  %3085 = vmatpush.bf16.msrb.mxu2 %v8232_v31  ;;  %v10986_v31 = vld [vmem:[#allocation5 + $0x2e4] sm:$0xf0] }
  0xbe   :  { %3063 = vmatpush.bf16.msrb.mxu1 %v9572_v25  ;;  %v9508_v42 = vor.u32 %v11261_v28, %v9505_v38  ;;  %v11253_v50 = vld [vmem:[#allocation5 + $0xb44] sm:$0xf]  ;;  %v8135_v25 = vld [vmem:[#allocation5 + $0xc8] sm:$0xf]  ;;  %v8392_v41 = vor.u32 %v10986_v31, %v8391_v30 }
  0xbf   :  { %9598 = vmatmul.msk.bf16.gmra.mxu2 %vm2679_vm0, %v12164_v15  ;;  %3113 = vmatpush.bf16.msrb.mxu3 %v8488_v43  ;;  %v9473_v54 = vld [vmem:[#allocation5 + $0xb60] sm:$0xf0]  ;;  %v8136_v28 = vor.u32 %v10922_v26, %v8135_v25  ;;  %v8071_v25 = vld [vmem:[#allocation5 + $0x48] sm:$0xf] }
  0xc0   :  { %2901 = vmatmul.bf16.gmra.mxu3 %v12113_v32  ;;  %3029 = vmatpush.bf16.msrb.mxu0 %v9508_v42  ;;  %v9476_v62 = vor.u32 %v11253_v50, %v9473_v54  ;;  %v12193_v0 = vld [vmem:[#allocation7] sm:$0xff]  ;;  %v10906_v26 = vld [vmem:[#allocation5 + $0x64] sm:$0xf0] }
  0xc1   :  { %3086 = vmatpush.bf16.msrb.mxu2 %v8200_v51  ;;  %v11245_v6 = vld [vmem:[#allocation5 + $0xb04] sm:$0xf]  ;;  %v12196_v11 = vperm.slane %v12193_v0, 0  ;;  %v8327_v30 = vld [vmem:[#allocation5 + $0x248] sm:$0xf] }
  0xc2   :  { %v9441_v8 = vld [vmem:[#allocation5 + $0xb20] sm:$0xf0]  ;;  %v10970_v31 = vld [vmem:[#allocation5 + $0x264] sm:$0xf0] }
  0xc3   :  { %3114 = vmatpush.bf16.msrb.mxu3 %v8456_v63  ;;  %v9444_v12 = vor.u32 %v11245_v6, %v9441_v8  ;;  %v11237_v27 = vld [vmem:[#allocation5 + $0xac4] sm:$0xf]  ;;  %v8104_v63 = vor.u32 %v10914_v57, %v8103_v55  ;;  %v10978_v6 = vld [vmem:[#allocation5 + $0x2a4] sm:$0xf0] }
  0xc4   :  { %3030 = vmatpush.bf16.msrb.mxu0 %v9476_v62  ;;  %v9409_v29 = vld [vmem:[#allocation5 + $0xae0] sm:$0xf0]  ;;  %v8360_v8 = vor.u32 %v10978_v6, %v8359_v5  ;;  %v8039_v55 = vld [vmem:[#allocation5 + $0x8] sm:$0xf] }
  0xc5   :  { %3087 = vmatpush.bf16.msrb.mxu2 %v8168_v7  ;;  %v9412_v39 = vor.u32 %v11237_v27, %v9409_v29  ;;  %v11229_v62 = vld [vmem:[#allocation5 + $0xa84] sm:$0xf]  ;;  %v10898_v57 = vld [vmem:[#allocation5 + $0x24] sm:$0xf0] }
  0xc6   :  { %v9377_v4 = vld [vmem:[#allocation5 + $0xaa0] sm:$0xf0]  ;;  %v8295_v6 = vld [vmem:[#allocation5 + $0x208] sm:$0xf] }
  0xc7   :  { %2822 = vmatmul.bf16.gmra.mxu0 %v12171_v1  ;;  %3115 = vmatpush.bf16.msrb.mxu3 %v8424_v20  ;;  %v9380_v7 = vor.u32 %v11229_v62, %v9377_v4  ;;  %v11221_v27 = vld [vmem:[#allocation5 + $0xa44] sm:$0xf]  ;;  %v8040_v4 = vor.u32 %v10898_v57, %v8039_v55 }
  0xc8   :  { %3031 = vmatpush.bf16.msrb.mxu0 %v9444_v12  ;;  %v9345_v29 = vld [vmem:[#allocation5 + $0xa60] sm:$0xf0] }
  0xc9   :  { %3088 = vmatpush.bf16.msrb.mxu2 %v8136_v28  ;;  %v8072_v28 = vor.u32 %v10906_v26, %v8071_v25  ;;  %v11213_v62 = vld [vmem:[#allocation5 + $0xa04] sm:$0xf] }
  0xca   :  { %v9313_v5 = vld [vmem:[#allocation5 + $0xa20] sm:$0xf0] }
  0xcb   :  { %3116 = vmatpush.bf16.msrb.mxu3 %v8392_v41  ;;  %v8328_v41 = vor.u32 %v10970_v31, %v8327_v30  ;;  %v11082_v31 = vld [vmem:[#allocation5 + $0x5e4] sm:$0xf0] }
  0xcc   :  { %2850 = vmatmul.bf16.gmra.mxu1 %v12173_v2  ;;  %3032 = vmatpush.bf16.msrb.mxu0 %v9412_v39  ;;  %v9348_v39 = vor.u32 %v11221_v27, %v9345_v29  ;;  %v9287_v27 = vld [vmem:[#allocation5 + $0x9c8] sm:$0xf] }
  0xcd   :  { %3089 = vmatpush.bf16.msrb.mxu2 %v8104_v63  ;;  %v8775_v29 = vld [vmem:[#allocation5 + $0x5c8] sm:$0xf] }
  0xcf   :  { %9599 = vmatmul.msk.bf16.gmra.mxu2 %vm2679_vm0, %v12175_v3  ;;  %3117 = vmatpush.bf16.msrb.mxu3 %v8360_v8  ;;  %v9316_v8 = vor.u32 %v11213_v62, %v9313_v5 }
  0xd0   :  { %2906 = vmatmul.bf16.gmra.mxu3 %v12125_v16  ;;  %3033 = vmatpush.bf16.msrb.mxu0 %v9380_v7  ;;  %v10962_v7 = vld [vmem:[#allocation5 + $0x224] sm:$0xf0] }
  0xd1   :  { %3090 = vmatpush.bf16.msrb.mxu2 %v8072_v28  ;;  %v11210_v28 = vld [vmem:[#allocation5 + $0x9e4] sm:$0xf0] }
  0xd2   :  { %v9288_v30 = vor.u32 %v11210_v28, %v9287_v27  ;;  %v11146_v27 = vld [vmem:[#allocation5 + $0x7e4] sm:$0xf0] }
  0xd3   :  { %3118 = vmatpush.bf16.msrb.mxu3 %v8328_v41  ;;  %v9255_v28 = vld [vmem:[#allocation5 + $0x988] sm:$0xf] }
  0xd4   :  { %3034 = vmatpush.bf16.msrb.mxu0 %v9348_v39  ;;  %v11274_v39 = vld [vmem:[#allocation5 + $0xbe4] sm:$0xf0] }
  0xd5   :  { %3091 = vmatpush.bf16.msrb.mxu2 %v8040_v4 }
  0xd7   :  { %2827 = vmatmul.bf16.gmra.mxu0 %v12182_v44 }
  0xd8   :  { %3035 = vmatpush.bf16.msrb.mxu0 %v9316_v8 }
  0xdc   :  { %2855 = vmatmul.bf16.gmra.mxu1 %v12184_v45 }
  0xdf   :  { %9600 = vmatmul.msk.bf16.gmra.mxu2 %vm2679_vm0, %v12186_v46 }
  0xe0   :  { %2911 = vmatmul.bf16.gmra.mxu3 %v12137_v58 }
  0xe4   :  { %v2701_v21 = vpop.f32.mrf.mxu0 }
  0xe5   :  { %v2702_v22 = vadd.f32 %v2701_v21, %v12196_v11 }
  0xe7   :  { %2924 = vmatmul.bf16.vlgmr.msra.gmra.mxu0 %v12103_v52 }
  0xe8   :  { %v2729_v23 = vpop.f32.mrf.mxu1 }
  0xe9   :  { %v2730_v24 = vadd.f32 %v2729_v23, %v2702_v22 }
  0xec   :  { %2952 = vmatmul.bf16.vlgmr.msra.gmra.mxu1 %v12105_v53  ;;  %v2703_v47 = vpop.f32.mrf.mxu0 }
  0xed   :  { %v2704_v49 = vadd.f32 %v2703_v47, %v12196_v11 }
  0xef   :  { %2980 = vmatmul.bf16.vlgmr.msra.gmra.mxu2 %v12107_v56 }
  0xf0   :  { %3008 = vmatmul.bf16.vlgmr.msra.gmra.mxu3 %v12149_v33  ;;  %v2785_v43 = vpop.f32.mrf.mxu3  ;;  %v2731_v50 = vpop.f32.mrf.mxu1  ;;  %3196 = vmatpush.bf16.msra.mxu2 %v9288_v30  ;;  %v11202_v30 = vld [vmem:[#allocation5 + $0x9a4] sm:$0xf0] }
  0xf1   :  { %v2757_v38 = vpop.f32.mrf.mxu2  ;;  %v2732_v54 = vadd.f32 %v2731_v50, %v2704_v49 }
  0xf2   :  { %v2758_v42 = vadd.f32 %v2757_v38, %v2730_v24 }
  0xf4   :  { %v12204_v51 = vadd.f32 %v2785_v43, %v2758_v42  ;;  %v2706_v20 = vpop.f32.mrf.mxu0 }
  0xf5   :  { %v2707_v21 = vadd.f32 %v2706_v20, %v12196_v11 }
  0xf7   :  { %2929 = vmatmul.bf16.gmra.mxu0 %v12115_v36 }
  0xf8   :  { %v2787_v12 = vpop.f32.mrf.mxu3  ;;  %v2734_v22 = vpop.f32.mrf.mxu1 }
  0xf9   :  { %v2759_v9 = vpop.f32.mrf.mxu2  ;;  %v2735_v24 = vadd.f32 %v2734_v22, %v2707_v21 }
  0xfa   :  { %v2760_v10 = vadd.f32 %v2759_v9, %v2732_v54  ;;  %v8296_v9 = vor.u32 %v10962_v7, %v8295_v6 }
  0xfc   :  { %v12207_v23 = vadd.f32 %v2787_v12, %v2760_v10  ;;  %2957 = vmatmul.bf16.gmra.mxu1 %v12117_v37  ;;  %v2708_v47 = vpop.f32.mrf.mxu0  ;;  %3119 = vmatpush.bf16.msrb.mxu3 %v8296_v9 }
  0xfd   :  { %v2709_v49 = vadd.f32 %v2708_v47, %v12196_v11 }
  0xff   :  { %2985 = vmatmul.bf16.gmra.mxu2 %v12119_v40 }
 0x100   :  { %3013 = vmatmul.bf16.gmra.mxu3 %v12160_v13  ;;  %v2736_v50 = vpop.f32.mrf.mxu1 }
 0x101   :  { %v2737_v63 = vadd.f32 %v2736_v50, %v2709_v49 }
 0x102   :  { %v2762_v38 = vpop.f32.mrf.mxu2  ;;  %v2790_v43 = vpop.f32.mrf.mxu3 }
 0x103   :  { %v2763_v42 = vadd.f32 %v2762_v38, %v2735_v24  ;;  %v9543_v38 = vld [vmem:[#allocation5 + $0xbc8] sm:$0xf] }
 0x104   :  { %v2711_v21 = vpop.f32.mrf.mxu0 }
 0x105   :  { %v12214_v54 = vadd.f32 %v2790_v43, %v2763_v42  ;;  %v2712_v22 = vadd.f32 %v2711_v21, %v12196_v11  ;;  %v8776_v42 = vor.u32 %v11082_v31, %v8775_v29  ;;  %v9544_v43 = vor.u32 %v11274_v39, %v9543_v38  ;;  %v8743_v31 = vld [vmem:[#allocation5 + $0x588] sm:$0xf] }
 0x106   :  { %v11074_v38 = vld [vmem:[#allocation5 + $0x5a4] sm:$0xf0] }
 0x107   :  { %2934 = vmatmul.bf16.gmra.mxu0 %v12127_v17  ;;  %3224 = vmatpush.bf16.msra.mxu3 %v9544_v43  ;;  %v9511_v43 = vld [vmem:[#allocation5 + $0xb88] sm:$0xf] }
 0x108   :  { %3140 = vmatpush.bf16.msra.mxu0 %v8776_v42  ;;  %v8744_v42 = vor.u32 %v11074_v38, %v8743_v31  ;;  %v8967_v31 = vld [vmem:[#allocation5 + $0x748] sm:$0xf] }
 0x109   :  { %v2739_v24 = vpop.f32.mrf.mxu1  ;;  %v11130_v38 = vld [vmem:[#allocation5 + $0x764] sm:$0xf0] }
 0x10a   :  { %v2764_v10 = vpop.f32.mrf.mxu2  ;;  %v2792_v20 = vpop.f32.mrf.mxu3  ;;  %v2740_v26 = vadd.f32 %v2739_v24, %v2712_v22 }
 0x10b   :  { %v2765_v12 = vadd.f32 %v2764_v10, %v2737_v63 }
 0x10c   :  { %2962 = vmatmul.bf16.gmra.mxu1 %v12129_v18  ;;  %v2713_v50 = vpop.f32.mrf.mxu0  ;;  %3141 = vmatpush.bf16.msra.mxu0 %v8744_v42 }
 0x10d   :  { %v12217_v25 = vadd.f32 %v2792_v20, %v2765_v12  ;;  %v2714_v55 = vadd.f32 %v2713_v50, %v12196_v11 }
 0x10f   :  { %2990 = vmatmul.bf16.gmra.mxu2 %v12131_v19 }
 0x110   :  { %3018 = vmatmul.bf16.gmra.mxu3 %v12171_v1 }
 0x111   :  { %v2741_v57 = vpop.f32.mrf.mxu1 }
 0x112   :  { %v2767_v41 = vpop.f32.mrf.mxu2  ;;  %v2742_v63 = vadd.f32 %v2741_v57, %v2714_v55 }
 0x113   :  { %v2768_v47 = vadd.f32 %v2767_v41, %v2740_v26  ;;  %v2795_v49 = vpop.f32.mrf.mxu3  ;;  %v9031_v26 = vld [vmem:[#allocation5 + $0x7c8] sm:$0xf]  ;;  %v9256_v41 = vor.u32 %v11202_v30, %v9255_v28 }
 0x114   :  { %v2716_v7 = vpop.f32.mrf.mxu0  ;;  %v9032_v29 = vor.u32 %v11146_v27, %v9031_v26  ;;  %v9479_v26 = vld [vmem:[#allocation5 + $0xb48] sm:$0xf] }
 0x115   :  { %v12224_v62 = vadd.f32 %v2795_v49, %v2768_v47  ;;  %v2717_v8 = vadd.f32 %v2716_v7, %v12196_v11  ;;  %v11266_v47 = vld [vmem:[#allocation5 + $0xba4] sm:$0xf0]  ;;  %3197 = vmatpush.bf16.msra.mxu2 %v9256_v41 }
 0x116   :  { %3168 = vmatpush.bf16.msra.mxu1 %v9032_v29  ;;  %v9512_v49 = vor.u32 %v11266_v47, %v9511_v43  ;;  %v9223_v7 = vld [vmem:[#allocation5 + $0x948] sm:$0xf]  ;;  %v8968_v47 = vor.u32 %v11130_v38, %v8967_v31 }
 0x117   :  { %2939 = vmatmul.bf16.gmra.mxu0 %v12139_v59  ;;  %v9191_v41 = vld [vmem:[#allocation5 + $0x908] sm:$0xf] }
 0x118   :  { %3225 = vmatpush.bf16.msra.mxu3 %v9512_v49  ;;  %v11186_v49 = vld [vmem:[#allocation5 + $0x924] sm:$0xf0] }
 0x119   :  { %v2744_v9 = vpop.f32.mrf.mxu1  ;;  %v11050_v38 = vld [vmem:[#allocation5 + $0x4e4] sm:$0xf0] }
 0x11a   :  { %v2769_v4 = vpop.f32.mrf.mxu2  ;;  %v2745_v12 = vadd.f32 %v2744_v9, %v2717_v8 }
 0x11b   :  { %v2770_v5 = vadd.f32 %v2769_v4, %v2742_v63  ;;  %v2797_v6 = vpop.f32.mrf.mxu3 }
 0x11c   :  { %2967 = vmatmul.bf16.gmra.mxu1 %v12141_v60  ;;  %v2718_v24 = vpop.f32.mrf.mxu0 }
 0x11d   :  { %v12227_v10 = vadd.f32 %v2797_v6, %v2770_v5  ;;  %v8999_v5 = vld [vmem:[#allocation5 + $0x788] sm:$0xf] }
 0x11e   :  { %v11138_v6 = vld [vmem:[#allocation5 + $0x7a4] sm:$0xf0] }
 0x11f   :  { %2995 = vmatmul.bf16.gmra.mxu2 %v12143_v61  ;;  %v9000_v9 = vor.u32 %v11138_v6, %v8999_v5  ;;  %v9447_v5 = vld [vmem:[#allocation5 + $0xb08] sm:$0xf] }
 0x120   :  { %3023 = vmatmul.bf16.gmra.mxu3 %v12182_v44 }
 0x121   :  { %v2746_v11 = vpop.f32.mrf.mxu1  ;;  %3169 = vmatpush.bf16.msra.mxu1 %v9000_v9 }
 0x122   :  { %v2772_v20 = vpop.f32.mrf.mxu2 }
 0x123   :  { %v2773_v21 = vadd.f32 %v2772_v20, %v2745_v12  ;;  %v2800_v22 = vpop.f32.mrf.mxu3  ;;  %v11194_v12 = vld [vmem:[#allocation5 + $0x964] sm:$0xf0] }
 0x124   :  { %v2813_v57 = vpop.f32.mrf.mxu0  ;;  %v8711_v20 = vld [vmem:[#allocation5 + $0x548] sm:$0xf] }
 0x125   :  { %v12233_v39 = vadd.f32 %v2800_v22, %v2773_v21  ;;  %v2814_v63 = vadd.f32 %v2813_v57, %v12204_v51  ;;  %v11066_v21 = vld [vmem:[#allocation5 + $0x564] sm:$0xf0]  ;;  %v9224_v22 = vor.u32 %v11194_v12, %v9223_v7  ;;  %3170 = vmatpush.bf16.msra.mxu1 %v8968_v47 }
 0x126   :  { %v8712_v24 = vor.u32 %v11066_v21, %v8711_v20  ;;  %v11258_v51 = vld [vmem:[#allocation5 + $0xb64] sm:$0xf0] }
 0x127   :  { %3036 = vmatmul.bf16.vlgmr.msrb.gmra.mxu0 %v12151_v34  ;;  %v9480_v27 = vor.u32 %v11258_v51, %v9479_v26  ;;  %3198 = vmatpush.bf16.msra.mxu2 %v9224_v22  ;;  %v11250_v7 = vld [vmem:[#allocation5 + $0xb24] sm:$0xf0] }
 0x128   :  { %3142 = vmatpush.bf16.msra.mxu0 %v8712_v24  ;;  %v11122_v12 = vld [vmem:[#allocation5 + $0x724] sm:$0xf0] }
 0x129   :  { %v2841_v4 = vpop.f32.mrf.mxu1  ;;  %3226 = vmatpush.bf16.msra.mxu3 %v9480_v27  ;;  %v9159_v26 = vld [vmem:[#allocation5 + $0x8c8] sm:$0xf] }
 0x12a   :  { %v2774_v50 = vpop.f32.mrf.mxu2  ;;  %v2842_v8 = vadd.f32 %v2841_v4, %v2814_v63  ;;  %v9192_v63 = vor.u32 %v11186_v49, %v9191_v41  ;;  %v11178_v51 = vld [vmem:[#allocation5 + $0x8e4] sm:$0xf0] }
 0x12b   :  { %v2802_v55 = vpop.f32.mrf.mxu3  ;;  %v8679_v50 = vld [vmem:[#allocation5 + $0x508] sm:$0xf]  ;;  %v9160_v31 = vor.u32 %v11178_v51, %v9159_v26 }
 0x12c   :  { %9601 = vmatmul.msk.bf16.vlgmr.msrb.gmra.mxu1 %vm2679_vm0, %v12153_v35  ;;  %v2815_v30 = vpop.f32.mrf.mxu0  ;;  %v11058_v55 = vld [vmem:[#allocation5 + $0x524] sm:$0xf0]  ;;  %3199 = vmatpush.bf16.msra.mxu2 %v9192_v63 }
 0x12d   :  { %v2816_v42 = vadd.f32 %v2815_v30, %v12207_v23  ;;  %v8680_v4 = vor.u32 %v11058_v55, %v8679_v50  ;;  %v8935_v23 = vld [vmem:[#allocation5 + $0x708] sm:$0xf] }
 0x12e   :  { %v8936_v24 = vor.u32 %v11122_v12, %v8935_v23  ;;  %v8647_v27 = vld [vmem:[#allocation5 + $0x4c8] sm:$0xf] }
 0x12f   :  { %3092 = vmatmul.bf16.vlgmr.msrb.gmra.mxu2 %v12101_v48  ;;  %3143 = vmatpush.bf16.msra.mxu0 %v8680_v4  ;;  %v9415_v41 = vld [vmem:[#allocation5 + $0xac8] sm:$0xf]  ;;  %v8648_v49 = vor.u32 %v11050_v38, %v8647_v27 }
 0x130   :  { %3120 = vmatmul.bf16.vlgmr.msrb.gmra.mxu3 %v12103_v52  ;;  %3171 = vmatpush.bf16.msra.mxu1 %v8936_v24  ;;  %v8903_v63 = vld [vmem:[#allocation5 + $0x6c8] sm:$0xf] }
 0x131   :  { %v2843_v43 = vpop.f32.mrf.mxu1  ;;  %3200 = vmatpush.bf16.msra.mxu2 %v9160_v31  ;;  %v11114_v4 = vld [vmem:[#allocation5 + $0x6e4] sm:$0xf0] }
 0x132   :  { %v2869_v28 = vpop.f32.mrf.mxu2  ;;  %v2844_v6 = vadd.f32 %v2843_v43, %v2816_v42  ;;  %v11242_v42 = vld [vmem:[#allocation5 + $0xae4] sm:$0xf0] }
 0x133   :  { %v12241_v11 = vadd.f32 %v2869_v28, %v2842_v8  ;;  %v12243_v29 = vpop.f32.mrf.mxu3  ;;  %v9448_v8 = vor.u32 %v11250_v7, %v9447_v5  ;;  %v9416_v50 = vor.u32 %v11242_v42, %v9415_v41  ;;  %3144 = vmatpush.bf16.msra.mxu0 %v8648_v49  ;;  %v9127_v7 = vld [vmem:[#allocation5 + $0x888] sm:$0xf] }
 0x134   :  { %v2818_v22 = vpop.f32.mrf.mxu0  ;;  %v11042_v26 = vld [vmem:[#allocation5 + $0x4a4] sm:$0xf0] }
 0x135   :  { %v4316_v57 = vmul.f32 1.442695, %v12241_v11  ;;  %3227 = vmatpush.bf16.msra.mxu3 %v9448_v8  ;;  %v2819_v28 = vadd.f32 %v2818_v22, %v12214_v54  ;;  %v8904_v54 = vor.u32 %v11114_v4, %v8903_v63  ;;  %v11170_v8 = vld [vmem:[#allocation5 + $0x8a4] sm:$0xf0]  ;;  %vm4260_vm1 = vcmp.gt.f32.partialorder %v12241_v11, 0.0 }
 0x136   :  { %v9128_v24 = vor.u32 %v11170_v8, %v9127_v7  ;;  %v9383_v51 = vld [vmem:[#allocation5 + $0xa88] sm:$0xf] }
 0x137   :  { %11592 = vpow2.f32 %v4316_v57  ;;  %3041 = vmatmul.bf16.gmra.mxu0 %v12162_v14  ;;  %3172 = vmatpush.bf16.msra.mxu1 %v8904_v54  ;;  %v11234_v31 = vld [vmem:[#allocation5 + $0xaa4] sm:$0xf0] }
 0x138   :  { %v8871_v38 = vld [vmem:[#allocation5 + $0x688] sm:$0xf]  ;;  %3201 = vmatpush.bf16.msra.mxu2 %v9128_v24 }
 0x139   :  { %v2846_v30 = vpop.f32.mrf.mxu1  ;;  %3228 = vmatpush.bf16.msra.mxu3 %v9416_v50  ;;  %v11106_v41 = vld [vmem:[#allocation5 + $0x6a4] sm:$0xf0] }
 0x13a   :  { %v2871_v9 = vpop.f32.mrf.mxu2  ;;  %v2847_v57 = vadd.f32 %v2846_v30, %v2819_v28  ;;  %v8872_v49 = vor.u32 %v11106_v41, %v8871_v38  ;;  %v9095_v63 = vld [vmem:[#allocation5 + $0x848] sm:$0xf] }
 0x13b   :  { %v12247_v20 = vadd.f32 %v2871_v9, %v2844_v6  ;;  %v12249_v21 = vpop.f32.mrf.mxu3  ;;  %v8615_v9 = vld [vmem:[#allocation5 + $0x488] sm:$0xf] }
 0x13c   :  { %9602 = vmatmul.msk.bf16.gmra.mxu1 %vm2679_vm0, %v12164_v15  ;;  %v2820_v22 = vpop.f32.mrf.mxu0  ;;  %v8616_v30 = vor.u32 %v11042_v26, %v8615_v9  ;;  %v8583_v54 = vld [vmem:[#allocation5 + $0x448] sm:$0xf] }
 0x13d   :  { %v11593_v43 = vpop.eup %11592  ;;  %v4332_v47 = vmul.f32 1.442695, %v12247_v20  ;;  %v2821_v27 = vadd.f32 %v2820_v22, %v12217_v25  ;;  %v11162_v25 = vld [vmem:[#allocation5 + $0x864] sm:$0xf0]  ;;  %3173 = vmatpush.bf16.msra.mxu1 %v8872_v49  ;;  %vm4268_vm2 = vcmp.gt.f32.partialorder %v12247_v20, 0.0 }
 0x13e   :  { %v9629_v55 = vadd.f32 -1.0, %v11593_v43  ;;  %3145 = vmatpush.bf16.msra.mxu0 %v8616_v30  ;;  %v9096_v4 = vor.u32 %v11162_v25, %v9095_v63  ;;  %v9351_v7 = vld [vmem:[#allocation5 + $0xa48] sm:$0xf] }
 0x13f   :  { %11594 = vpow2.f32 %v4332_v47  ;;  %3097 = vmatmul.bf16.gmra.mxu2 %v12113_v32  ;;  %v9384_v47 = vor.u32 %v11234_v31, %v9383_v51  ;;  %v11226_v22 = vld [vmem:[#allocation5 + $0xa64] sm:$0xf0] }
 0x140   :  { %3125 = vmatmul.bf16.gmra.mxu3 %v12115_v36  ;;  %v4484_v5 = vmul.f32 1.6732632, %v9629_v55  ;;  %v8839_v24 = vld [vmem:[#allocation5 + $0x648] sm:$0xf]  ;;  %3202 = vmatpush.bf16.msra.mxu2 %v9096_v4 }
 0x141   :  { %v2848_v28 = vpop.f32.mrf.mxu1  ;;  %3229 = vmatpush.bf16.msra.mxu3 %v9384_v47  ;;  %v9063_v30 = vld [vmem:[#allocation5 + $0x808] sm:$0xf] }
 0x142   :  { %v2874_v6 = vpop.f32.mrf.mxu2  ;;  %v4540_v50 = vsel %vm4260_vm1, %v12241_v11, %v4484_v5  ;;  %v9352_v11 = vor.u32 %v11226_v22, %v9351_v7  ;;  %v11098_v5 = vld [vmem:[#allocation5 + $0x664] sm:$0xf0] }
 0x143   :  { %v12258_v23 = vadd.f32 %v2874_v6, %v2847_v57  ;;  %v12260_v12 = vpop.f32.mrf.mxu3  ;;  %v2849_v57 = vadd.f32 %v2848_v28, %v2821_v27  ;;  %v11034_v6 = vld [vmem:[#allocation5 + $0x464] sm:$0xf0]  ;;  %v4596_v26 = vmul.f32 1.050701, %v4540_v50  ;;  %v8840_v28 = vor.u32 %v11098_v5, %v8839_v24 }
 0x144   :  { %v8584_v9 = vor.u32 %v11034_v6, %v8583_v54  ;;  %v11154_v31 = vld [vmem:[#allocation5 + $0x824] sm:$0xf0]  ;;  %v2823_v47 = vpop.f32.mrf.mxu0 }
 0x145   :  { %v11595_v42 = vpop.eup %11594  ;;  %v4348_v43 = vmul.f32 1.442695, %v12258_v23  ;;  %v8551_v38 = vld [vmem:[#allocation5 + $0x408] sm:$0xf]  ;;  %3230 = vmatpush.bf16.msra.mxu3 %v9352_v11  ;;  %v9064_v49 = vor.u32 %v11154_v31, %v9063_v30  ;;  %v2824_v63 = vadd.f32 %v2823_v47, %v12224_v62  ;;  %3174 = vmatpush.bf16.msra.mxu1 %v8840_v28  ;;  %vm4276_vm3 = vcmp.gt.f32.partialorder %v12258_v23, 0.0 }
 0x146   :  { %v9637_v55 = vadd.f32 -1.0, %v11595_v42  ;;  %3146 = vmatpush.bf16.msra.mxu0 %v8584_v9  ;;  %v11026_v50 = vld [vmem:[#allocation5 + $0x424] sm:$0xf0] }
 0x147   :  { %11596 = vpow2.f32 %v4348_v43  ;;  %v11218_v4 = vld [vmem:[#allocation5 + $0xa24] sm:$0xf0]  ;;  %3203 = vmatpush.bf16.msra.mxu2 %v9064_v49  ;;  %3046 = vmatmul.bf16.gmra.mxu0 %v12173_v2 }
 0x148   :  { %v4492_v8 = vmul.f32 1.6732632, %v9637_v55  ;;  %v9319_v55 = vld [vmem:[#allocation5 + $0xa08] sm:$0xf] }
 0x149   :  { %v2851_v25 = vpop.f32.mrf.mxu1  ;;  %v8807_v54 = vld [vmem:[#allocation5 + $0x608] sm:$0xf]  ;;  %v9320_v9 = vor.u32 %v11218_v4, %v9319_v55  ;;  %v8777_v4 = vld [vmem:[#allocation5 + $0x5e8] sm:$0xf0] }
 0x14a   :  { %v4548_v51 = vsel %vm4268_vm2, %v12247_v20, %v4492_v8  ;;  %v2876_v27 = vpop.f32.mrf.mxu2  ;;  %v8552_v20 = vor.u32 %v11026_v50, %v8551_v38  ;;  %v11090_v6 = vld [vmem:[#allocation5 + $0x624] sm:$0xf0]  ;;  %v2852_v22 = vadd.f32 %v2851_v25, %v2824_v63  ;;  %v8521_v50 = vld [vmem:[#allocation5 + $0x3e8] sm:$0xf0] }
 0x14b   :  { %v4604_v41 = vmul.f32 1.050701, %v4548_v51  ;;  %v12268_v42 = vadd.f32 %v2876_v27, %v2849_v57  ;;  %v12270_v43 = vpop.f32.mrf.mxu3  ;;  %v8808_v24 = vor.u32 %v11090_v6, %v8807_v54  ;;  %3231 = vmatpush.bf16.msra.mxu3 %v9320_v9  ;;  %v9575_v55 = vld [vmem:[#allocation5 + $0xc08] sm:$0xf]  ;;  %v8265_v9 = vld [vmem:[#allocation5 + $0x1e8] sm:$0xf0] }
 0x14c   :  { %9603 = vmatmul.msk.bf16.gmra.mxu1 %vm2679_vm0, %v12175_v3  ;;  %3147 = vmatpush.bf16.msra.mxu0 %v8552_v20  ;;  %v2825_v51 = vpop.f32.mrf.mxu0  ;;  %v11282_v25 = vld [vmem:[#allocation5 + $0xc24] sm:$0xf0]  ;;  %v11078_v20 = vld [vmem:[#allocation5 + $0x5cc] sm:$0xf] }
 0x14d   :  { %v11597_v7 = vpop.eup %11596  ;;  %v12273_v8 = vpack.c.bf16 %v4604_v41, %v4596_v26  ;;  %v4364_v57 = vmul.f32 1.442695, %v12268_v42  ;;  %3175 = vmatpush.bf16.msra.mxu1 %v8808_v24  ;;  %v2826_v28 = vadd.f32 %v2825_v51, %v12227_v10  ;;  %v11014_v41 = vld [vmem:[#allocation5 + $0x3cc] sm:$0xf]  ;;  %vm4284_vm4 = vcmp.gt.f32.partialorder %v12268_v42, 0.0 }
 0x14e   :  { %v9645_v62 = vadd.f32 -1.0, %v11597_v7  ;;  %v8524_v63 = vor.u32 %v11014_v41, %v8521_v50  ;;  %v9576_v6 = vor.u32 %v11282_v25, %v9575_v55  ;;  %v8780_v7 = vor.u32 %v11078_v20, %v8777_v4  ;;  %v11006_v24 = vld [vmem:[#allocation5 + $0x38c] sm:$0xf] }
 0x14f   :  { %11598 = vpow2.f32 %v4364_v57  ;;  %3102 = vmatmul.bf16.gmra.mxu2 %v12125_v16  ;;  %v10950_v57 = vld [vmem:[#allocation5 + $0x1cc] sm:$0xf] }
 0x150   :  { %3130 = vmatmul.bf16.gmra.mxu3 %v12127_v17  ;;  %v4500_v27 = vmul.f32 1.6732632, %v9645_v62  ;;  %3308 = vmatpush.bf16.msrb.mxu2 %v8524_v63  ;;  %v8489_v62 = vld [vmem:[#allocation5 + $0x3a8] sm:$0xf0] }
 0x151   :  { %v2853_v30 = vpop.f32.mrf.mxu1  ;;  %3259 = vmatpush.bf16.msrb.mxu0 %v9576_v6  ;;  %3336 = vmatpush.bf16.msrb.mxu3 %v8780_v7  ;;  %v10998_v6 = vld [vmem:[#allocation5 + $0x34c] sm:$0xf] }
 0x152   :  { %v2879_v26 = vpop.f32.mrf.mxu2  ;;  %v2854_v49 = vadd.f32 %v2853_v30, %v2826_v28  ;;  %v4556_v10 = vsel %vm4276_vm3, %v12258_v23, %v4500_v27  ;;  %v8492_v30 = vor.u32 %v11006_v24, %v8489_v62  ;;  %v8457_v7 = vld [vmem:[#allocation5 + $0x368] sm:$0xf0] }
 0x153   :  { %v12281_v11 = vadd.f32 %v2879_v26, %v2852_v22  ;;  %v12283_v5 = vpop.f32.mrf.mxu3  ;;  %v8268_v22 = vor.u32 %v10950_v57, %v8265_v9  ;;  %v11070_v26 = vld [vmem:[#allocation5 + $0x58c] sm:$0xf]  ;;  %v4612_v23 = vmul.f32 1.050701, %v4556_v10  ;;  %v8460_v57 = vor.u32 %v10998_v6, %v8457_v7 }
 0x154   :  { %3309 = vmatpush.bf16.msrb.mxu2 %v8492_v30  ;;  %v8233_v10 = vld [vmem:[#allocation5 + $0x1a8] sm:$0xf0] }
 0x155   :  { %v11599_v31 = vpop.eup %11598  ;;  %v4380_v38 = vmul.f32 1.442695, %v12281_v11  ;;  %3280 = vmatpush.bf16.msrb.mxu1 %v8268_v22  ;;  %v11062_v9 = vld [vmem:[#allocation5 + $0x54c] sm:$0xf]  ;;  %vm4292_vm5 = vcmp.gt.f32.partialorder %v12281_v11, 0.0 }
 0x156   :  { %v9653_v47 = vadd.f32 -1.0, %v11599_v31  ;;  %v8745_v31 = vld [vmem:[#allocation5 + $0x5a8] sm:$0xf0] }
 0x157   :  { %11600 = vpow2.f32 %v4380_v38  ;;  %v8748_v50 = vor.u32 %v11070_v26, %v8745_v31  ;;  %3051 = vmatmul.bf16.gmra.mxu0 %v12184_v45  ;;  %v8713_v22 = vld [vmem:[#allocation5 + $0x568] sm:$0xf0] }
 0x158   :  { %v4508_v54 = vmul.f32 1.6732632, %v9653_v47  ;;  %v2828_v47 = vpop.f32.mrf.mxu0  ;;  %v8716_v62 = vor.u32 %v11062_v9, %v8713_v22  ;;  %3310 = vmatpush.bf16.msrb.mxu2 %v8460_v57 }
 0x159   :  { %v2829_v55 = vadd.f32 %v2828_v47, %v12233_v39  ;;  %v2856_v63 = vpop.f32.mrf.mxu1  ;;  %3337 = vmatpush.bf16.msrb.mxu3 %v8748_v50  ;;  %v10934_v47 = vld [vmem:[#allocation5 + $0x14c] sm:$0xf] }
 0x15a   :  { %v4564_v51 = vsel %vm4284_vm4, %v12268_v42, %v4508_v54  ;;  %v2881_v28 = vpop.f32.mrf.mxu2  ;;  %v10942_v42 = vld [vmem:[#allocation5 + $0x18c] sm:$0xf] }
 0x15b   :  { %v4620_v27 = vmul.f32 1.050701, %v4564_v51  ;;  %v2882_v38 = vadd.f32 %v2881_v28, %v2854_v49  ;;  %v12293_v41 = vpop.f32.mrf.mxu3  ;;  %v2857_v54 = vadd.f32 %v2856_v63, %v2829_v55  ;;  %v8236_v49 = vor.u32 %v10942_v42, %v8233_v10  ;;  %v8201_v55 = vld [vmem:[#allocation5 + $0x168] sm:$0xf0] }
 0x15c   :  { %9604 = vmatmul.msk.bf16.gmra.mxu1 %vm2679_vm0, %v12186_v46  ;;  %v10990_v63 = vld [vmem:[#allocation5 + $0x30c] sm:$0xf] }
 0x15d   :  { %v11601_v25 = vpop.eup %11600  ;;  %v4396_v20 = vmul.f32 1.442695, %v2882_v38  ;;  %v12296_v4 = vpack.c.bf16 %v4620_v27, %v4612_v23  ;;  %3281 = vmatpush.bf16.msrb.mxu1 %v8236_v49  ;;  %3338 = vmatpush.bf16.msrb.mxu3 %v8716_v62  ;;  %v12308_v27 = vperm.slane %v12193_v0, 1  ;;  %v11054_v42 = vld [vmem:[#allocation5 + $0x50c] sm:$0xf]  ;;  %vm4300_vm6 = vcmp.gt.f32.partialorder %v2882_v38, 0.0 }
 0x15e   :  { %v9661_v39 = vadd.f32 -1.0, %v11601_v25  ;;  %v8204_v25 = vor.u32 %v10934_v47, %v8201_v55 }
 0x15f   :  { %13704 = vst [vmem:[#allocation21_spill] sm:$0xff] %v12296_v4  ;;  %11602 = vpow2.f32 %v4396_v20  ;;  %3107 = vmatmul.bf16.gmra.mxu2 %v12137_v58  ;;  %v8425_v20 = vld [vmem:[#allocation5 + $0x328] sm:$0xf0]  ;;  %v2898_v0 = vadd.f32 %v12243_v29, %v12308_v27  ;;  %v10947_v4 = vld [vmem:[#allocation5 + $0x1ac] sm:$0xf0] }
 0x160   :  { %3135 = vmatmul.bf16.gmra.mxu3 %v12139_v59  ;;  %v2830_v28 = vpop.f32.mrf.mxu0  ;;  %v4516_v30 = vmul.f32 1.6732632, %v9661_v39  ;;  %v8428_v39 = vor.u32 %v10990_v63, %v8425_v20  ;;  %v10982_v29 = vld [vmem:[#allocation5 + $0x2cc] sm:$0xf]  ;;  %v2900_v20 = vadd.f32 %v12249_v21, %v12308_v27 }
 0x161   :  { %v2858_v31 = vpop.f32.mrf.mxu1  ;;  %3282 = vmatpush.bf16.msrb.mxu1 %v8204_v25  ;;  %v11046_v63 = vld [vmem:[#allocation5 + $0x4cc] sm:$0xf] }
 0x162   :  { %v2884_v24 = vpop.f32.mrf.mxu2  ;;  %v4572_v10 = vsel %vm4292_vm5, %v12281_v11, %v4516_v30  ;;  %3311 = vmatpush.bf16.msrb.mxu2 %v8428_v39  ;;  %v8169_v11 = vld [vmem:[#allocation5 + $0x128] sm:$0xf0] }
 0x163   :  { %v12303_v26 = vadd.f32 %v2884_v24, %v2857_v54  ;;  %v12305_v51 = vpop.f32.mrf.mxu3  ;;  %v8681_v54 = vld [vmem:[#allocation5 + $0x528] sm:$0xf0]  ;;  %v4628_v9 = vmul.f32 1.050701, %v4572_v10 }
 0x164   :  { %v8684_v6 = vor.u32 %v11054_v42, %v8681_v54  ;;  %v8649_v25 = vld [vmem:[#allocation5 + $0x4e8] sm:$0xf0] }
 0x165   :  { %13705 = vst [vmem:[#allocation22_spill] sm:$0xff] %v12303_v26  ;;  %v11603_v23 = vpop.eup %11602  ;;  %v8652_v54 = vor.u32 %v11046_v63, %v8649_v25  ;;  %v8617_v21 = vld [vmem:[#allocation5 + $0x4a8] sm:$0xf0]  ;;  %v9367_v26 = vld [vmem:[#allocation5 + $0xa58] sm:$0xf] }
 0x166   :  { %v9669_v50 = vadd.f32 -1.0, %v11603_v23  ;;  %3339 = vmatpush.bf16.msrb.mxu3 %v8684_v6  ;;  %v10926_v23 = vld [vmem:[#allocation5 + $0x10c] sm:$0xf] }
 0x167   :  { %3148 = vmatmul.bf16.vlgmr.msra.gmra.mxu0 %v12105_v53 }
 0x168   :  { %v4524_v49 = vmul.f32 1.6732632, %v9669_v50  ;;  %v2925_v62 = vpop.f32.mrf.mxu0  ;;  %v8172_v50 = vor.u32 %v10926_v23, %v8169_v11 }
 0x169   :  { %v2926_v28 = vadd.f32 %v2925_v62, %v2898_v0  ;;  %v2953_v31 = vpop.f32.mrf.mxu1  ;;  %v10974_v62 = vld [vmem:[#allocation5 + $0x28c] sm:$0xf] }
 0x16a   :  { %v4580_v7 = vsel %vm4300_vm6, %v2882_v38, %v4524_v49  ;;  %v2886_v57 = vpop.f32.mrf.mxu2  ;;  %3283 = vmatpush.bf16.msrb.mxu1 %v8172_v50  ;;  %v8393_v38 = vld [vmem:[#allocation5 + $0x2e8] sm:$0xf0]  ;;  %3340 = vmatpush.bf16.msrb.mxu3 %v8652_v54 }
 0x16b   :  { %v4636_v22 = vmul.f32 1.050701, %v4580_v7  ;;  %v2914_v24 = vpop.f32.mrf.mxu3  ;;  %v2954_v47 = vadd.f32 %v2953_v31, %v2926_v28  ;;  %v8396_v55 = vor.u32 %v10982_v29, %v8393_v38  ;;  %v10918_v57 = vld [vmem:[#allocation5 + $0xcc] sm:$0xf] }
 0x16c   :  { %3176 = vmatmul.bf16.vlgmr.msra.gmra.mxu1 %v12107_v56  ;;  %v8361_v28 = vld [vmem:[#allocation5 + $0x2a8] sm:$0xf0] }
 0x16d   :  { %v12314_v30 = vpack.c.bf16 %v4636_v22, %v4628_v9  ;;  %3312 = vmatpush.bf16.msrb.mxu2 %v8396_v55  ;;  %v8137_v9 = vld [vmem:[#allocation5 + $0xe8] sm:$0xf0]  ;;  %v8364_v23 = vor.u32 %v10974_v62, %v8361_v28 }
 0x16e   :  { %v8140_v24 = vor.u32 %v10918_v57, %v8137_v9  ;;  %v11038_v31 = vld [vmem:[#allocation5 + $0x48c] sm:$0xf]  ;;  %v2905_v9 = vadd.f32 %v12270_v43, %v12308_v27 }
 0x16f   :  { %13706 = vst [vmem:[#allocation23_spill] sm:$0xff] %v12314_v30  ;;  %3204 = vmatmul.bf16.vlgmr.msra.gmra.mxu2 %v12149_v33  ;;  %v8620_v11 = vor.u32 %v11038_v31, %v8617_v21  ;;  %v8105_v54 = vld [vmem:[#allocation5 + $0xa8] sm:$0xf0] }
 0x170   :  { %3232 = vmatmul.bf16.vlgmr.msra.gmra.mxu3 %v12151_v34  ;;  %v2927_v39 = vpop.f32.mrf.mxu0  ;;  %3284 = vmatpush.bf16.msrb.mxu1 %v8140_v24  ;;  %v8585_v57 = vld [vmem:[#allocation5 + $0x468] sm:$0xf0] }
 0x171   :  { %v2928_v6 = vadd.f32 %v2927_v39, %v2900_v20  ;;  %v2955_v0 = vpop.f32.mrf.mxu1  ;;  %3313 = vmatpush.bf16.msrb.mxu2 %v8364_v23  ;;  %3341 = vmatpush.bf16.msrb.mxu3 %v8620_v11  ;;  %v8329_v39 = vld [vmem:[#allocation5 + $0x268] sm:$0xf0] }
 0x172   :  { %v2981_v42 = vpop.f32.mrf.mxu2  ;;  %v11094_v30 = vld [vmem:[#allocation5 + $0x64c] sm:$0xf] }
 0x173   :  { %v2982_v10 = vadd.f32 %v2981_v42, %v2954_v47  ;;  %v3009_v49 = vpop.f32.mrf.mxu3  ;;  %v2956_v22 = vadd.f32 %v2955_v0, %v2928_v6  ;;  %v2903_v47 = vadd.f32 %v12260_v12, %v12308_v27  ;;  %v10910_v42 = vld [vmem:[#allocation5 + $0x8c] sm:$0xf] }
 0x174   :  { %v10966_v12 = vld [vmem:[#allocation5 + $0x24c] sm:$0xf] }
 0x175   :  { %v12322_v7 = vadd.f32 %v3009_v49, %v2982_v10  ;;  %v8108_v49 = vor.u32 %v10910_v42, %v8105_v54  ;;  %v11030_v6 = vld [vmem:[#allocation5 + $0x44c] sm:$0xf]  ;;  %v8332_v0 = vor.u32 %v10966_v12, %v8329_v39 }
 0x176   :  { %v8588_v24 = vor.u32 %v11030_v6, %v8585_v57  ;;  %v8553_v42 = vld [vmem:[#allocation5 + $0x428] sm:$0xf0] }
 0x177   :  { %3153 = vmatmul.bf16.gmra.mxu0 %v12117_v37  ;;  %3285 = vmatpush.bf16.msrb.mxu1 %v8108_v49  ;;  %v10894_v12 = vld [vmem:[#allocation5 + $0xc] sm:$0xf] }
 0x178   :  { %v2930_v55 = vpop.f32.mrf.mxu0  ;;  %3314 = vmatpush.bf16.msrb.mxu2 %v8332_v0  ;;  %3342 = vmatpush.bf16.msrb.mxu3 %v8588_v24  ;;  %v8041_v39 = vld [vmem:[#allocation5 + $0x28] sm:$0xf0] }
 0x179   :  { %v2931_v63 = vadd.f32 %v2930_v55, %v2903_v47  ;;  %v2958_v25 = vpop.f32.mrf.mxu1  ;;  %v10902_v47 = vld [vmem:[#allocation5 + $0x4c] sm:$0xf] }
 0x17a   :  { %v2983_v50 = vpop.f32.mrf.mxu2 }
 0x17b   :  { %v2984_v29 = vadd.f32 %v2983_v50, %v2956_v22  ;;  %v3011_v38 = vpop.f32.mrf.mxu3  ;;  %v2959_v10 = vadd.f32 %v2958_v25, %v2931_v63  ;;  %v8073_v50 = vld [vmem:[#allocation5 + $0x68] sm:$0xf0] }
 0x17c   :  { %3181 = vmatmul.bf16.gmra.mxu1 %v12119_v40  ;;  %v8076_v55 = vor.u32 %v10902_v47, %v8073_v50  ;;  %v8297_v63 = vld [vmem:[#allocation5 + $0x228] sm:$0xf0] }
 0x17d   :  { %v12326_v20 = vadd.f32 %v3011_v38, %v2984_v29  ;;  %v10958_v29 = vld [vmem:[#allocation5 + $0x20c] sm:$0xf] }
 0x17e   :  { %v11022_v25 = vld [vmem:[#allocation5 + $0x40c] sm:$0xf]  ;;  %v8300_v43 = vor.u32 %v10958_v29, %v8297_v63  ;;  %3286 = vmatpush.bf16.msrb.mxu1 %v8076_v55  ;;  %v2913_v63 = vadd.f32 %v12305_v51, %v12308_v27 }
 0x17f   :  { %3209 = vmatmul.bf16.gmra.mxu2 %v12160_v13  ;;  %v8556_v54 = vor.u32 %v11022_v25, %v8553_v42  ;;  %v9033_v51 = vld [vmem:[#allocation5 + $0x7e8] sm:$0xf0] }
 0x180   :  { %3237 = vmatmul.bf16.gmra.mxu3 %v12162_v14  ;;  %v2932_v31 = vpop.f32.mrf.mxu0  ;;  %3315 = vmatpush.bf16.msrb.mxu2 %v8300_v43 }
 0x181   :  { %v2933_v23 = vadd.f32 %v2932_v31, %v2905_v9  ;;  %v2960_v21 = vpop.f32.mrf.mxu1  ;;  %3343 = vmatpush.bf16.msrb.mxu3 %v8556_v54  ;;  %v8044_v9 = vor.u32 %v10894_v12, %v8041_v39  ;;  %v11270_v39 = vld [vmem:[#allocation5 + $0xbcc] sm:$0xf] }
 0x182   :  { %v2986_v22 = vpop.f32.mrf.mxu2 }
 0x183   :  { %v2987_v62 = vadd.f32 %v2986_v22, %v2959_v10  ;;  %v3014_v28 = vpop.f32.mrf.mxu3  ;;  %v2961_v38 = vadd.f32 %v2960_v21, %v2933_v23  ;;  %v2908_v10 = vadd.f32 %v12283_v5, %v12308_v27  ;;  %3287 = vmatpush.bf16.msrb.mxu1 %v8044_v9  ;;  %v2910_v5 = vadd.f32 %v12293_v41, %v12308_v27  ;;  %v11278_v27 = vld [vmem:[#allocation5 + $0xc0c] sm:$0xf] }
 0x184   :  { %v9577_v9 = vld [vmem:[#allocation5 + $0xc28] sm:$0xf0] }
 0x185   :  { %v12334_v11 = vadd.f32 %v3014_v28, %v2987_v62 }
 0x187   :  { %3158 = vmatmul.bf16.gmra.mxu0 %v12129_v18 }
 0x188   :  { %v2935_v57 = vpop.f32.mrf.mxu0 }
 0x189   :  { %v2936_v22 = vadd.f32 %v2935_v57, %v2908_v10  ;;  %v2963_v24 = vpop.f32.mrf.mxu1 }
 0x18a   :  { %v2988_v49 = vpop.f32.mrf.mxu2 }
 0x18b   :  { %v2989_v6 = vadd.f32 %v2988_v49, %v2961_v38  ;;  %v3016_v0 = vpop.f32.mrf.mxu3  ;;  %v2964_v28 = vadd.f32 %v2963_v24, %v2936_v22  ;;  %v9580_v24 = vor.u32 %v11278_v27, %v9577_v9  ;;  %v12359_v9 = vld [vmem:[#allocation7] sm:$0xff] }
 0x18c   :  { %3186 = vmatmul.bf16.gmra.mxu1 %v12131_v19 }
 0x18d   :  { %v12338_v62 = vadd.f32 %v3016_v0, %v2989_v6  ;;  %v9545_v6 = vld [vmem:[#allocation5 + $0xbe8] sm:$0xf0]  ;;  %3455 = vmatpush.bf16.msra.mxu3 %v9580_v24 }
 0x18e   :  { %v11142_v0 = vld [vmem:[#allocation5 + $0x7cc] sm:$0xf]  ;;  %v9548_v57 = vor.u32 %v11270_v39, %v9545_v6 }
 0x18f   :  { %3214 = vmatmul.bf16.gmra.mxu2 %v12171_v1  ;;  %v9036_v22 = vor.u32 %v11142_v0, %v9033_v51 }
 0x190   :  { %3242 = vmatmul.bf16.gmra.mxu3 %v12173_v2  ;;  %v2937_v47 = vpop.f32.mrf.mxu0  ;;  %3420 = vmatpush.bf16.msra.mxu2 %v9548_v57 }
 0x191   :  { %v2938_v50 = vadd.f32 %v2937_v47, %v2910_v5  ;;  %v2965_v29 = vpop.f32.mrf.mxu1  ;;  %v9289_v5 = vld [vmem:[#allocation5 + $0x9e8] sm:$0xf0]  ;;  %3364 = vmatpush.bf16.msra.mxu0 %v9036_v22  ;;  %v12362_v22 = vperm.slane %v12359_v9, 2 }
 0x192   :  { %v2991_v31 = vpop.f32.mrf.mxu2 }
 0x193   :  { %v2992_v23 = vadd.f32 %v2991_v31, %v2964_v28  ;;  %v3019_v21 = vpop.f32.mrf.mxu3  ;;  %v2966_v55 = vadd.f32 %v2965_v29, %v2938_v50  ;;  %v11206_v28 = vld [vmem:[#allocation5 + $0x9cc] sm:$0xf] }
 0x194   :  { %v9292_v31 = vor.u32 %v11206_v28, %v9289_v5  ;;  %v11254_v28 = vld [vmem:[#allocation5 + $0xb4c] sm:$0xf] }
 0x195   :  { %v12346_v38 = vadd.f32 %v3019_v21, %v2992_v23  ;;  %v9481_v5 = vld [vmem:[#allocation5 + $0xb68] sm:$0xf0] }
 0x196   :  { %3392 = vmatpush.bf16.msra.mxu1 %v9292_v31  ;;  %v11126_v31 = vld [vmem:[#allocation5 + $0x74c] sm:$0xf] }
 0x197   :  { %3163 = vmatmul.bf16.gmra.mxu0 %v12141_v60 }
 0x198   :  { %v2940_v54 = vpop.f32.mrf.mxu0 }
 0x199   :  { %v2941_v10 = vadd.f32 %v2940_v54, %v2913_v63  ;;  %v2968_v49 = vpop.f32.mrf.mxu1  ;;  %v11262_v63 = vld [vmem:[#allocation5 + $0xb8c] sm:$0xf] }
 0x19a   :  { %v2993_v25 = vpop.f32.mrf.mxu2  ;;  %v9001_v54 = vld [vmem:[#allocation5 + $0x7a8] sm:$0xf0] }
 0x19b   :  { %v2994_v42 = vadd.f32 %v2993_v25, %v2966_v55  ;;  %v3021_v43 = vpop.f32.mrf.mxu3  ;;  %v2969_v41 = vadd.f32 %v2968_v49, %v2941_v10  ;;  %v9513_v25 = vld [vmem:[#allocation5 + $0xba8] sm:$0xf0] }
 0x19c   :  { %3191 = vmatmul.bf16.gmra.mxu1 %v12143_v61  ;;  %v11198_v10 = vld [vmem:[#allocation5 + $0x98c] sm:$0xf] }
 0x19d   :  { %v12350_v12 = vadd.f32 %v3021_v43, %v2994_v42  ;;  %v11134_v42 = vld [vmem:[#allocation5 + $0x78c] sm:$0xf]  ;;  %v9516_v43 = vor.u32 %v11262_v63, %v9513_v25 }
 0x19e   :  { %v9257_v49 = vld [vmem:[#allocation5 + $0x9a8] sm:$0xf0]  ;;  %v9004_v6 = vor.u32 %v11134_v42, %v9001_v54 }
 0x19f   :  { %3219 = vmatmul.bf16.gmra.mxu2 %v12182_v44  ;;  %v9260_v0 = vor.u32 %v11198_v10, %v9257_v49 }
 0x1a0   :  { %3247 = vmatmul.bf16.gmra.mxu3 %v12184_v45  ;;  %v2942_v50 = vpop.f32.mrf.mxu0  ;;  %3421 = vmatpush.bf16.msra.mxu2 %v9516_v43 }
 0x1a1   :  { %v2970_v29 = vpop.f32.mrf.mxu1  ;;  %3365 = vmatpush.bf16.msra.mxu0 %v9004_v6  ;;  %3393 = vmatpush.bf16.msra.mxu1 %v9260_v0  ;;  %v11246_v0 = vld [vmem:[#allocation5 + $0xb0c] sm:$0xf] }
 0x1a2   :  { %v2996_v23 = vpop.f32.mrf.mxu2 }
 0x1a3   :  { %v2997_v21 = vadd.f32 %v2996_v23, %v2969_v41  ;;  %v3024_v47 = vpop.f32.mrf.mxu3  ;;  %v8969_v23 = vld [vmem:[#allocation5 + $0x768] sm:$0xf0] }
 0x1a4   :  { %v8972_v29 = vor.u32 %v11126_v31, %v8969_v23 }
 0x1a5   :  { %v12356_v55 = vadd.f32 %v3024_v47, %v2997_v21  ;;  %v11190_v21 = vld [vmem:[#allocation5 + $0x94c] sm:$0xf] }
 0x1a6   :  { %v9225_v47 = vld [vmem:[#allocation5 + $0x968] sm:$0xf0]  ;;  %3366 = vmatpush.bf16.msra.mxu0 %v8972_v29 }
 0x1a7   :  { %9605 = vmatmul.msk.bf16.vlgmr.msrb.gmra.mxu0 %vm2679_vm0, %v12153_v35  ;;  %v9228_v63 = vor.u32 %v11190_v21, %v9225_v47 }
 0x1a8   :  { %v3037_v51 = vpop.f32.mrf.mxu0 }
 0x1a9   :  { %v3038_v41 = vadd.f32 %v3037_v51, %v12322_v7  ;;  %v3065_v27 = vpop.f32.mrf.mxu1  ;;  %v9484_v7 = vor.u32 %v11254_v28, %v9481_v5  ;;  %3394 = vmatpush.bf16.msra.mxu1 %v9228_v63  ;;  %v11118_v51 = vld [vmem:[#allocation5 + $0x70c] sm:$0xf] }
 0x1aa   :  { %v2998_v39 = vpop.f32.mrf.mxu2  ;;  %v11182_v28 = vld [vmem:[#allocation5 + $0x90c] sm:$0xf] }
 0x1ab   :  { %v3026_v57 = vpop.f32.mrf.mxu3  ;;  %v12364_v24 = vadd.f32 %v3065_v27, %v3038_v41  ;;  %3422 = vmatpush.bf16.msra.mxu2 %v9484_v7  ;;  %v8937_v27 = vld [vmem:[#allocation5 + $0x728] sm:$0xf0] }
 0x1ac   :  { %3288 = vmatmul.bf16.vlgmr.msrb.gmra.mxu1 %v12101_v48  ;;  %v9449_v57 = vld [vmem:[#allocation5 + $0xb28] sm:$0xf0]  ;;  %v8940_v23 = vor.u32 %v11118_v51, %v8937_v27 }
 0x1ad   :  { %v4318_v50 = vmul.f32 1.442695, %v12364_v24  ;;  %v9452_v41 = vor.u32 %v11246_v0, %v9449_v57  ;;  %v9193_v5 = vld [vmem:[#allocation5 + $0x928] sm:$0xf0]  ;;  %vm4261_vm7 = vcmp.gt.f32.partialorder %v12364_v24, 0.0 }
 0x1ae   :  { %v9196_v21 = vor.u32 %v11182_v28, %v9193_v5  ;;  %3367 = vmatpush.bf16.msra.mxu0 %v8940_v23  ;;  %v9417_v0 = vld [vmem:[#allocation5 + $0xae8] sm:$0xf0] }
 0x1af   :  { %3316 = vmatmul.bf16.vlgmr.msrb.gmra.mxu2 %v12103_v52  ;;  %11604 = vpow2.f32 %v4318_v50  ;;  %v11110_v51 = vld [vmem:[#allocation5 + $0x6cc] sm:$0xf] }
 0x1b0   :  { %3344 = vmatmul.bf16.vlgmr.msrb.gmra.mxu3 %v12105_v53  ;;  %v3039_v54 = vpop.f32.mrf.mxu0  ;;  %3423 = vmatpush.bf16.msra.mxu2 %v9452_v41  ;;  %v8905_v41 = vld [vmem:[#allocation5 + $0x6e8] sm:$0xf0] }
 0x1b1   :  { %v3040_v10 = vadd.f32 %v3039_v54, %v12326_v20  ;;  %v3067_v49 = vpop.f32.mrf.mxu1  ;;  %3395 = vmatpush.bf16.msra.mxu1 %v9196_v21  ;;  %v11174_v27 = vld [vmem:[#allocation5 + $0x8cc] sm:$0xf]  ;;  %v8908_v5 = vor.u32 %v11110_v51, %v8905_v41 }
 0x1b2   :  { %v3093_v25 = vpop.f32.mrf.mxu2  ;;  %v8873_v51 = vld [vmem:[#allocation5 + $0x6a8] sm:$0xf0] }
 0x1b3   :  { %v3094_v42 = vadd.f32 %v3093_v25, %v12362_v22  ;;  %v3121_v43 = vpop.f32.mrf.mxu3  ;;  %v12376_v6 = vadd.f32 %v3067_v49, %v3040_v10  ;;  %v11238_v49 = vld [vmem:[#allocation5 + $0xacc] sm:$0xf]  ;;  %3368 = vmatpush.bf16.msra.mxu0 %v8908_v5 }
 0x1b4   :  { %v9420_v57 = vor.u32 %v11238_v49, %v9417_v0  ;;  %v11166_v41 = vld [vmem:[#allocation5 + $0x88c] sm:$0xf] }
 0x1b5   :  { %v12374_v39 = vadd.f32 %v3121_v43, %v3094_v42  ;;  %v11605_v31 = vpop.eup %11604  ;;  %v4334_v7 = vmul.f32 1.442695, %v12376_v6  ;;  %vm4269_vm8 = vcmp.gt.f32.partialorder %v12376_v6, 0.0 }
 0x1b6   :  { %v9630_v47 = vadd.f32 -1.0, %v11605_v31  ;;  %v9161_v31 = vld [vmem:[#allocation5 + $0x8e8] sm:$0xf0]  ;;  %3424 = vmatpush.bf16.msra.mxu2 %v9420_v57 }
 0x1b7   :  { %11606 = vpow2.f32 %v4334_v7  ;;  %9606 = vmatmul.msk.bf16.gmra.mxu0 %vm2679_vm0, %v12164_v15  ;;  %v9164_v23 = vor.u32 %v11174_v27, %v9161_v31  ;;  %v9129_v27 = vld [vmem:[#allocation5 + $0x8a8] sm:$0xf0] }
 0x1b8   :  { %v3042_v63 = vpop.f32.mrf.mxu0  ;;  %v4485_v54 = vmul.f32 1.6732632, %v9630_v47  ;;  %v9132_v31 = vor.u32 %v11166_v41, %v9129_v27  ;;  %v11214_v41 = vld [vmem:[#allocation5 + $0xa0c] sm:$0xf] }
 0x1b9   :  { %v3043_v25 = vadd.f32 %v3042_v63, %v12334_v11  ;;  %v3070_v42 = vpop.f32.mrf.mxu1  ;;  %3396 = vmatpush.bf16.msra.mxu1 %v9164_v23  ;;  %v11222_v23 = vld [vmem:[#allocation5 + $0xa4c] sm:$0xf] }
 0x1ba   :  { %v3095_v20 = vpop.f32.mrf.mxu2  ;;  %v4541_v21 = vsel %vm4261_vm7, %v12364_v24, %v4485_v54 }
 0x1bb   :  { %v3096_v50 = vadd.f32 %v3095_v20, %v12362_v22  ;;  %v3123_v29 = vpop.f32.mrf.mxu3  ;;  %v12383_v10 = vadd.f32 %v3070_v42, %v3043_v25  ;;  %v11230_v20 = vld [vmem:[#allocation5 + $0xa8c] sm:$0xf] }
 0x1bc   :  { %3293 = vmatmul.bf16.gmra.mxu1 %v12113_v32 }
 0x1bd   :  { %v12381_v43 = vadd.f32 %v3123_v29, %v3096_v50  ;;  %v11607_v11 = vpop.eup %11606  ;;  %v4350_v28 = vmul.f32 1.442695, %v12383_v10  ;;  %v9385_v50 = vld [vmem:[#allocation5 + $0xaa8] sm:$0xf0]  ;;  %3397 = vmatpush.bf16.msra.mxu1 %v9132_v31  ;;  %vm4277_vm9 = vcmp.gt.f32.partialorder %v12383_v10, 0.0 }
 0x1be   :  { %v9638_v7 = vadd.f32 -1.0, %v11607_v11  ;;  %v11102_v29 = vld [vmem:[#allocation5 + $0x68c] sm:$0xf]  ;;  %v9388_v0 = vor.u32 %v11230_v20, %v9385_v50  ;;  %v4597_v11 = vmul.f32 1.050701, %v4541_v21 }
 0x1bf   :  { %3321 = vmatmul.bf16.gmra.mxu2 %v12115_v36  ;;  %11608 = vpow2.f32 %v4350_v28  ;;  %v8876_v54 = vor.u32 %v11102_v29, %v8873_v51  ;;  %v9353_v20 = vld [vmem:[#allocation5 + $0xa68] sm:$0xf0] }
 0x1c0   :  { %3349 = vmatmul.bf16.gmra.mxu3 %v12117_v37  ;;  %v4493_v63 = vmul.f32 1.6732632, %v9638_v7  ;;  %v3044_v49 = vpop.f32.mrf.mxu0  ;;  %3425 = vmatpush.bf16.msra.mxu2 %v9388_v0  ;;  %v9356_v50 = vor.u32 %v11222_v23, %v9353_v20  ;;  %v8809_v31 = vld [vmem:[#allocation5 + $0x628] sm:$0xf0] }
 0x1c1   :  { %v3045_v57 = vadd.f32 %v3044_v49, %v12338_v62  ;;  %v3072_v24 = vpop.f32.mrf.mxu1  ;;  %3369 = vmatpush.bf16.msra.mxu0 %v8876_v54  ;;  %v8841_v62 = vld [vmem:[#allocation5 + $0x668] sm:$0xf0] }
 0x1c2   :  { %v3098_v47 = vpop.f32.mrf.mxu2  ;;  %v4549_v28 = vsel %vm4269_vm8, %v12376_v6, %v4493_v63  ;;  %v11158_v49 = vld [vmem:[#allocation5 + $0x84c] sm:$0xf]  ;;  %v8844_v21 = vor.u32 %v11094_v30, %v8841_v62 }
 0x1c3   :  { %v3099_v25 = vadd.f32 %v3098_v47, %v12362_v22  ;;  %v3126_v42 = vpop.f32.mrf.mxu3  ;;  %v4605_v7 = vmul.f32 1.050701, %v4549_v28  ;;  %v12399_v47 = vadd.f32 %v3072_v24, %v3045_v57  ;;  %v9097_v63 = vld [vmem:[#allocation5 + $0x868] sm:$0xf0] }
 0x1c4   :  { %3426 = vmatpush.bf16.msra.mxu2 %v9356_v50  ;;  %v9321_v57 = vld [vmem:[#allocation5 + $0xa28] sm:$0xf0] }
 0x1c5   :  { %v12397_v5 = vadd.f32 %v3126_v42, %v3099_v25  ;;  %v11609_v29 = vpop.eup %11608  ;;  %v12401_v51 = vpack.c.bf16 %v4605_v7, %v4597_v11  ;;  %v4366_v6 = vmul.f32 1.442695, %v12399_v47  ;;  %v9100_v42 = vor.u32 %v11158_v49, %v9097_v63  ;;  %3370 = vmatpush.bf16.msra.mxu0 %v8844_v21  ;;  %v11086_v24 = vld [vmem:[#allocation5 + $0x60c] sm:$0xf]  ;;  %v8783_v63 = vld [vmem:[#allocation5 + $0x5d0] sm:$0xf] }
 0x1c6   :  { %v9646_v25 = vadd.f32 -1.0, %v11609_v29  ;;  %v9324_v11 = vor.u32 %v11214_v41, %v9321_v57  ;;  %v11150_v7 = vld [vmem:[#allocation5 + $0x80c] sm:$0xf]  ;;  %v8812_v20 = vor.u32 %v11086_v24, %v8809_v31  ;;  %vm4285_vm10 = vcmp.gt.f32.partialorder %v12399_v47, 0.0 }
 0x1c7   :  { %13707 = vst [vmem:[#allocation24_spill] sm:$0xff] %v12401_v51  ;;  %11610 = vpow2.f32 %v4366_v6  ;;  %3398 = vmatpush.bf16.msra.mxu1 %v9100_v42  ;;  %v9065_v50 = vld [vmem:[#allocation5 + $0x828] sm:$0xf0]  ;;  %9607 = vmatmul.msk.bf16.gmra.mxu0 %vm2679_vm0, %v12175_v3  ;;  %v11228_v51 = vld [vmem:[#allocation5 + $0xa74] sm:$0xf0] }
 0x1c8   :  { %v3047_v28 = vpop.f32.mrf.mxu0  ;;  %3427 = vmatpush.bf16.msra.mxu2 %v9324_v11  ;;  %v9068_v49 = vor.u32 %v11150_v7, %v9065_v50  ;;  %v4501_v29 = vmul.f32 1.6732632, %v9646_v25  ;;  %v11083_v25 = vld [vmem:[#allocation5 + $0x5ec] sm:$0xf0] }
 0x1c9   :  { %v3048_v30 = vadd.f32 %v3047_v28, %v12346_v38  ;;  %v3075_v23 = vpop.f32.mrf.mxu1  ;;  %3371 = vmatpush.bf16.msra.mxu0 %v8812_v20  ;;  %v8784_v24 = vor.u32 %v11083_v25, %v8783_v63  ;;  %v11147_v28 = vld [vmem:[#allocation5 + $0x7ec] sm:$0xf0] }
 0x1ca   :  { %v3100_v0 = vpop.f32.mrf.mxu2  ;;  %v4557_v41 = vsel %vm4277_vm9, %v12383_v10, %v4501_v29  ;;  %v11019_v63 = vld [vmem:[#allocation5 + $0x3ec] sm:$0xf0] }
 0x1cb   :  { %v3101_v54 = vadd.f32 %v3100_v0, %v12362_v22  ;;  %v3128_v27 = vpop.f32.mrf.mxu3  ;;  %v12408_v6 = vadd.f32 %v3075_v23, %v3048_v30  ;;  %3399 = vmatpush.bf16.msra.mxu1 %v9068_v49  ;;  %v8271_v0 = vld [vmem:[#allocation5 + $0x1d0] sm:$0xf]  ;;  %v4613_v10 = vmul.f32 1.050701, %v4557_v41 }
 0x1cc   :  { %3298 = vmatmul.bf16.gmra.mxu1 %v12125_v16  ;;  %3532 = vmatpush.bf16.msrb.mxu2 %v8784_v24 }
 0x1cd   :  { %v12406_v62 = vadd.f32 %v3128_v27, %v3101_v54  ;;  %v11611_v21 = vpop.eup %11610  ;;  %v4382_v38 = vmul.f32 1.442695, %v12408_v6  ;;  %v10955_v54 = vld [vmem:[#allocation5 + $0x1ec] sm:$0xf0]  ;;  %vm4293_vm11 = vcmp.gt.f32.partialorder %v12408_v6, 0.0 }
 0x1ce   :  { %v9654_v42 = vadd.f32 -1.0, %v11611_v21  ;;  %v9039_v27 = vld [vmem:[#allocation5 + $0x7d0] sm:$0xf]  ;;  %v8272_v23 = vor.u32 %v10955_v54, %v8271_v0 }
 0x1cf   :  { %3326 = vmatmul.bf16.gmra.mxu2 %v12127_v17  ;;  %11612 = vpow2.f32 %v4382_v38  ;;  %v9040_v20 = vor.u32 %v11147_v28, %v9039_v27  ;;  %v8527_v38 = vld [vmem:[#allocation5 + $0x3d0] sm:$0xf] }
 0x1d0   :  { %3354 = vmatmul.bf16.gmra.mxu3 %v12129_v18  ;;  %v4509_v11 = vmul.f32 1.6732632, %v9654_v42  ;;  %v3049_v30 = vpop.f32.mrf.mxu0  ;;  %3476 = vmatpush.bf16.msrb.mxu0 %v8272_v23  ;;  %v8751_v0 = vld [vmem:[#allocation5 + $0x590] sm:$0xf] }
 0x1d1   :  { %v3050_v50 = vadd.f32 %v3049_v30, %v12350_v12  ;;  %v3077_v49 = vpop.f32.mrf.mxu1  ;;  %3560 = vmatpush.bf16.msrb.mxu3 %v9040_v20  ;;  %v11075_v54 = vld [vmem:[#allocation5 + $0x5ac] sm:$0xf0] }
 0x1d2   :  { %v3103_v57 = vpop.f32.mrf.mxu2  ;;  %v4565_v29 = vsel %vm4285_vm10, %v12399_v47, %v4509_v11  ;;  %v8752_v27 = vor.u32 %v11075_v54, %v8751_v0  ;;  %v8239_v28 = vld [vmem:[#allocation5 + $0x190] sm:$0xf] }
 0x1d3   :  { %v3104_v31 = vadd.f32 %v3103_v57, %v12362_v22  ;;  %v3131_v7 = vpop.f32.mrf.mxu3  ;;  %v4621_v42 = vmul.f32 1.050701, %v4565_v29  ;;  %v3078_v25 = vadd.f32 %v3077_v49, %v3050_v50  ;;  %v8528_v57 = vor.u32 %v11019_v63, %v8527_v38  ;;  %v9007_v12 = vld [vmem:[#allocation5 + $0x790] sm:$0xf] }
 0x1d4   :  { %v8240_v41 = vor.u32 %v10947_v4, %v8239_v28  ;;  %v11139_v47 = vld [vmem:[#allocation5 + $0x7ac] sm:$0xf0]  ;;  %3533 = vmatpush.bf16.msrb.mxu2 %v8752_v27 }
 0x1d5   :  { %v12422_v21 = vadd.f32 %v3131_v7, %v3104_v31  ;;  %v11613_v30 = vpop.eup %11612  ;;  %v4398_v24 = vmul.f32 1.442695, %v3078_v25  ;;  %3504 = vmatpush.bf16.msrb.mxu1 %v8528_v57  ;;  %v12424_v11 = vpack.c.bf16 %v4621_v42, %v4613_v10  ;;  %v9008_v31 = vor.u32 %v11139_v47, %v9007_v12  ;;  %v8495_v4 = vld [vmem:[#allocation5 + $0x390] sm:$0xf] }
 0x1d6   :  { %v9662_v7 = vadd.f32 -1.0, %v11613_v30  ;;  %3477 = vmatpush.bf16.msrb.mxu0 %v8240_v41  ;;  %v11011_v57 = vld [vmem:[#allocation5 + $0x3ac] sm:$0xf0]  ;;  %vm4301_vm12 = vcmp.gt.f32.partialorder %v3078_v25, 0.0 }
 0x1d7   :  { %13708 = vst [vmem:[#allocation25_spill] sm:$0xff] %v12424_v11  ;;  %11614 = vpow2.f32 %v4398_v24  ;;  %3561 = vmatpush.bf16.msrb.mxu3 %v9008_v31  ;;  %9608 = vmatmul.msk.bf16.gmra.mxu0 %vm2679_vm0, %v12186_v46  ;;  %v8496_v0 = vor.u32 %v11011_v57, %v8495_v4  ;;  %v11067_v28 = vld [vmem:[#allocation5 + $0x56c] sm:$0xf0] }
 0x1d8   :  { %v3052_v49 = vpop.f32.mrf.mxu0  ;;  %v4517_v10 = vmul.f32 1.6732632, %v9662_v7  ;;  %v8207_v12 = vld [vmem:[#allocation5 + $0x150] sm:$0xf] }
 0x1d9   :  { %v3053_v29 = vadd.f32 %v3052_v49, %v12356_v55  ;;  %v3080_v38 = vpop.f32.mrf.mxu1  ;;  %3505 = vmatpush.bf16.msrb.mxu1 %v8496_v0  ;;  %v8719_v55 = vld [vmem:[#allocation5 + $0x550] sm:$0xf] }
 0x1da   :  { %v3105_v23 = vpop.f32.mrf.mxu2  ;;  %v4573_v30 = vsel %vm4293_vm11, %v12408_v6, %v4517_v10  ;;  %v8720_v41 = vor.u32 %v11067_v28, %v8719_v55  ;;  %v10939_v47 = vld [vmem:[#allocation5 + $0x16c] sm:$0xf0] }
 0x1db   :  { %v3106_v20 = vadd.f32 %v3105_v23, %v12362_v22  ;;  %v3133_v50 = vpop.f32.mrf.mxu3  ;;  %v12430_v42 = vadd.f32 %v3080_v38, %v3053_v29  ;;  %v8975_v31 = vld [vmem:[#allocation5 + $0x750] sm:$0xf]  ;;  %v8208_v29 = vor.u32 %v10939_v47, %v8207_v12  ;;  %v4629_v57 = vmul.f32 1.050701, %v4573_v30 }
 0x1dc   :  { %3303 = vmatmul.bf16.gmra.mxu1 %v12137_v58  ;;  %v11131_v7 = vld [vmem:[#allocation5 + $0x76c] sm:$0xf0]  ;;  %3534 = vmatpush.bf16.msrb.mxu2 %v8720_v41 }
 0x1dd   :  { %v12428_v63 = vadd.f32 %v3133_v50, %v3106_v20  ;;  %13709 = vst [vmem:[#allocation26_spill] sm:$0xff] %v12430_v42  ;;  %v11615_v54 = vpop.eup %11614  ;;  %v8976_v38 = vor.u32 %v11131_v7, %v8975_v31  ;;  %3478 = vmatpush.bf16.msrb.mxu0 %v8208_v29  ;;  %v8463_v6 = vld [vmem:[#allocation5 + $0x350] sm:$0xf] }
 0x1de   :  { %v9670_v27 = vadd.f32 -1.0, %v11615_v54  ;;  %v11003_v10 = vld [vmem:[#allocation5 + $0x36c] sm:$0xf0] }
 0x1df   :  { %3331 = vmatmul.bf16.gmra.mxu2 %v12139_v59  ;;  %3562 = vmatpush.bf16.msrb.mxu3 %v8976_v38  ;;  %v8464_v28 = vor.u32 %v11003_v10, %v8463_v6  ;;  %v11059_v11 = vld [vmem:[#allocation5 + $0x52c] sm:$0xf0] }
 0x1e0   :  { %3359 = vmatmul.bf16.gmra.mxu3 %v12141_v60  ;;  %v4525_v23 = vmul.f32 1.6732632, %v9670_v27  ;;  %v3054_v49 = vpop.f32.mrf.mxu0  ;;  %v8687_v27 = vld [vmem:[#allocation5 + $0x510] sm:$0xf] }
 0x1e1   :  { %v3082_v4 = vpop.f32.mrf.mxu1  ;;  %v10931_v49 = vld [vmem:[#allocation5 + $0x12c] sm:$0xf0]  ;;  %3506 = vmatpush.bf16.msrb.mxu1 %v8464_v28 }
 0x1e2   :  { %v3108_v24 = vpop.f32.mrf.mxu2  ;;  %v4581_v0 = vsel %vm4301_vm12, %v3078_v25, %v4525_v23  ;;  %v8943_v12 = vld [vmem:[#allocation5 + $0x710] sm:$0xf] }
 0x1e3   :  { %v3109_v20 = vadd.f32 %v3108_v24, %v12362_v22  ;;  %v3136_v50 = vpop.f32.mrf.mxu3  ;;  %v4637_v55 = vmul.f32 1.050701, %v4581_v0  ;;  %v8688_v22 = vor.u32 %v11059_v11, %v8687_v27  ;;  %v8175_v24 = vld [vmem:[#allocation5 + $0x110] sm:$0xf] }
 0x1e4   :  { %v8176_v47 = vor.u32 %v10931_v49, %v8175_v24  ;;  %v11123_v31 = vld [vmem:[#allocation5 + $0x72c] sm:$0xf0] }
 0x1e5   :  { %v12440_v54 = vadd.f32 %v3136_v50, %v3109_v20  ;;  %v12442_v41 = vpack.c.bf16 %v4637_v55, %v4629_v57  ;;  %3535 = vmatpush.bf16.msrb.mxu2 %v8688_v22  ;;  %v8944_v25 = vor.u32 %v11123_v31, %v8943_v12  ;;  %v8431_v29 = vld [vmem:[#allocation5 + $0x310] sm:$0xf] }
 0x1e6   :  { %3479 = vmatpush.bf16.msrb.mxu0 %v8176_v47  ;;  %v10995_v11 = vld [vmem:[#allocation5 + $0x32c] sm:$0xf0] }
 0x1e7   :  { %13710 = vst [vmem:[#allocation27_spill] sm:$0xff] %v12442_v41  ;;  %3563 = vmatpush.bf16.msrb.mxu3 %v8944_v25  ;;  %3372 = vmatmul.bf16.vlgmr.msra.gmra.mxu0 %v12107_v56  ;;  %v8432_v4 = vor.u32 %v10995_v11, %v8431_v29  ;;  %v8655_v57 = vld [vmem:[#allocation5 + $0x4d0] sm:$0xf] }
 0x1e8   :  { %v3149_v23 = vpop.f32.mrf.mxu0  ;;  %v11051_v0 = vld [vmem:[#allocation5 + $0x4ec] sm:$0xf0] }
 0x1e9   :  { %v3150_v20 = vadd.f32 %v3149_v23, %v12374_v39  ;;  %v3177_v50 = vpop.f32.mrf.mxu1  ;;  %3507 = vmatpush.bf16.msrb.mxu1 %v8432_v4  ;;  %v8143_v6 = vld [vmem:[#allocation5 + $0xd0] sm:$0xf]  ;;  %v8656_v10 = vor.u32 %v11051_v0, %v8655_v57 }
 0x1ea   :  { %v3110_v30 = vpop.f32.mrf.mxu2  ;;  %v10923_v39 = vld [vmem:[#allocation5 + $0xec] sm:$0xf0] }
 0x1eb   :  { %v3138_v7 = vpop.f32.mrf.mxu3  ;;  %v3178_v38 = vadd.f32 %v3177_v50, %v3150_v20  ;;  %v8911_v55 = vld [vmem:[#allocation5 + $0x6d0] sm:$0xf]  ;;  %v8144_v22 = vor.u32 %v10923_v39, %v8143_v6  ;;  %3536 = vmatpush.bf16.msrb.mxu2 %v8656_v10 }
 0x1ec   :  { %3400 = vmatmul.bf16.vlgmr.msra.gmra.mxu1 %v12149_v33  ;;  %v11115_v28 = vld [vmem:[#allocation5 + $0x6ec] sm:$0xf0] }
 0x1ed   :  { %v8912_v24 = vor.u32 %v11115_v28, %v8911_v55  ;;  %3480 = vmatpush.bf16.msrb.mxu0 %v8144_v22  ;;  %v8399_v7 = vld [vmem:[#allocation5 + $0x2d0] sm:$0xf] }
 0x1ee   :  { %v10987_v23 = vld [vmem:[#allocation5 + $0x2ec] sm:$0xf0] }
 0x1ef   :  { %3428 = vmatmul.bf16.vlgmr.msra.gmra.mxu2 %v12151_v34  ;;  %3564 = vmatpush.bf16.msrb.mxu3 %v8912_v24  ;;  %v8400_v50 = vor.u32 %v10987_v23, %v8399_v7  ;;  %v8623_v29 = vld [vmem:[#allocation5 + $0x490] sm:$0xf] }
 0x1f0   :  { %9609 = vmatmul.msk.bf16.vlgmr.msra.gmra.mxu3 %vm2679_vm0, %v12153_v35  ;;  %v3151_v47 = vpop.f32.mrf.mxu0  ;;  %v11043_v11 = vld [vmem:[#allocation5 + $0x4ac] sm:$0xf0] }
 0x1f1   :  { %v3152_v31 = vadd.f32 %v3151_v47, %v12381_v43  ;;  %v3179_v25 = vpop.f32.mrf.mxu1  ;;  %v8111_v4 = vld [vmem:[#allocation5 + $0x90] sm:$0xf]  ;;  %v8624_v57 = vor.u32 %v11043_v11, %v8623_v29  ;;  %3508 = vmatpush.bf16.msrb.mxu1 %v8400_v50 }
 0x1f2   :  { %v3205_v27 = vpop.f32.mrf.mxu2  ;;  %v10915_v0 = vld [vmem:[#allocation5 + $0xac] sm:$0xf0] }
 0x1f3   :  { %v3206_v49 = vadd.f32 %v3205_v27, %v3178_v38  ;;  %v3233_v12 = vpop.f32.mrf.mxu3  ;;  %v3180_v20 = vadd.f32 %v3179_v25, %v3152_v31  ;;  %v8879_v38 = vld [vmem:[#allocation5 + $0x690] sm:$0xf]  ;;  %v8112_v10 = vor.u32 %v10915_v0, %v8111_v4  ;;  %3537 = vmatpush.bf16.msrb.mxu2 %v8624_v57 }
 0x1f4   :  { %v11107_v6 = vld [vmem:[#allocation5 + $0x6ac] sm:$0xf0] }
 0x1f5   :  { %v12451_v30 = vadd.f32 %v3233_v12, %v3206_v49  ;;  %v8880_v39 = vor.u32 %v11107_v6, %v8879_v38  ;;  %3481 = vmatpush.bf16.msrb.mxu0 %v8112_v10  ;;  %v8367_v12 = vld [vmem:[#allocation5 + $0x290] sm:$0xf] }
 0x1f6   :  { %v10979_v47 = vld [vmem:[#allocation5 + $0x2ac] sm:$0xf0] }
 0x1f7   :  { %3565 = vmatpush.bf16.msrb.mxu3 %v8880_v39  ;;  %3377 = vmatmul.bf16.gmra.mxu0 %v12119_v40  ;;  %v8368_v25 = vor.u32 %v10979_v47, %v8367_v12  ;;  %v8591_v7 = vld [vmem:[#allocation5 + $0x450] sm:$0xf] }
 0x1f8   :  { %v3154_v27 = vpop.f32.mrf.mxu0  ;;  %v11035_v23 = vld [vmem:[#allocation5 + $0x46c] sm:$0xf0] }
 0x1f9   :  { %v3155_v22 = vadd.f32 %v3154_v27, %v12397_v5  ;;  %v3182_v24 = vpop.f32.mrf.mxu1  ;;  %3509 = vmatpush.bf16.msrb.mxu1 %v8368_v25  ;;  %v8079_v5 = vld [vmem:[#allocation5 + $0x50] sm:$0xf] }
 0x1fa   :  { %v3207_v43 = vpop.f32.mrf.mxu2  ;;  %v10907_v50 = vld [vmem:[#allocation5 + $0x6c] sm:$0xf0] }
 0x1fb   :  { %v3208_v55 = vadd.f32 %v3207_v43, %v3180_v20  ;;  %v3235_v28 = vpop.f32.mrf.mxu3  ;;  %v3183_v31 = vadd.f32 %v3182_v24, %v3155_v22  ;;  %v8592_v20 = vor.u32 %v11035_v23, %v8591_v7  ;;  %v8847_v29 = vld [vmem:[#allocation5 + $0x650] sm:$0xf]  ;;  %v8080_v57 = vor.u32 %v10907_v50, %v8079_v5 }
 0x1fc   :  { %3405 = vmatmul.bf16.gmra.mxu1 %v12160_v13  ;;  %v11099_v11 = vld [vmem:[#allocation5 + $0x66c] sm:$0xf0] }
 0x1fd   :  { %v12454_v49 = vadd.f32 %v3235_v28, %v3208_v55  ;;  %v8848_v0 = vor.u32 %v11099_v11, %v8847_v29  ;;  %3538 = vmatpush.bf16.msrb.mxu2 %v8592_v20  ;;  %3482 = vmatpush.bf16.msrb.mxu0 %v8080_v57  ;;  %v8335_v28 = vld [vmem:[#allocation5 + $0x250] sm:$0xf] }
 0x1fe   :  { %v10971_v27 = vld [vmem:[#allocation5 + $0x26c] sm:$0xf0] }
 0x1ff   :  { %3433 = vmatmul.bf16.gmra.mxu2 %v12162_v14  ;;  %3566 = vmatpush.bf16.msrb.mxu3 %v8848_v0  ;;  %v8559_v22 = vld [vmem:[#allocation5 + $0x410] sm:$0xf]  ;;  %v8336_v12 = vor.u32 %v10971_v27, %v8335_v28 }
 0x200   :  { %9610 = vmatmul.msk.bf16.gmra.mxu3 %vm2679_vm0, %v12164_v15  ;;  %v3156_v10 = vpop.f32.mrf.mxu0  ;;  %v11027_v47 = vld [vmem:[#allocation5 + $0x42c] sm:$0xf0] }
 0x201   :  { %v3157_v39 = vadd.f32 %v3156_v10, %v12406_v62  ;;  %v3184_v43 = vpop.f32.mrf.mxu1  ;;  %v8047_v25 = vld [vmem:[#allocation5 + $0x10] sm:$0xf]  ;;  %v8560_v23 = vor.u32 %v11027_v47, %v8559_v22  ;;  %3510 = vmatpush.bf16.msrb.mxu1 %v8336_v12 }
 0x202   :  { %v3210_v4 = vpop.f32.mrf.mxu2  ;;  %v10899_v7 = vld [vmem:[#allocation5 + $0x2c] sm:$0xf0] }
 0x203   :  { %v3211_v38 = vadd.f32 %v3210_v4, %v3183_v31  ;;  %v3238_v6 = vpop.f32.mrf.mxu3  ;;  %v3185_v24 = vadd.f32 %v3184_v43, %v3157_v39  ;;  %v8048_v31 = vor.u32 %v10899_v7, %v8047_v25  ;;  %v8815_v5 = vld [vmem:[#allocation5 + $0x610] sm:$0xf]  ;;  %3539 = vmatpush.bf16.msrb.mxu2 %v8560_v23 }
 0x204   :  { %v11091_v50 = vld [vmem:[#allocation5 + $0x62c] sm:$0xf0] }
 0x205   :  { %v12462_v55 = vadd.f32 %v3238_v6, %v3211_v38  ;;  %v8816_v20 = vor.u32 %v11091_v50, %v8815_v5  ;;  %3483 = vmatpush.bf16.msrb.mxu0 %v8048_v31  ;;  %v8303_v29 = vld [vmem:[#allocation5 + $0x210] sm:$0xf] }
 0x206   :  { %v10963_v11 = vld [vmem:[#allocation5 + $0x22c] sm:$0xf0] }
 0x207   :  { %3567 = vmatpush.bf16.msrb.mxu3 %v8816_v20  ;;  %v8304_v38 = vor.u32 %v10963_v11, %v8303_v29  ;;  %3382 = vmatmul.bf16.gmra.mxu0 %v12131_v19  ;;  %v11283_v29 = vld [vmem:[#allocation5 + $0xc2c] sm:$0xf0] }
 0x208   :  { %v3159_v0 = vpop.f32.mrf.mxu0  ;;  %v9295_v11 = vld [vmem:[#allocation5 + $0x9d0] sm:$0xf] }
 0x209   :  { %v3160_v6 = vadd.f32 %v3159_v0, %v12422_v21  ;;  %v3187_v10 = vpop.f32.mrf.mxu1  ;;  %3511 = vmatpush.bf16.msrb.mxu1 %v8304_v38  ;;  %v11211_v0 = vld [vmem:[#allocation5 + $0x9ec] sm:$0xf0]  ;;  %v10951_v38 = vld [vmem:[#allocation5 + $0x1d4] sm:$0xf] }
 0x20a   :  { %v3212_v62 = vpop.f32.mrf.mxu2 }
 0x20b   :  { %v3213_v4 = vadd.f32 %v3212_v62, %v3185_v24  ;;  %v3240_v57 = vpop.f32.mrf.mxu3  ;;  %v3188_v43 = vadd.f32 %v3187_v10, %v3160_v6  ;;  %v9583_v62 = vld [vmem:[#allocation5 + $0xc10] sm:$0xf]  ;;  %v9296_v10 = vor.u32 %v11211_v0, %v9295_v11 }
 0x20c   :  { %3410 = vmatmul.bf16.gmra.mxu1 %v12171_v1 }
 0x20d   :  { %v12465_v39 = vadd.f32 %v3240_v57, %v3213_v4  ;;  %v9584_v57 = vor.u32 %v11283_v29, %v9583_v62  ;;  %3588 = vmatpush.bf16.msra.mxu0 %v9296_v10  ;;  %v9519_v62 = vld [vmem:[#allocation5 + $0xb90] sm:$0xf] }
 0x20e   :  { %v11267_v29 = vld [vmem:[#allocation5 + $0xbac] sm:$0xf0] }
 0x20f   :  { %3438 = vmatmul.bf16.gmra.mxu2 %v12173_v2  ;;  %v9520_v0 = vor.u32 %v11267_v29, %v9519_v62 }
 0x210   :  { %9611 = vmatmul.msk.bf16.gmra.mxu3 %vm2679_vm0, %v12175_v3  ;;  %v3161_v24 = vpop.f32.mrf.mxu0  ;;  %3651 = vmatpush.bf16.msra.mxu2 %v9584_v57 }
 0x211   :  { %v3162_v21 = vadd.f32 %v3161_v24, %v12428_v63  ;;  %v3189_v12 = vpop.f32.mrf.mxu1  ;;  %v8273_v63 = vld [vmem:[#allocation5 + $0x1f0] sm:$0xf0] }
 0x212   :  { %v3215_v28 = vpop.f32.mrf.mxu2 }
 0x213   :  { %v3216_v27 = vadd.f32 %v3215_v28, %v3188_v43  ;;  %v3243_v22 = vpop.f32.mrf.mxu3  ;;  %v3190_v25 = vadd.f32 %v3189_v12, %v3162_v21  ;;  %v8276_v43 = vor.u32 %v10951_v38, %v8273_v63  ;;  %v9551_v28 = vld [vmem:[#allocation5 + $0xbd0] sm:$0xf] }
 0x215   :  { %v12473_v47 = vadd.f32 %v3243_v22, %v3216_v27  ;;  %v11275_v27 = vld [vmem:[#allocation5 + $0xbec] sm:$0xf0]  ;;  %3672 = vmatpush.bf16.msra.mxu3 %v8276_v43 }
 0x217   :  { %3387 = vmatmul.bf16.gmra.mxu0 %v12143_v61 }
 0x218   :  { %v3164_v5 = vpop.f32.mrf.mxu0 }
 0x219   :  { %v3165_v50 = vadd.f32 %v3164_v5, %v12440_v54  ;;  %v3192_v20 = vpop.f32.mrf.mxu1  ;;  %v9552_v54 = vor.u32 %v11275_v27, %v9551_v28  ;;  %v10943_v5 = vld [vmem:[#allocation5 + $0x194] sm:$0xf]  ;;  %v9231_v28 = vld [vmem:[#allocation5 + $0x950] sm:$0xf] }
 0x21a   :  { %v3217_v7 = vpop.f32.mrf.mxu2  ;;  %v11195_v27 = vld [vmem:[#allocation5 + $0x96c] sm:$0xf0] }
 0x21b   :  { %v3218_v23 = vadd.f32 %v3217_v7, %v3190_v25  ;;  %v3245_v31 = vpop.f32.mrf.mxu3  ;;  %v3193_v6 = vadd.f32 %v3192_v20, %v3165_v50  ;;  %3616 = vmatpush.bf16.msra.mxu1 %v9552_v54  ;;  %v8241_v20 = vld [vmem:[#allocation5 + $0x1b0] sm:$0xf0] }
 0x21c   :  { %3415 = vmatmul.bf16.gmra.mxu1 %v12182_v44  ;;  %v8244_v11 = vor.u32 %v10943_v5, %v8241_v20  ;;  %v10935_v54 = vld [vmem:[#allocation5 + $0x154] sm:$0xf] }
 0x21d   :  { %v12476_v4 = vadd.f32 %v3245_v31, %v3218_v23  ;;  %v9263_v23 = vld [vmem:[#allocation5 + $0x990] sm:$0xf] }
 0x21e   :  { %v11203_v31 = vld [vmem:[#allocation5 + $0x9ac] sm:$0xf0]  ;;  %3673 = vmatpush.bf16.msra.mxu3 %v8244_v11 }
 0x21f   :  { %3443 = vmatmul.bf16.gmra.mxu2 %v12184_v45  ;;  %v9264_v50 = vor.u32 %v11203_v31, %v9263_v23  ;;  %3617 = vmatpush.bf16.msra.mxu1 %v9520_v0  ;;  %v9199_v11 = vld [vmem:[#allocation5 + $0x910] sm:$0xf] }
 0x220   :  { %9612 = vmatmul.msk.bf16.gmra.mxu3 %vm2679_vm0, %v12186_v46  ;;  %v3166_v12 = vpop.f32.mrf.mxu0  ;;  %v11187_v0 = vld [vmem:[#allocation5 + $0x92c] sm:$0xf0] }
 0x221   :  { %v3194_v25 = vpop.f32.mrf.mxu1  ;;  %3589 = vmatpush.bf16.msra.mxu0 %v9264_v50  ;;  %v11259_v12 = vld [vmem:[#allocation5 + $0xb6c] sm:$0xf0] }
 0x222   :  { %v3220_v22 = vpop.f32.mrf.mxu2 }
 0x223   :  { %v3221_v24 = vadd.f32 %v3220_v22, %v3193_v6  ;;  %v3248_v21 = vpop.f32.mrf.mxu3  ;;  %v12486_v6 = vperm.slane %v12359_v9, 3  ;;  %v9232_v22 = vor.u32 %v11195_v27, %v9231_v28  ;;  %v9455_v28 = vld [vmem:[#allocation5 + $0xb10] sm:$0xf] }
 0x224   :  { %v11251_v27 = vld [vmem:[#allocation5 + $0xb2c] sm:$0xf0] }
 0x225   :  { %v12483_v7 = vadd.f32 %v3248_v21, %v3221_v24  ;;  %v8209_v24 = vld [vmem:[#allocation5 + $0x170] sm:$0xf0]  ;;  %v9487_v21 = vld [vmem:[#allocation5 + $0xb50] sm:$0xf]  ;;  %3590 = vmatpush.bf16.msra.mxu0 %v9232_v22 }
 0x226   :  { %v8212_v23 = vor.u32 %v10935_v54, %v8209_v24  ;;  %v9488_v31 = vor.u32 %v11259_v12, %v9487_v21  ;;  %v9456_v21 = vor.u32 %v11251_v27, %v9455_v28  ;;  %v9423_v28 = vld [vmem:[#allocation5 + $0xad0] sm:$0xf] }
 0x227   :  { %3484 = vmatmul.bf16.vlgmr.msrb.gmra.mxu0 %v12101_v48 }
 0x228   :  { %v3261_v63 = vpop.f32.mrf.mxu0  ;;  %3674 = vmatpush.bf16.msra.mxu3 %v8212_v23  ;;  %3618 = vmatpush.bf16.msra.mxu1 %v9488_v31 }
 0x229   :  { %v3262_v10 = vadd.f32 %v3261_v63, %v12451_v30  ;;  %v3289_v43 = vpop.f32.mrf.mxu1  ;;  %v9200_v63 = vor.u32 %v11187_v0, %v9199_v11  ;;  %v11179_v11 = vld [vmem:[#allocation5 + $0x8ec] sm:$0xf0] }
 0x22a   :  { %v3222_v57 = vpop.f32.mrf.mxu2  ;;  %v3290_v5 = vadd.f32 %v3289_v43, %v12486_v6  ;;  %v8177_v43 = vld [vmem:[#allocation5 + $0x130] sm:$0xf0] }
 0x22b   :  { %v3250_v38 = vpop.f32.mrf.mxu3  ;;  %v4320_v25 = vmul.f32 1.442695, %v3262_v10  ;;  %v10927_v57 = vld [vmem:[#allocation5 + $0x114] sm:$0xf]  ;;  %3591 = vmatpush.bf16.msra.mxu0 %v9200_v63  ;;  %vm4262_vm13 = vcmp.gt.f32.partialorder %v3262_v10, 0.0 }
 0x22c   :  { %3512 = vmatmul.bf16.vlgmr.msrb.gmra.mxu1 %v12103_v52  ;;  %v8180_v24 = vor.u32 %v10927_v57, %v8177_v43  ;;  %v10919_v63 = vld [vmem:[#allocation5 + $0xd4] sm:$0xf] }
 0x22d   :  { %11616 = vpow2.f32 %v4320_v25  ;;  %3619 = vmatpush.bf16.msra.mxu1 %v9456_v21  ;;  %v8145_v43 = vld [vmem:[#allocation5 + $0xf0] sm:$0xf0] }
 0x22e   :  { %3675 = vmatpush.bf16.msra.mxu3 %v8180_v24  ;;  %v11243_v24 = vld [vmem:[#allocation5 + $0xaec] sm:$0xf0] }
 0x22f   :  { %3540 = vmatmul.bf16.vlgmr.msrb.gmra.mxu2 %v12105_v53 }
 0x230   :  { %3568 = vmatmul.bf16.vlgmr.msrb.gmra.mxu3 %v12107_v56  ;;  %v3263_v20 = vpop.f32.mrf.mxu0 }
 0x231   :  { %v3264_v62 = vadd.f32 %v3263_v20, %v12454_v49  ;;  %v3291_v29 = vpop.f32.mrf.mxu1  ;;  %v9167_v20 = vld [vmem:[#allocation5 + $0x8d0] sm:$0xf] }
 0x232   :  { %v3317_v9 = vpop.f32.mrf.mxu2  ;;  %v3292_v49 = vadd.f32 %v3291_v29, %v12486_v6  ;;  %v9168_v57 = vor.u32 %v11179_v11, %v9167_v20 }
 0x233   :  { %v3318_v30 = vadd.f32 %v3317_v9, %v3290_v5  ;;  %v3345_v50 = vpop.f32.mrf.mxu3  ;;  %v11617_v54 = vpop.eup %11616  ;;  %v4336_v22 = vmul.f32 1.442695, %v3264_v62  ;;  %vm4270_vm14 = vcmp.gt.f32.partialorder %v3264_v62, 0.0 }
 0x234   :  { %v9631_v12 = vadd.f32 -1.0, %v11617_v54  ;;  %3592 = vmatpush.bf16.msra.mxu0 %v9168_v57 }
 0x235   :  { %v12495_v38 = vadd.f32 %v3345_v50, %v3318_v30  ;;  %11618 = vpow2.f32 %v4336_v22  ;;  %v8148_v22 = vor.u32 %v10919_v63, %v8145_v43  ;;  %v8113_v43 = vld [vmem:[#allocation5 + $0xb0] sm:$0xf0] }
 0x236   :  { %v4486_v25 = vmul.f32 1.6732632, %v9631_v12  ;;  %v9424_v12 = vor.u32 %v11243_v24, %v9423_v28  ;;  %v9391_v28 = vld [vmem:[#allocation5 + $0xa90] sm:$0xf] }
 0x237   :  { %3489 = vmatmul.bf16.gmra.mxu0 %v12113_v32  ;;  %3676 = vmatpush.bf16.msra.mxu3 %v8148_v22 }
 0x238   :  { %v3266_v9 = vpop.f32.mrf.mxu0  ;;  %v4542_v29 = vsel %vm4262_vm13, %v3262_v10, %v4486_v25  ;;  %3620 = vmatpush.bf16.msra.mxu1 %v9424_v12 }
 0x239   :  { %v12499_v30 = vadd.f32 %v3266_v9, %v12462_v55  ;;  %v3294_v50 = vpop.f32.mrf.mxu1 }
 0x23a   :  { %v3319_v23 = vpop.f32.mrf.mxu2  ;;  %v3295_v55 = vadd.f32 %v3294_v50, %v12486_v6 }
 0x23b   :  { %v3320_v31 = vadd.f32 %v3319_v23, %v3292_v49  ;;  %v3347_v5 = vpop.f32.mrf.mxu3  ;;  %v11619_v27 = vpop.eup %11618  ;;  %v4352_v54 = vmul.f32 1.442695, %v12499_v30  ;;  %v4598_v49 = vmul.f32 1.050701, %v4542_v29  ;;  %v9135_v23 = vld [vmem:[#allocation5 + $0x890] sm:$0xf] }
 0x23c   :  { %v9639_v21 = vadd.f32 -1.0, %v11619_v27  ;;  %3517 = vmatmul.bf16.gmra.mxu1 %v12115_v36  ;;  %v11235_v27 = vld [vmem:[#allocation5 + $0xaac] sm:$0xf0]  ;;  %vm4278_vm15 = vcmp.gt.f32.partialorder %v12499_v30, 0.0 }
 0x23d   :  { %v12501_v0 = vadd.f32 %v3347_v5, %v3320_v31  ;;  %11620 = vpow2.f32 %v4352_v54  ;;  %v11171_v31 = vld [vmem:[#allocation5 + $0x8ac] sm:$0xf0]  ;;  %v10911_v5 = vld [vmem:[#allocation5 + $0x94] sm:$0xf]  ;;  %v9392_v22 = vor.u32 %v11235_v27, %v9391_v28 }
 0x23e   :  { %v4494_v10 = vmul.f32 1.6732632, %v9639_v21  ;;  %v9136_v63 = vor.u32 %v11171_v31, %v9135_v23  ;;  %v8116_v24 = vor.u32 %v10911_v5, %v8113_v43  ;;  %v9359_v31 = vld [vmem:[#allocation5 + $0xa50] sm:$0xf]  ;;  %v10895_v28 = vld [vmem:[#allocation5 + $0x14] sm:$0xf] }
 0x23f   :  { %3545 = vmatmul.bf16.gmra.mxu2 %v12117_v37  ;;  %3621 = vmatpush.bf16.msra.mxu1 %v9392_v22  ;;  %v11155_v43 = vld [vmem:[#allocation5 + $0x82c] sm:$0xf0]  ;;  %v8049_v22 = vld [vmem:[#allocation5 + $0x30] sm:$0xf0] }
 0x240   :  { %3573 = vmatmul.bf16.gmra.mxu3 %v12119_v40  ;;  %v4550_v9 = vsel %vm4270_vm14, %v3264_v62, %v4494_v10  ;;  %v3268_v11 = vpop.f32.mrf.mxu0  ;;  %3593 = vmatpush.bf16.msra.mxu0 %v9136_v63  ;;  %v11163_v10 = vld [vmem:[#allocation5 + $0x86c] sm:$0xf0] }
 0x241   :  { %v4606_v54 = vmul.f32 1.050701, %v4550_v9  ;;  %v12510_v57 = vadd.f32 %v3268_v11, %v12465_v39  ;;  %v3296_v29 = vpop.f32.mrf.mxu1  ;;  %3677 = vmatpush.bf16.msra.mxu3 %v8116_v24  ;;  %v8081_v39 = vld [vmem:[#allocation5 + $0x70] sm:$0xf0]  ;;  %v11227_v9 = vld [vmem:[#allocation5 + $0xa6c] sm:$0xf0] }
 0x242   :  { %v3322_v25 = vpop.f32.mrf.mxu2  ;;  %v9360_v11 = vor.u32 %v11227_v9, %v9359_v31 }
 0x243   :  { %v3323_v50 = vadd.f32 %v3322_v25, %v3295_v55  ;;  %v3350_v20 = vpop.f32.mrf.mxu3  ;;  %v11621_v12 = vpop.eup %11620  ;;  %v12514_v41 = vpack.c.bf16 %v4606_v54, %v4598_v49  ;;  %v4368_v62 = vmul.f32 1.442695, %v12510_v57  ;;  %v9103_v55 = vld [vmem:[#allocation5 + $0x850] sm:$0xf]  ;;  %v10903_v25 = vld [vmem:[#allocation5 + $0x54] sm:$0xf] }
 0x244   :  { %v9104_v23 = vor.u32 %v11163_v10, %v9103_v55  ;;  %v9647_v5 = vadd.f32 -1.0, %v11621_v12  ;;  %v9071_v49 = vld [vmem:[#allocation5 + $0x810] sm:$0xf]  ;;  %3622 = vmatpush.bf16.msra.mxu1 %v9360_v11  ;;  %vm4286_vm1 = vcmp.gt.f32.partialorder %v12510_v57, 0.0 }
 0x245   :  { %v12512_v21 = vadd.f32 %v3350_v20, %v3323_v50  ;;  %13711 = vst [vmem:[#allocation28_spill] sm:$0xff] %v12514_v41  ;;  %11622 = vpow2.f32 %v4368_v62  ;;  %v3297_v50 = vadd.f32 %v3296_v29, %v12486_v6  ;;  %v8084_v20 = vor.u32 %v10903_v25, %v8081_v39  ;;  %v9327_v62 = vld [vmem:[#allocation5 + $0xa10] sm:$0xf] }
 0x246   :  { %3594 = vmatpush.bf16.msra.mxu0 %v9104_v23  ;;  %v11219_v55 = vld [vmem:[#allocation5 + $0xa2c] sm:$0xf0]  ;;  %v9072_v29 = vor.u32 %v11155_v43, %v9071_v49  ;;  %v4502_v25 = vmul.f32 1.6732632, %v9647_v5  ;;  %v8052_v23 = vor.u32 %v10895_v28, %v8049_v22  ;;  %v9041_v5 = vld [vmem:[#allocation5 + $0x7f0] sm:$0xf0] }
 0x247   :  { %3678 = vmatpush.bf16.msra.mxu3 %v8084_v20  ;;  %v9328_v31 = vor.u32 %v11219_v55, %v9327_v62  ;;  %3494 = vmatmul.bf16.gmra.mxu0 %v12125_v16  ;;  %v9297_v62 = vld [vmem:[#allocation5 + $0x9f0] sm:$0xf0] }
 0x248   :  { %v3271_v24 = vpop.f32.mrf.mxu0  ;;  %v4558_v49 = vsel %vm4278_vm15, %v12499_v30, %v4502_v25 }
 0x249   :  { %v12519_v10 = vadd.f32 %v3271_v24, %v12473_v47  ;;  %v3299_v12 = vpop.f32.mrf.mxu1  ;;  %v11143_v47 = vld [vmem:[#allocation5 + $0x7d4] sm:$0xf]  ;;  %3623 = vmatpush.bf16.msra.mxu1 %v9328_v31  ;;  %v4614_v42 = vmul.f32 1.050701, %v4558_v49 }
 0x24a   :  { %v3324_v63 = vpop.f32.mrf.mxu2  ;;  %v3300_v11 = vadd.f32 %v3299_v12, %v12486_v6  ;;  %3595 = vmatpush.bf16.msra.mxu0 %v9072_v29  ;;  %v9044_v28 = vor.u32 %v11143_v47, %v9041_v5 }
 0x24b   :  { %v3325_v27 = vadd.f32 %v3324_v63, %v3297_v50  ;;  %v3352_v54 = vpop.f32.mrf.mxu3  ;;  %v11623_v9 = vpop.eup %11622  ;;  %v4384_v50 = vmul.f32 1.442695, %v12519_v10  ;;  %v11015_v63 = vld [vmem:[#allocation5 + $0x3d4] sm:$0xf]  ;;  %3679 = vmatpush.bf16.msra.mxu3 %v8052_v23  ;;  %vm4294_vm2 = vcmp.gt.f32.partialorder %v12519_v10, 0.0 }
 0x24c   :  { %v9655_v20 = vadd.f32 -1.0, %v11623_v9  ;;  %3522 = vmatmul.bf16.gmra.mxu1 %v12127_v17  ;;  %3756 = vmatpush.bf16.msrb.mxu2 %v9044_v28 }
 0x24d   :  { %v12521_v39 = vadd.f32 %v3352_v54, %v3325_v27  ;;  %11624 = vpow2.f32 %v4384_v50  ;;  %v8529_v27 = vld [vmem:[#allocation5 + $0x3f0] sm:$0xf0] }
 0x24e   :  { %v4510_v43 = vmul.f32 1.6732632, %v9655_v20  ;;  %v11207_v54 = vld [vmem:[#allocation5 + $0x9d4] sm:$0xf]  ;;  %v8532_v22 = vor.u32 %v11015_v63, %v8529_v27 }
 0x24f   :  { %3550 = vmatmul.bf16.gmra.mxu2 %v12129_v18  ;;  %v9300_v50 = vor.u32 %v11207_v54, %v9297_v62 }
 0x250   :  { %3578 = vmatmul.bf16.gmra.mxu3 %v12131_v19  ;;  %v4566_v55 = vsel %vm4286_vm1, %v12510_v57, %v4510_v43  ;;  %v3273_v9 = vpop.f32.mrf.mxu0  ;;  %3700 = vmatpush.bf16.msrb.mxu0 %v8532_v22 }
 0x251   :  { %v4622_v30 = vmul.f32 1.050701, %v4566_v55  ;;  %v3274_v25 = vadd.f32 %v3273_v9, %v12476_v4  ;;  %v3301_v23 = vpop.f32.mrf.mxu1  ;;  %3784 = vmatpush.bf16.msrb.mxu3 %v9300_v50 }
 0x252   :  { %v3327_v24 = vpop.f32.mrf.mxu2 }
 0x253   :  { %v3328_v12 = vadd.f32 %v3327_v24, %v3300_v11  ;;  %v3355_v29 = vpop.f32.mrf.mxu3  ;;  %v11625_v20 = vpop.eup %11624  ;;  %v4400_v47 = vmul.f32 1.442695, %v3274_v25  ;;  %v12536_v5 = vpack.c.bf16 %v4622_v30, %v4614_v42  ;;  %v3302_v11 = vadd.f32 %v3301_v23, %v12486_v6 }
 0x254   :  { %v9663_v57 = vadd.f32 -1.0, %v11625_v20  ;;  %vm4302_vm3 = vcmp.gt.f32.partialorder %v3274_v25, 0.0 }
 0x255   :  { %v12534_v31 = vadd.f32 %v3355_v29, %v3328_v12  ;;  %13712 = vst [vmem:[#allocation29_spill] sm:$0xff] %v12536_v5  ;;  %11626 = vpow2.f32 %v4400_v47 }
 0x256   :  { %v4518_v54 = vmul.f32 1.6732632, %v9663_v57  ;;  %v11079_v57 = vld [vmem:[#allocation5 + $0x5d4] sm:$0xf] }
 0x257   :  { %3499 = vmatmul.bf16.gmra.mxu0 %v12137_v58 }
 0x258   :  { %v3276_v49 = vpop.f32.mrf.mxu0 }
 0x259   :  { %v12540_v27 = vadd.f32 %v3276_v49, %v12483_v7  ;;  %v3304_v4 = vpop.f32.mrf.mxu1  ;;  %v4574_v7 = vsel %vm4294_vm2, %v12519_v10, %v4518_v54  ;;  %v11007_v49 = vld [vmem:[#allocation5 + $0x394] sm:$0xf] }
 0x25a   :  { %v3329_v63 = vpop.f32.mrf.mxu2  ;;  %v3305_v62 = vadd.f32 %v3304_v4, %v12486_v6  ;;  %v4630_v23 = vmul.f32 1.050701, %v4574_v7  ;;  %v8497_v4 = vld [vmem:[#allocation5 + $0x3b0] sm:$0xf0] }
 0x25b   :  { %v3330_v43 = vadd.f32 %v3329_v63, %v3302_v11  ;;  %v3357_v28 = vpop.f32.mrf.mxu3  ;;  %13713 = vst [vmem:[#allocation30_spill] sm:$0xff] %v12540_v27  ;;  %v11627_v22 = vpop.eup %11626  ;;  %v8785_v11 = vld [vmem:[#allocation5 + $0x5f0] sm:$0xf0]  ;;  %v9111_v27 = vld [vmem:[#allocation5 + $0x858] sm:$0xf] }
 0x25c   :  { %v9671_v42 = vadd.f32 -1.0, %v11627_v22  ;;  %3527 = vmatmul.bf16.gmra.mxu1 %v12139_v59  ;;  %v11135_v63 = vld [vmem:[#allocation5 + $0x794] sm:$0xf]  ;;  %v8500_v22 = vor.u32 %v11007_v49, %v8497_v4 }
 0x25d   :  { %v12542_v24 = vadd.f32 %v3357_v28, %v3330_v43  ;;  %v8788_v43 = vor.u32 %v11079_v57, %v8785_v11  ;;  %v9009_v28 = vld [vmem:[#allocation5 + $0x7b0] sm:$0xf0] }
 0x25e   :  { %v4526_v55 = vmul.f32 1.6732632, %v9671_v42  ;;  %v9012_v54 = vor.u32 %v11135_v63, %v9009_v28  ;;  %v9265_v42 = vld [vmem:[#allocation5 + $0x9b0] sm:$0xf0]  ;;  %3701 = vmatpush.bf16.msrb.mxu0 %v8500_v22 }
 0x25f   :  { %3555 = vmatmul.bf16.gmra.mxu2 %v12141_v60  ;;  %3728 = vmatpush.bf16.msrb.mxu1 %v8788_v43  ;;  %v8977_v57 = vld [vmem:[#allocation5 + $0x770] sm:$0xf0] }
 0x260   :  { %3583 = vmatmul.bf16.gmra.mxu3 %v12143_v61  ;;  %v4582_v29 = vsel %vm4302_vm3, %v3274_v25, %v4526_v55  ;;  %v3278_v30 = vpop.f32.mrf.mxu0  ;;  %v11199_v25 = vld [vmem:[#allocation5 + $0x994] sm:$0xf]  ;;  %3757 = vmatpush.bf16.msrb.mxu2 %v9012_v54 }
 0x261   :  { %v4638_v20 = vmul.f32 1.050701, %v4582_v29  ;;  %v3306_v6 = vpop.f32.mrf.mxu1  ;;  %v11071_v30 = vld [vmem:[#allocation5 + $0x594] sm:$0xf] }
 0x262   :  { %v3332_v12 = vpop.f32.mrf.mxu2  ;;  %v10999_v11 = vld [vmem:[#allocation5 + $0x354] sm:$0xf] }
 0x263   :  { %v3333_v9 = vadd.f32 %v3332_v12, %v3305_v62  ;;  %v3360_v50 = vpop.f32.mrf.mxu3  ;;  %v12553_v10 = vpack.c.bf16 %v4638_v20, %v4630_v23  ;;  %v9268_v62 = vor.u32 %v11199_v25, %v9265_v42  ;;  %v8753_v23 = vld [vmem:[#allocation5 + $0x5b0] sm:$0xf0] }
 0x264   :  { %v11127_v20 = vld [vmem:[#allocation5 + $0x754] sm:$0xf]  ;;  %v8756_v6 = vor.u32 %v11071_v30, %v8753_v23 }
 0x265   :  { %v12551_v47 = vadd.f32 %v3360_v50, %v3333_v9  ;;  %13714 = vst [vmem:[#allocation31_spill] sm:$0xff] %v12553_v10  ;;  %3785 = vmatpush.bf16.msrb.mxu3 %v9268_v62  ;;  %v8465_v63 = vld [vmem:[#allocation5 + $0x370] sm:$0xf0]  ;;  %v8980_v43 = vor.u32 %v11127_v20, %v8977_v57 }
 0x266   :  { %v11191_v28 = vld [vmem:[#allocation5 + $0x954] sm:$0xf]  ;;  %3729 = vmatpush.bf16.msrb.mxu1 %v8756_v6 }
 0x267   :  { %3596 = vmatmul.bf16.vlgmr.msra.gmra.mxu0 %v12149_v33  ;;  %v9233_v49 = vld [vmem:[#allocation5 + $0x970] sm:$0xf0]  ;;  %3758 = vmatpush.bf16.msrb.mxu2 %v8980_v43 }
 0x268   :  { %v3373_v12 = vpop.f32.mrf.mxu0  ;;  %v9236_v54 = vor.u32 %v11191_v28, %v9233_v49  ;;  %v8945_v20 = vld [vmem:[#allocation5 + $0x730] sm:$0xf0] }
 0x269   :  { %v3374_v29 = vadd.f32 %v3373_v12, %v12495_v38  ;;  %v3401_v9 = vpop.f32.mrf.mxu1  ;;  %v8468_v38 = vor.u32 %v10999_v11, %v8465_v63  ;;  %v11063_v12 = vld [vmem:[#allocation5 + $0x554] sm:$0xf] }
 0x26a   :  { %v3334_v7 = vpop.f32.mrf.mxu2  ;;  %3786 = vmatpush.bf16.msrb.mxu3 %v9236_v54  ;;  %v10991_v57 = vld [vmem:[#allocation5 + $0x314] sm:$0xf] }
 0x26b   :  { %v3362_v55 = vpop.f32.mrf.mxu3  ;;  %v3402_v50 = vadd.f32 %v3401_v9, %v3374_v29  ;;  %3702 = vmatpush.bf16.msrb.mxu0 %v8468_v38  ;;  %v8721_v29 = vld [vmem:[#allocation5 + $0x570] sm:$0xf0] }
 0x26c   :  { %3624 = vmatmul.bf16.vlgmr.msra.gmra.mxu1 %v12151_v34  ;;  %v11119_v9 = vld [vmem:[#allocation5 + $0x714] sm:$0xf]  ;;  %v8724_v23 = vor.u32 %v11063_v12, %v8721_v29 }
 0x26d   :  { %v8433_v6 = vld [vmem:[#allocation5 + $0x330] sm:$0xf0]  ;;  %v8948_v11 = vor.u32 %v11119_v9, %v8945_v20 }
 0x26e   :  { %v8436_v63 = vor.u32 %v10991_v57, %v8433_v6  ;;  %v11183_v43 = vld [vmem:[#allocation5 + $0x914] sm:$0xf]  ;;  %3730 = vmatpush.bf16.msrb.mxu1 %v8724_v23 }
 0x26f   :  { %9613 = vmatmul.msk.bf16.vlgmr.msra.gmra.mxu2 %vm2679_vm0, %v12153_v35  ;;  %v9201_v38 = vld [vmem:[#allocation5 + $0x930] sm:$0xf0] }
 0x270   :  { %3680 = vmatmul.bf16.vlgmr.msra.gmra.mxu3 %v12101_v48  ;;  %v3375_v42 = vpop.f32.mrf.mxu0  ;;  %3759 = vmatpush.bf16.msrb.mxu2 %v8948_v11  ;;  %v11055_v49 = vld [vmem:[#allocation5 + $0x514] sm:$0xf] }
 0x271   :  { %v3376_v62 = vadd.f32 %v3375_v42, %v12501_v0  ;;  %v3403_v7 = vpop.f32.mrf.mxu1  ;;  %3703 = vmatpush.bf16.msrb.mxu0 %v8436_v63  ;;  %v9204_v0 = vor.u32 %v11183_v43, %v9201_v38  ;;  %v11111_v29 = vld [vmem:[#allocation5 + $0x6d4] sm:$0xf] }
 0x272   :  { %v3429_v4 = vpop.f32.mrf.mxu2  ;;  %v8913_v9 = vld [vmem:[#allocation5 + $0x6f0] sm:$0xf0] }
 0x273   :  { %v3430_v22 = vadd.f32 %v3429_v4, %v3402_v50  ;;  %v3457_v25 = vpop.f32.mrf.mxu3  ;;  %v3404_v30 = vadd.f32 %v3403_v7, %v3376_v62  ;;  %v8689_v4 = vld [vmem:[#allocation5 + $0x530] sm:$0xf0]  ;;  %3787 = vmatpush.bf16.msrb.mxu3 %v9204_v0  ;;  %v8916_v57 = vor.u32 %v11111_v29, %v8913_v9 }
 0x274   :  { %v8692_v42 = vor.u32 %v11055_v49, %v8689_v4  ;;  %v10983_v23 = vld [vmem:[#allocation5 + $0x2d4] sm:$0xf] }
 0x275   :  { %v12562_v55 = vadd.f32 %v3457_v25, %v3430_v22  ;;  %v8401_v6 = vld [vmem:[#allocation5 + $0x2f0] sm:$0xf0]  ;;  %3760 = vmatpush.bf16.msrb.mxu2 %v8916_v57 }
 0x276   :  { %3731 = vmatpush.bf16.msrb.mxu1 %v8692_v42  ;;  %v11047_v38 = vld [vmem:[#allocation5 + $0x4d4] sm:$0xf] }
 0x277   :  { %v4322_v50 = vmul.f32 1.442695, %v12562_v55  ;;  %3601 = vmatmul.bf16.gmra.mxu0 %v12160_v13  ;;  %v10975_v9 = vld [vmem:[#allocation5 + $0x294] sm:$0xf]  ;;  %vm4263_vm4 = vcmp.gt.f32.partialorder %v12562_v55, 0.0 }
 0x278   :  { %v3378_v25 = vpop.f32.mrf.mxu0 }
 0x279   :  { %11628 = vpow2.f32 %v4322_v50  ;;  %v3379_v62 = vadd.f32 %v3378_v25, %v12512_v21  ;;  %v3406_v7 = vpop.f32.mrf.mxu1  ;;  %v11175_v50 = vld [vmem:[#allocation5 + $0x8d4] sm:$0xf]  ;;  %v8404_v21 = vor.u32 %v10983_v23, %v8401_v6 }
 0x27a   :  { %v3431_v28 = vpop.f32.mrf.mxu2  ;;  %v8881_v25 = vld [vmem:[#allocation5 + $0x6b0] sm:$0xf0] }
 0x27b   :  { %v3432_v54 = vadd.f32 %v3431_v28, %v3404_v30  ;;  %v3459_v22 = vpop.f32.mrf.mxu3  ;;  %v3407_v20 = vadd.f32 %v3406_v7, %v3379_v62  ;;  %v9169_v30 = vld [vmem:[#allocation5 + $0x8f0] sm:$0xf0]  ;;  %3704 = vmatpush.bf16.msrb.mxu0 %v8404_v21 }
 0x27c   :  { %3629 = vmatmul.bf16.gmra.mxu1 %v12162_v14  ;;  %v9172_v43 = vor.u32 %v11175_v50, %v9169_v30  ;;  %v8657_v28 = vld [vmem:[#allocation5 + $0x4f0] sm:$0xf0] }
 0x27d   :  { %v12566_v12 = vadd.f32 %v3459_v22, %v3432_v54  ;;  %v8660_v49 = vor.u32 %v11047_v38, %v8657_v28  ;;  %v11103_v22 = vld [vmem:[#allocation5 + $0x694] sm:$0xf] }
 0x27e   :  { %3788 = vmatpush.bf16.msrb.mxu3 %v9172_v43  ;;  %v8884_v29 = vor.u32 %v11103_v22, %v8881_v25  ;;  %v8369_v23 = vld [vmem:[#allocation5 + $0x2b0] sm:$0xf0] }
 0x27f   :  { %v11629_v11 = vpop.eup %11628  ;;  %v4338_v63 = vmul.f32 1.442695, %v12566_v12  ;;  %9614 = vmatmul.msk.bf16.gmra.mxu2 %vm2679_vm0, %v12164_v15  ;;  %3732 = vmatpush.bf16.msrb.mxu1 %v8660_v49  ;;  %v11167_v6 = vld [vmem:[#allocation5 + $0x894] sm:$0xf]  ;;  %v8372_v30 = vor.u32 %v10975_v9, %v8369_v23  ;;  %vm4271_vm5 = vcmp.gt.f32.partialorder %v12566_v12, 0.0 }
 0x280   :  { %v9632_v0 = vadd.f32 -1.0, %v11629_v11  ;;  %3685 = vmatmul.bf16.gmra.mxu3 %v12113_v32  ;;  %v3380_v7 = vpop.f32.mrf.mxu0  ;;  %v9137_v11 = vld [vmem:[#allocation5 + $0x8b0] sm:$0xf0]  ;;  %3761 = vmatpush.bf16.msrb.mxu2 %v8884_v29 }
 0x281   :  { %11630 = vpow2.f32 %v4338_v63  ;;  %v3381_v50 = vadd.f32 %v3380_v7, %v12521_v39  ;;  %v3408_v57 = vpop.f32.mrf.mxu1  ;;  %v11039_v63 = vld [vmem:[#allocation5 + $0x494] sm:$0xf]  ;;  %3705 = vmatpush.bf16.msrb.mxu0 %v8372_v30 }
 0x282   :  { %v4487_v4 = vmul.f32 1.6732632, %v9632_v0  ;;  %v3434_v54 = vpop.f32.mrf.mxu2  ;;  %v8625_v21 = vld [vmem:[#allocation5 + $0x4b0] sm:$0xf0] }
 0x283   :  { %v3435_v42 = vadd.f32 %v3434_v54, %v3407_v20  ;;  %v3462_v62 = vpop.f32.mrf.mxu3  ;;  %v9140_v20 = vor.u32 %v11167_v6, %v9137_v11  ;;  %v8628_v38 = vor.u32 %v11039_v63, %v8625_v21  ;;  %v3409_v28 = vadd.f32 %v3408_v57, %v3381_v50  ;;  %v11095_v49 = vld [vmem:[#allocation5 + $0x654] sm:$0xf] }
 0x284   :  { %v4543_v0 = vsel %vm4263_vm4, %v12562_v55, %v4487_v4  ;;  %v8849_v54 = vld [vmem:[#allocation5 + $0x670] sm:$0xf0] }
 0x285   :  { %v12576_v43 = vadd.f32 %v3462_v62, %v3435_v42  ;;  %v10967_v22 = vld [vmem:[#allocation5 + $0x254] sm:$0xf]  ;;  %3789 = vmatpush.bf16.msrb.mxu3 %v9140_v20  ;;  %3733 = vmatpush.bf16.msrb.mxu1 %v8628_v38  ;;  %v8852_v7 = vor.u32 %v11095_v49, %v8849_v54  ;;  %v4599_v6 = vmul.f32 1.050701, %v4543_v0 }
 0x286   :  { %v8337_v9 = vld [vmem:[#allocation5 + $0x270] sm:$0xf0] }
 0x287   :  { %v11631_v39 = vpop.eup %11630  ;;  %v4354_v25 = vmul.f32 1.442695, %v12576_v43  ;;  %v8340_v62 = vor.u32 %v10967_v22, %v8337_v9  ;;  %v11159_v29 = vld [vmem:[#allocation5 + $0x854] sm:$0xf]  ;;  %3762 = vmatpush.bf16.msrb.mxu2 %v8852_v7  ;;  %3606 = vmatmul.bf16.gmra.mxu0 %v12171_v1  ;;  %vm4279_vm6 = vcmp.gt.f32.partialorder %v12576_v43, 0.0 }
 0x288   :  { %v9640_v42 = vadd.f32 -1.0, %v11631_v39  ;;  %v9105_v23 = vld [vmem:[#allocation5 + $0x870] sm:$0xf0]  ;;  %v3383_v49 = vpop.f32.mrf.mxu0 }
 0x289   :  { %11632 = vpow2.f32 %v4354_v25  ;;  %v9108_v55 = vor.u32 %v11159_v29, %v9105_v23  ;;  %v11031_v4 = vld [vmem:[#allocation5 + $0x454] sm:$0xf]  ;;  %3706 = vmatpush.bf16.msrb.mxu0 %v8340_v62  ;;  %v3384_v25 = vadd.f32 %v3383_v49, %v12534_v31  ;;  %v3411_v7 = vpop.f32.mrf.mxu1 }
 0x28a   :  { %v8593_v50 = vld [vmem:[#allocation5 + $0x470] sm:$0xf0]  ;;  %v4495_v57 = vmul.f32 1.6732632, %v9640_v42  ;;  %v3436_v30 = vpop.f32.mrf.mxu2 }
 0x28b   :  { %v8596_v11 = vor.u32 %v11031_v4, %v8593_v50  ;;  %v11087_v63 = vld [vmem:[#allocation5 + $0x614] sm:$0xf]  ;;  %v3437_v20 = vadd.f32 %v3436_v30, %v3409_v28  ;;  %v3464_v38 = vpop.f32.mrf.mxu3  ;;  %3790 = vmatpush.bf16.msrb.mxu3 %v9108_v55  ;;  %v3412_v30 = vadd.f32 %v3411_v7, %v3384_v25 }
 0x28c   :  { %v8817_v21 = vld [vmem:[#allocation5 + $0x630] sm:$0xf0]  ;;  %v4551_v0 = vsel %vm4271_vm5, %v12566_v12, %v4495_v57  ;;  %3634 = vmatmul.bf16.gmra.mxu1 %v12173_v2 }
 0x28d   :  { %v8820_v54 = vor.u32 %v11087_v63, %v8817_v21  ;;  %v10959_v22 = vld [vmem:[#allocation5 + $0x214] sm:$0xf]  ;;  %3734 = vmatpush.bf16.msrb.mxu1 %v8596_v11  ;;  %v4607_v28 = vmul.f32 1.050701, %v4551_v0  ;;  %v3465_v4 = vadd.f32 %v3464_v38, %v3437_v20 }
 0x28e   :  { %v8305_v39 = vld [vmem:[#allocation5 + $0x230] sm:$0xf0] }
 0x28f   :  { %v11151_v9 = vld [vmem:[#allocation5 + $0x814] sm:$0xf]  ;;  %v8308_v42 = vor.u32 %v10959_v22, %v8305_v39  ;;  %3763 = vmatpush.bf16.msrb.mxu2 %v8820_v54  ;;  %v11633_v63 = vpop.eup %11632  ;;  %v12586_v21 = vpack.c.bf16 %v4607_v28, %v4599_v6  ;;  %v4370_v12 = vmul.f32 1.442695, %v3465_v4  ;;  %vm4287_vm7 = vcmp.gt.f32.partialorder %v3465_v4, 0.0 }
 0x290   :  { %v9073_v62 = vld [vmem:[#allocation5 + $0x830] sm:$0xf0]  ;;  %9615 = vmatmul.msk.bf16.gmra.mxu2 %vm2679_vm0, %v12175_v3  ;;  %v9648_v31 = vadd.f32 -1.0, %v11633_v63  ;;  %3690 = vmatmul.bf16.gmra.mxu3 %v12125_v16  ;;  %v3385_v38 = vpop.f32.mrf.mxu0 }
 0x291   :  { %v11023_v29 = vld [vmem:[#allocation5 + $0x414] sm:$0xf]  ;;  %v9076_v55 = vor.u32 %v11151_v9, %v9073_v62  ;;  %13715 = vst [vmem:[#allocation32_spill] sm:$0xff] %v12586_v21  ;;  %3707 = vmatpush.bf16.msrb.mxu0 %v8308_v42  ;;  %11634 = vpow2.f32 %v4370_v12  ;;  %v3386_v54 = vadd.f32 %v3385_v38, %v12542_v24  ;;  %v3413_v22 = vpop.f32.mrf.mxu1  ;;  %v8279_v42 = vld [vmem:[#allocation5 + $0x1d8] sm:$0xf] }
 0x292   :  { %v8561_v23 = vld [vmem:[#allocation5 + $0x430] sm:$0xf0]  ;;  %v4503_v57 = vmul.f32 1.6732632, %v9648_v31  ;;  %v3439_v11 = vpop.f32.mrf.mxu2 }
 0x293   :  { %v8564_v50 = vor.u32 %v11023_v29, %v8561_v23  ;;  %3791 = vmatpush.bf16.msrb.mxu3 %v9076_v55  ;;  %v3440_v20 = vadd.f32 %v3439_v11, %v3412_v30  ;;  %v3467_v6 = vpop.f32.mrf.mxu3  ;;  %v3414_v9 = vadd.f32 %v3413_v22, %v3386_v54  ;;  %v10956_v29 = vld [vmem:[#allocation5 + $0x1f4] sm:$0xf0]  ;;  %v11271_v23 = vld [vmem:[#allocation5 + $0xbd4] sm:$0xf] }
 0x294   :  { %v4559_v49 = vsel %vm4279_vm6, %v12576_v43, %v4503_v57  ;;  %v8280_v28 = vor.u32 %v10956_v29, %v8279_v42  ;;  %v9553_v55 = vld [vmem:[#allocation5 + $0xbf0] sm:$0xf0]  ;;  %v11020_v43 = vld [vmem:[#allocation5 + $0x3f4] sm:$0xf0] }
 0x295   :  { %3735 = vmatpush.bf16.msrb.mxu1 %v8564_v50  ;;  %v12595_v39 = vadd.f32 %v3467_v6, %v3440_v20  ;;  %v4615_v25 = vmul.f32 1.050701, %v4559_v49  ;;  %v8535_v50 = vld [vmem:[#allocation5 + $0x3d8] sm:$0xf]  ;;  %v9556_v63 = vor.u32 %v11271_v23, %v9553_v55  ;;  %v11279_v31 = vld [vmem:[#allocation5 + $0xc14] sm:$0xf] }
 0x296   :  { %v8536_v12 = vor.u32 %v11020_v43, %v8535_v50  ;;  %v9585_v57 = vld [vmem:[#allocation5 + $0xc30] sm:$0xf0]  ;;  %3868 = vmatpush.bf16.msra.mxu2 %v8280_v28  ;;  %v8247_v49 = vld [vmem:[#allocation5 + $0x198] sm:$0xf] }
 0x297   :  { %v11635_v0 = vpop.eup %11634  ;;  %v4386_v7 = vmul.f32 1.442695, %v12595_v39  ;;  %v9588_v38 = vor.u32 %v11279_v31, %v9585_v57  ;;  %v10948_v54 = vld [vmem:[#allocation5 + $0x1b4] sm:$0xf0]  ;;  %v11263_v22 = vld [vmem:[#allocation5 + $0xb94] sm:$0xf]  ;;  %3812 = vmatpush.bf16.msra.mxu0 %v9556_v63 }
 0x298   :  { %v9656_v62 = vadd.f32 -1.0, %v11635_v0  ;;  %v3388_v6 = vpop.f32.mrf.mxu0  ;;  %3896 = vmatpush.bf16.msra.mxu3 %v8536_v12  ;;  %v9521_v29 = vld [vmem:[#allocation5 + $0xbb0] sm:$0xf0]  ;;  %v8503_v23 = vld [vmem:[#allocation5 + $0x398] sm:$0xf]  ;;  %3611 = vmatmul.bf16.gmra.mxu0 %v12182_v44  ;;  %vm4295_vm8 = vcmp.gt.f32.partialorder %v12595_v39, 0.0 }
 0x299   :  { %11636 = vpow2.f32 %v4386_v7  ;;  %v3389_v7 = vadd.f32 %v3388_v6, %v12551_v47  ;;  %v3416_v42 = vpop.f32.mrf.mxu1  ;;  %v11012_v55 = vld [vmem:[#allocation5 + $0x3b4] sm:$0xf0]  ;;  %3847 = vmatpush.bf16.msra.mxu1 %v9588_v38  ;;  %v9524_v43 = vor.u32 %v11263_v22, %v9521_v29 }
 0x29a   :  { %v4511_v30 = vmul.f32 1.6732632, %v9656_v62  ;;  %v3441_v24 = vpop.f32.mrf.mxu2  ;;  %v8248_v62 = vor.u32 %v10948_v54, %v8247_v49  ;;  %v8504_v28 = vor.u32 %v11012_v55, %v8503_v23  ;;  %v10940_v63 = vld [vmem:[#allocation5 + $0x174] sm:$0xf0] }
 0x29b   :  { %v3442_v11 = vadd.f32 %v3441_v24, %v3414_v9  ;;  %v3469_v20 = vpop.f32.mrf.mxu3  ;;  %v3417_v24 = vadd.f32 %v3416_v42, %v3389_v7  ;;  %3813 = vmatpush.bf16.msra.mxu0 %v9524_v43  ;;  %v8471_v6 = vld [vmem:[#allocation5 + $0x358] sm:$0xf] }
 0x29c   :  { %v4567_v0 = vsel %vm4287_vm7, %v3465_v4, %v4511_v30  ;;  %3639 = vmatmul.bf16.gmra.mxu1 %v12184_v45  ;;  %3869 = vmatpush.bf16.msra.mxu2 %v8248_v62  ;;  %v8215_v30 = vld [vmem:[#allocation5 + $0x158] sm:$0xf] }
 0x29d   :  { %v4623_v50 = vmul.f32 1.050701, %v4567_v0  ;;  %v3470_v9 = vadd.f32 %v3469_v20, %v3442_v11  ;;  %3897 = vmatpush.bf16.msra.mxu3 %v8504_v28  ;;  %v8216_v12 = vor.u32 %v10940_v63, %v8215_v30  ;;  %v11255_v11 = vld [vmem:[#allocation5 + $0xb54] sm:$0xf]  ;;  %v11004_v54 = vld [vmem:[#allocation5 + $0x374] sm:$0xf0] }
 0x29e   :  { %v9489_v20 = vld [vmem:[#allocation5 + $0xb70] sm:$0xf0]  ;;  %v8472_v7 = vor.u32 %v11004_v54, %v8471_v6  ;;  %v8183_v23 = vld [vmem:[#allocation5 + $0x118] sm:$0xf]  ;;  %v12609_v30 = vld [vmem:[#allocation7] sm:$0xff] }
 0x29f   :  { %v11637_v31 = vpop.eup %11636  ;;  %v4402_v57 = vmul.f32 1.442695, %v3470_v9  ;;  %v12604_v47 = vpack.c.bf16 %v4623_v50, %v4615_v25  ;;  %v9492_v49 = vor.u32 %v11255_v11, %v9489_v20  ;;  %v10932_v55 = vld [vmem:[#allocation5 + $0x134] sm:$0xf0]  ;;  %v11247_v50 = vld [vmem:[#allocation5 + $0xb14] sm:$0xf] }
 0x2a0   :  { %9616 = vmatmul.msk.bf16.gmra.mxu2 %vm2679_vm0, %v12186_v46  ;;  %v9664_v4 = vadd.f32 -1.0, %v11637_v31  ;;  %3695 = vmatmul.bf16.gmra.mxu3 %v12137_v58  ;;  %v3390_v25 = vpop.f32.mrf.mxu0  ;;  %v8184_v28 = vor.u32 %v10932_v55, %v8183_v23  ;;  %v9457_v31 = vld [vmem:[#allocation5 + $0xb30] sm:$0xf0]  ;;  %v8439_v11 = vld [vmem:[#allocation5 + $0x318] sm:$0xf]  ;;  %vm4303_vm9 = vcmp.gt.f32.partialorder %v3470_v9, 0.0 }
 0x2a1   :  { %13716 = vst [vmem:[#allocation33_spill] sm:$0xff] %v12604_v47  ;;  %11638 = vpow2.f32 %v4402_v57  ;;  %v3418_v42 = vpop.f32.mrf.mxu1  ;;  %3870 = vmatpush.bf16.msra.mxu2 %v8216_v12  ;;  %3814 = vmatpush.bf16.msra.mxu0 %v9492_v49  ;;  %v9460_v63 = vor.u32 %v11247_v50, %v9457_v31  ;;  %v10996_v12 = vld [vmem:[#allocation5 + $0x334] sm:$0xf0] }
 0x2a2   :  { %v3444_v38 = vpop.f32.mrf.mxu2  ;;  %v4519_v29 = vmul.f32 1.6732632, %v9664_v4  ;;  %3898 = vmatpush.bf16.msra.mxu3 %v8472_v7  ;;  %v8440_v4 = vor.u32 %v10996_v12, %v8439_v11  ;;  %v10924_v55 = vld [vmem:[#allocation5 + $0xf4] sm:$0xf0] }
 0x2a3   :  { %v3445_v22 = vadd.f32 %v3444_v38, %v3417_v24  ;;  %v3472_v0 = vpop.f32.mrf.mxu3  ;;  %v12612_v24 = vperm.slane %v12609_v30, 4  ;;  %v9239_v47 = vld [vmem:[#allocation5 + $0x958] sm:$0xf] }
 0x2a4   :  { %v4575_v20 = vsel %vm4295_vm8, %v12595_v39, %v4519_v29  ;;  %v8151_v29 = vld [vmem:[#allocation5 + $0xd8] sm:$0xf] }
 0x2a5   :  { %v12607_v62 = vadd.f32 %v3472_v0, %v3445_v22  ;;  %3871 = vmatpush.bf16.msra.mxu2 %v8184_v28  ;;  %3815 = vmatpush.bf16.msra.mxu0 %v9460_v63  ;;  %v4631_v7 = vmul.f32 1.050701, %v4575_v20  ;;  %v8152_v50 = vor.u32 %v10924_v55, %v8151_v29  ;;  %v8407_v28 = vld [vmem:[#allocation5 + $0x2d8] sm:$0xf] }
 0x2a6   :  { %3899 = vmatpush.bf16.msra.mxu3 %v8440_v4  ;;  %v10988_v63 = vld [vmem:[#allocation5 + $0x2f4] sm:$0xf0] }
 0x2a7   :  { %13717 = vst [vmem:[#allocation34_spill] sm:$0xff] %v12607_v62  ;;  %v11639_v43 = vpop.eup %11638  ;;  %v8408_v20 = vor.u32 %v10988_v63, %v8407_v28  ;;  %v8375_v29 = vld [vmem:[#allocation5 + $0x298] sm:$0xf] }
 0x2a8   :  { %v9672_v57 = vadd.f32 -1.0, %v11639_v43  ;;  %v3485_v54 = vpop.f32.mrf.mxu0  ;;  %3708 = vmatmul.bf16.vlgmr.msrb.gmra.mxu0 %v12103_v52  ;;  %v9425_v43 = vld [vmem:[#allocation5 + $0xaf0] sm:$0xf0]  ;;  %v10980_v55 = vld [vmem:[#allocation5 + $0x2b4] sm:$0xf0] }
 0x2a9   :  { %v3486_v0 = vadd.f32 %v3485_v54, %v12612_v24  ;;  %v3513_v25 = vpop.f32.mrf.mxu1  ;;  %3872 = vmatpush.bf16.msra.mxu2 %v8152_v50 }
 0x2aa   :  { %v4527_v6 = vmul.f32 1.6732632, %v9672_v57  ;;  %v3446_v38 = vpop.f32.mrf.mxu2  ;;  %3900 = vmatpush.bf16.msra.mxu3 %v8408_v20  ;;  %v10908_v20 = vld [vmem:[#allocation5 + $0x74] sm:$0xf0] }
 0x2ab   :  { %v3474_v49 = vpop.f32.mrf.mxu3  ;;  %v3514_v23 = vadd.f32 %v3513_v25, %v3486_v0  ;;  %v10916_v0 = vld [vmem:[#allocation5 + $0xb4] sm:$0xf0]  ;;  %v11231_v25 = vld [vmem:[#allocation5 + $0xa94] sm:$0xf] }
 0x2ac   :  { %v4583_v22 = vsel %vm4303_vm9, %v3470_v9, %v4527_v6  ;;  %3736 = vmatmul.bf16.vlgmr.msrb.gmra.mxu1 %v12105_v53  ;;  %v11239_v9 = vld [vmem:[#allocation5 + $0xad4] sm:$0xf] }
 0x2ad   :  { %v4639_v42 = vmul.f32 1.050701, %v4583_v22  ;;  %v9428_v57 = vor.u32 %v11239_v9, %v9425_v43  ;;  %v8119_v22 = vld [vmem:[#allocation5 + $0x98] sm:$0xf]  ;;  %v8376_v9 = vor.u32 %v10980_v55, %v8375_v29 }
 0x2af   :  { %v12620_v39 = vpack.c.bf16 %v4639_v42, %v4631_v7  ;;  %3816 = vmatpush.bf16.msra.mxu0 %v9428_v57  ;;  %v8120_v7 = vor.u32 %v10916_v0, %v8119_v22  ;;  %v9393_v42 = vld [vmem:[#allocation5 + $0xab0] sm:$0xf0]  ;;  %3901 = vmatpush.bf16.msra.mxu3 %v8376_v9  ;;  %v8343_v22 = vld [vmem:[#allocation5 + $0x258] sm:$0xf] }
 0x2b0   :  { %3764 = vmatmul.bf16.vlgmr.msrb.gmra.mxu2 %v12107_v56  ;;  %3792 = vmatmul.bf16.vlgmr.msrb.gmra.mxu3 %v12149_v33  ;;  %v3487_v4 = vpop.f32.mrf.mxu0  ;;  %v10972_v0 = vld [vmem:[#allocation5 + $0x274] sm:$0xf0] }
 0x2b1   :  { %13718 = vst [vmem:[#allocation35_spill] sm:$0xff] %v12620_v39  ;;  %v3488_v6 = vadd.f32 %v3487_v4, %v12612_v24  ;;  %v3515_v38 = vpop.f32.mrf.mxu1  ;;  %3873 = vmatpush.bf16.msra.mxu2 %v8120_v7  ;;  %v8087_v4 = vld [vmem:[#allocation5 + $0x58] sm:$0xf] }
 0x2b2   :  { %v3541_v31 = vpop.f32.mrf.mxu2  ;;  %v8311_v39 = vld [vmem:[#allocation5 + $0x218] sm:$0xf] }
 0x2b3   :  { %v3542_v11 = vadd.f32 %v3541_v31, %v3514_v23  ;;  %v3569_v12 = vpop.f32.mrf.mxu3  ;;  %v3516_v54 = vadd.f32 %v3515_v38, %v3488_v6  ;;  %v9396_v23 = vor.u32 %v11231_v25, %v9393_v42  ;;  %v11223_v6 = vld [vmem:[#allocation5 + $0xa54] sm:$0xf]  ;;  %v8088_v38 = vor.u32 %v10908_v20, %v8087_v4 }
 0x2b4   :  { %v8344_v42 = vor.u32 %v10972_v0, %v8343_v22  ;;  %v9329_v20 = vld [vmem:[#allocation5 + $0xa30] sm:$0xf0] }
 0x2b5   :  { %v12624_v49 = vadd.f32 %v3569_v12, %v3542_v11  ;;  %3817 = vmatpush.bf16.msra.mxu0 %v9396_v23  ;;  %3874 = vmatpush.bf16.msra.mxu2 %v8088_v38 }
 0x2b6   :  { %3902 = vmatpush.bf16.msra.mxu3 %v8344_v42 }
 0x2b8   :  { %v3490_v31 = vpop.f32.mrf.mxu0  ;;  %3713 = vmatmul.bf16.gmra.mxu0 %v12115_v36 }
 0x2b9   :  { %v3491_v57 = vadd.f32 %v3490_v31, %v12612_v24  ;;  %v3518_v63 = vpop.f32.mrf.mxu1  ;;  %v10900_v31 = vld [vmem:[#allocation5 + $0x34] sm:$0xf0] }
 0x2ba   :  { %v3543_v50 = vpop.f32.mrf.mxu2 }
 0x2bb   :  { %v3544_v43 = vadd.f32 %v3543_v50, %v3516_v54  ;;  %v3571_v28 = vpop.f32.mrf.mxu3  ;;  %v3519_v12 = vadd.f32 %v3518_v63, %v3491_v57  ;;  %v9361_v54 = vld [vmem:[#allocation5 + $0xa70] sm:$0xf0] }
 0x2bc   :  { %3741 = vmatmul.bf16.gmra.mxu1 %v12117_v37  ;;  %v9364_v7 = vor.u32 %v11223_v6, %v9361_v54  ;;  %v11215_v57 = vld [vmem:[#allocation5 + $0xa14] sm:$0xf]  ;;  %v10964_v6 = vld [vmem:[#allocation5 + $0x234] sm:$0xf0] }
 0x2bd   :  { %v12627_v11 = vadd.f32 %v3571_v28, %v3544_v43  ;;  %v8055_v28 = vld [vmem:[#allocation5 + $0x18] sm:$0xf]  ;;  %v9332_v54 = vor.u32 %v11215_v57, %v9329_v20 }
 0x2be   :  { %3818 = vmatpush.bf16.msra.mxu0 %v9364_v7  ;;  %v8056_v4 = vor.u32 %v10900_v31, %v8055_v28  ;;  %v11084_v28 = vld [vmem:[#allocation5 + $0x5f4] sm:$0xf0] }
 0x2bf   :  { %v9559_v31 = vld [vmem:[#allocation5 + $0xbd8] sm:$0xf] }
 0x2c0   :  { %3769 = vmatmul.bf16.gmra.mxu2 %v12119_v40  ;;  %3797 = vmatmul.bf16.gmra.mxu3 %v12160_v13  ;;  %v3492_v23 = vpop.f32.mrf.mxu0  ;;  %v11276_v57 = vld [vmem:[#allocation5 + $0xbf4] sm:$0xf0] }
 0x2c1   :  { %v3493_v9 = vadd.f32 %v3492_v23, %v12612_v24  ;;  %v3520_v50 = vpop.f32.mrf.mxu1  ;;  %3875 = vmatpush.bf16.msra.mxu2 %v8056_v4  ;;  %v11212_v23 = vld [vmem:[#allocation5 + $0x9f4] sm:$0xf0]  ;;  %v9560_v20 = vor.u32 %v11276_v57, %v9559_v31 }
 0x2c2   :  { %v3546_v25 = vpop.f32.mrf.mxu2  ;;  %3819 = vmatpush.bf16.msra.mxu0 %v9332_v54 }
 0x2c3   :  { %v3547_v29 = vadd.f32 %v3546_v25, %v3519_v12  ;;  %v3574_v55 = vpop.f32.mrf.mxu3  ;;  %v3521_v63 = vadd.f32 %v3520_v50, %v3493_v9  ;;  %v8312_v12 = vor.u32 %v10964_v6, %v8311_v39  ;;  %v9303_v39 = vld [vmem:[#allocation5 + $0x9d8] sm:$0xf] }
 0x2c4   :  { %v8791_v9 = vld [vmem:[#allocation5 + $0x5d8] sm:$0xf]  ;;  %v9304_v50 = vor.u32 %v11212_v23, %v9303_v39 }
 0x2c5   :  { %v12634_v43 = vadd.f32 %v3574_v55, %v3547_v29  ;;  %3903 = vmatpush.bf16.msra.mxu3 %v8312_v12  ;;  %v8792_v4 = vor.u32 %v11084_v28, %v8791_v9 }
 0x2c6   :  { %3980 = vmatpush.bf16.msrb.mxu2 %v9304_v50 }
 0x2c7   :  { %3924 = vmatpush.bf16.msrb.mxu0 %v8792_v4  ;;  %v9047_v4 = vld [vmem:[#allocation5 + $0x7d8] sm:$0xf] }
 0x2c8   :  { %v3495_v25 = vpop.f32.mrf.mxu0  ;;  %3718 = vmatmul.bf16.gmra.mxu0 %v12127_v17 }
 0x2c9   :  { %v3496_v7 = vadd.f32 %v3495_v25, %v12612_v24  ;;  %v3523_v42 = vpop.f32.mrf.mxu1  ;;  %4008 = vmatpush.bf16.msrb.mxu3 %v9560_v20  ;;  %v11148_v20 = vld [vmem:[#allocation5 + $0x7f4] sm:$0xf0] }
 0x2ca   :  { %v3548_v38 = vpop.f32.mrf.mxu2 }
 0x2cb   :  { %v3549_v22 = vadd.f32 %v3548_v38, %v3521_v63  ;;  %v3576_v0 = vpop.f32.mrf.mxu3  ;;  %v3524_v55 = vadd.f32 %v3523_v42, %v3496_v7 }
 0x2cc   :  { %3746 = vmatmul.bf16.gmra.mxu1 %v12129_v18 }
 0x2cd   :  { %v12637_v29 = vadd.f32 %v3576_v0, %v3549_v22 }
 0x2d0   :  { %3774 = vmatmul.bf16.gmra.mxu2 %v12131_v19  ;;  %3802 = vmatmul.bf16.gmra.mxu3 %v12171_v1  ;;  %v3497_v12 = vpop.f32.mrf.mxu0 }
 0x2d1   :  { %v3498_v38 = vadd.f32 %v3497_v12, %v12612_v24  ;;  %v3525_v22 = vpop.f32.mrf.mxu1  ;;  %v11204_v12 = vld [vmem:[#allocation5 + $0x9b4] sm:$0xf0] }
 0x2d2   :  { %v3551_v63 = vpop.f32.mrf.mxu2 }
 0x2d3   :  { %v3552_v6 = vadd.f32 %v3551_v63, %v3524_v55  ;;  %v3579_v54 = vpop.f32.mrf.mxu3  ;;  %v3526_v25 = vadd.f32 %v3525_v22, %v3498_v38  ;;  %v8759_v38 = vld [vmem:[#allocation5 + $0x598] sm:$0xf] }
 0x2d5   :  { %v12644_v0 = vadd.f32 %v3579_v54, %v3552_v6  ;;  %v9271_v6 = vld [vmem:[#allocation5 + $0x998] sm:$0xf]  ;;  %v9048_v54 = vor.u32 %v11148_v20, %v9047_v4 }
 0x2d6   :  { %v9015_v20 = vld [vmem:[#allocation5 + $0x798] sm:$0xf] }
 0x2d7   :  { %3952 = vmatpush.bf16.msrb.mxu1 %v9048_v54  ;;  %v11068_v54 = vld [vmem:[#allocation5 + $0x574] sm:$0xf0] }
 0x2d8   :  { %v3500_v23 = vpop.f32.mrf.mxu0  ;;  %3723 = vmatmul.bf16.gmra.mxu0 %v12139_v59 }
 0x2d9   :  { %v3501_v10 = vadd.f32 %v3500_v23, %v12612_v24  ;;  %v3528_v9 = vpop.f32.mrf.mxu1 }
 0x2da   :  { %v3553_v7 = vpop.f32.mrf.mxu2 }
 0x2db   :  { %v3554_v42 = vadd.f32 %v3553_v7, %v3526_v25  ;;  %v3581_v39 = vpop.f32.mrf.mxu3  ;;  %v3529_v55 = vadd.f32 %v3528_v9, %v3501_v10  ;;  %v11076_v10 = vld [vmem:[#allocation5 + $0x5b4] sm:$0xf0]  ;;  %v9272_v25 = vor.u32 %v11204_v12, %v9271_v6 }
 0x2dc   :  { %3751 = vmatmul.bf16.gmra.mxu1 %v12141_v60  ;;  %v8760_v7 = vor.u32 %v11076_v10, %v8759_v38  ;;  %v11196_v6 = vld [vmem:[#allocation5 + $0x974] sm:$0xf0] }
 0x2dd   :  { %v12647_v28 = vadd.f32 %v3581_v39, %v3554_v42  ;;  %v9527_v42 = vld [vmem:[#allocation5 + $0xb98] sm:$0xf]  ;;  %3981 = vmatpush.bf16.msrb.mxu2 %v9272_v25  ;;  %v9240_v38 = vor.u32 %v11196_v6, %v9239_v47 }
 0x2de   :  { %v11268_v39 = vld [vmem:[#allocation5 + $0xbb4] sm:$0xf0]  ;;  %3925 = vmatpush.bf16.msrb.mxu0 %v8760_v7 }
 0x2df   :  { %v9528_v23 = vor.u32 %v11268_v39, %v9527_v42  ;;  %v8727_v12 = vld [vmem:[#allocation5 + $0x558] sm:$0xf] }
 0x2e0   :  { %3779 = vmatmul.bf16.gmra.mxu2 %v12143_v61  ;;  %3807 = vmatmul.bf16.gmra.mxu3 %v12182_v44  ;;  %v3502_v63 = vpop.f32.mrf.mxu0  ;;  %v8728_v10 = vor.u32 %v11068_v54, %v8727_v12  ;;  %v9495_v25 = vld [vmem:[#allocation5 + $0xb58] sm:$0xf] }
 0x2e1   :  { %v3530_v24 = vpop.f32.mrf.mxu1  ;;  %4009 = vmatpush.bf16.msrb.mxu3 %v9528_v23  ;;  %3982 = vmatpush.bf16.msrb.mxu2 %v9240_v38  ;;  %v8695_v6 = vld [vmem:[#allocation5 + $0x518] sm:$0xf] }
 0x2e2   :  { %v3556_v50 = vpop.f32.mrf.mxu2  ;;  %v11140_v24 = vld [vmem:[#allocation5 + $0x7b4] sm:$0xf0]  ;;  %3926 = vmatpush.bf16.msrb.mxu0 %v8728_v10 }
 0x2e3   :  { %v3557_v31 = vadd.f32 %v3556_v50, %v3529_v55  ;;  %v3584_v57 = vpop.f32.mrf.mxu3  ;;  %v9463_v10 = vld [vmem:[#allocation5 + $0xb18] sm:$0xf] }
 0x2e5   :  { %v12653_v22 = vadd.f32 %v3584_v57, %v3557_v31  ;;  %v9016_v57 = vor.u32 %v11140_v24, %v9015_v20  ;;  %v11188_v24 = vld [vmem:[#allocation5 + $0x934] sm:$0xf0] }
 0x2e7   :  { %3953 = vmatpush.bf16.msrb.mxu1 %v9016_v57  ;;  %v11060_v57 = vld [vmem:[#allocation5 + $0x534] sm:$0xf0] }
 0x2e8   :  { %v3597_v50 = vpop.f32.mrf.mxu0  ;;  %3820 = vmatmul.bf16.vlgmr.msra.gmra.mxu0 %v12151_v34  ;;  %v8696_v38 = vor.u32 %v11060_v57, %v8695_v6  ;;  %v8663_v6 = vld [vmem:[#allocation5 + $0x4d8] sm:$0xf] }
 0x2e9   :  { %v3598_v63 = vadd.f32 %v3597_v50, %v12624_v49  ;;  %v3625_v4 = vpop.f32.mrf.mxu1  ;;  %v11260_v49 = vld [vmem:[#allocation5 + $0xb74] sm:$0xf0] }
 0x2ea   :  { %v3558_v9 = vpop.f32.mrf.mxu2  ;;  %v9496_v7 = vor.u32 %v11260_v49, %v9495_v25  ;;  %v11132_v50 = vld [vmem:[#allocation5 + $0x774] sm:$0xf0]  ;;  %3927 = vmatpush.bf16.msrb.mxu0 %v8696_v38 }
 0x2eb   :  { %v3586_v55 = vpop.f32.mrf.mxu3  ;;  %v3626_v31 = vadd.f32 %v3625_v4, %v3598_v63  ;;  %v9207_v63 = vld [vmem:[#allocation5 + $0x918] sm:$0xf] }
 0x2ec   :  { %9617 = vmatmul.msk.bf16.vlgmr.msra.gmra.mxu1 %vm2679_vm0, %v12153_v35  ;;  %4010 = vmatpush.bf16.msrb.mxu3 %v9496_v7  ;;  %v8983_v55 = vld [vmem:[#allocation5 + $0x758] sm:$0xf]  ;;  %v9208_v54 = vor.u32 %v11188_v24, %v9207_v63 }
 0x2ed   :  { %v8984_v20 = vor.u32 %v11132_v50, %v8983_v55  ;;  %v11252_v25 = vld [vmem:[#allocation5 + $0xb34] sm:$0xf0] }
 0x2ee   :  { %3983 = vmatpush.bf16.msrb.mxu2 %v9208_v54  ;;  %v9464_v49 = vor.u32 %v11252_v25, %v9463_v10  ;;  %v9175_v63 = vld [vmem:[#allocation5 + $0x8d8] sm:$0xf] }
 0x2ef   :  { %3954 = vmatpush.bf16.msrb.mxu1 %v8984_v20  ;;  %v11180_v24 = vld [vmem:[#allocation5 + $0x8f4] sm:$0xf0] }
 0x2f0   :  { %3876 = vmatmul.bf16.vlgmr.msra.gmra.mxu2 %v12101_v48  ;;  %3904 = vmatmul.bf16.vlgmr.msra.gmra.mxu3 %v12103_v52  ;;  %v3599_v9 = vpop.f32.mrf.mxu0  ;;  %v9176_v20 = vor.u32 %v11180_v24, %v9175_v63  ;;  %v11052_v57 = vld [vmem:[#allocation5 + $0x4f4] sm:$0xf0] }
 0x2f1   :  { %v3600_v47 = vadd.f32 %v3599_v9, %v12627_v11  ;;  %v3627_v4 = vpop.f32.mrf.mxu1  ;;  %4011 = vmatpush.bf16.msrb.mxu3 %v9464_v49  ;;  %v8951_v11 = vld [vmem:[#allocation5 + $0x718] sm:$0xf] }
 0x2f2   :  { %v3653_v42 = vpop.f32.mrf.mxu2  ;;  %v11244_v54 = vld [vmem:[#allocation5 + $0xaf4] sm:$0xf0]  ;;  %3984 = vmatpush.bf16.msrb.mxu2 %v9176_v20 }
 0x2f3   :  { %v12661_v39 = vadd.f32 %v3653_v42, %v3626_v31  ;;  %v12663_v23 = vpop.f32.mrf.mxu3  ;;  %v3628_v31 = vadd.f32 %v3627_v4, %v3600_v47  ;;  %v11124_v42 = vld [vmem:[#allocation5 + $0x734] sm:$0xf0] }
 0x2f4   :  { %v8952_v5 = vor.u32 %v11124_v42, %v8951_v11  ;;  %v8919_v11 = vld [vmem:[#allocation5 + $0x6d8] sm:$0xf] }
 0x2f5   :  { %v4324_v12 = vmul.f32 1.442695, %v12661_v39  ;;  %v11116_v42 = vld [vmem:[#allocation5 + $0x6f4] sm:$0xf0]  ;;  %vm4264_vm10 = vcmp.gt.f32.partialorder %v12661_v39, 0.0 }
 0x2f6   :  { %3955 = vmatpush.bf16.msrb.mxu1 %v8952_v5  ;;  %v9143_v63 = vld [vmem:[#allocation5 + $0x898] sm:$0xf] }
 0x2f7   :  { %11640 = vpow2.f32 %v4324_v12  ;;  %v9431_v12 = vld [vmem:[#allocation5 + $0xad8] sm:$0xf] }
 0x2f8   :  { %v3602_v50 = vpop.f32.mrf.mxu0  ;;  %v9432_v25 = vor.u32 %v11244_v54, %v9431_v12  ;;  %3825 = vmatmul.bf16.gmra.mxu0 %v12162_v14  ;;  %v11172_v24 = vld [vmem:[#allocation5 + $0x8b4] sm:$0xf0] }
 0x2f9   :  { %v3603_v47 = vadd.f32 %v3602_v50, %v12634_v43  ;;  %v3630_v4 = vpop.f32.mrf.mxu1  ;;  %v8920_v43 = vor.u32 %v11116_v42, %v8919_v11  ;;  %v11044_v12 = vld [vmem:[#allocation5 + $0x4b4] sm:$0xf0] }
 0x2fa   :  { %v3655_v7 = vpop.f32.mrf.mxu2  ;;  %4012 = vmatpush.bf16.msrb.mxu3 %v9432_v25  ;;  %v9399_v54 = vld [vmem:[#allocation5 + $0xa98] sm:$0xf] }
 0x2fb   :  { %v12667_v9 = vadd.f32 %v3655_v7, %v3628_v31  ;;  %v12669_v55 = vpop.f32.mrf.mxu3  ;;  %v8664_v31 = vor.u32 %v11052_v57, %v8663_v6  ;;  %v3631_v7 = vadd.f32 %v3630_v4, %v3603_v47  ;;  %3956 = vmatpush.bf16.msrb.mxu1 %v8920_v43  ;;  %v8631_v6 = vld [vmem:[#allocation5 + $0x498] sm:$0xf]  ;;  %v9144_v57 = vor.u32 %v11172_v24, %v9143_v63 }
 0x2fc   :  { %9618 = vmatmul.msk.bf16.gmra.mxu1 %vm2679_vm0, %v12164_v15  ;;  %v8632_v11 = vor.u32 %v11044_v12, %v8631_v6  ;;  %v11108_v25 = vld [vmem:[#allocation5 + $0x6b4] sm:$0xf0] }
 0x2fd   :  { %v11641_v38 = vpop.eup %11640  ;;  %v4340_v10 = vmul.f32 1.442695, %v12667_v9  ;;  %3928 = vmatpush.bf16.msrb.mxu0 %v8664_v31  ;;  %v11236_v31 = vld [vmem:[#allocation5 + $0xab4] sm:$0xf0]  ;;  %3985 = vmatpush.bf16.msrb.mxu2 %v9144_v57  ;;  %vm4272_vm11 = vcmp.gt.f32.partialorder %v12667_v9, 0.0 }
 0x2fe   :  { %v9633_v49 = vadd.f32 -1.0, %v11641_v38  ;;  %v11036_v12 = vld [vmem:[#allocation5 + $0x474] sm:$0xf0] }
 0x2ff   :  { %11642 = vpow2.f32 %v4340_v10  ;;  %v8855_v57 = vld [vmem:[#allocation5 + $0x658] sm:$0xf] }
 0x300   :  { %3881 = vmatmul.bf16.gmra.mxu2 %v12113_v32  ;;  %3909 = vmatmul.bf16.gmra.mxu3 %v12115_v36  ;;  %v4488_v5 = vmul.f32 1.6732632, %v9633_v49  ;;  %v3604_v20 = vpop.f32.mrf.mxu0  ;;  %v8887_v49 = vld [vmem:[#allocation5 + $0x698] sm:$0xf] }
 0x301   :  { %v3605_v38 = vadd.f32 %v3604_v20, %v12637_v29  ;;  %v3632_v10 = vpop.f32.mrf.mxu1  ;;  %3929 = vmatpush.bf16.msrb.mxu0 %v8632_v11  ;;  %v11164_v29 = vld [vmem:[#allocation5 + $0x874] sm:$0xf0] }
 0x302   :  { %v3658_v50 = vpop.f32.mrf.mxu2  ;;  %v4544_v62 = vsel %vm4264_vm10, %v12661_v39, %v4488_v5  ;;  %v9112_v6 = vor.u32 %v11164_v29, %v9111_v27  ;;  %v8599_v20 = vld [vmem:[#allocation5 + $0x458] sm:$0xf]  ;;  %v9368_v39 = vor.u32 %v11228_v51, %v9367_v26 }
 0x303   :  { %v12678_v47 = vadd.f32 %v3658_v50, %v3631_v7  ;;  %v12680_v4 = vpop.f32.mrf.mxu3  ;;  %v9400_v7 = vor.u32 %v11236_v31, %v9399_v54  ;;  %v8888_v50 = vor.u32 %v11108_v25, %v8887_v49  ;;  %v3633_v24 = vadd.f32 %v3632_v10, %v3605_v38  ;;  %v11100_v5 = vld [vmem:[#allocation5 + $0x674] sm:$0xf0] }
 0x304   :  { %v8600_v41 = vor.u32 %v11036_v12, %v8599_v20  ;;  %v4600_v54 = vmul.f32 1.050701, %v4544_v62  ;;  %3986 = vmatpush.bf16.msrb.mxu2 %v9112_v6  ;;  %v8856_v11 = vor.u32 %v11100_v5, %v8855_v57  ;;  %v9079_v31 = vld [vmem:[#allocation5 + $0x818] sm:$0xf] }
 0x305   :  { %v11643_v42 = vpop.eup %11642  ;;  %v4356_v43 = vmul.f32 1.442695, %v12678_v47  ;;  %4013 = vmatpush.bf16.msrb.mxu3 %v9400_v7  ;;  %3957 = vmatpush.bf16.msrb.mxu1 %v8888_v50  ;;  %v11156_v27 = vld [vmem:[#allocation5 + $0x834] sm:$0xf0]  ;;  %vm4280_vm12 = vcmp.gt.f32.partialorder %v12678_v47, 0.0 }
 0x306   :  { %v9641_v63 = vadd.f32 -1.0, %v11643_v42  ;;  %3930 = vmatpush.bf16.msrb.mxu0 %v8600_v41  ;;  %v8567_v49 = vld [vmem:[#allocation5 + $0x418] sm:$0xf]  ;;  %v9080_v62 = vor.u32 %v11156_v27, %v9079_v31 }
 0x307   :  { %11644 = vpow2.f32 %v4356_v43  ;;  %v11028_v50 = vld [vmem:[#allocation5 + $0x434] sm:$0xf0] }
 0x308   :  { %v4496_v21 = vmul.f32 1.6732632, %v9641_v63  ;;  %v3607_v7 = vpop.f32.mrf.mxu0  ;;  %v9335_v63 = vld [vmem:[#allocation5 + $0xa18] sm:$0xf]  ;;  %3987 = vmatpush.bf16.msrb.mxu2 %v9080_v62  ;;  %3830 = vmatmul.bf16.gmra.mxu0 %v12173_v2 }
 0x309   :  { %4014 = vmatpush.bf16.msrb.mxu3 %v9368_v39  ;;  %v3608_v26 = vadd.f32 %v3607_v7, %v12644_v0  ;;  %v3635_v51 = vpop.f32.mrf.mxu1  ;;  %3958 = vmatpush.bf16.msrb.mxu1 %v8856_v11  ;;  %v11220_v41 = vld [vmem:[#allocation5 + $0xa34] sm:$0xf0]  ;;  %v11016_v7 = vld [vmem:[#allocation5 + $0x3dc] sm:$0xf] }
 0x30a   :  { %v4552_v38 = vsel %vm4272_vm11, %v12667_v9, %v4496_v21  ;;  %v3660_v10 = vpop.f32.mrf.mxu2  ;;  %v8568_v21 = vor.u32 %v11028_v50, %v8567_v49  ;;  %v8823_v9 = vld [vmem:[#allocation5 + $0x618] sm:$0xf]  ;;  %v9336_v12 = vor.u32 %v11220_v41, %v9335_v63  ;;  %v8537_v63 = vld [vmem:[#allocation5 + $0x3f8] sm:$0xf0] }
 0x30b   :  { %v4608_v25 = vmul.f32 1.050701, %v4552_v38  ;;  %v12688_v42 = vadd.f32 %v3660_v10, %v3633_v24  ;;  %v12690_v43 = vpop.f32.mrf.mxu3  ;;  %v11092_v29 = vld [vmem:[#allocation5 + $0x634] sm:$0xf0]  ;;  %v3636_v57 = vadd.f32 %v3635_v51, %v3608_v26  ;;  %v8540_v51 = vor.u32 %v11016_v7, %v8537_v63  ;;  %v11080_v41 = vld [vmem:[#allocation5 + $0x5dc] sm:$0xf] }
 0x30c   :  { %v8824_v39 = vor.u32 %v11092_v29, %v8823_v9  ;;  %9619 = vmatmul.msk.bf16.gmra.mxu1 %vm2679_vm0, %v12175_v3  ;;  %3931 = vmatpush.bf16.msrb.mxu0 %v8568_v21  ;;  %v9591_v26 = vld [vmem:[#allocation5 + $0xc18] sm:$0xf]  ;;  %v8793_v9 = vld [vmem:[#allocation5 + $0x5f8] sm:$0xf0] }
 0x30d   :  { %v11645_v6 = vpop.eup %11644  ;;  %v12693_v20 = vpack.c.bf16 %v4608_v25, %v4600_v54  ;;  %v4372_v24 = vmul.f32 1.442695, %v12688_v42  ;;  %4015 = vmatpush.bf16.msrb.mxu3 %v9336_v12  ;;  %vm4288_vm13 = vcmp.gt.f32.partialorder %v12688_v42, 0.0  ;;  %v11284_v21 = vld [vmem:[#allocation5 + $0xc34] sm:$0xf0]  ;;  %4092 = vmatpush.bf16.msra.mxu2 %v8540_v51 }
 0x30e   :  { %v9649_v0 = vadd.f32 -1.0, %v11645_v6  ;;  %3959 = vmatpush.bf16.msrb.mxu1 %v8824_v39  ;;  %v9592_v6 = vor.u32 %v11284_v21, %v9591_v26  ;;  %v10952_v12 = vld [vmem:[#allocation5 + $0x1dc] sm:$0xf] }
 0x30f   :  { %11646 = vpow2.f32 %v4372_v24  ;;  %v8796_v24 = vor.u32 %v11080_v41, %v8793_v9 }
 0x310   :  { %3886 = vmatmul.bf16.gmra.mxu2 %v12125_v16  ;;  %3914 = vmatmul.bf16.gmra.mxu3 %v12127_v17  ;;  %v3609_v10 = vpop.f32.mrf.mxu0  ;;  %v4504_v11 = vmul.f32 1.6732632, %v9649_v0  ;;  %v11008_v0 = vld [vmem:[#allocation5 + $0x39c] sm:$0xf] }
 0x311   :  { %v3610_v31 = vadd.f32 %v3609_v10, %v12647_v28  ;;  %v3637_v27 = vpop.f32.mrf.mxu1  ;;  %v11072_v10 = vld [vmem:[#allocation5 + $0x59c] sm:$0xf]  ;;  %4043 = vmatpush.bf16.msra.mxu0 %v9592_v6  ;;  %4120 = vmatpush.bf16.msra.mxu3 %v8796_v24 }
 0x312   :  { %v4560_v28 = vsel %vm4280_vm12, %v12678_v47, %v4504_v11  ;;  %v11000_v24 = vld [vmem:[#allocation5 + $0x35c] sm:$0xf] }
 0x313   :  { %v3663_v54 = vpop.f32.mrf.mxu2  ;;  %v12703_v38 = vpop.f32.mrf.mxu3  ;;  %v3638_v50 = vadd.f32 %v3637_v27, %v3610_v31  ;;  %v4616_v47 = vmul.f32 1.050701, %v4560_v28  ;;  %v8249_v28 = vld [vmem:[#allocation5 + $0x1b8] sm:$0xf0] }
 0x314   :  { %v12701_v5 = vadd.f32 %v3663_v54, %v3636_v57  ;;  %v8281_v57 = vld [vmem:[#allocation5 + $0x1f8] sm:$0xf0] }
 0x315   :  { %v11647_v49 = vpop.eup %11646  ;;  %v8284_v39 = vor.u32 %v10952_v12, %v8281_v57  ;;  %v8505_v54 = vld [vmem:[#allocation5 + $0x3b8] sm:$0xf0] }
 0x316   :  { %v4388_v25 = vmul.f32 1.442695, %v12701_v5  ;;  %v9657_v62 = vadd.f32 -1.0, %v11647_v49  ;;  %v8508_v49 = vor.u32 %v11008_v0, %v8505_v54  ;;  %v8473_v12 = vld [vmem:[#allocation5 + $0x378] sm:$0xf0]  ;;  %vm4296_vm14 = vcmp.gt.f32.partialorder %v12701_v5, 0.0 }
 0x317   :  { %4064 = vmatpush.bf16.msra.mxu1 %v8284_v39  ;;  %v8476_v57 = vor.u32 %v11000_v24, %v8473_v12  ;;  %v11064_v39 = vld [vmem:[#allocation5 + $0x55c] sm:$0xf] }
 0x318   :  { %11648 = vpow2.f32 %v4388_v25  ;;  %v4512_v29 = vmul.f32 1.6732632, %v9657_v62  ;;  %v8761_v25 = vld [vmem:[#allocation5 + $0x5b8] sm:$0xf0]  ;;  %v3612_v63 = vpop.f32.mrf.mxu0  ;;  %4093 = vmatpush.bf16.msra.mxu2 %v8508_v49  ;;  %3835 = vmatmul.bf16.gmra.mxu0 %v12184_v45 }
 0x319   :  { %v8764_v26 = vor.u32 %v11072_v10, %v8761_v25  ;;  %v3613_v51 = vadd.f32 %v3612_v63, %v12653_v22  ;;  %v3640_v21 = vpop.f32.mrf.mxu1  ;;  %v8729_v0 = vld [vmem:[#allocation5 + $0x578] sm:$0xf0]  ;;  %v12728_v63 = vperm.slane %v12609_v30, 5 }
 0x31a   :  { %v4568_v31 = vsel %vm4288_vm13, %v12688_v42, %v4512_v29  ;;  %v10944_v42 = vld [vmem:[#allocation5 + $0x19c] sm:$0xf]  ;;  %v8732_v10 = vor.u32 %v11064_v39, %v8729_v0 }
 0x31b   :  { %v3665_v27 = vpop.f32.mrf.mxu2  ;;  %v4624_v11 = vmul.f32 1.050701, %v4568_v31  ;;  %v12713_v62 = vpop.f32.mrf.mxu3  ;;  %v3641_v6 = vadd.f32 %v3640_v21, %v3613_v51  ;;  %4121 = vmatpush.bf16.msra.mxu3 %v8764_v26  ;;  %v10936_v26 = vld [vmem:[#allocation5 + $0x15c] sm:$0xf]  ;;  %v3682_v30 = vadd.f32 %v12663_v23, %v12728_v63 }
 0x31c   :  { %v3666_v7 = vadd.f32 %v3665_v27, %v3638_v50  ;;  %9620 = vmatmul.msk.bf16.gmra.mxu1 %vm2679_vm0, %v12186_v46  ;;  %v8252_v50 = vor.u32 %v10944_v42, %v8249_v28  ;;  %4094 = vmatpush.bf16.msra.mxu2 %v8476_v57  ;;  %v8217_v21 = vld [vmem:[#allocation5 + $0x178] sm:$0xf0] }
 0x31d   :  { %v12716_v29 = vpack.c.bf16 %v4624_v11, %v4616_v47  ;;  %v8441_v42 = vld [vmem:[#allocation5 + $0x338] sm:$0xf0] }
 0x31e   :  { %v11649_v41 = vpop.eup %11648  ;;  %v4404_v9 = vmul.f32 1.442695, %v3666_v7  ;;  %4065 = vmatpush.bf16.msra.mxu1 %v8252_v50  ;;  %v8697_v28 = vld [vmem:[#allocation5 + $0x538] sm:$0xf0]  ;;  %vm4304_vm15 = vcmp.gt.f32.partialorder %v3666_v7, 0.0 }
 0x31f   :  { %v9665_v22 = vadd.f32 -1.0, %v11649_v41  ;;  %4122 = vmatpush.bf16.msra.mxu3 %v8732_v10  ;;  %v10992_v41 = vld [vmem:[#allocation5 + $0x31c] sm:$0xf] }
 0x320   :  { %11650 = vpow2.f32 %v4404_v9  ;;  %3891 = vmatmul.bf16.gmra.mxu2 %v12137_v58  ;;  %3919 = vmatmul.bf16.gmra.mxu3 %v12139_v59  ;;  %v3614_v49 = vpop.f32.mrf.mxu0  ;;  %v8220_v9 = vor.u32 %v10936_v26, %v8217_v21  ;;  %v10928_v26 = vld [vmem:[#allocation5 + $0x11c] sm:$0xf] }
 0x321   :  { %v4520_v25 = vmul.f32 1.6732632, %v9665_v22  ;;  %v3642_v47 = vpop.f32.mrf.mxu1  ;;  %v8444_v22 = vor.u32 %v10992_v41, %v8441_v42  ;;  %v10984_v23 = vld [vmem:[#allocation5 + $0x2dc] sm:$0xf] }
 0x322   :  { %4066 = vmatpush.bf16.msra.mxu1 %v8220_v9  ;;  %v11048_v9 = vld [vmem:[#allocation5 + $0x4dc] sm:$0xf] }
 0x323   :  { %v3668_v54 = vpop.f32.mrf.mxu2  ;;  %v12725_v27 = vpop.f32.mrf.mxu3  ;;  %v4576_v50 = vsel %vm4296_vm14, %v12701_v5, %v4520_v25  ;;  %4095 = vmatpush.bf16.msra.mxu2 %v8444_v22  ;;  %v8185_v5 = vld [vmem:[#allocation5 + $0x138] sm:$0xf0] }
 0x324   :  { %v12723_v31 = vadd.f32 %v3668_v54, %v3641_v6  ;;  %v11056_v6 = vld [vmem:[#allocation5 + $0x51c] sm:$0xf]  ;;  %v4632_v0 = vmul.f32 1.050701, %v4576_v50  ;;  %v8188_v21 = vor.u32 %v10928_v26, %v8185_v5 }
 0x325   :  { %v8700_v12 = vor.u32 %v11056_v6, %v8697_v28  ;;  %v8665_v42 = vld [vmem:[#allocation5 + $0x4f8] sm:$0xf0]  ;;  %v3684_v6 = vadd.f32 %v12669_v55, %v12728_v63 }
 0x326   :  { %v11651_v11 = vpop.eup %11650  ;;  %4067 = vmatpush.bf16.msra.mxu1 %v8188_v21  ;;  %v8668_v50 = vor.u32 %v11048_v9, %v8665_v42  ;;  %v11040_v26 = vld [vmem:[#allocation5 + $0x49c] sm:$0xf] }
 0x327   :  { %v9673_v51 = vadd.f32 -1.0, %v11651_v11  ;;  %4123 = vmatpush.bf16.msra.mxu3 %v8700_v12  ;;  %v8633_v55 = vld [vmem:[#allocation5 + $0x4b8] sm:$0xf0] }
 0x328   :  { %v3709_v49 = vpop.f32.mrf.mxu0  ;;  %3932 = vmatmul.bf16.vlgmr.msrb.gmra.mxu0 %v12105_v53  ;;  %v8636_v21 = vor.u32 %v11040_v26, %v8633_v55 }
 0x329   :  { %v4528_v24 = vmul.f32 1.6732632, %v9673_v51  ;;  %v3710_v47 = vadd.f32 %v3709_v49, %v3682_v30  ;;  %v3737_v11 = vpop.f32.mrf.mxu1 }
 0x32b   :  { %v4584_v57 = vsel %vm4304_vm15, %v3666_v7, %v4528_v24  ;;  %v3670_v39 = vpop.f32.mrf.mxu2  ;;  %v3698_v10 = vpop.f32.mrf.mxu3  ;;  %v3738_v51 = vadd.f32 %v3737_v11, %v3710_v47  ;;  %v8409_v7 = vld [vmem:[#allocation5 + $0x2f8] sm:$0xf0]  ;;  %4124 = vmatpush.bf16.msra.mxu3 %v8668_v50 }
 0x32c   :  { %v4640_v54 = vmul.f32 1.050701, %v4584_v57  ;;  %3960 = vmatmul.bf16.vlgmr.msrb.gmra.mxu1 %v12107_v56  ;;  %v8412_v41 = vor.u32 %v10984_v23, %v8409_v7  ;;  %v10976_v47 = vld [vmem:[#allocation5 + $0x29c] sm:$0xf] }
 0x32d   :  { %v8377_v11 = vld [vmem:[#allocation5 + $0x2b8] sm:$0xf0] }
 0x32e   :  { %v12734_v25 = vpack.c.bf16 %v4640_v54, %v4632_v0  ;;  %4096 = vmatpush.bf16.msra.mxu2 %v8412_v41  ;;  %v10920_v0 = vld [vmem:[#allocation5 + $0xdc] sm:$0xf]  ;;  %v8380_v5 = vor.u32 %v10976_v47, %v8377_v11 }
 0x32f   :  { %v8153_v54 = vld [vmem:[#allocation5 + $0xf8] sm:$0xf0]  ;;  %4125 = vmatpush.bf16.msra.mxu3 %v8636_v21 }
 0x330   :  { %3988 = vmatmul.bf16.vlgmr.msrb.gmra.mxu2 %v12149_v33  ;;  %4016 = vmatmul.bf16.vlgmr.msrb.gmra.mxu3 %v12151_v34  ;;  %v3711_v12 = vpop.f32.mrf.mxu0  ;;  %v8156_v49 = vor.u32 %v10920_v0, %v8153_v54  ;;  %v10912_v50 = vld [vmem:[#allocation5 + $0x9c] sm:$0xf] }
 0x331   :  { %v3712_v30 = vadd.f32 %v3711_v12, %v3684_v6  ;;  %v3739_v57 = vpop.f32.mrf.mxu1  ;;  %v8601_v54 = vld [vmem:[#allocation5 + $0x478] sm:$0xf0] }
 0x332   :  { %4068 = vmatpush.bf16.msra.mxu1 %v8156_v49  ;;  %4097 = vmatpush.bf16.msra.mxu2 %v8380_v5 }
 0x333   :  { %v3765_v28 = vpop.f32.mrf.mxu2  ;;  %v3793_v22 = vpop.f32.mrf.mxu3  ;;  %v3740_v10 = vadd.f32 %v3739_v57, %v3712_v30  ;;  %v8345_v30 = vld [vmem:[#allocation5 + $0x278] sm:$0xf0] }
 0x334   :  { %v3766_v24 = vadd.f32 %v3765_v28, %v3738_v51  ;;  %v3687_v51 = vadd.f32 %v12680_v4, %v12728_v63  ;;  %v10968_v4 = vld [vmem:[#allocation5 + $0x25c] sm:$0xf] }
 0x335   :  { %v11032_v57 = vld [vmem:[#allocation5 + $0x45c] sm:$0xf]  ;;  %v8348_v0 = vor.u32 %v10968_v4, %v8345_v30 }
 0x336   :  { %v12742_v39 = vadd.f32 %v3793_v22, %v3766_v24  ;;  %v8121_v24 = vld [vmem:[#allocation5 + $0xb8] sm:$0xf0]  ;;  %v8604_v47 = vor.u32 %v11032_v57, %v8601_v54 }
 0x337   :  { %v8124_v12 = vor.u32 %v10912_v50, %v8121_v24  ;;  %4098 = vmatpush.bf16.msra.mxu2 %v8348_v0  ;;  %v11024_v50 = vld [vmem:[#allocation5 + $0x41c] sm:$0xf] }
 0x338   :  { %v3714_v9 = vpop.f32.mrf.mxu0  ;;  %3937 = vmatmul.bf16.gmra.mxu0 %v12117_v37  ;;  %4126 = vmatpush.bf16.msra.mxu3 %v8604_v47  ;;  %v8569_v24 = vld [vmem:[#allocation5 + $0x438] sm:$0xf0] }
 0x339   :  { %v3715_v42 = vadd.f32 %v3714_v9, %v3687_v51  ;;  %v3742_v6 = vpop.f32.mrf.mxu1  ;;  %4069 = vmatpush.bf16.msra.mxu1 %v8124_v12  ;;  %v8572_v12 = vor.u32 %v11024_v50, %v8569_v24  ;;  %v10896_v30 = vld [vmem:[#allocation5 + $0x1c] sm:$0xf]  ;;  %v3697_v50 = vadd.f32 %v12725_v27, %v12728_v63 }
 0x33a   :  { %v8057_v57 = vld [vmem:[#allocation5 + $0x38] sm:$0xf0] }
 0x33b   :  { %v3767_v23 = vpop.f32.mrf.mxu2  ;;  %v3795_v41 = vpop.f32.mrf.mxu3  ;;  %v3743_v22 = vadd.f32 %v3742_v6, %v3715_v42  ;;  %v8313_v6 = vld [vmem:[#allocation5 + $0x238] sm:$0xf0] }
 0x33c   :  { %v3768_v7 = vadd.f32 %v3767_v23, %v3740_v10  ;;  %3965 = vmatmul.bf16.gmra.mxu1 %v12119_v40  ;;  %v3689_v10 = vadd.f32 %v12690_v43, %v12728_v63  ;;  %v10904_v23 = vld [vmem:[#allocation5 + $0x5c] sm:$0xf]  ;;  %4127 = vmatpush.bf16.msra.mxu3 %v8572_v12 }
 0x33d   :  { %v9049_v27 = vld [vmem:[#allocation5 + $0x7f8] sm:$0xf0] }
 0x33e   :  { %v12746_v28 = vadd.f32 %v3795_v41, %v3768_v7  ;;  %v8089_v7 = vld [vmem:[#allocation5 + $0x78] sm:$0xf0] }
 0x33f   :  { %v10960_v41 = vld [vmem:[#allocation5 + $0x21c] sm:$0xf]  ;;  %v8092_v42 = vor.u32 %v10904_v23, %v8089_v7 }
 0x340   :  { %3993 = vmatmul.bf16.gmra.mxu2 %v12160_v13  ;;  %4021 = vmatmul.bf16.gmra.mxu3 %v12162_v14  ;;  %v3716_v5 = vpop.f32.mrf.mxu0  ;;  %v8316_v43 = vor.u32 %v10960_v41, %v8313_v6 }
 0x341   :  { %v3717_v55 = vadd.f32 %v3716_v5, %v3689_v10  ;;  %v3744_v21 = vpop.f32.mrf.mxu1  ;;  %4070 = vmatpush.bf16.msra.mxu1 %v8092_v42 }
 0x342   :  { %4099 = vmatpush.bf16.msra.mxu2 %v8316_v43 }
 0x343   :  { %v3770_v49 = vpop.f32.mrf.mxu2  ;;  %v3798_v26 = vpop.f32.mrf.mxu3  ;;  %v3745_v9 = vadd.f32 %v3744_v21, %v3717_v55 }
 0x344   :  { %v3771_v11 = vadd.f32 %v3770_v49, %v3743_v22  ;;  %v3692_v22 = vadd.f32 %v12703_v38, %v12728_v63  ;;  %v8060_v49 = vor.u32 %v10896_v30, %v8057_v57  ;;  %v3694_v38 = vadd.f32 %v12713_v62, %v12728_v63  ;;  %v11280_v63 = vld [vmem:[#allocation5 + $0xc1c] sm:$0xf] }
 0x346   :  { %v12754_v51 = vadd.f32 %v3798_v26, %v3771_v11  ;;  %4071 = vmatpush.bf16.msra.mxu1 %v8060_v49 }
 0x348   :  { %v3719_v10 = vpop.f32.mrf.mxu0  ;;  %3942 = vmatmul.bf16.gmra.mxu0 %v12129_v18 }
 0x349   :  { %v3720_v47 = vadd.f32 %v3719_v10, %v3692_v22  ;;  %v3747_v11 = vpop.f32.mrf.mxu1  ;;  %v11144_v10 = vld [vmem:[#allocation5 + $0x7dc] sm:$0xf] }
 0x34b   :  { %v3772_v4 = vpop.f32.mrf.mxu2  ;;  %v3800_v54 = vpop.f32.mrf.mxu3  ;;  %v3748_v5 = vadd.f32 %v3747_v11, %v3720_v47  ;;  %v9593_v47 = vld [vmem:[#allocation5 + $0xc38] sm:$0xf0]  ;;  %v9052_v11 = vor.u32 %v11144_v10, %v9049_v27 }
 0x34c   :  { %v3773_v0 = vadd.f32 %v3772_v4, %v3745_v9  ;;  %3970 = vmatmul.bf16.gmra.mxu1 %v12131_v19 }
 0x34d   :  { %4148 = vmatpush.bf16.msrb.mxu0 %v9052_v11  ;;  %v12779_v11 = vld [vmem:[#allocation7] sm:$0xff] }
 0x34e   :  { %v12758_v26 = vadd.f32 %v3800_v54, %v3773_v0  ;;  %v11272_v0 = vld [vmem:[#allocation5 + $0xbdc] sm:$0xf] }
 0x34f   :  { %v9561_v54 = vld [vmem:[#allocation5 + $0xbf8] sm:$0xf0] }
 0x350   :  { %3998 = vmatmul.bf16.gmra.mxu2 %v12171_v1  ;;  %4026 = vmatmul.bf16.gmra.mxu3 %v12173_v2  ;;  %v3721_v7 = vpop.f32.mrf.mxu0  ;;  %v9564_v49 = vor.u32 %v11272_v0, %v9561_v54  ;;  %v9273_v0 = vld [vmem:[#allocation5 + $0x9b8] sm:$0xf0] }
 0x351   :  { %v3722_v41 = vadd.f32 %v3721_v7, %v3694_v38  ;;  %v3749_v9 = vpop.f32.mrf.mxu1  ;;  %v11208_v38 = vld [vmem:[#allocation5 + $0x9dc] sm:$0xf] }
 0x352   :  { %4204 = vmatpush.bf16.msrb.mxu2 %v9564_v49 }
 0x353   :  { %v3775_v55 = vpop.f32.mrf.mxu2  ;;  %v3803_v23 = vpop.f32.mrf.mxu3  ;;  %v3750_v6 = vadd.f32 %v3749_v9, %v3722_v41 }
 0x354   :  { %v3776_v21 = vadd.f32 %v3775_v55, %v3748_v5  ;;  %v9596_v5 = vor.u32 %v11280_v63, %v9593_v47  ;;  %v9305_v55 = vld [vmem:[#allocation5 + $0x9f8] sm:$0xf0] }
 0x356   :  { %v12766_v42 = vadd.f32 %v3803_v23, %v3776_v21  ;;  %v9308_v21 = vor.u32 %v11208_v38, %v9305_v55  ;;  %4239 = vmatpush.bf16.msrb.mxu3 %v9596_v5  ;;  %v12782_v5 = vperm.slane %v12779_v11, 6  ;;  %v11256_v55 = vld [vmem:[#allocation5 + $0xb5c] sm:$0xf] }
 0x358   :  { %v3724_v22 = vpop.f32.mrf.mxu0  ;;  %3947 = vmatmul.bf16.gmra.mxu0 %v12141_v60  ;;  %4176 = vmatpush.bf16.msrb.mxu1 %v9308_v21  ;;  %v9497_v21 = vld [vmem:[#allocation5 + $0xb78] sm:$0xf0] }
 0x359   :  { %v3725_v4 = vadd.f32 %v3724_v22, %v3697_v50  ;;  %v3752_v30 = vpop.f32.mrf.mxu1 }
 0x35b   :  { %v3777_v24 = vpop.f32.mrf.mxu2  ;;  %v3805_v12 = vpop.f32.mrf.mxu3  ;;  %v3753_v62 = vadd.f32 %v3752_v30, %v3725_v4  ;;  %v9017_v4 = vld [vmem:[#allocation5 + $0x7b8] sm:$0xf0] }
 0x35c   :  { %v3778_v43 = vadd.f32 %v3777_v24, %v3750_v6  ;;  %3975 = vmatmul.bf16.gmra.mxu1 %v12143_v61  ;;  %v11264_v24 = vld [vmem:[#allocation5 + $0xb9c] sm:$0xf] }
 0x35d   :  { %v11200_v30 = vld [vmem:[#allocation5 + $0x99c] sm:$0xf] }
 0x35e   :  { %v12770_v57 = vadd.f32 %v3805_v12, %v3778_v43  ;;  %v9529_v43 = vld [vmem:[#allocation5 + $0xbb8] sm:$0xf0]  ;;  %v9276_v49 = vor.u32 %v11200_v30, %v9273_v0 }
 0x35f   :  { %v11136_v12 = vld [vmem:[#allocation5 + $0x79c] sm:$0xf]  ;;  %v9532_v22 = vor.u32 %v11264_v24, %v9529_v43 }
 0x360   :  { %4003 = vmatmul.bf16.gmra.mxu2 %v12182_v44  ;;  %4031 = vmatmul.bf16.gmra.mxu3 %v12184_v45  ;;  %v3726_v9 = vpop.f32.mrf.mxu0  ;;  %v9020_v10 = vor.u32 %v11136_v12, %v9017_v4 }
 0x361   :  { %v3754_v6 = vpop.f32.mrf.mxu1  ;;  %4205 = vmatpush.bf16.msrb.mxu2 %v9532_v22  ;;  %4177 = vmatpush.bf16.msrb.mxu1 %v9276_v49  ;;  %v9241_v9 = vld [vmem:[#allocation5 + $0x978] sm:$0xf0] }
 0x362   :  { %4149 = vmatpush.bf16.msrb.mxu0 %v9020_v10  ;;  %v11248_v10 = vld [vmem:[#allocation5 + $0xb1c] sm:$0xf] }
 0x363   :  { %v3780_v23 = vpop.f32.mrf.mxu2  ;;  %v3808_v41 = vpop.f32.mrf.mxu3  ;;  %v11120_v49 = vld [vmem:[#allocation5 + $0x71c] sm:$0xf] }
 0x364   :  { %v3781_v7 = vadd.f32 %v3780_v23, %v3753_v62  ;;  %v11128_v23 = vld [vmem:[#allocation5 + $0x75c] sm:$0xf] }
 0x366   :  { %v12776_v50 = vadd.f32 %v3808_v41, %v3781_v7  ;;  %v8985_v7 = vld [vmem:[#allocation5 + $0x778] sm:$0xf0] }
 0x367   :  { %v11192_v41 = vld [vmem:[#allocation5 + $0x95c] sm:$0xf]  ;;  %v8988_v24 = vor.u32 %v11128_v23, %v8985_v7 }
 0x368   :  { %v3821_v63 = vpop.f32.mrf.mxu0  ;;  %9621 = vmatmul.msk.bf16.vlgmr.msra.gmra.mxu0 %vm2679_vm0, %v12153_v35  ;;  %v9244_v43 = vor.u32 %v11192_v41, %v9241_v9 }
 0x369   :  { %v3822_v62 = vadd.f32 %v3821_v63, %v12742_v39  ;;  %v3849_v47 = vpop.f32.mrf.mxu1  ;;  %v9500_v39 = vor.u32 %v11256_v55, %v9497_v21  ;;  %4150 = vmatpush.bf16.msrb.mxu0 %v8988_v24  ;;  %v8953_v63 = vld [vmem:[#allocation5 + $0x738] sm:$0xf0] }
 0x36a   :  { %4178 = vmatpush.bf16.msrb.mxu1 %v9244_v43  ;;  %v8956_v23 = vor.u32 %v11120_v49, %v8953_v63  ;;  %v11176_v49 = vld [vmem:[#allocation5 + $0x8dc] sm:$0xf] }
 0x36b   :  { %v3782_v54 = vpop.f32.mrf.mxu2  ;;  %v3810_v27 = vpop.f32.mrf.mxu3  ;;  %v12784_v38 = vadd.f32 %v3849_v47, %v3822_v62  ;;  %4206 = vmatpush.bf16.msrb.mxu2 %v9500_v39  ;;  %v11184_v62 = vld [vmem:[#allocation5 + $0x91c] sm:$0xf] }
 0x36c   :  { %4072 = vmatmul.bf16.vlgmr.msra.gmra.mxu1 %v12101_v48  ;;  %v9209_v47 = vld [vmem:[#allocation5 + $0x938] sm:$0xf0] }
 0x36d   :  { %v4326_v6 = vmul.f32 1.442695, %v12784_v38  ;;  %v9212_v39 = vor.u32 %v11184_v62, %v9209_v47  ;;  %4151 = vmatpush.bf16.msrb.mxu0 %v8956_v23  ;;  %v9177_v62 = vld [vmem:[#allocation5 + $0x8f8] sm:$0xf0]  ;;  %vm4265_vm1 = vcmp.gt.f32.partialorder %v12784_v38, 0.0 }
 0x36e   :  { %v9401_v23 = vld [vmem:[#allocation5 + $0xab8] sm:$0xf0] }
 0x36f   :  { %11652 = vpow2.f32 %v4326_v6  ;;  %4179 = vmatpush.bf16.msrb.mxu1 %v9212_v39  ;;  %v11104_v39 = vld [vmem:[#allocation5 + $0x69c] sm:$0xf] }
 0x370   :  { %4100 = vmatmul.bf16.vlgmr.msra.gmra.mxu2 %v12103_v52  ;;  %4128 = vmatmul.bf16.vlgmr.msra.gmra.mxu3 %v12105_v53  ;;  %v3823_v4 = vpop.f32.mrf.mxu0  ;;  %v9465_v53 = vld [vmem:[#allocation5 + $0xb38] sm:$0xf0] }
 0x371   :  { %v3824_v52 = vadd.f32 %v3823_v4, %v12746_v28  ;;  %v3851_v30 = vpop.f32.mrf.mxu1  ;;  %v9468_v27 = vor.u32 %v11248_v10, %v9465_v53  ;;  %v11240_v4 = vld [vmem:[#allocation5 + $0xadc] sm:$0xf] }
 0x372   :  { %v11112_v10 = vld [vmem:[#allocation5 + $0x6dc] sm:$0xf] }
 0x373   :  { %v3877_v12 = vpop.f32.mrf.mxu2  ;;  %v3905_v48 = vpop.f32.mrf.mxu3  ;;  %v12796_v54 = vadd.f32 %v3851_v30, %v3824_v52  ;;  %4207 = vmatpush.bf16.msrb.mxu2 %v9468_v27  ;;  %v9433_v52 = vld [vmem:[#allocation5 + $0xaf8] sm:$0xf0] }
 0x374   :  { %v3878_v22 = vadd.f32 %v3877_v12, %v12782_v5  ;;  %v9436_v30 = vor.u32 %v11240_v4, %v9433_v52  ;;  %v8921_v53 = vld [vmem:[#allocation5 + $0x6f8] sm:$0xf0] }
 0x375   :  { %v11653_v55 = vpop.eup %11652  ;;  %v4342_v21 = vmul.f32 1.442695, %v12796_v54  ;;  %v8924_v63 = vor.u32 %v11112_v10, %v8921_v53  ;;  %vm4273_vm2 = vcmp.gt.f32.partialorder %v12796_v54, 0.0  ;;  %v9145_v4 = vld [vmem:[#allocation5 + $0x8b8] sm:$0xf0] }
 0x376   :  { %v12794_v0 = vadd.f32 %v3905_v48, %v3878_v22  ;;  %v9634_v7 = vadd.f32 -1.0, %v11653_v55  ;;  %v9180_v55 = vor.u32 %v11176_v49, %v9177_v62 }
 0x377   :  { %11654 = vpow2.f32 %v4342_v21  ;;  %4208 = vmatpush.bf16.msrb.mxu2 %v9436_v30  ;;  %4152 = vmatpush.bf16.msrb.mxu0 %v8924_v63  ;;  %v11232_v21 = vld [vmem:[#allocation5 + $0xa9c] sm:$0xf] }
 0x378   :  { %v3826_v6 = vpop.f32.mrf.mxu0  ;;  %v4489_v22 = vmul.f32 1.6732632, %v9634_v7  ;;  %9622 = vmatmul.msk.bf16.gmra.mxu0 %vm2679_vm0, %v12164_v15  ;;  %4180 = vmatpush.bf16.msrb.mxu1 %v9180_v55  ;;  %v9369_v63 = vld [vmem:[#allocation5 + $0xa78] sm:$0xf0] }
 0x379   :  { %v3827_v24 = vadd.f32 %v3826_v6, %v12754_v51  ;;  %v3854_v43 = vpop.f32.mrf.mxu1  ;;  %v8889_v6 = vld [vmem:[#allocation5 + $0x6b8] sm:$0xf0] }
 0x37a   :  { %v8857_v55 = vld [vmem:[#allocation5 + $0x678] sm:$0xf0] }
 0x37b   :  { %v3879_v28 = vpop.f32.mrf.mxu2  ;;  %v3907_v9 = vpop.f32.mrf.mxu3  ;;  %v12803_v48 = vadd.f32 %v3854_v43, %v3827_v24  ;;  %v11168_v24 = vld [vmem:[#allocation5 + $0x89c] sm:$0xf] }
 0x37c   :  { %v3880_v41 = vadd.f32 %v3879_v28, %v12782_v5  ;;  %4077 = vmatmul.bf16.gmra.mxu1 %v12113_v32  ;;  %v4545_v32 = vsel %vm4265_vm1, %v12784_v38, %v4489_v22  ;;  %v8892_v22 = vor.u32 %v11104_v39, %v8889_v6  ;;  %v9148_v53 = vor.u32 %v11168_v24, %v9145_v4  ;;  %v11152_v4 = vld [vmem:[#allocation5 + $0x81c] sm:$0xf] }
 0x37d   :  { %v11655_v51 = vpop.eup %11654  ;;  %v4358_v27 = vmul.f32 1.442695, %v12803_v48  ;;  %v4601_v52 = vmul.f32 1.050701, %v4545_v32  ;;  %vm4281_vm3 = vcmp.gt.f32.partialorder %v12803_v48, 0.0 }
 0x37e   :  { %v12801_v12 = vadd.f32 %v3907_v9, %v3880_v41  ;;  %v9642_v47 = vadd.f32 -1.0, %v11655_v51  ;;  %v9404_v9 = vor.u32 %v11232_v21, %v9401_v23  ;;  %4153 = vmatpush.bf16.msrb.mxu0 %v8892_v22  ;;  %4181 = vmatpush.bf16.msrb.mxu1 %v9148_v53  ;;  %v8825_v22 = vld [vmem:[#allocation5 + $0x638] sm:$0xf0] }
 0x37f   :  { %11656 = vpow2.f32 %v4358_v27  ;;  %v11224_v27 = vld [vmem:[#allocation5 + $0xa5c] sm:$0xf] }
 0x380   :  { %4105 = vmatmul.bf16.gmra.mxu2 %v12115_v36  ;;  %4133 = vmatmul.bf16.gmra.mxu3 %v12117_v37  ;;  %v4497_v7 = vmul.f32 1.6732632, %v9642_v47  ;;  %v3828_v37 = vpop.f32.mrf.mxu0  ;;  %v9372_v62 = vor.u32 %v11224_v27, %v9369_v63  ;;  %v11096_v47 = vld [vmem:[#allocation5 + $0x65c] sm:$0xf] }
 0x381   :  { %v3829_v43 = vadd.f32 %v3828_v37, %v12758_v26  ;;  %v3856_v38 = vpop.f32.mrf.mxu1  ;;  %4209 = vmatpush.bf16.msrb.mxu2 %v9404_v9  ;;  %v11160_v26 = vld [vmem:[#allocation5 + $0x85c] sm:$0xf]  ;;  %v8860_v23 = vor.u32 %v11096_v47, %v8857_v55 }
 0x382   :  { %v4553_v30 = vsel %vm4273_vm2, %v12796_v54, %v4497_v7  ;;  %v9113_v54 = vld [vmem:[#allocation5 + $0x878] sm:$0xf0] }
 0x383   :  { %v3882_v36 = vpop.f32.mrf.mxu2  ;;  %v3910_v41 = vpop.f32.mrf.mxu3  ;;  %v4609_v49 = vmul.f32 1.050701, %v4553_v30  ;;  %v3857_v51 = vadd.f32 %v3856_v38, %v3829_v43  ;;  %v9116_v39 = vor.u32 %v11160_v26, %v9113_v54  ;;  %4154 = vmatpush.bf16.msrb.mxu0 %v8860_v23  ;;  %v11088_v37 = vld [vmem:[#allocation5 + $0x61c] sm:$0xf] }
 0x384   :  { %v3883_v28 = vadd.f32 %v3882_v36, %v12782_v5  ;;  %v8828_v53 = vor.u32 %v11088_v37, %v8825_v22 }
 0x385   :  { %v11657_v36 = vpop.eup %11656  ;;  %v12819_v21 = vpack.c.bf16 %v4609_v49, %v4601_v52  ;;  %v4374_v32 = vmul.f32 1.442695, %v3857_v51  ;;  %4210 = vmatpush.bf16.msrb.mxu2 %v9372_v62  ;;  %4182 = vmatpush.bf16.msrb.mxu1 %v9116_v39  ;;  %v9081_v49 = vld [vmem:[#allocation5 + $0x838] sm:$0xf0]  ;;  %vm4289_vm4 = vcmp.gt.f32.partialorder %v3857_v51, 0.0 }
 0x386   :  { %v12817_v10 = vadd.f32 %v3910_v41, %v3883_v28  ;;  %v11216_v28 = vld [vmem:[#allocation5 + $0xa1c] sm:$0xf]  ;;  %v9650_v9 = vadd.f32 -1.0, %v11657_v36  ;;  %v9084_v63 = vor.u32 %v11152_v4, %v9081_v49 }
 0x387   :  { %11658 = vpow2.f32 %v4374_v32  ;;  %v9337_v41 = vld [vmem:[#allocation5 + $0xa38] sm:$0xf0]  ;;  %4155 = vmatpush.bf16.msrb.mxu0 %v8828_v53 }
 0x388   :  { %v3831_v43 = vpop.f32.mrf.mxu0  ;;  %v9340_v38 = vor.u32 %v11216_v28, %v9337_v41  ;;  %9623 = vmatmul.msk.bf16.gmra.mxu0 %vm2679_vm0, %v12175_v3  ;;  %v4505_v47 = vmul.f32 1.6732632, %v9650_v9 }
 0x389   :  { %v3832_v52 = vadd.f32 %v3831_v43, %v12766_v42  ;;  %v3859_v30 = vpop.f32.mrf.mxu1  ;;  %4183 = vmatpush.bf16.msrb.mxu1 %v9084_v63 }
 0x38a   :  { %4211 = vmatpush.bf16.msrb.mxu2 %v9340_v38  ;;  %v4561_v32 = vsel %vm4281_vm3, %v12803_v48, %v4505_v47  ;;  %vm4312_vm3 = vcmp.gt.f32.partialorder %v12723_v31, 0.0 }
 0x38b   :  { %v3884_v7 = vpop.f32.mrf.mxu2  ;;  %v3912_v24 = vpop.f32.mrf.mxu3  ;;  %v3860_v62 = vadd.f32 %v3859_v30, %v3832_v52  ;;  %v4617_v41 = vmul.f32 1.050701, %v4561_v32 }
 0x38c   :  { %v3885_v6 = vadd.f32 %v3884_v7, %v12782_v5  ;;  %4082 = vmatmul.bf16.gmra.mxu1 %v12125_v16 }
 0x38d   :  { %v11659_v55 = vpop.eup %11658  ;;  %v4390_v26 = vmul.f32 1.442695, %v3860_v62  ;;  %vm4297_vm5 = vcmp.gt.f32.partialorder %v3860_v62, 0.0 }
 0x38e   :  { %v12823_v27 = vadd.f32 %v3912_v24, %v3885_v6  ;;  %v9658_v42 = vadd.f32 -1.0, %v11659_v55 }
 0x38f   :  { %11660 = vpow2.f32 %v4390_v26 }
 0x390   :  { %4110 = vmatmul.bf16.gmra.mxu2 %v12127_v17  ;;  %4138 = vmatmul.bf16.gmra.mxu3 %v12129_v18  ;;  %v4513_v23 = vmul.f32 1.6732632, %v9658_v42  ;;  %v3833_v16 = vpop.f32.mrf.mxu0 }
 0x391   :  { %v3834_v17 = vadd.f32 %v3833_v16, %v12770_v57  ;;  %v3861_v7 = vpop.f32.mrf.mxu1 }
 0x392   :  { %v4569_v28 = vsel %vm4289_vm4, %v3857_v51, %v4513_v23 }
 0x393   :  { %v3887_v36 = vpop.f32.mrf.mxu2  ;;  %v3915_v39 = vpop.f32.mrf.mxu3  ;;  %v4625_v37 = vmul.f32 1.050701, %v4569_v28  ;;  %v3862_v9 = vadd.f32 %v3861_v7, %v3834_v17 }
 0x394   :  { %v3888_v54 = vadd.f32 %v3887_v36, %v12782_v5 }
 0x395   :  { %v11661_v6 = vpop.eup %11660  ;;  %v4406_v24 = vmul.f32 1.442695, %v3862_v9  ;;  %v12836_v43 = vpack.c.bf16 %v4625_v37, %v4617_v41  ;;  %vm4305_vm6 = vcmp.gt.f32.partialorder %v3862_v9, 0.0  ;;  %v11379_v37 = vld [vmem:[#allocation8 + $0x2ec] sm:$0xf0] }
 0x396   :  { %v12834_v18 = vadd.f32 %v3915_v39, %v3888_v54  ;;  %v9666_v38 = vadd.f32 -1.0, %v11661_v6  ;;  %v9799_v6 = vld [vmem:[#allocation8 + $0xe0] sm:$0xf] }
 0x397   :  { %13719 = vst [vmem:[#allocation36_spill] sm:$0xff] %v12836_v43  ;;  %11662 = vpow2.f32 %v4406_v24  ;;  %v11315_v24 = vld [vmem:[#allocation8 + $0xec] sm:$0xf0] }
 0x398   :  { %v3836_v52 = vpop.f32.mrf.mxu0  ;;  %9624 = vmatmul.msk.bf16.gmra.mxu0 %vm2679_vm0, %v12186_v46  ;;  %v4521_v49 = vmul.f32 1.6732632, %v9666_v38  ;;  %v9800_v38 = vor.u32 %v11315_v24, %v9799_v6  ;;  %v10151_v24 = vld [vmem:[#allocation8 + $0x3a0] sm:$0xf] }
 0x399   :  { %v3837_v57 = vadd.f32 %v3836_v52, %v12776_v50  ;;  %v3864_v30 = vpop.f32.mrf.mxu1 }
 0x39a   :  { %v4577_v50 = vsel %vm4297_vm5, %v3860_v62, %v4521_v49  ;;  %6230 = vmatpush.bf16.msra.mxu0 %v9800_v38  ;;  %v9911_v49 = vld [vmem:[#allocation8 + $0x1c0] sm:$0xf] }
 0x39b   :  { %v3889_v48 = vpop.f32.mrf.mxu2  ;;  %v3917_v4 = vpop.f32.mrf.mxu3  ;;  %v12842_v53 = vadd.f32 %v3864_v30, %v3837_v57  ;;  %v9783_v30 = vld [vmem:[#allocation8 + $0xc0] sm:$0xf] }
 0x39c   :  { %v3890_v22 = vadd.f32 %v3889_v48, %v12782_v5  ;;  %4087 = vmatmul.bf16.gmra.mxu1 %v12137_v58  ;;  %v4633_v58 = vmul.f32 1.050701, %v4577_v50  ;;  %v9927_v48 = vld [vmem:[#allocation8 + $0x1e0] sm:$0xf]  ;;  %v11343_v50 = vld [vmem:[#allocation8 + $0x1cc] sm:$0xf0] }
 0x39d   :  { %v11663_v63 = vpop.eup %11662  ;;  %vm4313_vm4 = vcmp.gt.f32.partialorder %v12842_v53, 0.0 }
 0x39e   :  { %v12840_v51 = vadd.f32 %v3917_v4, %v3890_v22  ;;  %v9674_v47 = vadd.f32 -1.0, %v11663_v63  ;;  %v11347_v22 = vld [vmem:[#allocation8 + $0x1ec] sm:$0xf0] }
 0x39f   :  { %v11411_v4 = vld [vmem:[#allocation8 + $0x3ec] sm:$0xf0]  ;;  %v9928_v52 = vor.u32 %v11347_v22, %v9927_v48 }
 0x3a0   :  { %4115 = vmatmul.bf16.gmra.mxu2 %v12139_v59  ;;  %4143 = vmatmul.bf16.gmra.mxu3 %v12141_v60  ;;  %v4529_v26 = vmul.f32 1.6732632, %v9674_v47  ;;  %v3838_v32 = vpop.f32.mrf.mxu0  ;;  %v11403_v48 = vld [vmem:[#allocation8 + $0x3ac] sm:$0xf0] }
 0x3a1   :  { %v3866_v23 = vpop.f32.mrf.mxu1  ;;  %6258 = vmatpush.bf16.msra.mxu1 %v9928_v52  ;;  %v9912_v32 = vor.u32 %v11343_v50, %v9911_v49  ;;  %v10152_v38 = vor.u32 %v11403_v48, %v10151_v24  ;;  %v9879_v52 = vld [vmem:[#allocation8 + $0x180] sm:$0xf] }
 0x3a2   :  { %v4585_v54 = vsel %vm4305_vm6, %v3862_v9, %v4529_v26  ;;  %v11375_v26 = vld [vmem:[#allocation8 + $0x2cc] sm:$0xf0]  ;;  %v10007_v49 = vld [vmem:[#allocation8 + $0x280] sm:$0xf] }
 0x3a3   :  { %v3892_v55 = vpop.f32.mrf.mxu2  ;;  %v3920_v36 = vpop.f32.mrf.mxu3  ;;  %v4641_v16 = vmul.f32 1.050701, %v4585_v54  ;;  %v10167_v54 = vld [vmem:[#allocation8 + $0x3c0] sm:$0xf] }
 0x3a4   :  { %v3893_v42 = vadd.f32 %v3892_v55, %v12782_v5  ;;  %v10055_v5 = vld [vmem:[#allocation8 + $0x2e0] sm:$0xf] }
 0x3a5   :  { %v12852_v59 = vpack.c.bf16 %v4641_v16, %v4633_v58  ;;  %v10056_v9 = vor.u32 %v11379_v37, %v10055_v5  ;;  %v11407_v58 = vld [vmem:[#allocation8 + $0x3cc] sm:$0xf0]  ;;  %6259 = vmatpush.bf16.msra.mxu1 %v9912_v32  ;;  %v10023_v37 = vld [vmem:[#allocation8 + $0x2a0] sm:$0xf] }
 0x3a6   :  { %v12850_v39 = vadd.f32 %v3920_v36, %v3893_v42  ;;  %v11339_v5 = vld [vmem:[#allocation8 + $0x1ac] sm:$0xf0] }
 0x3a7   :  { %6286 = vmatpush.bf16.msra.mxu2 %v10056_v9 }
 0x3a8   :  { %v3933_v7 = vpop.f32.mrf.mxu0  ;;  %4156 = vmatmul.bf16.vlgmr.msrb.gmra.mxu0 %v12107_v56 }
 0x3a9   :  { %v3934_v28 = vadd.f32 %v3933_v7, %v12794_v0  ;;  %v3961_v62 = vpop.f32.mrf.mxu1  ;;  %v10183_v0 = vld [vmem:[#allocation8 + $0x3e0] sm:$0xf] }
 0x3aa   :  { %v10184_v56 = vor.u32 %v11411_v4, %v10183_v0  ;;  %v9767_v7 = vld [vmem:[#allocation8 + $0xa0] sm:$0xf]  ;;  %v11303_v4 = vld [vmem:[#allocation8 + $0x8c] sm:$0xf0] }
 0x3ab   :  { %v3894_v17 = vpop.f32.mrf.mxu2  ;;  %v3922_v60 = vpop.f32.mrf.mxu3  ;;  %v3962_v41 = vadd.f32 %v3961_v62, %v3934_v28  ;;  %v11307_v28 = vld [vmem:[#allocation8 + $0xac] sm:$0xf0]  ;;  %v9895_v62 = vld [vmem:[#allocation8 + $0x1a0] sm:$0xf] }
 0x3ac   :  { %4184 = vmatmul.bf16.vlgmr.msrb.gmra.mxu1 %v12149_v33  ;;  %v11311_v33 = vld [vmem:[#allocation8 + $0xcc] sm:$0xf0]  ;;  %6314 = vmatpush.bf16.msra.mxu3 %v10184_v56  ;;  %v10168_v17 = vor.u32 %v11407_v58, %v10167_v54  ;;  %v9896_v9 = vor.u32 %v11339_v5, %v9895_v62  ;;  %v9751_v0 = vld [vmem:[#allocation8 + $0x80] sm:$0xf] }
 0x3ad   :  { %v9784_v55 = vor.u32 %v11311_v33, %v9783_v30  ;;  %v11335_v33 = vld [vmem:[#allocation8 + $0x18c] sm:$0xf0]  ;;  %v9735_v54 = vld [vmem:[#allocation8 + $0x60] sm:$0xf] }
 0x3ae   :  { %6260 = vmatpush.bf16.msra.mxu1 %v9896_v9  ;;  %v11299_v58 = vld [vmem:[#allocation8 + $0x6c] sm:$0xf0] }
 0x3af   :  { %6231 = vmatpush.bf16.msra.mxu0 %v9784_v55  ;;  %v9752_v55 = vor.u32 %v11303_v4, %v9751_v0  ;;  %v11395_v5 = vld [vmem:[#allocation8 + $0x36c] sm:$0xf0] }
 0x3b0   :  { %4212 = vmatmul.bf16.vlgmr.msrb.gmra.mxu2 %v12151_v34  ;;  %9625 = vmatmul.msk.bf16.vlgmr.msrb.gmra.mxu3 %vm2679_vm0, %v12153_v35  ;;  %v3935_v47 = vpop.f32.mrf.mxu0  ;;  %v10039_v35 = vld [vmem:[#allocation8 + $0x2c0] sm:$0xf]  ;;  %v11295_v9 = vld [vmem:[#allocation8 + $0x4c] sm:$0xf0] }
 0x3b1   :  { %v3936_v42 = vadd.f32 %v3935_v47, %v12801_v12  ;;  %v3963_v36 = vpop.f32.mrf.mxu1  ;;  %v10040_v23 = vor.u32 %v11375_v26, %v10039_v35  ;;  %6315 = vmatpush.bf16.msra.mxu3 %v10168_v17  ;;  %v11371_v12 = vld [vmem:[#allocation8 + $0x2ac] sm:$0xf0]  ;;  %v10135_v35 = vld [vmem:[#allocation8 + $0x380] sm:$0xf] }
 0x3b2   :  { %v10024_v6 = vor.u32 %v11371_v12, %v10023_v37  ;;  %v11399_v26 = vld [vmem:[#allocation8 + $0x38c] sm:$0xf0]  ;;  %v9863_v17 = vld [vmem:[#allocation8 + $0x160] sm:$0xf] }
 0x3b3   :  { %v3989_v57 = vpop.f32.mrf.mxu2  ;;  %v4017_v63 = vpop.f32.mrf.mxu3  ;;  %v3964_v60 = vadd.f32 %v3963_v36, %v3936_v42  ;;  %6287 = vmatpush.bf16.msra.mxu2 %v10040_v23  ;;  %v9880_v36 = vor.u32 %v11335_v33, %v9879_v52  ;;  %v10136_v32 = vor.u32 %v11399_v26, %v10135_v35  ;;  %v11323_v35 = vld [vmem:[#allocation8 + $0x12c] sm:$0xf0]  ;;  %v9959_v26 = vld [vmem:[#allocation8 + $0x220] sm:$0xf] }
 0x3b4   :  { %v3990_v34 = vadd.f32 %v3989_v57, %v3962_v41  ;;  %v9768_v41 = vor.u32 %v11307_v28, %v9767_v7  ;;  %v11363_v7 = vld [vmem:[#allocation8 + $0x26c] sm:$0xf0]  ;;  %v9736_v28 = vor.u32 %v11299_v58, %v9735_v54 }
 0x3b5   :  { %6316 = vmatpush.bf16.msra.mxu3 %v10152_v38  ;;  %6261 = vmatpush.bf16.msra.mxu1 %v9880_v36  ;;  %v11327_v38 = vld [vmem:[#allocation8 + $0x14c] sm:$0xf0] }
 0x3b6   :  { %v12861_v16 = vadd.f32 %v4017_v63, %v3990_v34  ;;  %6232 = vmatpush.bf16.msra.mxu0 %v9768_v41  ;;  %v11367_v34 = vld [vmem:[#allocation8 + $0x28c] sm:$0xf0]  ;;  %v10119_v41 = vld [vmem:[#allocation8 + $0x360] sm:$0xf] }
 0x3b7   :  { %6288 = vmatpush.bf16.msra.mxu2 %v10024_v6  ;;  %v10008_v50 = vor.u32 %v11367_v34, %v10007_v49  ;;  %v10120_v37 = vor.u32 %v11395_v5, %v10119_v41 }
 0x3b8   :  { %v3938_v30 = vpop.f32.mrf.mxu0  ;;  %4161 = vmatmul.bf16.gmra.mxu0 %v12119_v40 }
 0x3b9   :  { %v3939_v63 = vadd.f32 %v3938_v30, %v12817_v10  ;;  %v3966_v47 = vpop.f32.mrf.mxu1  ;;  %v11331_v10 = vld [vmem:[#allocation8 + $0x16c] sm:$0xf0]  ;;  %6317 = vmatpush.bf16.msra.mxu3 %v10136_v32  ;;  %v10087_v32 = vld [vmem:[#allocation8 + $0x320] sm:$0xf] }
 0x3ba   :  { %6233 = vmatpush.bf16.msra.mxu0 %v9752_v55  ;;  %v9864_v40 = vor.u32 %v11331_v10, %v9863_v17  ;;  %v11391_v30 = vld [vmem:[#allocation8 + $0x34c] sm:$0xf0]  ;;  %v9831_v55 = vld [vmem:[#allocation8 + $0x120] sm:$0xf] }
 0x3bb   :  { %v3991_v22 = vpop.f32.mrf.mxu2  ;;  %v4019_v57 = vpop.f32.mrf.mxu3  ;;  %v3967_v23 = vadd.f32 %v3966_v47, %v3939_v63  ;;  %6289 = vmatpush.bf16.msra.mxu2 %v10008_v50  ;;  %v9703_v63 = vld [vmem:[#allocation8 + $0x20] sm:$0xf]  ;;  %v11291_v47 = vld [vmem:[#allocation8 + $0x2c] sm:$0xf0]  ;;  %v9832_v58 = vor.u32 %v11323_v35, %v9831_v55 }
 0x3bc   :  { %v3992_v56 = vadd.f32 %v3991_v22, %v3964_v60  ;;  %4189 = vmatmul.bf16.gmra.mxu1 %v12160_v13  ;;  %v9991_v60 = vld [vmem:[#allocation8 + $0x260] sm:$0xf]  ;;  %v9704_v54 = vor.u32 %v11291_v47, %v9703_v63 }
 0x3bd   :  { %v9992_v62 = vor.u32 %v11363_v7, %v9991_v60  ;;  %v9719_v13 = vld [vmem:[#allocation8 + $0x40] sm:$0xf]  ;;  %6262 = vmatpush.bf16.msra.mxu1 %v9864_v40  ;;  %6318 = vmatpush.bf16.msra.mxu3 %v10120_v37  ;;  %v11287_v7 = vld [vmem:[#allocation8 + $0xc] sm:$0xf0] }
 0x3be   :  { %v12864_v42 = vadd.f32 %v4019_v57, %v3992_v56  ;;  %v9975_v22 = vld [vmem:[#allocation8 + $0x240] sm:$0xf]  ;;  %6234 = vmatpush.bf16.msra.mxu0 %v9736_v28  ;;  %v9720_v52 = vor.u32 %v11295_v9, %v9719_v13  ;;  %v11319_v40 = vld [vmem:[#allocation8 + $0x10c] sm:$0xf0] }
 0x3bf   :  { %6290 = vmatpush.bf16.msra.mxu2 %v9992_v62  ;;  %v10103_v57 = vld [vmem:[#allocation8 + $0x340] sm:$0xf] }
 0x3c0   :  { %4217 = vmatmul.bf16.gmra.mxu2 %v12162_v14  ;;  %9626 = vmatmul.msk.bf16.gmra.mxu3 %vm2679_vm0, %v12164_v15  ;;  %v9847_v14 = vld [vmem:[#allocation8 + $0x140] sm:$0xf]  ;;  %v3940_v48 = vpop.f32.mrf.mxu0  ;;  %v11359_v15 = vld [vmem:[#allocation8 + $0x24c] sm:$0xf0]  ;;  %v10104_v34 = vor.u32 %v11391_v30, %v10103_v57 }
 0x3c1   :  { %v3941_v0 = vadd.f32 %v3940_v48, %v12823_v27  ;;  %v3968_v4 = vpop.f32.mrf.mxu1  ;;  %v9976_v56 = vor.u32 %v11359_v15, %v9975_v22  ;;  %v9848_v49 = vor.u32 %v11327_v38, %v9847_v14  ;;  %v11355_v27 = vld [vmem:[#allocation8 + $0x22c] sm:$0xf0]  ;;  %v9687_v60 = vld [vmem:[#allocation8] sm:$0xf] }
 0x3c2   :  { %v9960_v36 = vor.u32 %v11355_v27, %v9959_v26  ;;  %6235 = vmatpush.bf16.msra.mxu0 %v9720_v52  ;;  %6319 = vmatpush.bf16.msra.mxu3 %v10104_v34  ;;  %v9815_v28 = vld [vmem:[#allocation8 + $0x100] sm:$0xf]  ;;  %v9688_v14 = vor.u32 %v11287_v7, %v9687_v60  ;;  %v11383_v48 = vld [vmem:[#allocation8 + $0x30c] sm:$0xf0] }
 0x3c3   :  { %v3994_v12 = vpop.f32.mrf.mxu2  ;;  %v4022_v24 = vpop.f32.mrf.mxu3  ;;  %v3969_v50 = vadd.f32 %v3968_v4, %v3941_v0  ;;  %6291 = vmatpush.bf16.msra.mxu2 %v9976_v56  ;;  %6263 = vmatpush.bf16.msra.mxu1 %v9848_v49  ;;  %v9943_v37 = vld [vmem:[#allocation8 + $0x200] sm:$0xf]  ;;  %v9816_v22 = vor.u32 %v11319_v40, %v9815_v28  ;;  %v11507_v7 = vld [vmem:[#allocation8 + $0x6ec] sm:$0xf0] }
 0x3c4   :  { %v3995_v6 = vadd.f32 %v3994_v12, %v3967_v23  ;;  %v11387_v23 = vld [vmem:[#allocation8 + $0x32c] sm:$0xf0]  ;;  %v13721_v60 = vld [vmem:[#allocation28_spill] sm:$0xff] }
 0x3c5   :  { %v10088_v17 = vor.u32 %v11387_v23, %v10087_v32  ;;  %v11351_v12 = vld [vmem:[#allocation8 + $0x20c] sm:$0xf0]  ;;  %v10311_v28 = vld [vmem:[#allocation8 + $0x4e0] sm:$0xf] }
 0x3c6   :  { %v12872_v33 = vadd.f32 %v4022_v24, %v3995_v6  ;;  %6236 = vmatpush.bf16.msra.mxu0 %v9704_v54  ;;  %v9944_v6 = vor.u32 %v11351_v12, %v9943_v37  ;;  %v10071_v24 = vld [vmem:[#allocation8 + $0x300] sm:$0xf]  ;;  %v11475_v40 = vld [vmem:[#allocation8 + $0x5ec] sm:$0xf0] }
 0x3c7   :  { %6292 = vmatpush.bf16.msra.mxu2 %v9960_v36  ;;  %6264 = vmatpush.bf16.msra.mxu1 %v9832_v58  ;;  %v10072_v15 = vor.u32 %v11383_v48, %v10071_v24  ;;  %v12896_v58 = vperm.slane %v12779_v11, 7  ;;  %v13722_v11 = vld [vmem:[#allocation32_spill] sm:$0xff] }
 0x3c8   :  { %v3943_v5 = vpop.f32.mrf.mxu0  ;;  %6320 = vmatpush.bf16.msra.mxu3 %v10088_v17  ;;  %4166 = vmatmul.bf16.gmra.mxu0 %v12131_v19 }
 0x3c9   :  { %v3944_v13 = vadd.f32 %v3943_v5, %v12834_v18  ;;  %v3971_v9 = vpop.f32.mrf.mxu1  ;;  %v10439_v5 = vld [vmem:[#allocation8 + $0x5e0] sm:$0xf] }
 0x3ca   :  { %6237 = vmatpush.bf16.msra.mxu0 %v9688_v14  ;;  %v10440_v37 = vor.u32 %v11475_v40, %v10439_v5  ;;  %v10423_v14 = vld [vmem:[#allocation8 + $0x5c0] sm:$0xf] }
 0x3cb   :  { %v3996_v10 = vpop.f32.mrf.mxu2  ;;  %v4024_v41 = vpop.f32.mrf.mxu3  ;;  %v3972_v0 = vadd.f32 %v3971_v9, %v3944_v13  ;;  %6293 = vmatpush.bf16.msra.mxu2 %v9944_v6  ;;  %6265 = vmatpush.bf16.msra.mxu1 %v9816_v22  ;;  %v10295_v13 = vld [vmem:[#allocation8 + $0x4c0] sm:$0xf]  ;;  %v11439_v9 = vld [vmem:[#allocation8 + $0x4cc] sm:$0xf0] }
 0x3cc   :  { %v3997_v62 = vadd.f32 %v3996_v10, %v3969_v50  ;;  %4194 = vmatmul.bf16.gmra.mxu1 %v12171_v1  ;;  %6321 = vmatpush.bf16.msra.mxu3 %v10072_v15  ;;  %v13720_v10 = vld [vmem:[#allocation24_spill] sm:$0xff]  ;;  %v10296_v22 = vor.u32 %v11439_v9, %v10295_v13  ;;  %v11471_v15 = vld [vmem:[#allocation8 + $0x5cc] sm:$0xf0] }
 0x3cd   :  { %v13725_v9 = vld [vmem:[#allocation30_spill] sm:$0xff] }
 0x3ce   :  { %v12875_v38 = vadd.f32 %v4024_v41, %v3997_v62  ;;  %v11443_v62 = vld [vmem:[#allocation8 + $0x4ec] sm:$0xf0]  ;;  %vm4310_vm12 = vcmp.gt.f32.partialorder %v13725_v9, 0.0 }
 0x3cf   :  { %v10312_v41 = vor.u32 %v11443_v62, %v10311_v28  ;;  %6370 = vmatpush.bf16.msrb.mxu1 %v10440_v37  ;;  %v10519_v28 = vld [vmem:[#allocation8 + $0x680] sm:$0xf]  ;;  %v11495_v62 = vld [vmem:[#allocation8 + $0x68c] sm:$0xf0] }
 0x3d0   :  { %4222 = vmatmul.bf16.gmra.mxu2 %v12173_v2  ;;  %9627 = vmatmul.msk.bf16.gmra.mxu3 %vm2679_vm0, %v12175_v3  ;;  %v3945_v56 = vpop.f32.mrf.mxu0  ;;  %v10695_v37 = vld [vmem:[#allocation8 + $0x7e0] sm:$0xf] }
 0x3d1   :  { %v3946_v57 = vadd.f32 %v3945_v56, %v12840_v51  ;;  %v3973_v30 = vpop.f32.mrf.mxu1  ;;  %6342 = vmatpush.bf16.msrb.mxu0 %v10312_v41  ;;  %v10424_v56 = vor.u32 %v11471_v15, %v10423_v14  ;;  %v4416_v14 = vmul.f32 1.442695, %v13725_v9 }
 0x3d3   :  { %v3999_v18 = vpop.f32.mrf.mxu2  ;;  %v4027_v52 = vpop.f32.mrf.mxu3  ;;  %v3974_v19 = vadd.f32 %v3973_v30, %v3946_v57  ;;  %6371 = vmatpush.bf16.msrb.mxu1 %v10424_v56  ;;  %v13727_v56 = vld [vmem:[#allocation21_spill] sm:$0xff] }
 0x3d4   :  { %v4000_v4 = vadd.f32 %v3999_v18, %v3972_v0  ;;  %v10551_v0 = vld [vmem:[#allocation8 + $0x6c0] sm:$0xf]  ;;  %v11503_v18 = vld [vmem:[#allocation8 + $0x6cc] sm:$0xf0] }
 0x3d5   :  { %v10552_v57 = vor.u32 %v11503_v18, %v10551_v0  ;;  %6343 = vmatpush.bf16.msrb.mxu0 %v10296_v22  ;;  %v13726_v22 = vld [vmem:[#allocation34_spill] sm:$0xff] }
 0x3d6   :  { %v12883_v49 = vadd.f32 %v4027_v52, %v4000_v4  ;;  %v4418_v15 = vmul.f32 1.442695, %v13726_v22  ;;  %vm4311_vm13 = vcmp.gt.f32.partialorder %v13726_v22, 0.0 }
 0x3d8   :  { %v3948_v2 = vpop.f32.mrf.mxu0  ;;  %4171 = vmatmul.bf16.gmra.mxu0 %v12143_v61 }
 0x3d9   :  { %v3949_v47 = vadd.f32 %v3948_v2, %v12850_v39  ;;  %v3976_v3 = vpop.f32.mrf.mxu1  ;;  %v11435_v2 = vld [vmem:[#allocation8 + $0x4ac] sm:$0xf0] }
 0x3db   :  { %v4001_v34 = vpop.f32.mrf.mxu2  ;;  %v4029_v63 = vpop.f32.mrf.mxu3  ;;  %v3977_v50 = vadd.f32 %v3976_v3, %v3949_v47  ;;  %v10407_v47 = vld [vmem:[#allocation8 + $0x5a0] sm:$0xf] }
 0x3dc   :  { %v4002_v1 = vadd.f32 %v4001_v34, %v3974_v19  ;;  %4199 = vmatmul.bf16.gmra.mxu1 %v12182_v44 }
 0x3de   :  { %v12886_v55 = vadd.f32 %v4029_v63, %v4002_v1  ;;  %v10279_v1 = vld [vmem:[#allocation8 + $0x4a0] sm:$0xf] }
 0x3df   :  { %v10280_v3 = vor.u32 %v11435_v2, %v10279_v1  ;;  %v13728_v1 = vld [vmem:[#allocation25_spill] sm:$0xff]  ;;  %v11427_v2 = vld [vmem:[#allocation8 + $0x46c] sm:$0xf0] }
 0x3e0   :  { %4227 = vmatmul.bf16.gmra.mxu2 %v12184_v45  ;;  %9628 = vmatmul.msk.bf16.gmra.mxu3 %vm2679_vm0, %v12186_v46  ;;  %v3950_v27 = vpop.f32.mrf.mxu0  ;;  %v10567_v46 = vld [vmem:[#allocation8 + $0x6e0] sm:$0xf] }
 0x3e1   :  { %v3978_v36 = vpop.f32.mrf.mxu1  ;;  %6344 = vmatpush.bf16.msrb.mxu0 %v10280_v3  ;;  %v13730_v3 = vld [vmem:[#allocation33_spill] sm:$0xff] }
 0x3e3   :  { %v4004_v51 = vpop.f32.mrf.mxu2  ;;  %v4032_v26 = vpop.f32.mrf.mxu3 }
 0x3e4   :  { %v4005_v35 = vadd.f32 %v4004_v51, %v3977_v50  ;;  %v10535_v50 = vld [vmem:[#allocation8 + $0x6a0] sm:$0xf]  ;;  %v11499_v51 = vld [vmem:[#allocation8 + $0x6ac] sm:$0xf0] }
 0x3e6   :  { %v12893_v32 = vadd.f32 %v4032_v26, %v4005_v35  ;;  %v13723_v35 = vld [vmem:[#allocation22_spill] sm:$0xff] }
 0x3e7   :  { %v4412_v26 = vmul.f32 1.442695, %v13723_v35  ;;  %vm4308_vm9 = vcmp.gt.f32.partialorder %v13723_v35, 0.0 }
 0x3e8   :  { %v4045_v54 = vpop.f32.mrf.mxu0  ;;  %6238 = vmatmul.bf16.vlgmr.msra.gmra.mxu0 %v12273_v8 }
 0x3e9   :  { %v12899_v61 = vadd.f32 %v4045_v54, %v12861_v16  ;;  %v4073_v44 = vpop.f32.mrf.mxu1  ;;  %v10568_v16 = vor.u32 %v11507_v7, %v10567_v46  ;;  %v10263_v54 = vld [vmem:[#allocation8 + $0x480] sm:$0xf]  ;;  %v11463_v7 = vld [vmem:[#allocation8 + $0x58c] sm:$0xf0] }
 0x3ea   :  { %v4074_v17 = vadd.f32 %v4073_v44, %v12896_v58  ;;  %v11431_v44 = vld [vmem:[#allocation8 + $0x48c] sm:$0xf0] }
 0x3eb   :  { %v4006_v39 = vpop.f32.mrf.mxu2  ;;  %v4034_v23 = vpop.f32.mrf.mxu3  ;;  %v4328_v45 = vmul.f32 1.442695, %v12899_v61  ;;  %6398 = vmatpush.bf16.msrb.mxu2 %v10568_v16  ;;  %v13724_v16 = vld [vmem:[#allocation26_spill] sm:$0xff]  ;;  %v10264_v13 = vor.u32 %v11431_v44, %v10263_v54  ;;  %vm4266_vm0 = vcmp.gt.f32.partialorder %v12899_v61, 0.0 }
 0x3ec   :  { %6266 = vmatmul.bf16.vlgmr.msra.gmra.mxu1 %v13720_v10  ;;  %v10536_v39 = vor.u32 %v11499_v51, %v10535_v50  ;;  %v4414_v41 = vmul.f32 1.442695, %v13724_v16  ;;  %v10503_v50 = vld [vmem:[#allocation8 + $0x660] sm:$0xf]  ;;  %v11491_v51 = vld [vmem:[#allocation8 + $0x66c] sm:$0xf0] }
 0x3ed   :  { %11664 = vpow2.f32 %v4328_v45  ;;  %v10391_v45 = vld [vmem:[#allocation8 + $0x580] sm:$0xf]  ;;  %6345 = vmatpush.bf16.msrb.mxu0 %v10264_v13  ;;  %v10504_v44 = vor.u32 %v11491_v51, %v10503_v50  ;;  %v11451_v51 = vld [vmem:[#allocation8 + $0x52c] sm:$0xf0]  ;;  %vm4309_vm10 = vcmp.gt.f32.partialorder %v13724_v16, 0.0 }
 0x3ee   :  { %v10487_v13 = vld [vmem:[#allocation8 + $0x640] sm:$0xf] }
 0x3ef   :  { %6399 = vmatpush.bf16.msrb.mxu2 %v10552_v57  ;;  %v10247_v57 = vld [vmem:[#allocation8 + $0x460] sm:$0xf] }
 0x3f0   :  { %6294 = vmatmul.bf16.vlgmr.msra.gmra.mxu2 %v13721_v60  ;;  %6322 = vmatmul.bf16.vlgmr.msra.gmra.mxu3 %v13722_v11  ;;  %v4047_v48 = vpop.f32.mrf.mxu0 }
 0x3f1   :  { %v12908_v4 = vadd.f32 %v4047_v48, %v12864_v42  ;;  %v12910_v52 = vpop.f32.mrf.mxu1  ;;  %v11467_v42 = vld [vmem:[#allocation8 + $0x5ac] sm:$0xf0] }
 0x3f2   :  { %v10408_v36 = vor.u32 %v11467_v42, %v10407_v47  ;;  %v10375_v47 = vld [vmem:[#allocation8 + $0x560] sm:$0xf]  ;;  %v11459_v42 = vld [vmem:[#allocation8 + $0x56c] sm:$0xf0] }
 0x3f3   :  { %v4101_v12 = vpop.f32.mrf.mxu2  ;;  %v4129_v24 = vpop.f32.mrf.mxu3  ;;  %v4344_v34 = vmul.f32 1.442695, %v12908_v4  ;;  %6400 = vmatpush.bf16.msrb.mxu2 %v10536_v39  ;;  %vm4274_vm7 = vcmp.gt.f32.partialorder %v12908_v4, 0.0  ;;  %v10376_v39 = vor.u32 %v11459_v42, %v10375_v47  ;;  %v11419_v47 = vld [vmem:[#allocation8 + $0x42c] sm:$0xf0] }
 0x3f4   :  { %v4102_v6 = vadd.f32 %v4101_v12, %v4074_v17  ;;  %v11665_v19 = vpop.eup %11664  ;;  %6372 = vmatpush.bf16.msrb.mxu1 %v10408_v36  ;;  %v11539_v12 = vld [vmem:[#allocation8 + $0x7ec] sm:$0xf0]  ;;  %v10343_v42 = vld [vmem:[#allocation8 + $0x520] sm:$0xf] }
 0x3f5   :  { %v9635_v63 = vadd.f32 -1.0, %v11665_v19  ;;  %11666 = vpow2.f32 %v4344_v34 }
 0x3f6   :  { %v12912_v30 = vadd.f32 %v4129_v24, %v4102_v6  ;;  %v10696_v6 = vor.u32 %v11539_v12, %v10695_v37  ;;  %v10392_v24 = vor.u32 %v11463_v7, %v10391_v45  ;;  %v10231_v45 = vld [vmem:[#allocation8 + $0x440] sm:$0xf]  ;;  %v11455_v12 = vld [vmem:[#allocation8 + $0x54c] sm:$0xf0] }
 0x3f7   :  { %v4490_v27 = vmul.f32 1.6732632, %v9635_v63  ;;  %v13729_v63 = vld [vmem:[#allocation29_spill] sm:$0xff]  ;;  %v10359_v7 = vld [vmem:[#allocation8 + $0x540] sm:$0xf] }
 0x3f8   :  { %v4050_v17 = vpop.f32.mrf.mxu0  ;;  %6243 = vmatmul.bf16.gmra.mxu0 %v13727_v56  ;;  %6426 = vmatpush.bf16.msrb.mxu3 %v10696_v6 }
 0x3f9   :  { %v12922_v5 = vadd.f32 %v4050_v17, %v12872_v33  ;;  %v4078_v40 = vpop.f32.mrf.mxu1  ;;  %v4546_v0 = vsel %vm4266_vm0, %v12899_v61, %v4490_v27  ;;  %v10520_v33 = vor.u32 %v11495_v62, %v10519_v28  ;;  %v10248_v61 = vor.u32 %v11427_v2, %v10247_v57  ;;  %6373 = vmatpush.bf16.msrb.mxu1 %v10392_v24  ;;  %v11423_v17 = vld [vmem:[#allocation8 + $0x44c] sm:$0xf0]  ;;  %v10215_v2 = vld [vmem:[#allocation8 + $0x420] sm:$0xf] }
 0x3fa   :  { %v4079_v34 = vadd.f32 %v4078_v40, %v12896_v58  ;;  %v4602_v27 = vmul.f32 1.050701, %v4546_v0  ;;  %v10679_v0 = vld [vmem:[#allocation8 + $0x7c0] sm:$0xf]  ;;  %v10360_v57 = vor.u32 %v11455_v12, %v10359_v7  ;;  %v11447_v12 = vld [vmem:[#allocation8 + $0x50c] sm:$0xf0] }
 0x3fb   :  { %v12916_v23 = vpop.f32.mrf.mxu2  ;;  %v12918_v46 = vpop.f32.mrf.mxu3  ;;  %v4360_v18 = vmul.f32 1.442695, %v12922_v5  ;;  %6401 = vmatpush.bf16.msrb.mxu2 %v10520_v33  ;;  %6346 = vmatpush.bf16.msrb.mxu0 %v10248_v61  ;;  %v10232_v33 = vor.u32 %v11423_v17, %v10231_v45  ;;  %v10216_v61 = vor.u32 %v11419_v47, %v10215_v2  ;;  %v10199_v7 = vld [vmem:[#allocation8 + $0x400] sm:$0xf]  ;;  %vm4282_vm8 = vcmp.gt.f32.partialorder %v12922_v5, 0.0 }
 0x3fc   :  { %v11667_v48 = vpop.eup %11666  ;;  %6271 = vmatmul.bf16.gmra.mxu1 %v13728_v1 }
 0x3fd   :  { %v9643_v19 = vadd.f32 -1.0, %v11667_v48  ;;  %11668 = vpow2.f32 %v4360_v18  ;;  %v11487_v48 = vld [vmem:[#allocation8 + $0x64c] sm:$0xf0]  ;;  %6374 = vmatpush.bf16.msrb.mxu1 %v10376_v39 }
 0x3fe   :  { %11670 = vpow2.f32 %v4412_v26  ;;  %v11535_v18 = vld [vmem:[#allocation8 + $0x7cc] sm:$0xf0] }
 0x3ff   :  { %v4498_v36 = vmul.f32 1.6732632, %v9643_v19  ;;  %11672 = vpow2.f32 %v4414_v41  ;;  %6402 = vmatpush.bf16.msrb.mxu2 %v10504_v44  ;;  %6347 = vmatpush.bf16.msrb.mxu0 %v10232_v33  ;;  %v11483_v39 = vld [vmem:[#allocation8 + $0x62c] sm:$0xf0] }
 0x400   :  { %6299 = vmatmul.bf16.gmra.mxu2 %v13729_v63  ;;  %6327 = vmatmul.bf16.gmra.mxu3 %v13730_v3  ;;  %v4052_v37 = vpop.f32.mrf.mxu0  ;;  %11674 = vpow2.f32 %v4416_v14 }
 0x401   :  { %v4554_v28 = vsel %vm4274_vm7, %v12908_v4, %v4498_v36  ;;  %v12937_v24 = vadd.f32 %v4052_v37, %v12875_v38  ;;  %v12939_v26 = vpop.f32.mrf.mxu1  ;;  %v10680_v4 = vor.u32 %v11535_v18, %v10679_v0  ;;  %11676 = vpow2.f32 %v4418_v15  ;;  %v10471_v36 = vld [vmem:[#allocation8 + $0x620] sm:$0xf]  ;;  %6375 = vmatpush.bf16.msrb.mxu1 %v10360_v57 }
 0x402   :  { %v4610_v6 = vmul.f32 1.050701, %v4554_v28  ;;  %v10488_v38 = vor.u32 %v11487_v48, %v10487_v13  ;;  %v10344_v15 = vor.u32 %v11451_v51, %v10343_v42  ;;  %v10472_v44 = vor.u32 %v11483_v39, %v10471_v36  ;;  %v11415_v28 = vld [vmem:[#allocation8 + $0x40c] sm:$0xf0]  ;;  %v10455_v13 = vld [vmem:[#allocation8 + $0x600] sm:$0xf] }
 0x403   :  { %v4106_v54 = vpop.f32.mrf.mxu2  ;;  %v4134_v40 = vpop.f32.mrf.mxu3  ;;  %v4376_v14 = vmul.f32 1.442695, %v12937_v24  ;;  %6427 = vmatpush.bf16.msrb.mxu3 %v10680_v4  ;;  %v11479_v48 = vld [vmem:[#allocation8 + $0x60c] sm:$0xf0]  ;;  %6348 = vmatpush.bf16.msrb.mxu0 %v10216_v61  ;;  %v10200_v4 = vor.u32 %v11415_v28, %v10199_v7  ;;  %v13731_v42 = vld [vmem:[#allocation23_spill] sm:$0xff]  ;;  %vm4290_vm11 = vcmp.gt.f32.partialorder %v12937_v24, 0.0 }
 0x404   :  { %v4107_v62 = vadd.f32 %v4106_v54, %v4079_v34  ;;  %v11669_v19 = vpop.eup %11668  ;;  %v12943_v34 = vpack.c.bf16 %v4610_v6, %v4602_v27  ;;  %6403 = vmatpush.bf16.msrb.mxu2 %v10488_v38  ;;  %v10663_v51 = vld [vmem:[#allocation8 + $0x7a0] sm:$0xf]  ;;  %v10456_v36 = vor.u32 %v11479_v48, %v10455_v13  ;;  %v13733_v61 = vld [vmem:[#allocation31_spill] sm:$0xff]  ;;  %v11527_v28 = vld [vmem:[#allocation8 + $0x78c] sm:$0xf0] }
 0x405   :  { %v11671_v50 = vpop.eup %11670  ;;  %11678 = vpow2.f32 %v4376_v14  ;;  %v9651_v45 = vadd.f32 -1.0, %v11669_v19  ;;  %6376 = vmatpush.bf16.msrb.mxu1 %v10344_v15 }
 0x406   :  { %v12941_v41 = vadd.f32 %v4134_v40, %v4107_v62  ;;  %v11673_v54 = vpop.eup %11672  ;;  %v10327_v62 = vld [vmem:[#allocation8 + $0x500] sm:$0xf]  ;;  %v9677_v0 = vadd.f32 -1.0, %v11671_v50 }
 0x407   :  { %v11675_v27 = vpop.eup %11674  ;;  %v9678_v57 = vadd.f32 -1.0, %v11673_v54  ;;  %v4506_v14 = vmul.f32 1.6732632, %v9651_v45  ;;  %v10328_v38 = vor.u32 %v11447_v12, %v10327_v62  ;;  %v11531_v54 = vld [vmem:[#allocation8 + $0x7ac] sm:$0xf0]  ;;  %6349 = vmatpush.bf16.msrb.mxu0 %v10200_v4 }
 0x408   :  { %v4055_v37 = vpop.f32.mrf.mxu0  ;;  %v11677_v6 = vpop.eup %11676  ;;  %v9679_v19 = vadd.f32 -1.0, %v11675_v27  ;;  %6248 = vmatmul.bf16.gmra.mxu0 %v13731_v42  ;;  %6404 = vmatpush.bf16.msrb.mxu2 %v10472_v44  ;;  %v10647_v45 = vld [vmem:[#allocation8 + $0x780] sm:$0xf]  ;;  %v4532_v15 = vmul.f32 1.6732632, %v9677_v0  ;;  %v13734_v27 = vld [vmem:[#allocation35_spill] sm:$0xff]  ;;  %v10664_v7 = vor.u32 %v11531_v54, %v10663_v51 }
 0x409   :  { %v12951_v18 = vadd.f32 %v4055_v37, %v12883_v49  ;;  %v4083_v33 = vpop.f32.mrf.mxu1  ;;  %v9680_v50 = vadd.f32 -1.0, %v11677_v6  ;;  %v13732_v37 = vld [vmem:[#allocation27_spill] sm:$0xff]  ;;  %v4533_v44 = vmul.f32 1.6732632, %v9678_v57  ;;  %v4562_v12 = vsel %vm4282_vm8, %v12922_v5, %v4506_v14  ;;  %6377 = vmatpush.bf16.msrb.mxu1 %v10328_v38  ;;  %v11523_v5 = vld [vmem:[#allocation8 + $0x76c] sm:$0xf0] }
 0x40a   :  { %v4084_v49 = vadd.f32 %v4083_v33, %v12896_v58  ;;  %v4534_v62 = vmul.f32 1.6732632, %v9679_v19  ;;  %6428 = vmatpush.bf16.msrb.mxu3 %v10664_v7  ;;  %v10648_v6 = vor.u32 %v11527_v28, %v10647_v45  ;;  %v4618_v14 = vmul.f32 1.050701, %v4562_v12 }
 0x40b   :  { %v12946_v17 = vpop.f32.mrf.mxu2  ;;  %v12948_v40 = vpop.f32.mrf.mxu3  ;;  %v4392_v47 = vmul.f32 1.442695, %v12951_v18  ;;  %v4535_v0 = vmul.f32 1.6732632, %v9680_v50  ;;  %vm4298_vm14 = vcmp.gt.f32.partialorder %v12951_v18, 0.0 }
 0x40c   :  { %v11679_v2 = vpop.eup %11678  ;;  %6276 = vmatmul.bf16.gmra.mxu1 %v13732_v37  ;;  %6405 = vmatpush.bf16.msrb.mxu2 %v10456_v36  ;;  %v4588_v36 = vsel %vm4308_vm9, %v13723_v35, %v4532_v15  ;;  %v4590_v50 = vsel %vm4310_vm12, %v13725_v9, %v4534_v62 }
 0x40d   :  { %v9659_v39 = vadd.f32 -1.0, %v11679_v2  ;;  %11680 = vpow2.f32 %v4392_v47  ;;  %v10631_v2 = vld [vmem:[#allocation8 + $0x760] sm:$0xf]  ;;  %v4591_v7 = vsel %vm4311_vm13, %v13726_v22, %v4535_v0  ;;  %v4644_v28 = vmul.f32 1.050701, %v4588_v36 }
 0x40e   :  { %6429 = vmatpush.bf16.msrb.mxu3 %v10648_v6  ;;  %v4646_v12 = vmul.f32 1.050701, %v4590_v50 }
 0x40f   :  { %v4514_v13 = vmul.f32 1.6732632, %v9659_v39 }
 0x410   :  { %6304 = vmatmul.bf16.gmra.mxu2 %v13733_v61  ;;  %6332 = vmatmul.bf16.gmra.mxu3 %v13734_v27  ;;  %v4057_v19 = vpop.f32.mrf.mxu0  ;;  %v12992_v22 = vpack.c.bf16 %v4646_v12, %v4646_v12 }
 0x411   :  { %v4570_v33 = vsel %vm4290_vm11, %v12937_v24, %v4514_v13  ;;  %v4058_v47 = vadd.f32 %v4057_v19, %v12886_v55  ;;  %v12967_v51 = vpop.f32.mrf.mxu1  ;;  %v4589_v24 = vsel %vm4309_vm10, %v13724_v16, %v4533_v44  ;;  %v10632_v55 = vor.u32 %v11523_v5, %v10631_v2 }
 0x412   :  { %v4626_v38 = vmul.f32 1.050701, %v4570_v33  ;;  %v4645_v15 = vmul.f32 1.050701, %v4589_v24  ;;  %v4647_v16 = vmul.f32 1.050701, %v4591_v7  ;;  %v12988_v13 = vpack.c.bf16 %v4644_v28, %v4644_v28 }
 0x413   :  { %v4111_v48 = vpop.f32.mrf.mxu2  ;;  %v4139_v57 = vpop.f32.mrf.mxu3  ;;  %v4408_v54 = vmul.f32 1.442695, %v4058_v47  ;;  %6430 = vmatpush.bf16.msrb.mxu3 %v10632_v55  ;;  %vm4306_vm15 = vcmp.gt.f32.partialorder %v4058_v47, 0.0  ;;  %v10615_v7 = vld [vmem:[#allocation8 + $0x740] sm:$0xf] }
 0x414   :  { %v4112_v4 = vadd.f32 %v4111_v48, %v4084_v49  ;;  %v11681_v49 = vpop.eup %11680  ;;  %v12979_v45 = vpack.c.bf16 %v4626_v38, %v4618_v14  ;;  %v12990_v33 = vpack.c.bf16 %v4645_v15, %v4645_v15  ;;  %v11519_v28 = vld [vmem:[#allocation8 + $0x74c] sm:$0xf0] }
 0x415   :  { %v9667_v35 = vadd.f32 -1.0, %v11681_v49  ;;  %11682 = vpow2.f32 %v4408_v54  ;;  %v10616_v15 = vor.u32 %v11519_v28, %v10615_v7  ;;  %v11345_v7 = vld [vmem:[#allocation8 + $0x1e4] sm:$0xf]  ;;  %v9929_v28 = vld [vmem:[#allocation8 + $0x1f0] sm:$0xf0] }
 0x416   :  { %v12976_v39 = vadd.f32 %v4139_v57, %v4112_v4  ;;  %13735 = vst [vmem:[#allocation24_spill] sm:$0xff] %v12979_v45  ;;  %v12994_v4 = vpack.c.bf16 %v4647_v16, %v4647_v16  ;;  %v11515_v16 = vld [vmem:[#allocation8 + $0x72c] sm:$0xf0] }
 0x417   :  { %v4522_v48 = vmul.f32 1.6732632, %v9667_v35  ;;  %6431 = vmatpush.bf16.msrb.mxu3 %v10616_v15  ;;  %v9932_v15 = vor.u32 %v11345_v7, %v9929_v28  ;;  %v9769_v7 = vld [vmem:[#allocation8 + $0xb0] sm:$0xf0]  ;;  %v11337_v28 = vld [vmem:[#allocation8 + $0x1a4] sm:$0xf] }
 0x418   :  { %v12986_v62 = vpop.f32.mrf.mxu0  ;;  %13736 = vst [vmem:[#allocation28_spill] sm:$0xff] %v12994_v4  ;;  %6253 = vmatmul.bf16.gmra.mxu0 %v12988_v13 }
 0x419   :  { %v4088_v6 = vpop.f32.mrf.mxu1  ;;  %v4578_v2 = vsel %vm4298_vm14, %v12951_v18, %v4522_v48  ;;  %v10599_v18 = vld [vmem:[#allocation8 + $0x720] sm:$0xf]  ;;  %6482 = vmatpush.bf16.msra.mxu1 %v9932_v15  ;;  %v9897_v15 = vld [vmem:[#allocation8 + $0x1b0] sm:$0xf0] }
 0x41a   :  { %v4089_v19 = vadd.f32 %v4088_v6, %v12896_v58  ;;  %v4634_v38 = vmul.f32 1.050701, %v4578_v2  ;;  %v10600_v48 = vor.u32 %v11515_v16, %v10599_v18  ;;  %v11511_v2 = vld [vmem:[#allocation8 + $0x70c] sm:$0xf0]  ;;  %v11309_v16 = vld [vmem:[#allocation8 + $0xc4] sm:$0xf] }
 0x41b   :  { %v12982_v44 = vpop.f32.mrf.mxu2  ;;  %v12984_v9 = vpop.f32.mrf.mxu3 }
 0x41c   :  { %v11683_v0 = vpop.eup %11682  ;;  %6281 = vmatmul.bf16.gmra.mxu1 %v12990_v33  ;;  %6432 = vmatpush.bf16.msrb.mxu3 %v10600_v48  ;;  %v9785_v48 = vld [vmem:[#allocation8 + $0xd0] sm:$0xf0] }
 0x41d   :  { %v9675_v57 = vadd.f32 -1.0, %v11683_v0 }
 0x41f   :  { %v4530_v5 = vmul.f32 1.6732632, %v9675_v57 }
 0x420   :  { %6309 = vmatmul.bf16.gmra.mxu2 %v12992_v22  ;;  %6337 = vmatmul.bf16.gmra.mxu3 %v12994_v4  ;;  %v4062_v49 = vpop.f32.mrf.mxu0 }
 0x421   :  { %v4586_v36 = vsel %vm4306_vm15, %v4058_v47, %v4530_v5  ;;  %v4090_v55 = vpop.f32.mrf.mxu1  ;;  %v4076_v5 = vadd.f32 %v12910_v52, %v12896_v58 }
 0x422   :  { %v4642_v54 = vmul.f32 1.050701, %v4586_v36  ;;  %v9801_v55 = vld [vmem:[#allocation8 + $0xf0] sm:$0xf0] }
 0x423   :  { %v4116_v14 = vpop.f32.mrf.mxu2  ;;  %v4144_v50 = vpop.f32.mrf.mxu3  ;;  %v4104_v49 = vadd.f32 %v12916_v23, %v4076_v5  ;;  %v9913_v5 = vld [vmem:[#allocation8 + $0x1d0] sm:$0xf0] }
 0x424   :  { %v4117_v24 = vadd.f32 %v4116_v14, %v4089_v19  ;;  %v13005_v12 = vpack.c.bf16 %v4642_v54, %v4634_v38  ;;  %v10583_v19 = vld [vmem:[#allocation8 + $0x700] sm:$0xf]  ;;  %v11377_v38 = vld [vmem:[#allocation8 + $0x2e4] sm:$0xf] }
 0x425   :  { %v10584_v36 = vor.u32 %v11511_v2, %v10583_v19  ;;  %v4132_v23 = vadd.f32 %v12918_v46, %v4104_v49  ;;  %v9788_v2 = vor.u32 %v11309_v16, %v9785_v48  ;;  %v4420_v46 = vmul.f32 1.442695, %v12723_v31  ;;  %v11369_v16 = vld [vmem:[#allocation8 + $0x2a4] sm:$0xf]  ;;  %v10025_v48 = vld [vmem:[#allocation8 + $0x2b0] sm:$0xf0] }
 0x426   :  { %v13003_v35 = vadd.f32 %v4144_v50, %v4117_v24  ;;  %v10057_v24 = vld [vmem:[#allocation8 + $0x2f0] sm:$0xf0]  ;;  %v11313_v50 = vld [vmem:[#allocation8 + $0xe4] sm:$0xf] }
 0x427   :  { %v10060_v54 = vor.u32 %v11377_v38, %v10057_v24  ;;  %6433 = vmatpush.bf16.msrb.mxu3 %v10584_v36  ;;  %v9804_v52 = vor.u32 %v11313_v50, %v9801_v55  ;;  %v11373_v38 = vld [vmem:[#allocation8 + $0x2c4] sm:$0xf]  ;;  %v10041_v24 = vld [vmem:[#allocation8 + $0x2d0] sm:$0xf0] }
 0x428   :  { %v4157_v57 = vpop.f32.mrf.mxu0  ;;  %6350 = vmatmul.bf16.vlgmr.msrb.gmra.mxu0 %v12693_v20  ;;  %v10044_v55 = vor.u32 %v11373_v38, %v10041_v24 }
 0x429   :  { %v4185_v47 = vpop.f32.mrf.mxu1  ;;  %v4158_v14 = vadd.f32 %v4157_v57, %v12912_v30  ;;  %6510 = vmatpush.bf16.msra.mxu2 %v10060_v54  ;;  %6454 = vmatpush.bf16.msra.mxu0 %v9804_v52  ;;  %v11305_v54 = vld [vmem:[#allocation8 + $0xa4] sm:$0xf] }
 0x42a   :  { %v9772_v52 = vor.u32 %v11305_v54, %v9769_v7  ;;  %v11365_v54 = vld [vmem:[#allocation8 + $0x284] sm:$0xf]  ;;  %v10009_v7 = vld [vmem:[#allocation8 + $0x290] sm:$0xf0] }
 0x42b   :  { %v4118_v6 = vpop.f32.mrf.mxu2  ;;  %v4146_v0 = vpop.f32.mrf.mxu3  ;;  %v4186_v30 = vadd.f32 %v4185_v47, %v4158_v14 }
 0x42c   :  { %6378 = vmatmul.bf16.vlgmr.msrb.gmra.mxu1 %v12819_v21  ;;  %v11341_v6 = vld [vmem:[#allocation8 + $0x1c4] sm:$0xf] }
 0x42d   :  { %v9916_v50 = vor.u32 %v11341_v6, %v9913_v5  ;;  %6455 = vmatpush.bf16.msra.mxu0 %v9788_v2  ;;  %6511 = vmatpush.bf16.msra.mxu2 %v10044_v55  ;;  %v13022_v6 = vadd.f32 %v12986_v62, %v12893_v32  ;;  %v9753_v2 = vld [vmem:[#allocation8 + $0x90] sm:$0xf0]  ;;  %v11333_v5 = vld [vmem:[#allocation8 + $0x184] sm:$0xf]  ;;  %v4081_v32 = vadd.f32 %v12939_v26, %v12896_v58 }
 0x42e   :  { %v9881_v55 = vld [vmem:[#allocation8 + $0x190] sm:$0xf0]  ;;  %v11329_v26 = vld [vmem:[#allocation8 + $0x164] sm:$0xf] }
 0x42f   :  { %6483 = vmatpush.bf16.msra.mxu1 %v9916_v50  ;;  %vm4314_vm5 = vcmp.gt.f32.partialorder %v13022_v6, 0.0 }
 0x430   :  { %6406 = vmatmul.bf16.vlgmr.msrb.gmra.mxu2 %v12943_v34  ;;  %v4159_v19 = vpop.f32.mrf.mxu0 }
 0x431   :  { %v4187_v36 = vpop.f32.mrf.mxu1  ;;  %v4160_v14 = vadd.f32 %v4159_v19, %v4132_v23  ;;  %6456 = vmatpush.bf16.msra.mxu0 %v9772_v52  ;;  %v11301_v19 = vld [vmem:[#allocation8 + $0x84] sm:$0xf] }
 0x433   :  { %v4213_v18 = vpop.f32.mrf.mxu2  ;;  %v4241_v57 = vpop.f32.mrf.mxu3  ;;  %v4188_v23 = vadd.f32 %v4187_v36, %v4160_v14  ;;  %v9756_v36 = vor.u32 %v11301_v19, %v9753_v2  ;;  %v9884_v14 = vor.u32 %v11333_v5, %v9881_v55  ;;  %v11361_v5 = vld [vmem:[#allocation8 + $0x264] sm:$0xf] }
 0x434   :  { %v4214_v0 = vadd.f32 %v4213_v18, %v4186_v30  ;;  %v4422_v30 = vmul.f32 1.442695, %v12842_v53  ;;  %v9900_v18 = vor.u32 %v11337_v28, %v9897_v15  ;;  %v4424_v28 = vmul.f32 1.442695, %v13022_v6  ;;  %v11409_v15 = vld [vmem:[#allocation8 + $0x3e4] sm:$0xf] }
 0x435   :  { %6457 = vmatpush.bf16.msra.mxu0 %v9756_v36 }
 0x436   :  { %v13015_v47 = vadd.f32 %v4241_v57, %v4214_v0  ;;  %v10028_v0 = vor.u32 %v11369_v16, %v10025_v48  ;;  %6484 = vmatpush.bf16.msra.mxu1 %v9900_v18  ;;  %v10185_v18 = vld [vmem:[#allocation8 + $0x3f0] sm:$0xf0]  ;;  %v10012_v16 = vor.u32 %v11365_v54, %v10009_v7  ;;  %v11293_v7 = vld [vmem:[#allocation8 + $0x44] sm:$0xf] }
 0x437   :  { %v10188_v48 = vor.u32 %v11409_v15, %v10185_v18 }
 0x438   :  { %v4330_v49 = vmul.f32 1.442695, %v13015_v47  ;;  %v4162_v50 = vpop.f32.mrf.mxu0  ;;  %6512 = vmatpush.bf16.msra.mxu2 %v10028_v0  ;;  %6355 = vmatmul.bf16.gmra.mxu0 %v12716_v29  ;;  %vm4267_vm1 = vcmp.gt.f32.partialorder %v13015_v47, 0.0 }
 0x439   :  { %v4190_v62 = vpop.f32.mrf.mxu1  ;;  %v4163_v52 = vadd.f32 %v4162_v50, %v12941_v41  ;;  %v9865_v41 = vld [vmem:[#allocation8 + $0x170] sm:$0xf0]  ;;  %6538 = vmatpush.bf16.msra.mxu3 %v10188_v48  ;;  %v11325_v48 = vld [vmem:[#allocation8 + $0x144] sm:$0xf] }
 0x43a   :  { %11684 = vpow2.f32 %v4330_v49  ;;  %6485 = vmatpush.bf16.msra.mxu1 %v9884_v14  ;;  %v9868_v2 = vor.u32 %v11329_v26, %v9865_v41 }
 0x43b   :  { %v4215_v57 = vpop.f32.mrf.mxu2  ;;  %v4243_v24 = vpop.f32.mrf.mxu3  ;;  %11686 = vpow2.f32 %v4420_v46  ;;  %v11297_v46 = vld [vmem:[#allocation8 + $0x64] sm:$0xf]  ;;  %v4191_v50 = vadd.f32 %v4190_v62, %v4163_v52 }
 0x43c   :  { %v4216_v38 = vadd.f32 %v4215_v57, %v4188_v23  ;;  %11688 = vpow2.f32 %v4422_v30  ;;  %v9737_v23 = vld [vmem:[#allocation8 + $0x70] sm:$0xf0]  ;;  %v4109_v57 = vadd.f32 %v12946_v17, %v4081_v32  ;;  %6383 = vmatmul.bf16.gmra.mxu1 %v12836_v43  ;;  %6513 = vmatpush.bf16.msra.mxu2 %v10012_v16 }
 0x43d   :  { %v9740_v30 = vor.u32 %v11297_v46, %v9737_v23  ;;  %v9721_v32 = vld [vmem:[#allocation8 + $0x50] sm:$0xf0]  ;;  %v11357_v23 = vld [vmem:[#allocation8 + $0x244] sm:$0xf] }
 0x43e   :  { %v13027_v49 = vadd.f32 %v4243_v24, %v4216_v38  ;;  %v9993_v38 = vld [vmem:[#allocation8 + $0x270] sm:$0xf0]  ;;  %6486 = vmatpush.bf16.msra.mxu1 %v9868_v2  ;;  %v4137_v14 = vadd.f32 %v12948_v40, %v4109_v57  ;;  %v9724_v62 = vor.u32 %v11293_v7, %v9721_v32  ;;  %v11405_v2 = vld [vmem:[#allocation8 + $0x3c4] sm:$0xf] }
 0x43f   :  { %v9996_v55 = vor.u32 %v11361_v5, %v9993_v38  ;;  %v9849_v46 = vld [vmem:[#allocation8 + $0x150] sm:$0xf0]  ;;  %6458 = vmatpush.bf16.msra.mxu0 %v9740_v30  ;;  %v11289_v38 = vld [vmem:[#allocation8 + $0x24] sm:$0xf] }
 0x440   :  { %v11685_v0 = vpop.eup %11684  ;;  %v4346_v19 = vmul.f32 1.442695, %v13027_v49  ;;  %6411 = vmatmul.bf16.gmra.mxu2 %v12979_v45  ;;  %v4164_v36 = vpop.f32.mrf.mxu0  ;;  %v9852_v52 = vor.u32 %v11325_v48, %v9849_v46  ;;  %v9977_v16 = vld [vmem:[#allocation8 + $0x250] sm:$0xf0]  ;;  %vm4275_vm2 = vcmp.gt.f32.partialorder %v13027_v49, 0.0 }
 0x441   :  { %v9636_v24 = vadd.f32 -1.0, %v11685_v0  ;;  %v11687_v54 = vpop.eup %11686  ;;  %v4192_v0 = vpop.f32.mrf.mxu1  ;;  %v4165_v41 = vadd.f32 %v4164_v36, %v4137_v14  ;;  %v10169_v5 = vld [vmem:[#allocation8 + $0x3d0] sm:$0xf0]  ;;  %6514 = vmatpush.bf16.msra.mxu2 %v9996_v55  ;;  %v9980_v40 = vor.u32 %v11357_v23, %v9977_v16 }
 0x442   :  { %11690 = vpow2.f32 %v4346_v19  ;;  %v11689_v26 = vpop.eup %11688  ;;  %v10172_v57 = vor.u32 %v11405_v2, %v10169_v5  ;;  %6487 = vmatpush.bf16.msra.mxu1 %v9852_v52  ;;  %v9681_v45 = vadd.f32 -1.0, %v11687_v54  ;;  %v9833_v7 = vld [vmem:[#allocation8 + $0x130] sm:$0xf0] }
 0x443   :  { %11692 = vpow2.f32 %v4424_v28  ;;  %v4218_v17 = vpop.f32.mrf.mxu2  ;;  %v4246_v18 = vpop.f32.mrf.mxu3  ;;  %v4491_v19 = vmul.f32 1.6732632, %v9636_v24  ;;  %v9682_v43 = vadd.f32 -1.0, %v11689_v26  ;;  %6459 = vmatpush.bf16.msra.mxu0 %v9724_v62  ;;  %v4193_v48 = vadd.f32 %v4192_v0, %v4165_v41  ;;  %v11285_v26 = vld [vmem:[#allocation8 + $0x4] sm:$0xf] }
 0x444   :  { %v4219_v15 = vadd.f32 %v4218_v17, %v4191_v50  ;;  %v9705_v50 = vld [vmem:[#allocation8 + $0x30] sm:$0xf0]  ;;  %v11321_v17 = vld [vmem:[#allocation8 + $0x124] sm:$0xf]  ;;  %6539 = vmatpush.bf16.msra.mxu3 %v10172_v57 }
 0x445   :  { %v9708_v14 = vor.u32 %v11289_v38, %v9705_v50  ;;  %v9836_v55 = vor.u32 %v11321_v17, %v9833_v7  ;;  %v4547_v36 = vsel %vm4267_vm1, %v13015_v47, %v4491_v19  ;;  %6515 = vmatpush.bf16.msra.mxu2 %v9980_v40  ;;  %v9689_v52 = vld [vmem:[#allocation8 + $0x10] sm:$0xf0]  ;;  %v11317_v57 = vld [vmem:[#allocation8 + $0x104] sm:$0xf] }
 0x446   :  { %v13036_v28 = vadd.f32 %v4246_v18, %v4219_v15  ;;  %v11353_v15 = vld [vmem:[#allocation8 + $0x224] sm:$0xf]  ;;  %v9961_v18 = vld [vmem:[#allocation8 + $0x230] sm:$0xf0]  ;;  %v4603_v19 = vmul.f32 1.050701, %v4547_v36  ;;  %v9692_v40 = vor.u32 %v11285_v26, %v9689_v52 }
 0x447   :  { %v9964_v54 = vor.u32 %v11353_v15, %v9961_v18  ;;  %6488 = vmatpush.bf16.msra.mxu1 %v9836_v55  ;;  %v9817_v47 = vld [vmem:[#allocation8 + $0x110] sm:$0xf0]  ;;  %6460 = vmatpush.bf16.msra.mxu0 %v9708_v14  ;;  %v11349_v50 = vld [vmem:[#allocation8 + $0x204] sm:$0xf]  ;;  %v4536_v15 = vmul.f32 1.6732632, %v9681_v45 }
 0x448   :  { %v11691_v4 = vpop.eup %11690  ;;  %v4362_v30 = vmul.f32 1.442695, %v13036_v28  ;;  %v4167_v5 = vpop.f32.mrf.mxu0  ;;  %v9820_v38 = vor.u32 %v11317_v57, %v9817_v47  ;;  %v9945_v17 = vld [vmem:[#allocation8 + $0x210] sm:$0xf0]  ;;  %6360 = vmatmul.bf16.gmra.mxu0 %v12734_v25  ;;  %vm4283_vm6 = vcmp.gt.f32.partialorder %v13036_v28, 0.0 }
 0x449   :  { %v11693_v32 = vpop.eup %11692  ;;  %v9644_v24 = vadd.f32 -1.0, %v11691_v4  ;;  %v4086_v4 = vadd.f32 %v12967_v51, %v12896_v58  ;;  %v4195_v41 = vpop.f32.mrf.mxu1  ;;  %v4168_v58 = vadd.f32 %v4167_v5, %v12976_v39  ;;  %v11401_v51 = vld [vmem:[#allocation8 + $0x3a4] sm:$0xf]  ;;  %6516 = vmatpush.bf16.msra.mxu2 %v9964_v54  ;;  %v4537_v39 = vmul.f32 1.6732632, %v9682_v43 }
 0x44a   :  { %11694 = vpow2.f32 %v4362_v30  ;;  %v9683_v16 = vadd.f32 -1.0, %v11693_v32  ;;  %v10153_v32 = vld [vmem:[#allocation8 + $0x3b0] sm:$0xf0] }
 0x44b   :  { %v4499_v46 = vmul.f32 1.6732632, %v9644_v24  ;;  %v4220_v23 = vpop.f32.mrf.mxu2  ;;  %v4248_v2 = vpop.f32.mrf.mxu3  ;;  %v9948_v24 = vor.u32 %v11349_v50, %v9945_v17  ;;  %v10156_v55 = vor.u32 %v11401_v51, %v10153_v32  ;;  %6489 = vmatpush.bf16.msra.mxu1 %v9820_v38  ;;  %v4114_v14 = vadd.f32 %v12982_v44, %v4086_v4  ;;  %6461 = vmatpush.bf16.msra.mxu0 %v9692_v40  ;;  %v11393_v17 = vld [vmem:[#allocation8 + $0x364] sm:$0xf] }
 0x44c   :  { %v4221_v62 = vadd.f32 %v4220_v23, %v4193_v48  ;;  %6388 = vmatmul.bf16.gmra.mxu1 %v12852_v59  ;;  %v4538_v48 = vmul.f32 1.6732632, %v9683_v16  ;;  %v4592_v44 = vsel %vm4312_vm3, %v12723_v31, %v4536_v15  ;;  %v4593_v4 = vsel %vm4313_vm4, %v12842_v53, %v4537_v39  ;;  %v10137_v53 = vld [vmem:[#allocation8 + $0x390] sm:$0xf0] }
 0x44d   :  { %v4555_v0 = vsel %vm4275_vm2, %v13027_v49, %v4499_v46  ;;  %6540 = vmatpush.bf16.msra.mxu3 %v10156_v55  ;;  %v4196_v46 = vadd.f32 %v4195_v41, %v4168_v58  ;;  %6517 = vmatpush.bf16.msra.mxu2 %v9948_v24  ;;  %v4142_v23 = vadd.f32 %v12984_v9, %v4114_v14  ;;  %v4648_v47 = vmul.f32 1.050701, %v4592_v44  ;;  %v11397_v9 = vld [vmem:[#allocation8 + $0x384] sm:$0xf] }
 0x44e   :  { %v4611_v30 = vmul.f32 1.050701, %v4555_v0  ;;  %v13045_v7 = vadd.f32 %v4248_v2, %v4221_v62  ;;  %v4594_v62 = vsel %vm4314_vm5, %v13022_v6, %v4538_v48  ;;  %v10140_v6 = vor.u32 %v11397_v9, %v10137_v53  ;;  %v11389_v44 = vld [vmem:[#allocation8 + $0x344] sm:$0xf] }
 0x44f   :  { %v4650_v41 = vmul.f32 1.050701, %v4594_v62  ;;  %v13068_v32 = vpack.c.bf16 %v4648_v47, %v4648_v47  ;;  %v11381_v53 = vld [vmem:[#allocation8 + $0x304] sm:$0xf] }
 0x450   :  { %v11695_v49 = vpop.eup %11694  ;;  %v13050_v18 = vpack.c.bf16 %v4611_v30, %v4603_v19  ;;  %v4378_v36 = vmul.f32 1.442695, %v13045_v7  ;;  %6416 = vmatmul.bf16.gmra.mxu2 %v13005_v12  ;;  %v4169_v52 = vpop.f32.mrf.mxu0  ;;  %v4649_v19 = vmul.f32 1.050701, %v4593_v4  ;;  %v10121_v30 = vld [vmem:[#allocation8 + $0x370] sm:$0xf0] }
 0x451   :  { %v9652_v54 = vadd.f32 -1.0, %v11695_v49  ;;  %v4197_v16 = vpop.f32.mrf.mxu1  ;;  %v4170_v57 = vadd.f32 %v4169_v52, %v4142_v23  ;;  %vm4291_vm0 = vcmp.gt.f32.partialorder %v13045_v7, 0.0  ;;  %6541 = vmatpush.bf16.msra.mxu3 %v10140_v6  ;;  %v10124_v39 = vor.u32 %v11393_v17, %v10121_v30  ;;  %v10105_v23 = vld [vmem:[#allocation8 + $0x350] sm:$0xf0] }
 0x452   :  { %11696 = vpow2.f32 %v4378_v36  ;;  %6434 = vmatmul.bf16.vlgmr.msrb.gmra.mxu3 %v13050_v18  ;;  %v13071_v15 = vpack.c.bf16 %v4649_v19, %v4649_v19  ;;  %v13074_v48 = vpack.c.bf16 %v4650_v41, %v4650_v41  ;;  %v13085_v41 = vld [vmem:[#allocation10] sm:$0xf] }
 0x453   :  { %v4223_v45 = vpop.f32.mrf.mxu2  ;;  %v4251_v43 = vpop.f32.mrf.mxu3  ;;  %v4507_v2 = vmul.f32 1.6732632, %v9652_v54  ;;  %v4198_v50 = vadd.f32 %v4197_v16, %v4170_v57  ;;  %v11385_v16 = vld [vmem:[#allocation8 + $0x324] sm:$0xf]  ;;  %v13089_v30 = vperm.slane %v13085_v41, 0 }
 0x454   :  { %v4224_v26 = vadd.f32 %v4223_v45, %v4196_v46 }
 0x455   :  { %v4563_v38 = vsel %vm4283_vm6, %v13036_v28, %v4507_v2  ;;  %6542 = vmatpush.bf16.msra.mxu3 %v10124_v39 }
 0x456   :  { %v13063_v5 = vadd.f32 %v4251_v43, %v4224_v26  ;;  %v4619_v14 = vmul.f32 1.050701, %v4563_v38  ;;  %v10073_v38 = vld [vmem:[#allocation8 + $0x310] sm:$0xf0] }
 0x458   :  { %v11697_v31 = vpop.eup %11696  ;;  %v4394_v0 = vmul.f32 1.442695, %v13063_v5  ;;  %v4172_v49 = vpop.f32.mrf.mxu0  ;;  %6365 = vmatmul.bf16.gmra.mxu0 %v13068_v32  ;;  %vm4299_vm7 = vcmp.gt.f32.partialorder %v13063_v5, 0.0 }
 0x459   :  { %v9660_v40 = vadd.f32 -1.0, %v11697_v31  ;;  %v4200_v36 = vpop.f32.mrf.mxu1  ;;  %v4173_v45 = vadd.f32 %v4172_v49, %v13003_v35  ;;  %v10089_v35 = vld [vmem:[#allocation8 + $0x330] sm:$0xf0] }
 0x45a   :  { %11698 = vpow2.f32 %v4394_v0  ;;  %v10092_v0 = vor.u32 %v11385_v16, %v10089_v35  ;;  %v11473_v16 = vld [vmem:[#allocation8 + $0x5e4] sm:$0xf]  ;;  %v10441_v35 = vld [vmem:[#allocation8 + $0x5f0] sm:$0xf0] }
 0x45b   :  { %v4515_v58 = vmul.f32 1.6732632, %v9660_v40  ;;  %v4225_v51 = vpop.f32.mrf.mxu2  ;;  %v4253_v55 = vpop.f32.mrf.mxu3  ;;  %v4201_v4 = vadd.f32 %v4200_v36, %v4173_v45 }
 0x45c   :  { %v4226_v24 = vadd.f32 %v4225_v51, %v4198_v50  ;;  %6393 = vmatmul.bf16.gmra.mxu1 %v13071_v15 }
 0x45d   :  { %v4571_v28 = vsel %vm4291_vm0, %v13045_v7, %v4515_v58  ;;  %v10108_v7 = vor.u32 %v11389_v44, %v10105_v23  ;;  %v10076_v58 = vor.u32 %v11381_v53, %v10073_v38  ;;  %v11505_v23 = vld [vmem:[#allocation8 + $0x6e4] sm:$0xf]  ;;  %v10297_v38 = vld [vmem:[#allocation8 + $0x4d0] sm:$0xf0] }
 0x45e   :  { %v4627_v54 = vmul.f32 1.050701, %v4571_v28  ;;  %v4254_v46 = vadd.f32 %v4253_v55, %v4226_v24  ;;  %v11437_v53 = vld [vmem:[#allocation8 + $0x4c4] sm:$0xf] }
 0x45f   :  { %6543 = vmatpush.bf16.msra.mxu3 %v10108_v7 }
 0x460   :  { %v11699_v26 = vpop.eup %11698  ;;  %v4410_v43 = vmul.f32 1.442695, %v4254_v46  ;;  %6421 = vmatmul.bf16.gmra.mxu2 %v13074_v48  ;;  %v13080_v52 = vpack.c.bf16 %v4627_v54, %v4619_v14  ;;  %v4174_v31 = vpop.f32.mrf.mxu0  ;;  %vm4307_vm8 = vcmp.gt.f32.partialorder %v4254_v46, 0.0 }
 0x461   :  { %v9668_v62 = vadd.f32 -1.0, %v11699_v26  ;;  %v4202_v19 = vpop.f32.mrf.mxu1  ;;  %v10569_v26 = vld [vmem:[#allocation8 + $0x6f0] sm:$0xf0] }
 0x462   :  { %11700 = vpow2.f32 %v4410_v43  ;;  %6439 = vmatmul.bf16.gmra.mxu3 %v13080_v52  ;;  %v11441_v43 = vld [vmem:[#allocation8 + $0x4e4] sm:$0xf]  ;;  %v10697_v31 = vld [vmem:[#allocation8 + $0x7f0] sm:$0xf0] }
 0x463   :  { %v4228_v2 = vpop.f32.mrf.mxu2  ;;  %v4256_v47 = vpop.f32.mrf.mxu3  ;;  %v4523_v40 = vmul.f32 1.6732632, %v9668_v62  ;;  %6544 = vmatpush.bf16.msra.mxu3 %v10092_v0 }
 0x464   :  { %v4229_v57 = vadd.f32 %v4228_v2, %v4201_v4  ;;  %v10313_v4 = vld [vmem:[#allocation8 + $0x4f0] sm:$0xf0] }
 0x465   :  { %v4579_v51 = vsel %vm4299_vm7, %v13063_v5, %v4523_v40  ;;  %v10316_v2 = vor.u32 %v11441_v43, %v10313_v4  ;;  %v11465_v43 = vld [vmem:[#allocation8 + $0x5a4] sm:$0xf] }
 0x466   :  { %v13083_v9 = vadd.f32 %v4256_v47, %v4229_v57  ;;  %v4635_v54 = vmul.f32 1.050701, %v4579_v51  ;;  %v10444_v57 = vor.u32 %v11473_v16, %v10441_v35  ;;  %v11537_v47 = vld [vmem:[#allocation8 + $0x7e4] sm:$0xf]  ;;  %v10537_v16 = vld [vmem:[#allocation8 + $0x6b0] sm:$0xf0] }
 0x467   :  { %6545 = vmatpush.bf16.msra.mxu3 %v10076_v58  ;;  %6566 = vmatpush.bf16.msrb.mxu0 %v10316_v2  ;;  %v10700_v40 = vor.u32 %v11537_v47, %v10697_v31  ;;  %v10300_v58 = vor.u32 %v11437_v53, %v10297_v38  ;;  %v11469_v51 = vld [vmem:[#allocation8 + $0x5c4] sm:$0xf] }
 0x468   :  { %v11701_v50 = vpop.eup %11700  ;;  %v4426_v6 = vmul.f32 1.442695, %v13083_v9  ;;  %v6239_v14 = vpop.f32.mrf.mxu0  ;;  %6462 = vmatmul.bf16.vlgmr.msra.gmra.mxu0 %v12273_v8  ;;  %6594 = vmatpush.bf16.msrb.mxu1 %v10444_v57  ;;  %vm4315_vm9 = vcmp.gt.f32.partialorder %v13083_v9, 0.0  ;;  %v11497_v4 = vld [vmem:[#allocation8 + $0x6a4] sm:$0xf] }
 0x469   :  { %v9676_v17 = vadd.f32 -1.0, %v11701_v50  ;;  %v6240_v36 = vadd.f32 %v6239_v14, %v13089_v30  ;;  %v6267_v39 = vpop.f32.mrf.mxu1  ;;  %v11533_v2 = vld [vmem:[#allocation8 + $0x7c4] sm:$0xf]  ;;  %v10681_v57 = vld [vmem:[#allocation8 + $0x7d0] sm:$0xf0] }
 0x46a   :  { %11702 = vpow2.f32 %v4426_v6  ;;  %v10684_v31 = vor.u32 %v11533_v2, %v10681_v57  ;;  %v11421_v57 = vld [vmem:[#allocation8 + $0x444] sm:$0xf] }
 0x46b   :  { %v4531_v24 = vmul.f32 1.6732632, %v9676_v17  ;;  %v4230_v55 = vpop.f32.mrf.mxu2  ;;  %v4258_v49 = vpop.f32.mrf.mxu3  ;;  %v6268_v44 = vadd.f32 %v6267_v39, %v6240_v36  ;;  %6650 = vmatpush.bf16.msrb.mxu3 %v10700_v40  ;;  %v10553_v36 = vld [vmem:[#allocation8 + $0x6d0] sm:$0xf0]  ;;  %6567 = vmatpush.bf16.msrb.mxu0 %v10300_v58  ;;  %v11461_v40 = vld [vmem:[#allocation8 + $0x584] sm:$0xf] }
 0x46c   :  { %6490 = vmatmul.bf16.vlgmr.msra.gmra.mxu1 %v13720_v10  ;;  %v11501_v55 = vld [vmem:[#allocation8 + $0x6c4] sm:$0xf]  ;;  %v10521_v58 = vld [vmem:[#allocation8 + $0x690] sm:$0xf0] }
 0x46d   :  { %v4587_v28 = vsel %vm4307_vm8, %v4254_v46, %v4531_v24  ;;  %v10572_v46 = vor.u32 %v11505_v23, %v10569_v26  ;;  %v10425_v24 = vld [vmem:[#allocation8 + $0x5d0] sm:$0xf0]  ;;  %v11433_v23 = vld [vmem:[#allocation8 + $0x4a4] sm:$0xf] }
 0x46e   :  { %v4643_v45 = vmul.f32 1.050701, %v4587_v28  ;;  %v10428_v28 = vor.u32 %v11469_v51, %v10425_v24  ;;  %v10281_v26 = vld [vmem:[#allocation8 + $0x4b0] sm:$0xf0] }
 0x46f   :  { %6622 = vmatpush.bf16.msrb.mxu2 %v10572_v46  ;;  %v10409_v46 = vld [vmem:[#allocation8 + $0x5b0] sm:$0xf0]  ;;  %6651 = vmatpush.bf16.msrb.mxu3 %v10684_v31  ;;  %v11453_v31 = vld [vmem:[#allocation8 + $0x544] sm:$0xf] }
 0x470   :  { %v11703_v7 = vpop.eup %11702  ;;  %6518 = vmatmul.bf16.vlgmr.msra.gmra.mxu2 %v13721_v60  ;;  %v13097_v5 = vpack.c.bf16 %v4643_v45, %v4635_v54  ;;  %v6241_v17 = vpop.f32.mrf.mxu0  ;;  %v10556_v54 = vor.u32 %v11501_v55, %v10553_v36  ;;  %6595 = vmatpush.bf16.msrb.mxu1 %v10428_v28  ;;  %v10412_v35 = vor.u32 %v11465_v43, %v10409_v46  ;;  %v11425_v36 = vld [vmem:[#allocation8 + $0x464] sm:$0xf]  ;;  %v10505_v43 = vld [vmem:[#allocation8 + $0x670] sm:$0xf0] }
 0x471   :  { %v9684_v62 = vadd.f32 -1.0, %v11703_v7  ;;  %v6242_v49 = vadd.f32 %v6241_v17, %v13089_v30  ;;  %v6269_v14 = vpop.f32.mrf.mxu1  ;;  %v10284_v7 = vor.u32 %v11433_v23, %v10281_v26  ;;  %v11493_v17 = vld [vmem:[#allocation8 + $0x684] sm:$0xf]  ;;  %v10377_v23 = vld [vmem:[#allocation8 + $0x570] sm:$0xf0] }
 0x472   :  { %6444 = vmatmul.bf16.gmra.mxu3 %v13097_v5  ;;  %v11489_v26 = vld [vmem:[#allocation8 + $0x664] sm:$0xf] }
 0x473   :  { %v4539_v19 = vmul.f32 1.6732632, %v9684_v62  ;;  %v6295_v0 = vpop.f32.mrf.mxu2  ;;  %v6323_v6 = vpop.f32.mrf.mxu3  ;;  %6623 = vmatpush.bf16.msrb.mxu2 %v10556_v54  ;;  %v10540_v62 = vor.u32 %v11497_v4, %v10537_v16  ;;  %6568 = vmatpush.bf16.msrb.mxu0 %v10284_v7  ;;  %v10249_v54 = vld [vmem:[#allocation8 + $0x470] sm:$0xf0]  ;;  %v10508_v4 = vor.u32 %v11489_v26, %v10505_v43  ;;  %v11529_v16 = vld [vmem:[#allocation8 + $0x7a4] sm:$0xf] }
 0x474   :  { %v6296_v50 = vadd.f32 %v6295_v0, %v6268_v44  ;;  %v6270_v44 = vadd.f32 %v6269_v14, %v6242_v49  ;;  %6596 = vmatpush.bf16.msrb.mxu1 %v10412_v35  ;;  %v10524_v14 = vor.u32 %v11493_v17, %v10521_v58  ;;  %v10252_v7 = vor.u32 %v11425_v36, %v10249_v54  ;;  %v10665_v35 = vld [vmem:[#allocation8 + $0x7b0] sm:$0xf0]  ;;  %v11449_v54 = vld [vmem:[#allocation8 + $0x524] sm:$0xf] }
 0x475   :  { %v4595_v45 = vsel %vm4315_vm9, %v13083_v9, %v4539_v19  ;;  %v11429_v9 = vld [vmem:[#allocation8 + $0x484] sm:$0xf]  ;;  %v10265_v19 = vld [vmem:[#allocation8 + $0x490] sm:$0xf0]  ;;  %v10668_v2 = vor.u32 %v11529_v16, %v10665_v35 }
 0x476   :  { %v13102_v39 = vadd.f32 %v6323_v6, %v6296_v50  ;;  %v4651_v47 = vmul.f32 1.050701, %v4595_v45  ;;  %v10393_v6 = vld [vmem:[#allocation8 + $0x590] sm:$0xf0]  ;;  %v10268_v55 = vor.u32 %v11429_v9, %v10265_v19  ;;  %v11457_v45 = vld [vmem:[#allocation8 + $0x564] sm:$0xf] }
 0x477   :  { %6624 = vmatpush.bf16.msrb.mxu2 %v10540_v62  ;;  %v10396_v49 = vor.u32 %v11461_v40, %v10393_v6  ;;  %v10380_v46 = vor.u32 %v11457_v45, %v10377_v23  ;;  %v11485_v6 = vld [vmem:[#allocation8 + $0x644] sm:$0xf]  ;;  %v10489_v17 = vld [vmem:[#allocation8 + $0x650] sm:$0xf0]  ;;  %6652 = vmatpush.bf16.msrb.mxu3 %v10668_v2 }
 0x478   :  { %v6244_v50 = vpop.f32.mrf.mxu0  ;;  %6467 = vmatmul.bf16.gmra.mxu0 %v13727_v56  ;;  %v10217_v36 = vld [vmem:[#allocation8 + $0x430] sm:$0xf0]  ;;  %v11481_v23 = vld [vmem:[#allocation8 + $0x624] sm:$0xf] }
 0x479   :  { %v6245_v51 = vadd.f32 %v6244_v50, %v13089_v30  ;;  %v6272_v24 = vpop.f32.mrf.mxu1  ;;  %6597 = vmatpush.bf16.msrb.mxu1 %v10396_v49  ;;  %6569 = vmatpush.bf16.msrb.mxu0 %v10268_v55  ;;  %v10361_v50 = vld [vmem:[#allocation8 + $0x550] sm:$0xf0]  ;;  %v10492_v55 = vor.u32 %v11485_v6, %v10489_v17  ;;  %v11413_v2 = vld [vmem:[#allocation8 + $0x404] sm:$0xf] }
 0x47a   :  { %v10345_v45 = vld [vmem:[#allocation8 + $0x530] sm:$0xf0]  ;;  %v11477_v6 = vld [vmem:[#allocation8 + $0x604] sm:$0xf] }
 0x47b   :  { %v6297_v0 = vpop.f32.mrf.mxu2  ;;  %v13107_v38 = vpop.f32.mrf.mxu3  ;;  %v6273_v28 = vadd.f32 %v6272_v24, %v6245_v51  ;;  %6625 = vmatpush.bf16.msrb.mxu2 %v10524_v14  ;;  %v10364_v24 = vor.u32 %v11453_v31, %v10361_v50  ;;  %v11417_v14 = vld [vmem:[#allocation8 + $0x424] sm:$0xf]  ;;  %v10473_v26 = vld [vmem:[#allocation8 + $0x630] sm:$0xf0]  ;;  %v10348_v43 = vor.u32 %v11449_v54, %v10345_v45 }
 0x47c   :  { %v13105_v53 = vadd.f32 %v6297_v0, %v6270_v44  ;;  %v13111_v44 = vpack.c.bf16 %v4651_v47, %v4651_v47  ;;  %6495 = vmatmul.bf16.gmra.mxu1 %v13728_v1  ;;  %v10233_v47 = vld [vmem:[#allocation8 + $0x450] sm:$0xf0] }
 0x47d   :  { %6598 = vmatpush.bf16.msrb.mxu1 %v10380_v46  ;;  %v10236_v40 = vor.u32 %v11421_v57, %v10233_v47  ;;  %6570 = vmatpush.bf16.msrb.mxu0 %v10252_v7  ;;  %v11525_v46 = vld [vmem:[#allocation8 + $0x784] sm:$0xf]  ;;  %v10649_v16 = vld [vmem:[#allocation8 + $0x790] sm:$0xf0]  ;;  %v10220_v7 = vor.u32 %v11417_v14, %v10217_v36 }
 0x47e   :  { %13737 = vst [vmem:[#allocation32_spill] sm:$0xff] %v13111_v44  ;;  %v10652_v35 = vor.u32 %v11525_v46, %v10649_v16  ;;  %v10201_v57 = vld [vmem:[#allocation8 + $0x410] sm:$0xf0]  ;;  %v11445_v47 = vld [vmem:[#allocation8 + $0x504] sm:$0xf] }
 0x47f   :  { %6626 = vmatpush.bf16.msrb.mxu2 %v10508_v4  ;;  %v10476_v4 = vor.u32 %v11481_v23, %v10473_v26  ;;  %v10329_v50 = vld [vmem:[#allocation8 + $0x510] sm:$0xf0]  ;;  %v11521_v14 = vld [vmem:[#allocation8 + $0x764] sm:$0xf] }
 0x480   :  { %6523 = vmatmul.bf16.gmra.mxu2 %v13729_v63  ;;  %v6246_v19 = vpop.f32.mrf.mxu0  ;;  %6653 = vmatpush.bf16.msrb.mxu3 %v10652_v35  ;;  %v10457_v17 = vld [vmem:[#allocation8 + $0x610] sm:$0xf0] }
 0x481   :  { %v6247_v58 = vadd.f32 %v6246_v19, %v13089_v30  ;;  %v6274_v51 = vpop.f32.mrf.mxu1  ;;  %6599 = vmatpush.bf16.msrb.mxu1 %v10364_v24  ;;  %6571 = vmatpush.bf16.msrb.mxu0 %v10236_v40  ;;  %v10204_v19 = vor.u32 %v11413_v2, %v10201_v57  ;;  %v10460_v24 = vor.u32 %v11477_v6, %v10457_v17  ;;  %v10633_v36 = vld [vmem:[#allocation8 + $0x770] sm:$0xf0]  ;;  %v11513_v17 = vld [vmem:[#allocation8 + $0x724] sm:$0xf] }
 0x482   :  { %6449 = vmatmul.bf16.gmra.mxu3 %v13111_v44  ;;  %v10617_v35 = vld [vmem:[#allocation8 + $0x750] sm:$0xf0] }
 0x483   :  { %v6300_v62 = vpop.f32.mrf.mxu2  ;;  %v6328_v9 = vpop.f32.mrf.mxu3  ;;  %6627 = vmatpush.bf16.msrb.mxu2 %v10492_v55 }
 0x484   :  { %v6301_v0 = vadd.f32 %v6300_v62, %v6273_v28  ;;  %v6275_v28 = vadd.f32 %v6274_v51, %v6247_v58  ;;  %v10332_v51 = vor.u32 %v11445_v47, %v10329_v50 }
 0x485   :  { %6600 = vmatpush.bf16.msrb.mxu1 %v10348_v43  ;;  %6572 = vmatpush.bf16.msrb.mxu0 %v10220_v7 }
 0x486   :  { %v13117_v49 = vadd.f32 %v6328_v9, %v6301_v0 }
 0x487   :  { %6628 = vmatpush.bf16.msrb.mxu2 %v10476_v4  ;;  %v11517_v4 = vld [vmem:[#allocation8 + $0x744] sm:$0xf] }
 0x488   :  { %v6249_v9 = vpop.f32.mrf.mxu0  ;;  %6472 = vmatmul.bf16.gmra.mxu0 %v13731_v42 }
 0x489   :  { %v6250_v40 = vadd.f32 %v6249_v9, %v13089_v30  ;;  %v6277_v58 = vpop.f32.mrf.mxu1  ;;  %6601 = vmatpush.bf16.msrb.mxu1 %v10332_v51  ;;  %6573 = vmatpush.bf16.msrb.mxu0 %v10204_v19 }
 0x48b   :  { %v6302_v62 = vpop.f32.mrf.mxu2  ;;  %v13121_v0 = vpop.f32.mrf.mxu3  ;;  %v6278_v55 = vadd.f32 %v6277_v58, %v6250_v40  ;;  %6629 = vmatpush.bf16.msrb.mxu2 %v10460_v24  ;;  %v10601_v40 = vld [vmem:[#allocation8 + $0x730] sm:$0xf0] }
 0x48c   :  { %v13119_v31 = vadd.f32 %v6302_v62, %v6275_v28  ;;  %6500 = vmatmul.bf16.gmra.mxu1 %v13732_v37  ;;  %v10636_v28 = vor.u32 %v11521_v14, %v10633_v36  ;;  %v10620_v62 = vor.u32 %v11517_v4, %v10617_v35  ;;  %v10604_v51 = vor.u32 %v11513_v17, %v10601_v40  ;;  %v10063_v35 = vld [vmem:[#allocation8 + $0x2e8] sm:$0xf] }
 0x48e   :  { %6654 = vmatpush.bf16.msrb.mxu3 %v10636_v28  ;;  %v10585_v28 = vld [vmem:[#allocation8 + $0x710] sm:$0xf0] }
 0x490   :  { %6528 = vmatmul.bf16.gmra.mxu2 %v13733_v61  ;;  %v6251_v26 = vpop.f32.mrf.mxu0 }
 0x491   :  { %v6252_v43 = vadd.f32 %v6251_v26, %v13089_v30  ;;  %v6279_v46 = vpop.f32.mrf.mxu1 }
 0x492   :  { %6546 = vmatmul.bf16.vlgmr.msra.gmra.mxu3 %v13722_v11 }
 0x493   :  { %v6305_v54 = vpop.f32.mrf.mxu2  ;;  %v6333_v23 = vpop.f32.mrf.mxu3  ;;  %v6280_v7 = vadd.f32 %v6279_v46, %v6252_v43  ;;  %6655 = vmatpush.bf16.msrb.mxu3 %v10620_v62  ;;  %v11380_v62 = vld [vmem:[#allocation8 + $0x2f4] sm:$0xf0] }
 0x494   :  { %v6306_v45 = vadd.f32 %v6305_v54, %v6278_v55  ;;  %v11509_v54 = vld [vmem:[#allocation8 + $0x704] sm:$0xf] }
 0x496   :  { %v13129_v16 = vadd.f32 %v6333_v23, %v6306_v45  ;;  %v10588_v45 = vor.u32 %v11509_v54, %v10585_v28  ;;  %v9919_v54 = vld [vmem:[#allocation8 + $0x1c8] sm:$0xf] }
 0x497   :  { %6656 = vmatpush.bf16.msrb.mxu3 %v10604_v51  ;;  %v6326_v51 = vadd.f32 %v13107_v38, %v13105_v53  ;;  %v9775_v38 = vld [vmem:[#allocation8 + $0xa8] sm:$0xf] }
 0x498   :  { %v6254_v9 = vpop.f32.mrf.mxu0  ;;  %6477 = vmatmul.bf16.gmra.mxu0 %v12988_v13 }
 0x499   :  { %v6255_v19 = vadd.f32 %v6254_v9, %v13089_v30  ;;  %v6282_v50 = vpop.f32.mrf.mxu1  ;;  %v10064_v9 = vor.u32 %v11380_v62, %v10063_v35 }
 0x49b   :  { %v6307_v2 = vpop.f32.mrf.mxu2  ;;  %v13133_v47 = vpop.f32.mrf.mxu3  ;;  %v6283_v6 = vadd.f32 %v6282_v50, %v6255_v19  ;;  %6657 = vmatpush.bf16.msrb.mxu3 %v10588_v45  ;;  %v11316_v19 = vld [vmem:[#allocation8 + $0xf4] sm:$0xf0]  ;;  %v9935_v50 = vld [vmem:[#allocation8 + $0x1e8] sm:$0xf]  ;;  %6734 = vmatpush.bf16.msra.mxu2 %v10064_v9 }
 0x49c   :  { %v13131_v57 = vadd.f32 %v6307_v2, %v6280_v7  ;;  %6505 = vmatmul.bf16.gmra.mxu1 %v12990_v33  ;;  %v9807_v2 = vld [vmem:[#allocation8 + $0xe8] sm:$0xf]  ;;  %v11308_v9 = vld [vmem:[#allocation8 + $0xb4] sm:$0xf0] }
 0x49d   :  { %v9808_v17 = vor.u32 %v11316_v19, %v9807_v2  ;;  %v9903_v19 = vld [vmem:[#allocation8 + $0x1a8] sm:$0xf] }
 0x49f   :  { %6678 = vmatpush.bf16.msra.mxu0 %v9808_v17  ;;  %v11372_v17 = vld [vmem:[#allocation8 + $0x2b4] sm:$0xf0] }
 0x4a0   :  { %6533 = vmatmul.bf16.gmra.mxu2 %v12992_v22  ;;  %v6256_v14 = vpop.f32.mrf.mxu0 }
 0x4a1   :  { %v6284_v36 = vpop.f32.mrf.mxu1  ;;  %v9791_v14 = vld [vmem:[#allocation8 + $0xc8] sm:$0xf] }
 0x4a2   :  { %6551 = vmatmul.bf16.gmra.mxu3 %v13730_v3  ;;  %v11312_v36 = vld [vmem:[#allocation8 + $0xd4] sm:$0xf0] }
 0x4a3   :  { %v6310_v58 = vpop.f32.mrf.mxu2  ;;  %v6338_v55 = vpop.f32.mrf.mxu3 }
 0x4a4   :  { %v6311_v24 = vadd.f32 %v6310_v58, %v6283_v6  ;;  %v11348_v6 = vld [vmem:[#allocation8 + $0x1f4] sm:$0xf0] }
 0x4a5   :  { %v9936_v40 = vor.u32 %v11348_v6, %v9935_v50  ;;  %v11412_v58 = vld [vmem:[#allocation8 + $0x3f4] sm:$0xf0]  ;;  %v9776_v50 = vor.u32 %v11308_v9, %v9775_v38  ;;  %v10031_v6 = vld [vmem:[#allocation8 + $0x2a8] sm:$0xf] }
 0x4a6   :  { %v13140_v30 = vadd.f32 %v6338_v55, %v6311_v24  ;;  %v11300_v38 = vld [vmem:[#allocation8 + $0x74] sm:$0xf0]  ;;  %v9871_v9 = vld [vmem:[#allocation8 + $0x168] sm:$0xf] }
 0x4a7   :  { %6706 = vmatpush.bf16.msra.mxu1 %v9936_v40 }
 0x4a8   :  { %v6351_v43 = vpop.f32.mrf.mxu0  ;;  %6574 = vmatmul.bf16.vlgmr.msrb.gmra.mxu0 %v12693_v20 }
 0x4a9   :  { %v6352_v46 = vadd.f32 %v6351_v43, %v13102_v39  ;;  %v6379_v7 = vpop.f32.mrf.mxu1  ;;  %v10191_v39 = vld [vmem:[#allocation8 + $0x3e8] sm:$0xf] }
 0x4aa   :  { %v10192_v55 = vor.u32 %v11412_v58, %v10191_v39  ;;  %v10047_v43 = vld [vmem:[#allocation8 + $0x2c8] sm:$0xf]  ;;  %v10032_v39 = vor.u32 %v11372_v17, %v10031_v6  ;;  %v11364_v6 = vld [vmem:[#allocation8 + $0x274] sm:$0xf0] }
 0x4ab   :  { %v6312_v23 = vpop.f32.mrf.mxu2  ;;  %v6340_v26 = vpop.f32.mrf.mxu3  ;;  %v6380_v4 = vadd.f32 %v6379_v7, %v6352_v46  ;;  %v11376_v46 = vld [vmem:[#allocation8 + $0x2d4] sm:$0xf0] }
 0x4ac   :  { %6602 = vmatmul.bf16.vlgmr.msrb.gmra.mxu1 %v12819_v21  ;;  %v9792_v23 = vor.u32 %v11312_v36, %v9791_v14  ;;  %v11344_v26 = vld [vmem:[#allocation8 + $0x1d4] sm:$0xf0]  ;;  %6762 = vmatpush.bf16.msra.mxu3 %v10192_v55  ;;  %v10048_v2 = vor.u32 %v11376_v46, %v10047_v43  ;;  %v9887_v55 = vld [vmem:[#allocation8 + $0x188] sm:$0xf] }
 0x4ad   :  { %v9920_v62 = vor.u32 %v11344_v26, %v9919_v54  ;;  %v11336_v54 = vld [vmem:[#allocation8 + $0x194] sm:$0xf0] }
 0x4ae   :  { %6679 = vmatpush.bf16.msra.mxu0 %v9792_v23  ;;  %6735 = vmatpush.bf16.msra.mxu2 %v10048_v2  ;;  %v11368_v23 = vld [vmem:[#allocation8 + $0x294] sm:$0xf0]  ;;  %v9743_v2 = vld [vmem:[#allocation8 + $0x68] sm:$0xf] }
 0x4af   :  { %6707 = vmatpush.bf16.msra.mxu1 %v9920_v62 }
 0x4b0   :  { %6630 = vmatmul.bf16.vlgmr.msrb.gmra.mxu2 %v12943_v34  ;;  %v6353_v45 = vpop.f32.mrf.mxu0 }
 0x4b1   :  { %v6354_v7 = vadd.f32 %v6353_v45, %v6326_v51  ;;  %v6381_v35 = vpop.f32.mrf.mxu1  ;;  %v9759_v51 = vld [vmem:[#allocation8 + $0x88] sm:$0xf] }
 0x4b2   :  { %6556 = vmatmul.bf16.gmra.mxu3 %v13734_v27  ;;  %6680 = vmatpush.bf16.msra.mxu0 %v9776_v50  ;;  %v10015_v45 = vld [vmem:[#allocation8 + $0x288] sm:$0xf]  ;;  %v11332_v50 = vld [vmem:[#allocation8 + $0x174] sm:$0xf0] }
 0x4b3   :  { %v6407_v24 = vpop.f32.mrf.mxu2  ;;  %v6382_v53 = vadd.f32 %v6381_v35, %v6354_v7  ;;  %6736 = vmatpush.bf16.msra.mxu2 %v10032_v39  ;;  %v9888_v7 = vor.u32 %v11336_v54, %v9887_v55  ;;  %v10016_v35 = vor.u32 %v11368_v23, %v10015_v45  ;;  %v9872_v17 = vor.u32 %v11332_v50, %v9871_v9  ;;  %v13740_v39 = vld [vmem:[#allocation28_spill] sm:$0xff]  ;;  %v11296_v55 = vld [vmem:[#allocation8 + $0x54] sm:$0xf0] }
 0x4b4   :  { %v13149_v28 = vadd.f32 %v6407_v24, %v6380_v4  ;;  %v11340_v4 = vld [vmem:[#allocation8 + $0x1b4] sm:$0xf0] }
 0x4b5   :  { %v9904_v40 = vor.u32 %v11340_v4, %v9903_v19  ;;  %v11304_v24 = vld [vmem:[#allocation8 + $0x94] sm:$0xf0]  ;;  %v13739_v19 = vld [vmem:[#allocation24_spill] sm:$0xff]  ;;  %v9999_v4 = vld [vmem:[#allocation8 + $0x268] sm:$0xf] }
 0x4b6   :  { %v9760_v46 = vor.u32 %v11304_v24, %v9759_v51  ;;  %v9727_v24 = vld [vmem:[#allocation8 + $0x48] sm:$0xf]  ;;  %v11328_v23 = vld [vmem:[#allocation8 + $0x154] sm:$0xf0] }
 0x4b7   :  { %6708 = vmatpush.bf16.msra.mxu1 %v9904_v40  ;;  %6737 = vmatpush.bf16.msra.mxu2 %v10016_v35  ;;  %v10000_v40 = vor.u32 %v11364_v6, %v9999_v4  ;;  %v9728_v35 = vor.u32 %v11296_v55, %v9727_v24  ;;  %v11408_v9 = vld [vmem:[#allocation8 + $0x3d4] sm:$0xf0]  ;;  %v9711_v4 = vld [vmem:[#allocation8 + $0x28] sm:$0xf] }
 0x4b8   :  { %v6356_v36 = vpop.f32.mrf.mxu0  ;;  %6579 = vmatmul.bf16.gmra.mxu0 %v12716_v29  ;;  %v11292_v6 = vld [vmem:[#allocation8 + $0x34] sm:$0xf0]  ;;  %v9695_v24 = vld [vmem:[#allocation8 + $0x8] sm:$0xf] }
 0x4b9   :  { %v6357_v26 = vadd.f32 %v6356_v36, %v13117_v49  ;;  %v6384_v43 = vpop.f32.mrf.mxu1  ;;  %6681 = vmatpush.bf16.msra.mxu0 %v9760_v46  ;;  %v9744_v49 = vor.u32 %v11300_v38, %v9743_v2  ;;  %v9855_v36 = vld [vmem:[#allocation8 + $0x148] sm:$0xf]  ;;  %v11288_v55 = vld [vmem:[#allocation8 + $0x14] sm:$0xf0] }
 0x4ba   :  { %v9856_v2 = vor.u32 %v11328_v23, %v9855_v36  ;;  %v10175_v38 = vld [vmem:[#allocation8 + $0x3c8] sm:$0xf] }
 0x4bb   :  { %v6409_v58 = vpop.f32.mrf.mxu2  ;;  %v6385_v62 = vadd.f32 %v6384_v43, %v6357_v26  ;;  %6709 = vmatpush.bf16.msra.mxu1 %v9888_v7  ;;  %v9983_v26 = vld [vmem:[#allocation8 + $0x248] sm:$0xf]  ;;  %v11360_v43 = vld [vmem:[#allocation8 + $0x254] sm:$0xf0]  ;;  %6738 = vmatpush.bf16.msra.mxu2 %v10000_v40  ;;  %v10176_v50 = vor.u32 %v11408_v9, %v10175_v38 }
 0x4bc   :  { %v13151_v14 = vadd.f32 %v6409_v58, %v6382_v53  ;;  %v13738_v53 = vld [vmem:[#allocation36_spill] sm:$0xff]  ;;  %v6331_v58 = vadd.f32 %v13121_v0, %v13119_v31  ;;  %v9984_v31 = vor.u32 %v11360_v43, %v9983_v26  ;;  %v9823_v36 = vld [vmem:[#allocation8 + $0x108] sm:$0xf]  ;;  %v11320_v43 = vld [vmem:[#allocation8 + $0x114] sm:$0xf0] }
 0x4bd   :  { %6607 = vmatmul.bf16.gmra.mxu1 %v13738_v53  ;;  %6682 = vmatpush.bf16.msra.mxu0 %v9744_v49  ;;  %v9824_v9 = vor.u32 %v11320_v43, %v9823_v36 }
 0x4be   :  { %6763 = vmatpush.bf16.msra.mxu3 %v10176_v50  ;;  %v11404_v50 = vld [vmem:[#allocation8 + $0x3b4] sm:$0xf0] }
 0x4bf   :  { %6710 = vmatpush.bf16.msra.mxu1 %v9872_v17  ;;  %v11324_v17 = vld [vmem:[#allocation8 + $0x134] sm:$0xf0]  ;;  %6739 = vmatpush.bf16.msra.mxu2 %v9984_v31 }
 0x4c0   :  { %6635 = vmatmul.bf16.gmra.mxu2 %v13739_v19  ;;  %v6358_v45 = vpop.f32.mrf.mxu0 }
 0x4c1   :  { %v6359_v46 = vadd.f32 %v6358_v45, %v6331_v58  ;;  %v6386_v7 = vpop.f32.mrf.mxu1  ;;  %6683 = vmatpush.bf16.msra.mxu0 %v9728_v35  ;;  %v9712_v58 = vor.u32 %v11292_v6, %v9711_v4  ;;  %v9696_v35 = vor.u32 %v11288_v55, %v9695_v24  ;;  %v11400_v24 = vld [vmem:[#allocation8 + $0x394] sm:$0xf0] }
 0x4c2   :  { %6561 = vmatmul.bf16.gmra.mxu3 %v13740_v39  ;;  %v11356_v39 = vld [vmem:[#allocation8 + $0x234] sm:$0xf0] }
 0x4c3   :  { %v6412_v51 = vpop.f32.mrf.mxu2  ;;  %v6387_v0 = vadd.f32 %v6386_v7, %v6359_v46  ;;  %6711 = vmatpush.bf16.msra.mxu1 %v9856_v2  ;;  %v9951_v46 = vld [vmem:[#allocation8 + $0x208] sm:$0xf]  ;;  %v11352_v7 = vld [vmem:[#allocation8 + $0x214] sm:$0xf0] }
 0x4c4   :  { %v13160_v54 = vadd.f32 %v6412_v51, %v6385_v62  ;;  %v9839_v62 = vld [vmem:[#allocation8 + $0x128] sm:$0xf]  ;;  %v9952_v31 = vor.u32 %v11352_v7, %v9951_v46 }
 0x4c5   :  { %v9967_v51 = vld [vmem:[#allocation8 + $0x228] sm:$0xf]  ;;  %v9840_v45 = vor.u32 %v11324_v17, %v9839_v62  ;;  %6684 = vmatpush.bf16.msra.mxu0 %v9712_v58 }
 0x4c6   :  { %v9968_v49 = vor.u32 %v11356_v39, %v9967_v51  ;;  %v10127_v46 = vld [vmem:[#allocation8 + $0x368] sm:$0xf] }
 0x4c7   :  { %6712 = vmatpush.bf16.msra.mxu1 %v9840_v45 }
 0x4c8   :  { %v6361_v26 = vpop.f32.mrf.mxu0  ;;  %6740 = vmatpush.bf16.msra.mxu2 %v9968_v49  ;;  %6584 = vmatmul.bf16.gmra.mxu0 %v12734_v25 }
 0x4c9   :  { %v6362_v2 = vadd.f32 %v6361_v26, %v13129_v16  ;;  %v6389_v38 = vpop.f32.mrf.mxu1  ;;  %6685 = vmatpush.bf16.msra.mxu0 %v9696_v35  ;;  %v6336_v16 = vadd.f32 %v13133_v47, %v13131_v57  ;;  %v11396_v57 = vld [vmem:[#allocation8 + $0x374] sm:$0xf0] }
 0x4cb   :  { %v6414_v40 = vpop.f32.mrf.mxu2  ;;  %v6390_v39 = vadd.f32 %v6389_v38, %v6362_v2  ;;  %6713 = vmatpush.bf16.msra.mxu1 %v9824_v9  ;;  %v10128_v2 = vor.u32 %v11396_v57, %v10127_v46  ;;  %v11388_v46 = vld [vmem:[#allocation8 + $0x334] sm:$0xf0] }
 0x4cc   :  { %v13162_v23 = vadd.f32 %v6414_v40, %v6387_v0  ;;  %v10159_v0 = vld [vmem:[#allocation8 + $0x3a8] sm:$0xf]  ;;  %6741 = vmatpush.bf16.msra.mxu2 %v9952_v31 }
 0x4cd   :  { %6612 = vmatmul.bf16.gmra.mxu1 %v12852_v59  ;;  %v10160_v4 = vor.u32 %v11404_v50, %v10159_v0  ;;  %v10143_v40 = vld [vmem:[#allocation8 + $0x388] sm:$0xf] }
 0x4ce   :  { %v10144_v36 = vor.u32 %v11400_v24, %v10143_v40 }
 0x4cf   :  { %6764 = vmatpush.bf16.msra.mxu3 %v10160_v4 }
 0x4d0   :  { %6640 = vmatmul.bf16.gmra.mxu2 %v13005_v12  ;;  %v6363_v17 = vpop.f32.mrf.mxu0 }
 0x4d1   :  { %v6364_v51 = vadd.f32 %v6363_v17, %v6336_v16  ;;  %v6391_v58 = vpop.f32.mrf.mxu1  ;;  %v10111_v17 = vld [vmem:[#allocation8 + $0x348] sm:$0xf] }
 0x4d2   :  { %6658 = vmatmul.bf16.vlgmr.msrb.gmra.mxu3 %v13050_v18 }
 0x4d3   :  { %v6417_v6 = vpop.f32.mrf.mxu2  ;;  %v6392_v55 = vadd.f32 %v6391_v58, %v6364_v51  ;;  %6765 = vmatpush.bf16.msra.mxu3 %v10144_v36  ;;  %v11392_v51 = vld [vmem:[#allocation8 + $0x354] sm:$0xf0] }
 0x4d4   :  { %v13171_v62 = vadd.f32 %v6417_v6, %v6390_v39 }
 0x4d5   :  { %v6435_v45 = vpop.f32.mrf.mxu3 }
 0x4d6   :  { %v6436_v49 = vadd.f32 %v6435_v45, %v13149_v28  ;;  %v10112_v45 = vor.u32 %v11392_v51, %v10111_v17  ;;  %v11508_v17 = vld [vmem:[#allocation8 + $0x6f4] sm:$0xf0] }
 0x4d7   :  { %6766 = vmatpush.bf16.msra.mxu3 %v10128_v2 }
 0x4d8   :  { %v7154_v26 = vmul.f32 1.442695, %v6436_v49  ;;  %v6366_v7 = vpop.f32.mrf.mxu0  ;;  %6589 = vmatmul.bf16.gmra.mxu0 %v13068_v32  ;;  %vm7126_vm10 = vcmp.gt.f32.partialorder %v6436_v49, 0.0 }
 0x4d9   :  { %v6367_v38 = vadd.f32 %v6366_v7, %v13140_v30  ;;  %v6394_v35 = vpop.f32.mrf.mxu1 }
 0x4da   :  { %11704 = vpow2.f32 %v7154_v26  ;;  %v13189_v26 = vperm.slane %v13085_v41, 1 }
 0x4db   :  { %v6419_v43 = vpop.f32.mrf.mxu2  ;;  %v6395_v31 = vadd.f32 %v6394_v35, %v6367_v38  ;;  %6767 = vmatpush.bf16.msra.mxu3 %v10112_v45  ;;  %v10543_v45 = vld [vmem:[#allocation8 + $0x6a8] sm:$0xf] }
 0x4dc   :  { %v13174_v47 = vadd.f32 %v6419_v43, %v6392_v55  ;;  %v10095_v43 = vld [vmem:[#allocation8 + $0x328] sm:$0xf] }
 0x4dd   :  { %v6437_v9 = vpop.f32.mrf.mxu3  ;;  %6617 = vmatmul.bf16.gmra.mxu1 %v13071_v15  ;;  %v10096_v57 = vor.u32 %v11388_v46, %v10095_v43  ;;  %v11476_v43 = vld [vmem:[#allocation8 + $0x5f4] sm:$0xf0] }
 0x4de   :  { %v6438_v28 = vadd.f32 %v6437_v9, %v13151_v14 }
 0x4df   :  { %6768 = vmatpush.bf16.msra.mxu3 %v10096_v57 }
 0x4e0   :  { %v11705_v39 = vpop.eup %11704  ;;  %v7162_v0 = vmul.f32 1.442695, %v6438_v28  ;;  %6645 = vmatmul.bf16.gmra.mxu2 %v13074_v48  ;;  %v6368_v16 = vpop.f32.mrf.mxu0  ;;  %vm7130_vm11 = vcmp.gt.f32.partialorder %v6438_v28, 0.0 }
 0x4e1   :  { %v10709_v50 = vadd.f32 -1.0, %v11705_v39  ;;  %v6396_v6 = vpop.f32.mrf.mxu1 }
 0x4e2   :  { %11706 = vpow2.f32 %v7162_v0  ;;  %6663 = vmatmul.bf16.gmra.mxu3 %v13080_v52  ;;  %v10079_v0 = vld [vmem:[#allocation8 + $0x308] sm:$0xf] }
 0x4e3   :  { %v6422_v4 = vpop.f32.mrf.mxu2  ;;  %v7238_v40 = vmul.f32 1.6732632, %v10709_v50  ;;  %v11384_v50 = vld [vmem:[#allocation8 + $0x314] sm:$0xf0] }
 0x4e4   :  { %v13182_v30 = vadd.f32 %v6422_v4, %v6395_v31 }
 0x4e5   :  { %v6440_v14 = vpop.f32.mrf.mxu3  ;;  %v7266_v7 = vsel %vm7126_vm10, %v6436_v49, %v7238_v40  ;;  %v10080_v49 = vor.u32 %v11384_v50, %v10079_v0  ;;  %v10431_v0 = vld [vmem:[#allocation8 + $0x5c8] sm:$0xf] }
 0x4e6   :  { %v13185_v58 = vadd.f32 %v6440_v14, %v13160_v54  ;;  %v13192_v41 = vmul.f32 1.050701, %v7266_v7  ;;  %v10575_v14 = vld [vmem:[#allocation8 + $0x6e8] sm:$0xf] }
 0x4e7   :  { %6769 = vmatpush.bf16.msra.mxu3 %v10080_v49 }
 0x4e8   :  { %v11707_v24 = vpop.eup %11706  ;;  %v7170_v55 = vmul.f32 1.442695, %v13185_v58  ;;  %v6463_v54 = vpop.f32.mrf.mxu0  ;;  %13741 = vst [vmem:[#allocation22_spill] sm:$0xff] %v13192_v41  ;;  %6686 = vmatmul.bf16.vlgmr.msra.gmra.mxu0 %v12273_v8  ;;  %vm7134_vm12 = vcmp.gt.f32.partialorder %v13185_v58, 0.0 }
 0x4e9   :  { %v10713_v36 = vadd.f32 -1.0, %v11707_v24  ;;  %v6464_v31 = vadd.f32 %v6463_v54, %v13189_v26  ;;  %v6491_v39 = vpop.f32.mrf.mxu1  ;;  %v10576_v24 = vor.u32 %v11508_v17, %v10575_v14 }
 0x4ea   :  { %11708 = vpow2.f32 %v7170_v55 }
 0x4eb   :  { %v7242_v2 = vmul.f32 1.6732632, %v10713_v36  ;;  %v6424_v38 = vpop.f32.mrf.mxu2  ;;  %v6492_v6 = vadd.f32 %v6491_v39, %v6464_v31  ;;  %v10447_v36 = vld [vmem:[#allocation8 + $0x5e8] sm:$0xf]  ;;  %6846 = vmatpush.bf16.msrb.mxu2 %v10576_v24  ;;  %v11440_v39 = vld [vmem:[#allocation8 + $0x4d4] sm:$0xf0] }
 0x4ec   :  { %v10448_v57 = vor.u32 %v11476_v43, %v10447_v36  ;;  %v11540_v38 = vld [vmem:[#allocation8 + $0x7f4] sm:$0xf0]  ;;  %v10303_v31 = vld [vmem:[#allocation8 + $0x4c8] sm:$0xf] }
 0x4ed   :  { %v7270_v35 = vsel %vm7130_vm11, %v6438_v28, %v7242_v2  ;;  %v6442_v9 = vpop.f32.mrf.mxu3  ;;  %v10319_v28 = vld [vmem:[#allocation8 + $0x4e8] sm:$0xf]  ;;  %6714 = vmatmul.bf16.vlgmr.msra.gmra.mxu1 %v13720_v10  ;;  %v10304_v17 = vor.u32 %v11440_v39, %v10303_v31  ;;  %v11468_v31 = vld [vmem:[#allocation8 + $0x5b4] sm:$0xf0] }
 0x4ee   :  { %v13194_v4 = vmul.f32 1.050701, %v7270_v35  ;;  %v13197_v16 = vadd.f32 %v6442_v9, %v13162_v23  ;;  %v11444_v23 = vld [vmem:[#allocation8 + $0x4f4] sm:$0xf0]  ;;  %v10703_v2 = vld [vmem:[#allocation8 + $0x7e8] sm:$0xf]  ;;  %6818 = vmatpush.bf16.msrb.mxu1 %v10448_v57 }
 0x4ef   :  { %v10320_v55 = vor.u32 %v11444_v23, %v10319_v28  ;;  %v10704_v9 = vor.u32 %v11540_v38, %v10703_v2  ;;  %v11472_v28 = vld [vmem:[#allocation8 + $0x5d4] sm:$0xf0]  ;;  %v10287_v43 = vld [vmem:[#allocation8 + $0x4a8] sm:$0xf] }
 0x4f0   :  { %13742 = vst [vmem:[#allocation26_spill] sm:$0xff] %v13194_v4  ;;  %v11709_v51 = vpop.eup %11708  ;;  %v7178_v40 = vmul.f32 1.442695, %v13197_v16  ;;  %6742 = vmatmul.bf16.vlgmr.msra.gmra.mxu2 %v13721_v60  ;;  %v6465_v35 = vpop.f32.mrf.mxu0  ;;  %v11436_v57 = vld [vmem:[#allocation8 + $0x4b4] sm:$0xf0]  ;;  %vm7138_vm13 = vcmp.gt.f32.partialorder %v13197_v16, 0.0 }
 0x4f1   :  { %v10717_v46 = vadd.f32 -1.0, %v11709_v51  ;;  %6790 = vmatpush.bf16.msrb.mxu0 %v10320_v55  ;;  %v6466_v49 = vadd.f32 %v6465_v35, %v13189_v26  ;;  %v6493_v14 = vpop.f32.mrf.mxu1  ;;  %v10559_v51 = vld [vmem:[#allocation8 + $0x6c8] sm:$0xf]  ;;  %6874 = vmatpush.bf16.msrb.mxu3 %v10704_v9  ;;  %v10288_v35 = vor.u32 %v11436_v57, %v10287_v43  ;;  %v11464_v57 = vld [vmem:[#allocation8 + $0x594] sm:$0xf0] }
 0x4f2   :  { %11710 = vpow2.f32 %v7178_v40  ;;  %6668 = vmatmul.bf16.gmra.mxu3 %v13097_v5  ;;  %v11504_v40 = vld [vmem:[#allocation8 + $0x6d4] sm:$0xf0]  ;;  %v10399_v43 = vld [vmem:[#allocation8 + $0x588] sm:$0xf] }
 0x4f3   :  { %v6519_v7 = vpop.f32.mrf.mxu2  ;;  %v7246_v24 = vmul.f32 1.6732632, %v10717_v46  ;;  %v10560_v55 = vor.u32 %v11504_v40, %v10559_v51  ;;  %v6494_v36 = vadd.f32 %v6493_v14, %v6466_v49  ;;  %v10271_v51 = vld [vmem:[#allocation8 + $0x488] sm:$0xf]  ;;  %v11432_v40 = vld [vmem:[#allocation8 + $0x494] sm:$0xf0] }
 0x4f4   :  { %v13206_v54 = vadd.f32 %v6519_v7, %v6492_v6  ;;  %v10432_v6 = vor.u32 %v11472_v28, %v10431_v0  ;;  %v10415_v7 = vld [vmem:[#allocation8 + $0x5a8] sm:$0xf] }
 0x4f5   :  { %v6445_v50 = vpop.f32.mrf.mxu3  ;;  %6791 = vmatpush.bf16.msrb.mxu0 %v10304_v17  ;;  %6847 = vmatpush.bf16.msrb.mxu2 %v10560_v55  ;;  %v10416_v46 = vor.u32 %v11468_v31, %v10415_v7  ;;  %v10687_v0 = vld [vmem:[#allocation8 + $0x7c8] sm:$0xf]  ;;  %v7274_v49 = vsel %vm7134_vm12, %v13185_v58, %v7246_v24  ;;  %v10272_v58 = vor.u32 %v11432_v40, %v10271_v51  ;;  %v11496_v31 = vld [vmem:[#allocation8 + $0x694] sm:$0xf0] }
 0x4f6   :  { %v13210_v23 = vadd.f32 %v6445_v50, %v13171_v62  ;;  %6819 = vmatpush.bf16.msrb.mxu1 %v10432_v6  ;;  %v11500_v62 = vld [vmem:[#allocation8 + $0x6b4] sm:$0xf0]  ;;  %v10527_v7 = vld [vmem:[#allocation8 + $0x688] sm:$0xf]  ;;  %v10400_v24 = vor.u32 %v11464_v57, %v10399_v43 }
 0x4f7   :  { %v10544_v9 = vor.u32 %v11500_v62, %v10543_v45  ;;  %v11536_v50 = vld [vmem:[#allocation8 + $0x7d4] sm:$0xf0]  ;;  %v10511_v40 = vld [vmem:[#allocation8 + $0x668] sm:$0xf] }
 0x4f8   :  { %v11711_v2 = vpop.eup %11710  ;;  %v7186_v38 = vmul.f32 1.442695, %v13210_v23  ;;  %v10688_v28 = vor.u32 %v11536_v50, %v10687_v0  ;;  %v6468_v55 = vpop.f32.mrf.mxu0  ;;  %6691 = vmatmul.bf16.gmra.mxu0 %v13727_v56  ;;  %v10255_v0 = vld [vmem:[#allocation8 + $0x468] sm:$0xf]  ;;  %v11428_v50 = vld [vmem:[#allocation8 + $0x474] sm:$0xf0] }
 0x4f9   :  { %v10721_v39 = vadd.f32 -1.0, %v11711_v2  ;;  %6792 = vmatpush.bf16.msrb.mxu0 %v10288_v35  ;;  %6848 = vmatpush.bf16.msrb.mxu2 %v10544_v9  ;;  %v6469_v45 = vadd.f32 %v6468_v55, %v13189_v26  ;;  %v11492_v55 = vld [vmem:[#allocation8 + $0x674] sm:$0xf0]  ;;  %v10479_v4 = vld [vmem:[#allocation8 + $0x628] sm:$0xf]  ;;  %vm7142_vm14 = vcmp.gt.f32.partialorder %v13210_v23, 0.0 }
 0x4fa   :  { %11712 = vpow2.f32 %v7186_v38  ;;  %6820 = vmatpush.bf16.msrb.mxu1 %v10416_v46  ;;  %v6496_v38 = vpop.f32.mrf.mxu1  ;;  %6875 = vmatpush.bf16.msrb.mxu3 %v10688_v28  ;;  %v10528_v46 = vor.u32 %v11496_v31, %v10527_v7  ;;  %v10512_v57 = vor.u32 %v11492_v55, %v10511_v40  ;;  %v10671_v7 = vld [vmem:[#allocation8 + $0x7a8] sm:$0xf]  ;;  %v11488_v40 = vld [vmem:[#allocation8 + $0x654] sm:$0xf0] }
 0x4fb   :  { %v7250_v14 = vmul.f32 1.6732632, %v10721_v39  ;;  %v6521_v17 = vpop.f32.mrf.mxu2  ;;  %v6497_v9 = vadd.f32 %v6496_v38, %v6469_v45  ;;  %v10239_v31 = vld [vmem:[#allocation8 + $0x448] sm:$0xf] }
 0x4fc   :  { %v13216_v6 = vadd.f32 %v6521_v17, %v6494_v36  ;;  %v13222_v36 = vmul.f32 1.050701, %v7274_v49  ;;  %v10383_v17 = vld [vmem:[#allocation8 + $0x568] sm:$0xf]  ;;  %v10256_v49 = vor.u32 %v11428_v50, %v10255_v0  ;;  %v11456_v0 = vld [vmem:[#allocation8 + $0x554] sm:$0xf0] }
 0x4fd   :  { %v6447_v2 = vpop.f32.mrf.mxu3  ;;  %v7278_v35 = vsel %vm7138_vm13, %v13197_v16, %v7250_v14  ;;  %6719 = vmatmul.bf16.gmra.mxu1 %v13728_v1  ;;  %v11460_v16 = vld [vmem:[#allocation8 + $0x574] sm:$0xf0]  ;;  %6793 = vmatpush.bf16.msrb.mxu0 %v10272_v58  ;;  %v10495_v50 = vld [vmem:[#allocation8 + $0x648] sm:$0xf] }
 0x4fe   :  { %13743 = vst [vmem:[#allocation30_spill] sm:$0xff] %v13222_v36  ;;  %v13225_v39 = vadd.f32 %v6447_v2, %v13174_v47  ;;  %v13227_v62 = vmul.f32 1.050701, %v7278_v35  ;;  %6821 = vmatpush.bf16.msrb.mxu1 %v10400_v24  ;;  %v10384_v14 = vor.u32 %v11460_v16, %v10383_v17  ;;  %6849 = vmatpush.bf16.msrb.mxu2 %v10528_v46  ;;  %v11532_v2 = vld [vmem:[#allocation8 + $0x7b4] sm:$0xf0] }
 0x4ff   :  { %v10672_v38 = vor.u32 %v11532_v2, %v10671_v7  ;;  %v11424_v35 = vld [vmem:[#allocation8 + $0x454] sm:$0xf0]  ;;  %v10367_v24 = vld [vmem:[#allocation8 + $0x548] sm:$0xf] }
 0x500   :  { %13744 = vst [vmem:[#allocation34_spill] sm:$0xff] %v13227_v62  ;;  %v11713_v28 = vpop.eup %11712  ;;  %v7194_v51 = vmul.f32 1.442695, %v13225_v39  ;;  %6747 = vmatmul.bf16.gmra.mxu2 %v13729_v63  ;;  %v6470_v58 = vpop.f32.mrf.mxu0  ;;  %v10240_v46 = vor.u32 %v11424_v35, %v10239_v31  ;;  %v10368_v16 = vor.u32 %v11456_v0, %v10367_v24  ;;  %v10223_v2 = vld [vmem:[#allocation8 + $0x428] sm:$0xf]  ;;  %vm7146_vm15 = vcmp.gt.f32.partialorder %v13225_v39, 0.0 }
 0x501   :  { %v10725_v43 = vadd.f32 -1.0, %v11713_v28  ;;  %v6471_v28 = vadd.f32 %v6470_v58, %v13189_v26  ;;  %6794 = vmatpush.bf16.msrb.mxu0 %v10256_v49  ;;  %6876 = vmatpush.bf16.msrb.mxu3 %v10672_v38  ;;  %v10351_v36 = vld [vmem:[#allocation8 + $0x528] sm:$0xf]  ;;  %v11452_v62 = vld [vmem:[#allocation8 + $0x534] sm:$0xf0] }
 0x502   :  { %11714 = vpow2.f32 %v7194_v51  ;;  %6673 = vmatmul.bf16.gmra.mxu3 %v13111_v44  ;;  %v6498_v51 = vpop.f32.mrf.mxu1  ;;  %6822 = vmatpush.bf16.msrb.mxu1 %v10384_v14  ;;  %v11484_v44 = vld [vmem:[#allocation8 + $0x634] sm:$0xf0]  ;;  %v10352_v31 = vor.u32 %v11452_v62, %v10351_v36  ;;  %v10335_v62 = vld [vmem:[#allocation8 + $0x508] sm:$0xf] }
 0x503   :  { %v6524_v45 = vpop.f32.mrf.mxu2  ;;  %v7254_v55 = vmul.f32 1.6732632, %v10725_v43  ;;  %6850 = vmatpush.bf16.msrb.mxu2 %v10512_v57  ;;  %v6499_v47 = vadd.f32 %v6498_v51, %v6471_v28  ;;  %v10655_v43 = vld [vmem:[#allocation8 + $0x788] sm:$0xf]  ;;  %v11528_v35 = vld [vmem:[#allocation8 + $0x794] sm:$0xf0] }
 0x504   :  { %v13236_v41 = vadd.f32 %v6524_v45, %v6497_v9  ;;  %v10496_v9 = vor.u32 %v11488_v40, %v10495_v50  ;;  %v11420_v45 = vld [vmem:[#allocation8 + $0x434] sm:$0xf0]  ;;  %v10656_v57 = vor.u32 %v11528_v35, %v10655_v43  ;;  %v10207_v50 = vld [vmem:[#allocation8 + $0x408] sm:$0xf] }
 0x505   :  { %v6450_v17 = vpop.f32.mrf.mxu3  ;;  %6795 = vmatpush.bf16.msrb.mxu0 %v10240_v46  ;;  %v10224_v14 = vor.u32 %v11420_v45, %v10223_v2  ;;  %v7282_v38 = vsel %vm7142_vm14, %v13210_v23, %v7254_v55  ;;  %v11448_v46 = vld [vmem:[#allocation8 + $0x514] sm:$0xf0] }
 0x506   :  { %v13240_v7 = vadd.f32 %v6450_v17, %v13182_v30  ;;  %6823 = vmatpush.bf16.msrb.mxu1 %v10368_v16  ;;  %v10480_v30 = vor.u32 %v11484_v44, %v10479_v4  ;;  %v11416_v17 = vld [vmem:[#allocation8 + $0x414] sm:$0xf0]  ;;  %6877 = vmatpush.bf16.msrb.mxu3 %v10656_v57  ;;  %v10463_v16 = vld [vmem:[#allocation8 + $0x608] sm:$0xf]  ;;  %v10336_v44 = vor.u32 %v11448_v46, %v10335_v62 }
 0x507   :  { %6851 = vmatpush.bf16.msrb.mxu2 %v10496_v9  ;;  %v10208_v36 = vor.u32 %v11416_v17, %v10207_v50  ;;  %v11480_v4 = vld [vmem:[#allocation8 + $0x614] sm:$0xf0]  ;;  %v10623_v17 = vld [vmem:[#allocation8 + $0x748] sm:$0xf] }
 0x508   :  { %13745 = vst [vmem:[#allocation21_spill] sm:$0xff] %v13240_v7  ;;  %v11715_v58 = vpop.eup %11714  ;;  %v6473_v51 = vpop.f32.mrf.mxu0  ;;  %v10464_v55 = vor.u32 %v11480_v4, %v10463_v16  ;;  %6696 = vmatmul.bf16.gmra.mxu0 %v13731_v42  ;;  %v10481_v7 = vld [vmem:[#allocation8 + $0x638] sm:$0xf0] }
 0x509   :  { %v10729_v49 = vadd.f32 -1.0, %v11715_v58  ;;  %v6474_v2 = vadd.f32 %v6473_v51, %v13189_v26  ;;  %6796 = vmatpush.bf16.msrb.mxu0 %v10224_v14  ;;  %v11524_v14 = vld [vmem:[#allocation8 + $0x774] sm:$0xf0] }
 0x50a   :  { %v6501_v9 = vpop.f32.mrf.mxu1  ;;  %6824 = vmatpush.bf16.msrb.mxu1 %v10352_v31  ;;  %v11520_v51 = vld [vmem:[#allocation8 + $0x754] sm:$0xf0] }
 0x50b   :  { %v7258_v24 = vmul.f32 1.6732632, %v10729_v49  ;;  %v6526_v0 = vpop.f32.mrf.mxu2  ;;  %6852 = vmatpush.bf16.msrb.mxu2 %v10480_v30  ;;  %v6502_v58 = vadd.f32 %v6501_v9, %v6474_v2  ;;  %v11322_v49 = vld [vmem:[#allocation8 + $0x12c] sm:$0xf] }
 0x50c   :  { %v13245_v28 = vadd.f32 %v6526_v0, %v6499_v47  ;;  %v13251_v47 = vmul.f32 1.050701, %v7282_v38 }
 0x50d   :  { %v6452_v40 = vpop.f32.mrf.mxu3  ;;  %v7286_v23 = vsel %vm7146_vm15, %v13225_v39, %v7258_v24  ;;  %6724 = vmatmul.bf16.gmra.mxu1 %v13732_v37  ;;  %6797 = vmatpush.bf16.msrb.mxu0 %v10208_v36  ;;  %v10639_v39 = vld [vmem:[#allocation8 + $0x768] sm:$0xf]  ;;  %v10624_v36 = vor.u32 %v11520_v51, %v10623_v17 }
 0x50e   :  { %13746 = vst [vmem:[#allocation25_spill] sm:$0xff] %v13251_v47  ;;  %v13253_v45 = vmul.f32 1.050701, %v7286_v23  ;;  %6825 = vmatpush.bf16.msrb.mxu1 %v10336_v44  ;;  %v10640_v43 = vor.u32 %v11524_v14, %v10639_v39  ;;  %v11516_v23 = vld [vmem:[#allocation8 + $0x734] sm:$0xf0] }
 0x50f   :  { %6853 = vmatpush.bf16.msrb.mxu2 %v10464_v55  ;;  %v9841_v47 = vld [vmem:[#allocation8 + $0x138] sm:$0xf0] }
 0x510   :  { %13747 = vst [vmem:[#allocation29_spill] sm:$0xff] %v13253_v45  ;;  %6752 = vmatmul.bf16.gmra.mxu2 %v13733_v61  ;;  %v6475_v30 = vpop.f32.mrf.mxu0  ;;  %6878 = vmatpush.bf16.msrb.mxu3 %v10640_v43  ;;  %v10591_v43 = vld [vmem:[#allocation8 + $0x708] sm:$0xf]  ;;  %v11354_v45 = vld [vmem:[#allocation8 + $0x22c] sm:$0xf] }
 0x511   :  { %v6476_v57 = vadd.f32 %v6475_v30, %v13189_v26  ;;  %v11512_v30 = vld [vmem:[#allocation8 + $0x714] sm:$0xf0] }
 0x512   :  { %6770 = vmatmul.bf16.vlgmr.msra.gmra.mxu3 %v13722_v11  ;;  %v6503_v38 = vpop.f32.mrf.mxu1 }
 0x513   :  { %v6529_v31 = vpop.f32.mrf.mxu2  ;;  %v6504_v50 = vadd.f32 %v6503_v38, %v6476_v57  ;;  %v10592_v57 = vor.u32 %v11512_v30, %v10591_v43  ;;  %v11342_v43 = vld [vmem:[#allocation8 + $0x1cc] sm:$0xf] }
 0x514   :  { %v13261_v35 = vadd.f32 %v6529_v31, %v6502_v58  ;;  %6879 = vmatpush.bf16.msrb.mxu3 %v10624_v36 }
 0x515   :  { %v6547_v24 = vpop.f32.mrf.mxu3 }
 0x516   :  { %v6548_v0 = vadd.f32 %v6547_v24, %v13206_v54  ;;  %v10607_v54 = vld [vmem:[#allocation8 + $0x728] sm:$0xf] }
 0x517   :  { %v10608_v58 = vor.u32 %v11516_v23, %v10607_v54  ;;  %v9937_v54 = vld [vmem:[#allocation8 + $0x1f8] sm:$0xf0] }
 0x518   :  { %v6478_v16 = vpop.f32.mrf.mxu0  ;;  %6701 = vmatmul.bf16.gmra.mxu0 %v12988_v13 }
 0x519   :  { %v6479_v40 = vadd.f32 %v6478_v16, %v13189_v26  ;;  %6880 = vmatpush.bf16.msrb.mxu3 %v10608_v58  ;;  %v11378_v16 = vld [vmem:[#allocation8 + $0x2ec] sm:$0xf] }
 0x51a   :  { %v6506_v2 = vpop.f32.mrf.mxu1 }
 0x51b   :  { %v6531_v62 = vpop.f32.mrf.mxu2  ;;  %v6507_v4 = vadd.f32 %v6506_v2, %v6479_v40  ;;  %v10065_v40 = vld [vmem:[#allocation8 + $0x2f8] sm:$0xf0]  ;;  %v11314_v2 = vld [vmem:[#allocation8 + $0xec] sm:$0xf] }
 0x51c   :  { %v13265_v46 = vadd.f32 %v6531_v62, %v6504_v50 }
 0x51d   :  { %v6549_v9 = vpop.f32.mrf.mxu3  ;;  %6729 = vmatmul.bf16.gmra.mxu1 %v12990_v33  ;;  %6881 = vmatpush.bf16.msrb.mxu3 %v10592_v57 }
 0x51e   :  { %v6550_v44 = vadd.f32 %v6549_v9, %v13216_v6  ;;  %v9809_v9 = vld [vmem:[#allocation8 + $0xf8] sm:$0xf0] }
 0x51f   :  { %v9812_v23 = vor.u32 %v11314_v2, %v9809_v9 }
 0x520   :  { %6757 = vmatmul.bf16.gmra.mxu2 %v12992_v22  ;;  %v6480_v26 = vpop.f32.mrf.mxu0 }
 0x521   :  { %6902 = vmatpush.bf16.msra.mxu0 %v9812_v23  ;;  %v11338_v23 = vld [vmem:[#allocation8 + $0x1ac] sm:$0xf] }
 0x522   :  { %6775 = vmatmul.bf16.gmra.mxu3 %v13730_v3  ;;  %v6508_v14 = vpop.f32.mrf.mxu1 }
 0x523   :  { %v6534_v55 = vpop.f32.mrf.mxu2  ;;  %v11310_v14 = vld [vmem:[#allocation8 + $0xcc] sm:$0xf] }
 0x524   :  { %v13273_v39 = vadd.f32 %v6534_v55, %v6507_v4  ;;  %v11346_v4 = vld [vmem:[#allocation8 + $0x1ec] sm:$0xf]  ;;  %v10193_v55 = vld [vmem:[#allocation8 + $0x3f8] sm:$0xf0] }
 0x525   :  { %v6552_v31 = vpop.f32.mrf.mxu3 }
 0x526   :  { %v13276_v6 = vadd.f32 %v6552_v31, %v13236_v41  ;;  %v10068_v41 = vor.u32 %v11378_v16, %v10065_v40  ;;  %v9793_v31 = vld [vmem:[#allocation8 + $0xd8] sm:$0xf0] }
 0x528   :  { %v6575_v24 = vpop.f32.mrf.mxu0  ;;  %6798 = vmatmul.bf16.vlgmr.msrb.gmra.mxu0 %v12693_v20  ;;  %6958 = vmatpush.bf16.msra.mxu2 %v10068_v41 }
 0x529   :  { %v6576_v17 = vadd.f32 %v6575_v24, %v6548_v0  ;;  %v9940_v0 = vor.u32 %v11346_v4, %v9937_v54  ;;  %v9921_v24 = vld [vmem:[#allocation8 + $0x1d8] sm:$0xf0]  ;;  %v11306_v54 = vld [vmem:[#allocation8 + $0xac] sm:$0xf] }
 0x52a   :  { %v6603_v51 = vpop.f32.mrf.mxu1  ;;  %v9924_v2 = vor.u32 %v11342_v43, %v9921_v24  ;;  %v9761_v43 = vld [vmem:[#allocation8 + $0x98] sm:$0xf0] }
 0x52b   :  { %v6536_v38 = vpop.f32.mrf.mxu2  ;;  %v6604_v62 = vadd.f32 %v6603_v51, %v6576_v17  ;;  %6930 = vmatpush.bf16.msra.mxu1 %v9940_v0  ;;  %v10049_v17 = vld [vmem:[#allocation8 + $0x2d8] sm:$0xf0] }
 0x52c   :  { %v9796_v38 = vor.u32 %v11310_v14, %v9793_v31  ;;  %v9889_v24 = vld [vmem:[#allocation8 + $0x198] sm:$0xf0] }
 0x52d   :  { %v6554_v50 = vpop.f32.mrf.mxu3  ;;  %6826 = vmatmul.bf16.vlgmr.msrb.gmra.mxu1 %v12819_v21 }
 0x52e   :  { %v13279_v36 = vadd.f32 %v6554_v50, %v13245_v28  ;;  %v11410_v28 = vld [vmem:[#allocation8 + $0x3ec] sm:$0xf]  ;;  %6903 = vmatpush.bf16.msra.mxu0 %v9796_v38 }
 0x52f   :  { %v10196_v26 = vor.u32 %v11410_v28, %v10193_v55  ;;  %v11374_v50 = vld [vmem:[#allocation8 + $0x2cc] sm:$0xf]  ;;  %6931 = vmatpush.bf16.msra.mxu1 %v9924_v2  ;;  %v9905_v28 = vld [vmem:[#allocation8 + $0x1b8] sm:$0xf0] }
 0x530   :  { %6854 = vmatmul.bf16.vlgmr.msrb.gmra.mxu2 %v12943_v34  ;;  %v6577_v57 = vpop.f32.mrf.mxu0  ;;  %v10052_v41 = vor.u32 %v11374_v50, %v10049_v17  ;;  %v11370_v55 = vld [vmem:[#allocation8 + $0x2ac] sm:$0xf]  ;;  %v9908_v14 = vor.u32 %v11338_v23, %v9905_v28  ;;  %v10017_v17 = vld [vmem:[#allocation8 + $0x298] sm:$0xf0] }
 0x531   :  { %v6578_v16 = vadd.f32 %v6577_v57, %v6550_v44  ;;  %6986 = vmatpush.bf16.msra.mxu3 %v10196_v26  ;;  %v11302_v26 = vld [vmem:[#allocation8 + $0x8c] sm:$0xf] }
 0x532   :  { %6780 = vmatmul.bf16.gmra.mxu3 %v13734_v27  ;;  %v6605_v40 = vpop.f32.mrf.mxu1  ;;  %6959 = vmatpush.bf16.msra.mxu2 %v10052_v41  ;;  %v11366_v50 = vld [vmem:[#allocation8 + $0x28c] sm:$0xf]  ;;  %v9764_v2 = vor.u32 %v11302_v26, %v9761_v43 }
 0x533   :  { %v6631_v58 = vpop.f32.mrf.mxu2  ;;  %v6606_v4 = vadd.f32 %v6605_v40, %v6578_v16  ;;  %6932 = vmatpush.bf16.msra.mxu1 %v9908_v14  ;;  %v11330_v28 = vld [vmem:[#allocation8 + $0x16c] sm:$0xf] }
 0x534   :  { %v13285_v30 = vadd.f32 %v6631_v58, %v6604_v62  ;;  %v9777_v62 = vld [vmem:[#allocation8 + $0xb8] sm:$0xf0]  ;;  %v11294_v43 = vld [vmem:[#allocation8 + $0x4c] sm:$0xf] }
 0x535   :  { %v6557_v51 = vpop.f32.mrf.mxu3  ;;  %v9780_v0 = vor.u32 %v11306_v54, %v9777_v62  ;;  %v10033_v58 = vld [vmem:[#allocation8 + $0x2b8] sm:$0xf0]  ;;  %v10020_v54 = vor.u32 %v11366_v50, %v10017_v17 }
 0x536   :  { %v13288_v9 = vadd.f32 %v6557_v51, %v13261_v35  ;;  %v10036_v44 = vor.u32 %v11370_v55, %v10033_v58  ;;  %v11334_v35 = vld [vmem:[#allocation8 + $0x18c] sm:$0xf]  ;;  %v9873_v55 = vld [vmem:[#allocation8 + $0x178] sm:$0xf0] }
 0x537   :  { %6904 = vmatpush.bf16.msra.mxu0 %v9780_v0  ;;  %v9892_v41 = vor.u32 %v11334_v35, %v9889_v24  ;;  %v9745_v0 = vld [vmem:[#allocation8 + $0x78] sm:$0xf0] }
 0x538   :  { %v6580_v38 = vpop.f32.mrf.mxu0  ;;  %6960 = vmatpush.bf16.msra.mxu2 %v10036_v44  ;;  %6803 = vmatmul.bf16.gmra.mxu0 %v12716_v29  ;;  %v10001_v58 = vld [vmem:[#allocation8 + $0x278] sm:$0xf0]  ;;  %v9876_v44 = vor.u32 %v11330_v28, %v9873_v55  ;;  %v11406_v28 = vld [vmem:[#allocation8 + $0x3cc] sm:$0xf] }
 0x539   :  { %v6581_v16 = vadd.f32 %v6580_v38, %v13276_v6  ;;  %6933 = vmatpush.bf16.msra.mxu1 %v9892_v41  ;;  %v11362_v6 = vld [vmem:[#allocation8 + $0x26c] sm:$0xf]  ;;  %v9729_v35 = vld [vmem:[#allocation8 + $0x58] sm:$0xf0] }
 0x53a   :  { %v6608_v40 = vpop.f32.mrf.mxu1  ;;  %v11326_v38 = vld [vmem:[#allocation8 + $0x14c] sm:$0xf]  ;;  %v9857_v17 = vld [vmem:[#allocation8 + $0x158] sm:$0xf0] }
 0x53b   :  { %v6633_v31 = vpop.f32.mrf.mxu2  ;;  %v6609_v23 = vadd.f32 %v6608_v40, %v6581_v16  ;;  %6905 = vmatpush.bf16.msra.mxu0 %v9764_v2  ;;  %v9985_v16 = vld [vmem:[#allocation8 + $0x258] sm:$0xf0] }
 0x53c   :  { %v13290_v57 = vadd.f32 %v6633_v31, %v6606_v4  ;;  %v11298_v4 = vld [vmem:[#allocation8 + $0x6c] sm:$0xf]  ;;  %6961 = vmatpush.bf16.msra.mxu2 %v10020_v54  ;;  %v13748_v31 = vld [vmem:[#allocation28_spill] sm:$0xff]  ;;  %v9732_v54 = vor.u32 %v11294_v43, %v9729_v35  ;;  %v10177_v55 = vld [vmem:[#allocation8 + $0x3d8] sm:$0xf0] }
 0x53d   :  { %v6559_v51 = vpop.f32.mrf.mxu3  ;;  %6831 = vmatmul.bf16.gmra.mxu1 %v13738_v53  ;;  %v9748_v14 = vor.u32 %v11298_v4, %v9745_v0  ;;  %v9860_v4 = vor.u32 %v11326_v38, %v9857_v17  ;;  %v11286_v35 = vld [vmem:[#allocation8 + $0xc] sm:$0xf]  ;;  %v9697_v38 = vld [vmem:[#allocation8 + $0x18] sm:$0xf0] }
 0x53e   :  { %v13294_v62 = vadd.f32 %v6559_v51, %v13265_v46  ;;  %v10004_v46 = vor.u32 %v11362_v6, %v10001_v58  ;;  %6934 = vmatpush.bf16.msra.mxu1 %v9876_v44  ;;  %v11358_v51 = vld [vmem:[#allocation8 + $0x24c] sm:$0xf]  ;;  %v10180_v58 = vor.u32 %v11406_v28, %v10177_v55 }
 0x53f   :  { %6906 = vmatpush.bf16.msra.mxu0 %v9748_v14  ;;  %v9988_v6 = vor.u32 %v11358_v51, %v9985_v16  ;;  %v11290_v44 = vld [vmem:[#allocation8 + $0x2c] sm:$0xf]  ;;  %v9825_v16 = vld [vmem:[#allocation8 + $0x118] sm:$0xf0] }
 0x540   :  { %6859 = vmatmul.bf16.gmra.mxu2 %v13739_v19  ;;  %v6582_v50 = vpop.f32.mrf.mxu0  ;;  %6987 = vmatpush.bf16.msra.mxu3 %v10180_v58  ;;  %v11402_v55 = vld [vmem:[#allocation8 + $0x3ac] sm:$0xf] }
 0x541   :  { %v6583_v2 = vadd.f32 %v6582_v50, %v13279_v36  ;;  %6962 = vmatpush.bf16.msra.mxu2 %v10004_v46  ;;  %v9969_v36 = vld [vmem:[#allocation8 + $0x238] sm:$0xf0]  ;;  %v9844_v46 = vor.u32 %v11322_v49, %v9841_v47  ;;  %v11318_v50 = vld [vmem:[#allocation8 + $0x10c] sm:$0xf] }
 0x542   :  { %6785 = vmatmul.bf16.gmra.mxu3 %v13748_v31  ;;  %v6610_v41 = vpop.f32.mrf.mxu1  ;;  %6935 = vmatpush.bf16.msra.mxu1 %v9860_v4  ;;  %v9972_v43 = vor.u32 %v11354_v45, %v9969_v36  ;;  %v9828_v47 = vor.u32 %v11318_v50, %v9825_v16  ;;  %v11394_v16 = vld [vmem:[#allocation8 + $0x36c] sm:$0xf] }
 0x543   :  { %v6636_v26 = vpop.f32.mrf.mxu2  ;;  %6907 = vmatpush.bf16.msra.mxu0 %v9732_v54  ;;  %v9700_v54 = vor.u32 %v11286_v35, %v9697_v38 }
 0x544   :  { %v13300_v24 = vadd.f32 %v6636_v26, %v6609_v23  ;;  %v6611_v23 = vadd.f32 %v6610_v41, %v6583_v2  ;;  %v9713_v26 = vld [vmem:[#allocation8 + $0x38] sm:$0xf0] }
 0x545   :  { %v6562_v40 = vpop.f32.mrf.mxu3  ;;  %v9716_v14 = vor.u32 %v11290_v44, %v9713_v26  ;;  %6963 = vmatpush.bf16.msra.mxu2 %v9988_v6  ;;  %v9953_v2 = vld [vmem:[#allocation8 + $0x218] sm:$0xf0] }
 0x546   :  { %v13304_v0 = vadd.f32 %v6562_v40, %v13273_v39  ;;  %6936 = vmatpush.bf16.msra.mxu1 %v9844_v46  ;;  %v11350_v40 = vld [vmem:[#allocation8 + $0x20c] sm:$0xf]  ;;  %v10161_v6 = vld [vmem:[#allocation8 + $0x3b8] sm:$0xf0] }
 0x547   :  { %6908 = vmatpush.bf16.msra.mxu0 %v9716_v14  ;;  %v9956_v45 = vor.u32 %v11350_v40, %v9953_v2  ;;  %v10129_v40 = vld [vmem:[#allocation8 + $0x378] sm:$0xf0] }
 0x548   :  { %v6585_v51 = vpop.f32.mrf.mxu0  ;;  %6808 = vmatmul.bf16.gmra.mxu0 %v12734_v25 }
 0x549   :  { %v6586_v4 = vadd.f32 %v6585_v51, %v13288_v9  ;;  %6964 = vmatpush.bf16.msra.mxu2 %v9972_v43  ;;  %v11398_v43 = vld [vmem:[#allocation8 + $0x38c] sm:$0xf] }
 0x54a   :  { %v6613_v28 = vpop.f32.mrf.mxu1  ;;  %6937 = vmatpush.bf16.msra.mxu1 %v9828_v47 }
 0x54b   :  { %v6638_v39 = vpop.f32.mrf.mxu2  ;;  %v6614_v49 = vadd.f32 %v6613_v28, %v6586_v4  ;;  %6909 = vmatpush.bf16.msra.mxu0 %v9700_v54  ;;  %v10132_v4 = vor.u32 %v11394_v16, %v10129_v40  ;;  %v11386_v16 = vld [vmem:[#allocation8 + $0x32c] sm:$0xf]  ;;  %v10097_v40 = vld [vmem:[#allocation8 + $0x338] sm:$0xf0] }
 0x54c   :  { %v13306_v17 = vadd.f32 %v6638_v39, %v6611_v23  ;;  %v10164_v23 = vor.u32 %v11402_v55, %v10161_v6  ;;  %v10145_v39 = vld [vmem:[#allocation8 + $0x398] sm:$0xf0] }
 0x54d   :  { %v6564_v41 = vpop.f32.mrf.mxu3  ;;  %6836 = vmatmul.bf16.gmra.mxu1 %v12852_v59  ;;  %6965 = vmatpush.bf16.msra.mxu2 %v9956_v45  ;;  %v10148_v38 = vor.u32 %v11398_v43, %v10145_v39 }
 0x54e   :  { %6988 = vmatpush.bf16.msra.mxu3 %v10164_v23 }
 0x550   :  { %6864 = vmatmul.bf16.gmra.mxu2 %v13005_v12  ;;  %v6587_v44 = vpop.f32.mrf.mxu0 }
 0x551   :  { %v6588_v26 = vadd.f32 %v6587_v44, %v13294_v62  ;;  %v11390_v44 = vld [vmem:[#allocation8 + $0x34c] sm:$0xf] }
 0x552   :  { %6882 = vmatmul.bf16.vlgmr.msrb.gmra.mxu3 %v13050_v18  ;;  %v6615_v36 = vpop.f32.mrf.mxu1 }
 0x553   :  { %v6641_v9 = vpop.f32.mrf.mxu2  ;;  %v6616_v35 = vadd.f32 %v6615_v36, %v6588_v26  ;;  %6989 = vmatpush.bf16.msra.mxu3 %v10148_v38  ;;  %v10113_v26 = vld [vmem:[#allocation8 + $0x358] sm:$0xf0] }
 0x554   :  { %v13313_v58 = vadd.f32 %v6641_v9, %v6614_v49 }
 0x555   :  { %v6659_v14 = vpop.f32.mrf.mxu3 }
 0x556   :  { %v6660_v46 = vadd.f32 %v6659_v14, %v13285_v30  ;;  %v10116_v14 = vor.u32 %v11390_v44, %v10113_v26  ;;  %v11506_v26 = vld [vmem:[#allocation8 + $0x6ec] sm:$0xf] }
 0x557   :  { %6990 = vmatpush.bf16.msra.mxu3 %v10132_v4 }
 0x558   :  { %v7156_v50 = vmul.f32 1.442695, %v6660_v46  ;;  %v6590_v41 = vpop.f32.mrf.mxu0  ;;  %6813 = vmatmul.bf16.gmra.mxu0 %v13068_v32  ;;  %vm7127_vm1 = vcmp.gt.f32.partialorder %v6660_v46, 0.0 }
 0x559   :  { %v6591_v62 = vadd.f32 %v6590_v41, %v13304_v0  ;;  %v10100_v41 = vor.u32 %v11386_v16, %v10097_v40  ;;  %v11474_v40 = vld [vmem:[#allocation8 + $0x5ec] sm:$0xf] }
 0x55a   :  { %11716 = vpow2.f32 %v7156_v50  ;;  %v6618_v28 = vpop.f32.mrf.mxu1  ;;  %v13331_v50 = vld [vmem:[#allocation10] sm:$0xf] }
 0x55b   :  { %v6643_v51 = vpop.f32.mrf.mxu2  ;;  %v6619_v47 = vadd.f32 %v6618_v28, %v6591_v62  ;;  %6991 = vmatpush.bf16.msra.mxu3 %v10116_v14  ;;  %v10577_v14 = vld [vmem:[#allocation8 + $0x6f8] sm:$0xf0] }
 0x55c   :  { %v13317_v2 = vadd.f32 %v6643_v51, %v6616_v35  ;;  %v13334_v51 = vperm.slane %v13331_v50, 2 }
 0x55d   :  { %v6661_v54 = vpop.f32.mrf.mxu3  ;;  %6841 = vmatmul.bf16.gmra.mxu1 %v13071_v15 }
 0x55e   :  { %v6662_v30 = vadd.f32 %v6661_v54, %v13290_v57 }
 0x55f   :  { %6992 = vmatpush.bf16.msra.mxu3 %v10100_v41  ;;  %v10449_v41 = vld [vmem:[#allocation8 + $0x5f8] sm:$0xf0] }
 0x560   :  { %v11717_v45 = vpop.eup %11716  ;;  %v7164_v49 = vmul.f32 1.442695, %v6662_v30  ;;  %6869 = vmatmul.bf16.gmra.mxu2 %v13074_v48  ;;  %v6592_v23 = vpop.f32.mrf.mxu0  ;;  %vm7131_vm2 = vcmp.gt.f32.partialorder %v6662_v30, 0.0 }
 0x561   :  { %v10710_v55 = vadd.f32 -1.0, %v11717_v45 }
 0x562   :  { %11718 = vpow2.f32 %v7164_v49  ;;  %6887 = vmatmul.bf16.gmra.mxu3 %v13080_v52  ;;  %v6620_v9 = vpop.f32.mrf.mxu1 }
 0x563   :  { %v6646_v6 = vpop.f32.mrf.mxu2  ;;  %v7239_v43 = vmul.f32 1.6732632, %v10710_v55  ;;  %v11382_v55 = vld [vmem:[#allocation8 + $0x30c] sm:$0xf] }
 0x564   :  { %v13325_v0 = vadd.f32 %v6646_v6, %v6619_v47  ;;  %v10081_v6 = vld [vmem:[#allocation8 + $0x318] sm:$0xf0] }
 0x565   :  { %v6664_v57 = vpop.f32.mrf.mxu3  ;;  %v7267_v4 = vsel %vm7127_vm1, %v6660_v46, %v7239_v43  ;;  %v10084_v46 = vor.u32 %v11382_v55, %v10081_v6 }
 0x566   :  { %v13328_v36 = vadd.f32 %v6664_v57, %v13300_v24  ;;  %v13337_v23 = vmul.f32 1.050701, %v7267_v4  ;;  %v10452_v4 = vor.u32 %v11474_v40, %v10449_v41  ;;  %v11434_v40 = vld [vmem:[#allocation8 + $0x4ac] sm:$0xf]  ;;  %v10289_v41 = vld [vmem:[#allocation8 + $0x4b8] sm:$0xf0] }
 0x567   :  { %6993 = vmatpush.bf16.msra.mxu3 %v10084_v46 }
 0x568   :  { %v11719_v39 = vpop.eup %11718  ;;  %v7172_v35 = vmul.f32 1.442695, %v13328_v36  ;;  %v6687_v28 = vpop.f32.mrf.mxu0  ;;  %6910 = vmatmul.bf16.vlgmr.msra.gmra.mxu0 %v12273_v8  ;;  %7042 = vmatpush.bf16.msrb.mxu1 %v10452_v4  ;;  %v11466_v4 = vld [vmem:[#allocation8 + $0x5ac] sm:$0xf]  ;;  %vm7135_vm3 = vcmp.gt.f32.partialorder %v13328_v36, 0.0 }
 0x569   :  { %v10714_v38 = vadd.f32 -1.0, %v11719_v39  ;;  %v6688_v45 = vadd.f32 %v6687_v28, %v13334_v51  ;;  %v10705_v28 = vld [vmem:[#allocation8 + $0x7f8] sm:$0xf0] }
 0x56a   :  { %11720 = vpow2.f32 %v7172_v35  ;;  %v6715_v49 = vpop.f32.mrf.mxu1  ;;  %v10353_v39 = vld [vmem:[#allocation8 + $0x538] sm:$0xf0] }
 0x56b   :  { %v7243_v24 = vmul.f32 1.6732632, %v10714_v38  ;;  %v6648_v62 = vpop.f32.mrf.mxu2  ;;  %v6716_v44 = vadd.f32 %v6715_v49, %v6688_v45  ;;  %v10580_v38 = vor.u32 %v11506_v26, %v10577_v14  ;;  %v10305_v45 = vld [vmem:[#allocation8 + $0x4d8] sm:$0xf0]  ;;  %v11470_v49 = vld [vmem:[#allocation8 + $0x5cc] sm:$0xf] }
 0x56c   :  { %v11538_v62 = vld [vmem:[#allocation8 + $0x7ec] sm:$0xf]  ;;  %v10433_v14 = vld [vmem:[#allocation8 + $0x5d8] sm:$0xf0] }
 0x56d   :  { %v7271_v54 = vsel %vm7131_vm2, %v6662_v30, %v7243_v24  ;;  %v6666_v47 = vpop.f32.mrf.mxu3  ;;  %v11442_v30 = vld [vmem:[#allocation8 + $0x4ec] sm:$0xf]  ;;  %6938 = vmatmul.bf16.vlgmr.msra.gmra.mxu1 %v13720_v10  ;;  %7070 = vmatpush.bf16.msrb.mxu2 %v10580_v38 }
 0x56e   :  { %v13339_v9 = vmul.f32 1.050701, %v7271_v54  ;;  %v13342_v57 = vadd.f32 %v6666_v47, %v13306_v17  ;;  %v10321_v17 = vld [vmem:[#allocation8 + $0x4f8] sm:$0xf0]  ;;  %v11438_v47 = vld [vmem:[#allocation8 + $0x4cc] sm:$0xf] }
 0x56f   :  { %v10324_v16 = vor.u32 %v11442_v30, %v10321_v17  ;;  %v10308_v26 = vor.u32 %v11438_v47, %v10305_v45  ;;  %v11502_v30 = vld [vmem:[#allocation8 + $0x6cc] sm:$0xf] }
 0x570   :  { %v11721_v43 = vpop.eup %11720  ;;  %v7180_v35 = vmul.f32 1.442695, %v13342_v57  ;;  %6966 = vmatmul.bf16.vlgmr.msra.gmra.mxu2 %v13721_v60  ;;  %v6689_v10 = vpop.f32.mrf.mxu0  ;;  %v10708_v60 = vor.u32 %v11538_v62, %v10705_v28  ;;  %v10292_v28 = vor.u32 %v11434_v40, %v10289_v41  ;;  %v11498_v45 = vld [vmem:[#allocation8 + $0x6ac] sm:$0xf]  ;;  %vm7139_vm4 = vcmp.gt.f32.partialorder %v13342_v57, 0.0 }
 0x571   :  { %v10718_v8 = vadd.f32 -1.0, %v11721_v43  ;;  %7014 = vmatpush.bf16.msrb.mxu0 %v10324_v16  ;;  %v6690_v6 = vadd.f32 %v6689_v10, %v13334_v51  ;;  %v10561_v43 = vld [vmem:[#allocation8 + $0x6d8] sm:$0xf0]  ;;  %v11462_v40 = vld [vmem:[#allocation8 + $0x58c] sm:$0xf] }
 0x572   :  { %11722 = vpow2.f32 %v7180_v35  ;;  %6892 = vmatmul.bf16.gmra.mxu3 %v13097_v5  ;;  %v6717_v46 = vpop.f32.mrf.mxu1  ;;  %v10564_v17 = vor.u32 %v11502_v30, %v10561_v43  ;;  %v10417_v10 = vld [vmem:[#allocation8 + $0x5b8] sm:$0xf0]  ;;  %v11430_v30 = vld [vmem:[#allocation8 + $0x48c] sm:$0xf] }
 0x573   :  { %v6743_v24 = vpop.f32.mrf.mxu2  ;;  %v7247_v35 = vmul.f32 1.6732632, %v10718_v8  ;;  %7098 = vmatpush.bf16.msrb.mxu3 %v10708_v60  ;;  %v6718_v16 = vadd.f32 %v6717_v46, %v6690_v6  ;;  %v10420_v8 = vor.u32 %v11466_v4, %v10417_v10  ;;  %v10273_v43 = vld [vmem:[#allocation8 + $0x498] sm:$0xf0]  ;;  %v11494_v4 = vld [vmem:[#allocation8 + $0x68c] sm:$0xf] }
 0x574   :  { %v13351_v54 = vadd.f32 %v6743_v24, %v6716_v44  ;;  %v10436_v44 = vor.u32 %v11470_v49, %v10433_v14  ;;  %7071 = vmatpush.bf16.msrb.mxu2 %v10564_v17  ;;  %v11534_v49 = vld [vmem:[#allocation8 + $0x7cc] sm:$0xf]  ;;  %v10401_v41 = vld [vmem:[#allocation8 + $0x598] sm:$0xf0] }
 0x575   :  { %v6669_v55 = vpop.f32.mrf.mxu3  ;;  %7015 = vmatpush.bf16.msrb.mxu0 %v10308_v26  ;;  %v7275_v6 = vsel %vm7135_vm3, %v13328_v36, %v7247_v35  ;;  %v10276_v36 = vor.u32 %v11430_v30, %v10273_v43  ;;  %v10404_v35 = vor.u32 %v11462_v40, %v10401_v41  ;;  %v11490_v43 = vld [vmem:[#allocation8 + $0x66c] sm:$0xf]  ;;  %v13749_v40 = vld [vmem:[#allocation32_spill] sm:$0xff] }
 0x576   :  { %v13355_v38 = vadd.f32 %v6669_v55, %v13313_v58  ;;  %7043 = vmatpush.bf16.msrb.mxu1 %v10436_v44  ;;  %v10545_v58 = vld [vmem:[#allocation8 + $0x6b8] sm:$0xf0] }
 0x577   :  { %v10548_v60 = vor.u32 %v11498_v45, %v10545_v58  ;;  %v10689_v55 = vld [vmem:[#allocation8 + $0x7d8] sm:$0xf0] }
 0x578   :  { %v11723_v24 = vpop.eup %11722  ;;  %v7188_v62 = vmul.f32 1.442695, %v13355_v38  ;;  %v10692_v14 = vor.u32 %v11534_v49, %v10689_v55  ;;  %v6692_v17 = vpop.f32.mrf.mxu0  ;;  %6915 = vmatmul.bf16.gmra.mxu0 %v13727_v56  ;;  %v11426_v49 = vld [vmem:[#allocation8 + $0x46c] sm:$0xf]  ;;  %v10257_v55 = vld [vmem:[#allocation8 + $0x478] sm:$0xf0] }
 0x579   :  { %v10722_v47 = vadd.f32 -1.0, %v11723_v24  ;;  %7016 = vmatpush.bf16.msrb.mxu0 %v10292_v28  ;;  %7072 = vmatpush.bf16.msrb.mxu2 %v10548_v60  ;;  %v10513_v56 = vld [vmem:[#allocation8 + $0x678] sm:$0xf0]  ;;  %vm7143_vm5 = vcmp.gt.f32.partialorder %v13355_v38, 0.0 }
 0x57a   :  { %11724 = vpow2.f32 %v7188_v62  ;;  %7044 = vmatpush.bf16.msrb.mxu1 %v10420_v8  ;;  %v6693_v62 = vadd.f32 %v6692_v17, %v13334_v51  ;;  %v6720_v10 = vpop.f32.mrf.mxu1  ;;  %7099 = vmatpush.bf16.msrb.mxu3 %v10692_v14  ;;  %v10516_v41 = vor.u32 %v11490_v43, %v10513_v56 }
 0x57b   :  { %v7251_v46 = vmul.f32 1.6732632, %v10722_v47  ;;  %v6745_v26 = vpop.f32.mrf.mxu2  ;;  %v10529_v47 = vld [vmem:[#allocation8 + $0x698] sm:$0xf0] }
 0x57c   :  { %v13361_v44 = vadd.f32 %v6745_v26, %v6718_v16  ;;  %v13367_v16 = vmul.f32 1.050701, %v7275_v6  ;;  %v10532_v45 = vor.u32 %v11494_v4, %v10529_v47  ;;  %v6721_v60 = vadd.f32 %v6720_v10, %v6693_v62  ;;  %v11458_v26 = vld [vmem:[#allocation8 + $0x56c] sm:$0xf]  ;;  %v10241_v10 = vld [vmem:[#allocation8 + $0x458] sm:$0xf0] }
 0x57d   :  { %v6671_v24 = vpop.f32.mrf.mxu3  ;;  %v7279_v28 = vsel %vm7139_vm4, %v13342_v57, %v7251_v46  ;;  %6943 = vmatmul.bf16.gmra.mxu1 %v13728_v1  ;;  %v10385_v57 = vld [vmem:[#allocation8 + $0x578] sm:$0xf0]  ;;  %7017 = vmatpush.bf16.msrb.mxu0 %v10276_v36  ;;  %v10260_v6 = vor.u32 %v11426_v49, %v10257_v55  ;;  %v11530_v4 = vld [vmem:[#allocation8 + $0x7ac] sm:$0xf] }
 0x57e   :  { %v13370_v8 = vadd.f32 %v6671_v24, %v13317_v2  ;;  %v13372_v58 = vmul.f32 1.050701, %v7279_v28  ;;  %7045 = vmatpush.bf16.msrb.mxu1 %v10404_v35  ;;  %v10388_v46 = vor.u32 %v11458_v26, %v10385_v57  ;;  %7073 = vmatpush.bf16.msrb.mxu2 %v10532_v45  ;;  %v10673_v1 = vld [vmem:[#allocation8 + $0x7b8] sm:$0xf0]  ;;  %v11422_v62 = vld [vmem:[#allocation8 + $0x44c] sm:$0xf] }
 0x57f   :  { %v11454_v35 = vld [vmem:[#allocation8 + $0x54c] sm:$0xf]  ;;  %v10369_v28 = vld [vmem:[#allocation8 + $0x558] sm:$0xf0]  ;;  %v10244_v45 = vor.u32 %v11422_v62, %v10241_v10 }
 0x580   :  { %v11725_v14 = vpop.eup %11724  ;;  %v7196_v30 = vmul.f32 1.442695, %v13370_v8  ;;  %6971 = vmatmul.bf16.gmra.mxu2 %v13729_v63  ;;  %v10676_v63 = vor.u32 %v11530_v4, %v10673_v1  ;;  %v6694_v36 = vpop.f32.mrf.mxu0  ;;  %v11486_v49 = vld [vmem:[#allocation8 + $0x64c] sm:$0xf]  ;;  %v10497_v57 = vld [vmem:[#allocation8 + $0x658] sm:$0xf0] }
 0x581   :  { %v10726_v17 = vadd.f32 -1.0, %v11725_v14  ;;  %v6695_v26 = vadd.f32 %v6694_v36, %v13334_v51  ;;  %7018 = vmatpush.bf16.msrb.mxu0 %v10260_v6  ;;  %v11418_v4 = vld [vmem:[#allocation8 + $0x42c] sm:$0xf]  ;;  %v10225_v1 = vld [vmem:[#allocation8 + $0x438] sm:$0xf0]  ;;  %vm7147_vm6 = vcmp.gt.f32.partialorder %v13370_v8, 0.0 }
 0x582   :  { %11726 = vpow2.f32 %v7196_v30  ;;  %6897 = vmatmul.bf16.gmra.mxu3 %v13749_v40  ;;  %v6722_v14 = vpop.f32.mrf.mxu1  ;;  %7046 = vmatpush.bf16.msrb.mxu1 %v10388_v46  ;;  %v10372_v30 = vor.u32 %v11454_v35, %v10369_v28  ;;  %v11450_v2 = vld [vmem:[#allocation8 + $0x52c] sm:$0xf]  ;;  %v10228_v46 = vor.u32 %v11418_v4, %v10225_v1  ;;  %v10657_v10 = vld [vmem:[#allocation8 + $0x798] sm:$0xf0] }
 0x583   :  { %v6748_v24 = vpop.f32.mrf.mxu2  ;;  %v7255_v43 = vmul.f32 1.6732632, %v10726_v17  ;;  %7074 = vmatpush.bf16.msrb.mxu2 %v10516_v41  ;;  %7100 = vmatpush.bf16.msrb.mxu3 %v10676_v63  ;;  %v11482_v40 = vld [vmem:[#allocation8 + $0x62c] sm:$0xf]  ;;  %v10356_v62 = vor.u32 %v11450_v2, %v10353_v39 }
 0x584   :  { %v13381_v47 = vadd.f32 %v6748_v24, %v6721_v60  ;;  %v10500_v60 = vor.u32 %v11486_v49, %v10497_v57  ;;  %v6723_v24 = vadd.f32 %v6722_v14, %v6695_v26  ;;  %v11526_v17 = vld [vmem:[#allocation8 + $0x78c] sm:$0xf] }
 0x585   :  { %v6674_v55 = vpop.f32.mrf.mxu3  ;;  %7019 = vmatpush.bf16.msrb.mxu0 %v10244_v45  ;;  %v10660_v41 = vor.u32 %v11526_v17, %v10657_v10  ;;  %v7283_v63 = vsel %vm7143_vm5, %v13355_v38, %v7255_v43  ;;  %v11414_v49 = vld [vmem:[#allocation8 + $0x40c] sm:$0xf]  ;;  %v10337_v45 = vld [vmem:[#allocation8 + $0x518] sm:$0xf0] }
 0x586   :  { %v13385_v56 = vadd.f32 %v6674_v55, %v13325_v0  ;;  %7047 = vmatpush.bf16.msrb.mxu1 %v10372_v30  ;;  %v10484_v0 = vor.u32 %v11482_v40, %v10481_v7  ;;  %v10209_v55 = vld [vmem:[#allocation8 + $0x418] sm:$0xf0]  ;;  %v11446_v2 = vld [vmem:[#allocation8 + $0x50c] sm:$0xf]  ;;  %v13396_v43 = vmul.f32 1.050701, %v7283_v63 }
 0x587   :  { %7075 = vmatpush.bf16.msrb.mxu2 %v10500_v60  ;;  %7101 = vmatpush.bf16.msrb.mxu3 %v10660_v41  ;;  %v10212_v39 = vor.u32 %v11414_v49, %v10209_v55  ;;  %v11478_v30 = vld [vmem:[#allocation8 + $0x60c] sm:$0xf]  ;;  %v10340_v7 = vor.u32 %v11446_v2, %v10337_v45  ;;  %v10465_v38 = vld [vmem:[#allocation8 + $0x618] sm:$0xf0] }
 0x588   :  { %v11727_v36 = vpop.eup %11726  ;;  %v6697_v14 = vpop.f32.mrf.mxu0  ;;  %v10468_v1 = vor.u32 %v11478_v30, %v10465_v38  ;;  %6920 = vmatmul.bf16.gmra.mxu0 %v13731_v42  ;;  %vm7151_vm13 = vcmp.gt.f32.partialorder %v13385_v56, 0.0 }
 0x589   :  { %v10730_v6 = vadd.f32 -1.0, %v11727_v36  ;;  %v6698_v4 = vadd.f32 %v6697_v14, %v13334_v51  ;;  %7020 = vmatpush.bf16.msrb.mxu0 %v10228_v46  ;;  %v10641_v46 = vld [vmem:[#allocation8 + $0x778] sm:$0xf0] }
 0x58a   :  { %v6725_v60 = vpop.f32.mrf.mxu1  ;;  %7048 = vmatpush.bf16.msrb.mxu1 %v10356_v62 }
 0x58b   :  { %v7259_v35 = vmul.f32 1.6732632, %v10730_v6  ;;  %v6750_v28 = vpop.f32.mrf.mxu2  ;;  %7076 = vmatpush.bf16.msrb.mxu2 %v10484_v0  ;;  %v6726_v36 = vadd.f32 %v6725_v60, %v6698_v4 }
 0x58c   :  { %v13390_v26 = vadd.f32 %v6750_v28, %v6723_v24  ;;  %v10625_v28 = vld [vmem:[#allocation8 + $0x758] sm:$0xf0] }
 0x58d   :  { %v6676_v57 = vpop.f32.mrf.mxu3  ;;  %v7287_v40 = vsel %vm7147_vm6, %v13370_v8, %v7259_v35  ;;  %6948 = vmatmul.bf16.gmra.mxu1 %v13732_v37  ;;  %7021 = vmatpush.bf16.msrb.mxu0 %v10212_v39  ;;  %v11522_v8 = vld [vmem:[#allocation8 + $0x76c] sm:$0xf] }
 0x58e   :  { %v13398_v24 = vmul.f32 1.050701, %v7287_v40  ;;  %7049 = vmatpush.bf16.msrb.mxu1 %v10340_v7  ;;  %v10644_v17 = vor.u32 %v11522_v8, %v10641_v46  ;;  %v11518_v35 = vld [vmem:[#allocation8 + $0x74c] sm:$0xf]  ;;  %v10609_v57 = vld [vmem:[#allocation8 + $0x738] sm:$0xf0] }
 0x58f   :  { %7077 = vmatpush.bf16.msrb.mxu2 %v10468_v1  ;;  %v10628_v49 = vor.u32 %v11518_v35, %v10625_v28  ;;  %v11554_v35 = vld [vmem:[#allocation11 + $0x68] sm:$0xff] }
 0x590   :  { %6976 = vmatmul.bf16.gmra.mxu2 %v13733_v61  ;;  %v7331_v6 = vpack.c.bf16 %v13398_v24, %v13396_v43  ;;  %v6699_v0 = vpop.f32.mrf.mxu0  ;;  %7102 = vmatpush.bf16.msrb.mxu3 %v10644_v17  ;;  %v11564_v17 = vld [vmem:[#allocation11 + $0xb8] sm:$0xff]  ;;  %v11562_v28 = vld [vmem:[#allocation11 + $0xa8] sm:$0xff] }
 0x591   :  { %v6700_v42 = vadd.f32 %v6699_v0, %v13334_v51 }
 0x592   :  { %6994 = vmatmul.bf16.vlgmr.msra.gmra.mxu3 %v13722_v11  ;;  %v6727_v41 = vpop.f32.mrf.mxu1 }
 0x593   :  { %v6753_v62 = vpop.f32.mrf.mxu2  ;;  %v6728_v63 = vadd.f32 %v6727_v41, %v6700_v42  ;;  %7654 = vmatpush.bf16.msra.mxu2 %v11564_v17  ;;  %v11547_v41 = vld [vmem:[#allocation11 + $0x30] sm:$0xff]  ;;  %v11549_v17 = vld [vmem:[#allocation11 + $0x40] sm:$0xff] }
 0x594   :  { %v6754_v10 = vadd.f32 %v6753_v62, %v6726_v36  ;;  %7103 = vmatpush.bf16.msrb.mxu3 %v10628_v49  ;;  %v10593_v36 = vld [vmem:[#allocation8 + $0x718] sm:$0xf0] }
 0x595   :  { %v6771_v37 = vpop.f32.mrf.mxu3  ;;  %v11548_v62 = vld [vmem:[#allocation11 + $0x38] sm:$0xff] }
 0x596   :  { %v13408_v61 = vadd.f32 %v6771_v37, %v13351_v54  ;;  %v11514_v54 = vld [vmem:[#allocation8 + $0x72c] sm:$0xf]  ;;  %7598 = vmatpush.bf16.msra.mxu0 %v11548_v62  ;;  %v11555_v37 = vld [vmem:[#allocation11 + $0x70] sm:$0xff] }
 0x597   :  { %v10612_v60 = vor.u32 %v11514_v54, %v10609_v57  ;;  %v11544_v54 = vld [vmem:[#allocation11 + $0x18] sm:$0xff] }
 0x598   :  { %v6702_v14 = vpop.f32.mrf.mxu0  ;;  %6925 = vmatmul.bf16.gmra.mxu0 %v12988_v13  ;;  %v11510_v13 = vld [vmem:[#allocation8 + $0x70c] sm:$0xf]  ;;  %v11552_v57 = vld [vmem:[#allocation11 + $0x58] sm:$0xff] }
 0x599   :  { %v6703_v39 = vadd.f32 %v6702_v14, %v13334_v51  ;;  %7104 = vmatpush.bf16.msrb.mxu3 %v10612_v60  ;;  %v11545_v14 = vld [vmem:[#allocation11 + $0x20] sm:$0xff] }
 0x59a   :  { %v6730_v2 = vpop.f32.mrf.mxu1  ;;  %7599 = vmatpush.bf16.msra.mxu0 %v11547_v41 }
 0x59b   :  { %v6755_v11 = vpop.f32.mrf.mxu2  ;;  %v6731_v30 = vadd.f32 %v6730_v2, %v6703_v39  ;;  %v11553_v39 = vld [vmem:[#allocation11 + $0x60] sm:$0xff] }
 0x59c   :  { %v13410_v55 = vadd.f32 %v6755_v11, %v6728_v63 }
 0x59d   :  { %v13413_v45 = vpop.f32.mrf.mxu3  ;;  %6953 = vmatmul.bf16.gmra.mxu1 %v12990_v33  ;;  %v10596_v33 = vor.u32 %v11510_v13, %v10593_v36  ;;  %v11550_v36 = vld [vmem:[#allocation11 + $0x48] sm:$0xff] }
 0x59f   :  { %7105 = vmatpush.bf16.msrb.mxu3 %v10596_v33  ;;  %v11558_v33 = vld [vmem:[#allocation11 + $0x88] sm:$0xff] }
 0x5a0   :  { %6981 = vmatmul.bf16.gmra.mxu2 %v12992_v22  ;;  %v6704_v38 = vpop.f32.mrf.mxu0 }
 0x5a2   :  { %6999 = vmatmul.bf16.gmra.mxu3 %v13730_v3  ;;  %v6732_v51 = vpop.f32.mrf.mxu1 }
 0x5a3   :  { %v6758_v4 = vpop.f32.mrf.mxu2  ;;  %v11543_v51 = vld [vmem:[#allocation11 + $0x10] sm:$0xff] }
 0x5a4   :  { %v13419_v7 = vadd.f32 %v6758_v4, %v6731_v30  ;;  %v11561_v30 = vld [vmem:[#allocation11 + $0xa0] sm:$0xff]  ;;  %v11560_v4 = vld [vmem:[#allocation11 + $0x98] sm:$0xff] }
 0x5a5   :  { %v6776_v40 = vpop.f32.mrf.mxu3 }
 0x5a6   :  { %v13422_v1 = vadd.f32 %v6776_v40, %v13381_v47  ;;  %v11556_v47 = vld [vmem:[#allocation11 + $0x78] sm:$0xff]  ;;  %v11551_v40 = vld [vmem:[#allocation11 + $0x50] sm:$0xff] }
 0x5a7   :  { %7626 = vmatpush.bf16.msra.mxu1 %v11556_v47  ;;  %v11541_v47 = vld [vmem:[#allocation11] sm:$0xff] }
 0x5a8   :  { %v13424_v8 = vpop.f32.mrf.mxu0  ;;  %7022 = vmatmul.bf16.vlgmr.msrb.gmra.mxu0 %v12693_v20 }
 0x5aa   :  { %v13428_v46 = vpop.f32.mrf.mxu1 }
 0x5ab   :  { %v6760_v22 = vpop.f32.mrf.mxu2  ;;  %7627 = vmatpush.bf16.msra.mxu1 %v11555_v37 }
 0x5ad   :  { %v13426_v3 = vpop.f32.mrf.mxu3  ;;  %7050 = vmatmul.bf16.vlgmr.msrb.gmra.mxu1 %v12819_v21 }
 0x5af   :  { %7628 = vmatpush.bf16.msra.mxu1 %v11554_v35  ;;  %v6774_v35 = vadd.f32 %v13413_v45, %v13361_v44 }
 0x5b0   :  { %7078 = vmatmul.bf16.vlgmr.msrb.gmra.mxu2 %v12943_v34  ;;  %v13436_v42 = vpop.f32.mrf.mxu0  ;;  %v11563_v34 = vld [vmem:[#allocation11 + $0xb0] sm:$0xff] }
 0x5b1   :  { %7655 = vmatpush.bf16.msra.mxu2 %v11563_v34 }
 0x5b2   :  { %7004 = vmatmul.bf16.gmra.mxu3 %v13734_v27  ;;  %v13438_v20 = vpop.f32.mrf.mxu1  ;;  %v11546_v27 = vld [vmem:[#allocation11 + $0x28] sm:$0xff] }
 0x5b3   :  { %v13434_v0 = vpop.f32.mrf.mxu2  ;;  %7600 = vmatpush.bf16.msra.mxu0 %v11546_v27  ;;  %7629 = vmatpush.bf16.msra.mxu1 %v11553_v39 }
 0x5b5   :  { %v6781_v63 = vpop.f32.mrf.mxu3  ;;  %7656 = vmatpush.bf16.msra.mxu2 %v11562_v28 }
 0x5b6   :  { %v13440_v21 = vadd.f32 %v6781_v63, %v6754_v10  ;;  %v11557_v63 = vld [vmem:[#allocation11 + $0x80] sm:$0xff] }
 0x5b7   :  { %7601 = vmatpush.bf16.msra.mxu0 %v11545_v14  ;;  %7630 = vmatpush.bf16.msra.mxu1 %v11552_v57 }
 0x5b8   :  { %v13444_v11 = vpop.f32.mrf.mxu0  ;;  %7027 = vmatmul.bf16.gmra.mxu0 %v12716_v29 }
 0x5b9   :  { %7657 = vmatpush.bf16.msra.mxu2 %v11561_v30 }
 0x5ba   :  { %v13448_v10 = vpop.f32.mrf.mxu1 }
 0x5bb   :  { %v13442_v49 = vpop.f32.mrf.mxu2  ;;  %7602 = vmatpush.bf16.msra.mxu0 %v11544_v54  ;;  %7631 = vmatpush.bf16.msra.mxu1 %v11551_v40 }
 0x5bd   :  { %v13446_v2 = vpop.f32.mrf.mxu3  ;;  %7055 = vmatmul.bf16.gmra.mxu1 %v13738_v53  ;;  %7658 = vmatpush.bf16.msra.mxu2 %v11560_v4 }
 0x5bf   :  { %7603 = vmatpush.bf16.msra.mxu0 %v11543_v51  ;;  %7632 = vmatpush.bf16.msra.mxu1 %v11550_v36 }
 0x5c0   :  { %7083 = vmatmul.bf16.gmra.mxu2 %v13739_v19  ;;  %v13456_v38 = vpop.f32.mrf.mxu0  ;;  %v11559_v19 = vld [vmem:[#allocation11 + $0x90] sm:$0xff] }
 0x5c1   :  { %7659 = vmatpush.bf16.msra.mxu2 %v11559_v19 }
 0x5c2   :  { %7009 = vmatmul.bf16.gmra.mxu3 %v13748_v31  ;;  %v13458_v13 = vpop.f32.mrf.mxu1  ;;  %v11542_v31 = vld [vmem:[#allocation11 + $0x8] sm:$0xff] }
 0x5c3   :  { %v13454_v60 = vpop.f32.mrf.mxu2  ;;  %7604 = vmatpush.bf16.msra.mxu0 %v11542_v31  ;;  %7633 = vmatpush.bf16.msra.mxu1 %v11549_v17 }
 0x5c5   :  { %v6786_v29 = vpop.f32.mrf.mxu3  ;;  %7660 = vmatpush.bf16.msra.mxu2 %v11558_v33 }
 0x5c6   :  { %v13461_v53 = vadd.f32 %v6786_v29, %v13419_v7  ;;  %v6800_v7 = vadd.f32 %v13424_v8, %v13408_v61 }
 0x5c7   :  { %7605 = vmatpush.bf16.msra.mxu0 %v11541_v47 }
 0x5c8   :  { %v13465_v62 = vpop.f32.mrf.mxu0  ;;  %7032 = vmatmul.bf16.gmra.mxu0 %v12734_v25  ;;  %v6828_v34 = vadd.f32 %v13428_v46, %v6800_v7 }
 0x5c9   :  { %7661 = vmatpush.bf16.msra.mxu2 %v11557_v63 }
 0x5ca   :  { %v13467_v37 = vpop.f32.mrf.mxu1  ;;  %v6856_v61 = vadd.f32 %v13434_v0, %v6828_v34  ;;  %v6805_v0 = vadd.f32 %v13444_v11, %v13422_v1  ;;  %v6779_v1 = vadd.f32 %v13426_v3, %v13390_v26 }
 0x5cb   :  { %v13463_v22 = vpop.f32.mrf.mxu2 }
 0x5cd   :  { %v6788_v41 = vpop.f32.mrf.mxu3  ;;  %7060 = vmatmul.bf16.gmra.mxu1 %v12852_v59  ;;  %v6802_v59 = vadd.f32 %v13436_v42, %v6774_v35 }
 0x5cf   :  { %v6830_v46 = vadd.f32 %v13438_v20, %v6802_v59  ;;  %v6833_v20 = vadd.f32 %v13448_v10, %v6805_v0 }
 0x5d0   :  { %7088 = vmatmul.bf16.gmra.mxu2 %v13005_v12  ;;  %v13481_v8 = vpop.f32.mrf.mxu0 }
 0x5d1   :  { %v6858_v39 = vadd.f32 %v13442_v49, %v6830_v46  ;;  %v6861_v11 = vadd.f32 %v13454_v60, %v6833_v20  ;;  %v13753_v46 = vpack.c.bf16 %v13339_v9, %v13337_v23 }
 0x5d2   :  { %7106 = vmatmul.bf16.vlgmr.msrb.gmra.mxu3 %v13050_v18  ;;  %v13483_v25 = vpop.f32.mrf.mxu1 }
 0x5d3   :  { %v13476_v27 = vpop.f32.mrf.mxu2 }
 0x5d5   :  { %v6883_v28 = vpop.f32.mrf.mxu3 }
 0x5d6   :  { %v6884_v12 = vadd.f32 %v6883_v28, %v6856_v61  ;;  %v13750_v61 = vld [vmem:[#allocation26_spill] sm:$0xff] }
 0x5d7   :  { %v13751_v28 = vld [vmem:[#allocation22_spill] sm:$0xff] }
 0x5d8   :  { %v7158_v14 = vmul.f32 1.442695, %v6884_v12  ;;  %v13490_v30 = vpop.f32.mrf.mxu0  ;;  %7037 = vmatmul.bf16.gmra.mxu0 %v13068_v32  ;;  %vm7128_vm0 = vcmp.gt.f32.partialorder %v6884_v12, 0.0  ;;  %v13752_v59 = vpack.c.bf16 %v13750_v61, %v13751_v28 }
 0x5da   :  { %11728 = vpow2.f32 %v7158_v14  ;;  %v13492_v44 = vpop.f32.mrf.mxu1 }
 0x5db   :  { %v13487_v18 = vpop.f32.mrf.mxu2 }
 0x5dd   :  { %v6885_v45 = vpop.f32.mrf.mxu3  ;;  %7065 = vmatmul.bf16.gmra.mxu1 %v13071_v15  ;;  %v6807_v15 = vadd.f32 %v13456_v38, %v6779_v1 }
 0x5de   :  { %v6886_v54 = vadd.f32 %v6885_v45, %v6858_v39  ;;  %v6784_v45 = vadd.f32 %v13446_v2, %v13410_v55 }
 0x5df   :  { %v6835_v36 = vadd.f32 %v13458_v13, %v6807_v15 }
 0x5e0   :  { %v11729_v42 = vpop.eup %11728  ;;  %v7166_v57 = vmul.f32 1.442695, %v6886_v54  ;;  %7093 = vmatmul.bf16.gmra.mxu2 %v13074_v48  ;;  %v6816_v32 = vpop.f32.mrf.mxu0  ;;  %vm7132_vm7 = vcmp.gt.f32.partialorder %v6886_v54, 0.0 }
 0x5e1   :  { %v10711_v49 = vadd.f32 -1.0, %v11729_v42  ;;  %v6863_v33 = vadd.f32 %v13463_v22, %v6835_v36  ;;  %v6815_v36 = vadd.f32 %v13490_v30, %v13461_v53  ;;  %v13759_v30 = vld [vmem:[#allocation32_spill] sm:$0xff] }
 0x5e2   :  { %11730 = vpow2.f32 %v7166_v57  ;;  %7111 = vmatmul.bf16.gmra.mxu3 %v13080_v52  ;;  %v6844_v51 = vpop.f32.mrf.mxu1  ;;  %v13508_v52 = vperm.slane %v13331_v50, 3  ;;  %v6810_v50 = vadd.f32 %v13465_v62, %v13440_v21 }
 0x5e3   :  { %v13501_v4 = vpop.f32.mrf.mxu2  ;;  %v7240_v48 = vmul.f32 1.6732632, %v10711_v49  ;;  %v6843_v53 = vadd.f32 %v13492_v44, %v6815_v36 }
 0x5e4   :  { %v6838_v39 = vadd.f32 %v13467_v37, %v6810_v50  ;;  %v6812_v37 = vadd.f32 %v13481_v8, %v6784_v45 }
 0x5e5   :  { %v6888_v40 = vpop.f32.mrf.mxu3  ;;  %v7268_v26 = vsel %vm7128_vm0, %v6884_v12, %v7240_v48 }
 0x5e6   :  { %v6889_v29 = vadd.f32 %v6888_v40, %v6861_v11  ;;  %v7296_v63 = vmul.f32 1.050701, %v7268_v26  ;;  %v6866_v0 = vadd.f32 %v13476_v27, %v6838_v39  ;;  %v6840_v51 = vadd.f32 %v13483_v25, %v6812_v37 }
 0x5e8   :  { %v11731_v19 = vpop.eup %11730  ;;  %v7174_v10 = vmul.f32 1.442695, %v6889_v29  ;;  %v6911_v47 = vpop.f32.mrf.mxu0  ;;  %7606 = vmatmul.bf16.vlgmr.msra.gmra.mxu0 %v13752_v59  ;;  %vm7136_vm8 = vcmp.gt.f32.partialorder %v6889_v29, 0.0  ;;  %v6868_v40 = vadd.f32 %v13487_v18, %v6840_v51 }
 0x5e9   :  { %v10715_v31 = vadd.f32 -1.0, %v11731_v19  ;;  %v6912_v41 = vadd.f32 %v6911_v47, %v13508_v52 }
 0x5ea   :  { %11732 = vpow2.f32 %v7174_v10  ;;  %v6939_v7 = vpop.f32.mrf.mxu1 }
 0x5eb   :  { %v7244_v3 = vmul.f32 1.6732632, %v10715_v31  ;;  %v6872_v60 = vpop.f32.mrf.mxu2  ;;  %v6940_v35 = vadd.f32 %v6939_v7, %v6912_v41  ;;  %v13758_v7 = vld [vmem:[#allocation21_spill] sm:$0xff] }
 0x5ec   :  { %v13754_v60 = vld [vmem:[#allocation34_spill] sm:$0xff]  ;;  %v7202_v50 = vmul.f32 1.442695, %v13758_v7  ;;  %vm7150_vm12 = vcmp.gt.f32.partialorder %v13758_v7, 0.0 }
 0x5ed   :  { %v7272_v38 = vsel %vm7132_vm7, %v6886_v54, %v7244_v3  ;;  %v6890_v17 = vpop.f32.mrf.mxu3  ;;  %7634 = vmatmul.bf16.vlgmr.msra.gmra.mxu1 %v13753_v46 }
 0x5ee   :  { %v7300_v34 = vmul.f32 1.050701, %v7272_v38  ;;  %v6891_v13 = vadd.f32 %v6890_v17, %v6863_v33  ;;  %v13755_v33 = vld [vmem:[#allocation30_spill] sm:$0xff]  ;;  %v13757_v17 = vpack.c.bf16 %v13372_v58, %v13367_v16 }
 0x5ef   :  { %v13756_v47 = vpack.c.bf16 %v13754_v60, %v13755_v33 }
 0x5f0   :  { %v11733_v12 = vpop.eup %11732  ;;  %v7324_v22 = vpack.c.bf16 %v7300_v34, %v7296_v63  ;;  %v7182_v14 = vmul.f32 1.442695, %v6891_v13  ;;  %v6913_v42 = vpop.f32.mrf.mxu0  ;;  %vm7140_vm9 = vcmp.gt.f32.partialorder %v6891_v13, 0.0  ;;  %v7204_v63 = vmul.f32 1.442695, %v13385_v56 }
 0x5f1   :  { %v10719_v21 = vadd.f32 -1.0, %v11733_v12  ;;  %v6914_v23 = vadd.f32 %v6913_v42, %v13508_v52 }
 0x5f2   :  { %11734 = vpow2.f32 %v7182_v14  ;;  %7116 = vmatmul.bf16.gmra.mxu3 %v13097_v5  ;;  %7662 = vmatmul.bf16.vlgmr.msra.gmra.mxu2 %v7324_v22  ;;  %v6941_v9 = vpop.f32.mrf.mxu1 }
 0x5f3   :  { %v6967_v62 = vpop.f32.mrf.mxu2  ;;  %v7248_v49 = vmul.f32 1.6732632, %v10719_v21  ;;  %v6942_v5 = vadd.f32 %v6941_v9, %v6914_v23 }
 0x5f4   :  { %v13526_v54 = vadd.f32 %v6967_v62, %v6940_v35  ;;  %v6871_v35 = vadd.f32 %v13501_v4, %v6843_v53 }
 0x5f5   :  { %v6893_v57 = vpop.f32.mrf.mxu3  ;;  %v7276_v55 = vsel %vm7136_vm8, %v6889_v29, %v7248_v49 }
 0x5f6   :  { %v6894_v20 = vadd.f32 %v6893_v57, %v6866_v0  ;;  %v7304_v25 = vmul.f32 1.050701, %v7276_v55  ;;  %v13760_v55 = vld [vmem:[#allocation29_spill] sm:$0xff] }
 0x5f8   :  { %v11735_v1 = vpop.eup %11734  ;;  %v7190_v11 = vmul.f32 1.442695, %v6894_v20  ;;  %v6916_v48 = vpop.f32.mrf.mxu0  ;;  %7611 = vmatmul.bf16.gmra.mxu0 %v13756_v47  ;;  %vm7144_vm10 = vcmp.gt.f32.partialorder %v6894_v20, 0.0  ;;  %v11571_v47 = vld [vmem:[#allocation11 + $0xf0] sm:$0xff] }
 0x5f9   :  { %v10723_v32 = vadd.f32 -1.0, %v11735_v1  ;;  %v6917_v19 = vadd.f32 %v6916_v48, %v13508_v52 }
 0x5fa   :  { %11736 = vpow2.f32 %v7190_v11  ;;  %v6944_v10 = vpop.f32.mrf.mxu1 }
 0x5fb   :  { %v7252_v2 = vmul.f32 1.6732632, %v10723_v32  ;;  %v6969_v27 = vpop.f32.mrf.mxu2  ;;  %v6945_v29 = vadd.f32 %v6944_v10, %v6917_v19 }
 0x5fc   :  { %v13532_v15 = vadd.f32 %v6969_v27, %v6942_v5  ;;  %v11572_v27 = vld [vmem:[#allocation11 + $0xf8] sm:$0xff] }
 0x5fd   :  { %v6895_v8 = vpop.f32.mrf.mxu3  ;;  %v7280_v31 = vsel %vm7140_vm9, %v6891_v13, %v7252_v2  ;;  %7639 = vmatmul.bf16.gmra.mxu1 %v13757_v17  ;;  %v13761_v2 = vld [vmem:[#allocation25_spill] sm:$0xff]  ;;  %7682 = vmatpush.bf16.msra.mxu3 %v11572_v27 }
 0x5fe   :  { %v6896_v26 = vadd.f32 %v6895_v8, %v6868_v40  ;;  %v7308_v3 = vmul.f32 1.050701, %v7280_v31 }
 0x600   :  { %v11737_v18 = vpop.eup %11736  ;;  %v7198_v38 = vmul.f32 1.442695, %v6896_v26  ;;  %v7328_v41 = vpack.c.bf16 %v7308_v3, %v7304_v25  ;;  %v6918_v28 = vpop.f32.mrf.mxu0  ;;  %vm7148_vm11 = vcmp.gt.f32.partialorder %v6896_v26, 0.0 }
 0x601   :  { %v10727_v34 = vadd.f32 -1.0, %v11737_v18  ;;  %v6919_v58 = vadd.f32 %v6918_v28, %v13508_v52  ;;  %7683 = vmatpush.bf16.msra.mxu3 %v11571_v47 }
 0x602   :  { %11738 = vpow2.f32 %v7198_v38  ;;  %7121 = vmatmul.bf16.gmra.mxu3 %v13759_v30  ;;  %7667 = vmatmul.bf16.gmra.mxu2 %v7328_v41  ;;  %v6946_v59 = vpop.f32.mrf.mxu1 }
 0x603   :  { %v6972_v13 = vpop.f32.mrf.mxu2  ;;  %11740 = vpow2.f32 %v7202_v50  ;;  %v7256_v22 = vmul.f32 1.6732632, %v10727_v34  ;;  %v6947_v44 = vadd.f32 %v6946_v59, %v6919_v58 }
 0x604   :  { %v13548_v61 = vadd.f32 %v6972_v13, %v6945_v29  ;;  %11742 = vpow2.f32 %v7204_v63 }
 0x605   :  { %v6898_v16 = vpop.f32.mrf.mxu3  ;;  %v7284_v62 = vsel %vm7144_vm10, %v6894_v20, %v7256_v22  ;;  %v13762_v20 = vpack.c.bf16 %v13760_v55, %v13761_v2  ;;  %v11567_v55 = vld [vmem:[#allocation11 + $0xd0] sm:$0xff]  ;;  %v11566_v2 = vld [vmem:[#allocation11 + $0xc8] sm:$0xff] }
 0x606   :  { %v6899_v12 = vadd.f32 %v6898_v16, %v6871_v35  ;;  %v7312_v1 = vmul.f32 1.050701, %v7284_v62  ;;  %v11568_v62 = vld [vmem:[#allocation11 + $0xd8] sm:$0xff] }
 0x608   :  { %v11739_v14 = vpop.eup %11738  ;;  %v7206_v46 = vmul.f32 1.442695, %v6899_v12  ;;  %v6921_v57 = vpop.f32.mrf.mxu0  ;;  %7616 = vmatmul.bf16.gmra.mxu0 %v13762_v20  ;;  %vm7152_vm14 = vcmp.gt.f32.partialorder %v6899_v12, 0.0 }
 0x609   :  { %v10731_v39 = vadd.f32 -1.0, %v11739_v14  ;;  %v11741_v21 = vpop.eup %11740  ;;  %v6922_v9 = vadd.f32 %v6921_v57, %v13508_v52  ;;  %v11569_v14 = vld [vmem:[#allocation11 + $0xe0] sm:$0xff] }
 0x60a   :  { %11744 = vpow2.f32 %v7206_v46  ;;  %v11743_v0 = vpop.eup %11742  ;;  %v6949_v37 = vpop.f32.mrf.mxu1  ;;  %v10733_v5 = vadd.f32 -1.0, %v11741_v21 }
 0x60b   :  { %v7260_v4 = vmul.f32 1.6732632, %v10731_v39  ;;  %v6974_v45 = vpop.f32.mrf.mxu2  ;;  %v10734_v32 = vadd.f32 -1.0, %v11743_v0  ;;  %v6950_v51 = vadd.f32 %v6949_v37, %v6922_v9 }
 0x60c   :  { %v13551_v42 = vadd.f32 %v6974_v45, %v6947_v44  ;;  %v7262_v19 = vmul.f32 1.6732632, %v10733_v5 }
 0x60d   :  { %v6900_v23 = vpop.f32.mrf.mxu3  ;;  %v7288_v49 = vsel %vm7148_vm11, %v6896_v26, %v7260_v4  ;;  %7644 = vmatmul.bf16.gmra.mxu1 %v7331_v6  ;;  %v7263_v10 = vmul.f32 1.6732632, %v10734_v32 }
 0x60e   :  { %v7316_v11 = vmul.f32 1.050701, %v7288_v49  ;;  %v7290_v24 = vsel %vm7150_vm12, %v13758_v7, %v7262_v19  ;;  %v11565_v19 = vld [vmem:[#allocation11 + $0xc0] sm:$0xff] }
 0x60f   :  { %v7291_v33 = vsel %vm7151_vm13, %v13385_v56, %v7263_v10  ;;  %v7318_v18 = vmul.f32 1.050701, %v7290_v24  ;;  %v11570_v56 = vld [vmem:[#allocation11 + $0xe8] sm:$0xff] }
 0x610   :  { %v11745_v40 = vpop.eup %11744  ;;  %v7332_v48 = vpack.c.bf16 %v7316_v11, %v7312_v1  ;;  %v6923_v25 = vpop.f32.mrf.mxu0  ;;  %v7319_v17 = vmul.f32 1.050701, %v7291_v33  ;;  %7684 = vmatpush.bf16.msra.mxu3 %v11570_v56 }
 0x611   :  { %v10735_v8 = vadd.f32 -1.0, %v11745_v40  ;;  %v6924_v3 = vadd.f32 %v6923_v25, %v13508_v52  ;;  %v7334_v13 = vpack.c.bf16 %v7318_v18, %v7318_v18 }
 0x612   :  { %7672 = vmatmul.bf16.gmra.mxu2 %v7332_v48  ;;  %v6951_v29 = vpop.f32.mrf.mxu1  ;;  %v7335_v7 = vpack.c.bf16 %v7319_v17, %v7319_v17 }
 0x613   :  { %v6977_v31 = vpop.f32.mrf.mxu2  ;;  %v7264_v26 = vmul.f32 1.6732632, %v10735_v8  ;;  %v6952_v6 = vadd.f32 %v6951_v29, %v6924_v3 }
 0x614   :  { %v6978_v36 = vadd.f32 %v6977_v31, %v6950_v51  ;;  %7685 = vmatpush.bf16.msra.mxu3 %v11569_v14  ;;  %v13590_v14 = vld [vmem:[#allocation13] ss:$0 sm:$0xff] }
 0x615   :  { %v6995_v60 = vpop.f32.mrf.mxu3  ;;  %v7292_v38 = vsel %vm7152_vm14, %v6899_v12, %v7264_v26 }
 0x616   :  { %v6996_v43 = vadd.f32 %v6995_v60, %v13526_v54  ;;  %v7320_v53 = vmul.f32 1.050701, %v7292_v38 }
 0x618   :  { %v6926_v63 = vpop.f32.mrf.mxu0  ;;  %7621 = vmatmul.bf16.gmra.mxu0 %v7334_v13  ;;  %v7336_v28 = vpack.c.bf16 %v7320_v53, %v7320_v53  ;;  %7686 = vmatpush.bf16.msra.mxu3 %v11568_v62 }
 0x619   :  { %v6927_v30 = vadd.f32 %v6926_v63, %v13508_v52 }
 0x61a   :  { %v6954_v34 = vpop.f32.mrf.mxu1 }
 0x61b   :  { %v6979_v41 = vpop.f32.mrf.mxu2  ;;  %v6955_v35 = vadd.f32 %v6954_v34, %v6927_v30 }
 0x61c   :  { %v13566_v50 = vadd.f32 %v6979_v41, %v6952_v6  ;;  %7687 = vmatpush.bf16.msra.mxu3 %v11567_v55 }
 0x61d   :  { %v6997_v54 = vpop.f32.mrf.mxu3  ;;  %7649 = vmatmul.bf16.gmra.mxu1 %v7335_v7 }
 0x620   :  { %v6928_v59 = vpop.f32.mrf.mxu0  ;;  %7688 = vmatpush.bf16.msra.mxu3 %v11566_v2 }
 0x622   :  { %7677 = vmatmul.bf16.gmra.mxu2 %v7336_v28  ;;  %v6956_v12 = vpop.f32.mrf.mxu1 }
 0x623   :  { %v6982_v16 = vpop.f32.mrf.mxu2 }
 0x624   :  { %v6983_v58 = vadd.f32 %v6982_v16, %v6955_v35  ;;  %7689 = vmatpush.bf16.msra.mxu3 %v11565_v19 }
 0x625   :  { %v7000_v22 = vpop.f32.mrf.mxu3 }
 0x626   :  { %v7001_v44 = vadd.f32 %v7000_v22, %v13548_v61 }
 0x628   :  { %v7023_v46 = vpop.f32.mrf.mxu0 }
 0x629   :  { %v7024_v8 = vadd.f32 %v7023_v46, %v6996_v43 }
 0x62a   :  { %v7051_v21 = vpop.f32.mrf.mxu1 }
 0x62b   :  { %v6984_v52 = vpop.f32.mrf.mxu2  ;;  %v7052_v10 = vadd.f32 %v7051_v21, %v7024_v8 }
 0x62d   :  { %v7002_v39 = vpop.f32.mrf.mxu3 }
 0x62e   :  { %v7003_v13 = vadd.f32 %v7002_v39, %v13551_v42 }
 0x630   :  { %v7025_v45 = vpop.f32.mrf.mxu0 }
 0x632   :  { %v7053_v57 = vpop.f32.mrf.mxu1 }
 0x633   :  { %v7079_v4 = vpop.f32.mrf.mxu2 }
 0x634   :  { %v7080_v25 = vadd.f32 %v7079_v4, %v7052_v10 }
 0x635   :  { %v7005_v0 = vpop.f32.mrf.mxu3 }
 0x636   :  { %v13570_v23 = vadd.f32 %v7005_v0, %v6978_v36  ;;  %v6998_v36 = vadd.f32 %v6997_v54, %v13532_v15 }
 0x638   :  { %v7028_v37 = vpop.f32.mrf.mxu0  ;;  %v7026_v60 = vadd.f32 %v7025_v45, %v6998_v36 }
 0x639   :  { %v7029_v15 = vadd.f32 %v7028_v37, %v7001_v44 }
 0x63a   :  { %v7056_v5 = vpop.f32.mrf.mxu1  ;;  %v7054_v33 = vadd.f32 %v7053_v57, %v7026_v60 }
 0x63b   :  { %v7081_v9 = vpop.f32.mrf.mxu2  ;;  %v7057_v30 = vadd.f32 %v7056_v5, %v7029_v15 }
 0x63c   :  { %v7082_v43 = vadd.f32 %v7081_v9, %v7054_v33 }
 0x63d   :  { %v13572_v49 = vpop.f32.mrf.mxu3 }
 0x640   :  { %v7030_v1 = vpop.f32.mrf.mxu0 }
 0x641   :  { %v7031_v16 = vadd.f32 %v7030_v1, %v7003_v13 }
 0x642   :  { %v7058_v32 = vpop.f32.mrf.mxu1 }
 0x643   :  { %v7084_v61 = vpop.f32.mrf.mxu2  ;;  %v7059_v52 = vadd.f32 %v7058_v32, %v7031_v16 }
 0x644   :  { %v7085_v7 = vadd.f32 %v7084_v61, %v7057_v30 }
 0x645   :  { %v7010_v11 = vpop.f32.mrf.mxu3 }
 0x646   :  { %v13574_v51 = vadd.f32 %v7010_v11, %v6983_v58 }
 0x648   :  { %v7033_v27 = vpop.f32.mrf.mxu0 }
 0x649   :  { %v7034_v9 = vadd.f32 %v7033_v27, %v13570_v23 }
 0x64a   :  { %v7061_v48 = vpop.f32.mrf.mxu1 }
 0x64b   :  { %v7086_v20 = vpop.f32.mrf.mxu2  ;;  %v7062_v2 = vadd.f32 %v7061_v48, %v7034_v9 }
 0x64c   :  { %v7087_v4 = vadd.f32 %v7086_v20, %v7059_v52 }
 0x64d   :  { %v7012_v40 = vpop.f32.mrf.mxu3 }
 0x64e   :  { %v7008_v40 = vadd.f32 %v13572_v49, %v13566_v50 }
 0x650   :  { %v13577_v26 = vpop.f32.mrf.mxu0 }
 0x651   :  { %v7036_v27 = vadd.f32 %v13577_v26, %v7008_v40 }
 0x652   :  { %v13579_v3 = vpop.f32.mrf.mxu1 }
 0x653   :  { %v7089_v31 = vpop.f32.mrf.mxu2 }
 0x654   :  { %v7090_v8 = vadd.f32 %v7089_v31, %v7062_v2 }
 0x655   :  { %v7107_v29 = vpop.f32.mrf.mxu3 }
 0x656   :  { %v7108_v24 = vadd.f32 %v7107_v29, %v7080_v25 }
 0x658   :  { %v7160_v6 = vmul.f32 1.442695, %v7108_v24  ;;  %v13583_v18 = vpop.f32.mrf.mxu0  ;;  %vm7129_vm15 = vcmp.gt.f32.partialorder %v7108_v24, 0.0 }
 0x659   :  { %v7039_v30 = vadd.f32 %v13583_v18, %v13574_v51 }
 0x65a   :  { %11746 = vpow2.f32 %v7160_v6  ;;  %v13585_v38 = vpop.f32.mrf.mxu1 }
 0x65b   :  { %v13581_v47 = vpop.f32.mrf.mxu2 }
 0x65d   :  { %v7109_v17 = vpop.f32.mrf.mxu3 }
 0x65e   :  { %v7110_v41 = vadd.f32 %v7109_v17, %v7082_v43  ;;  %v7064_v17 = vadd.f32 %v13579_v3, %v7036_v27 }
 0x660   :  { %v11747_v63 = vpop.eup %11746  ;;  %v7168_v53 = vmul.f32 1.442695, %v7110_v41  ;;  %v7040_v35 = vpop.f32.mrf.mxu0  ;;  %vm7133_vm1 = vcmp.gt.f32.partialorder %v7110_v41, 0.0  ;;  %v7092_v31 = vadd.f32 %v13581_v47, %v7064_v17 }
 0x661   :  { %v10712_v34 = vadd.f32 -1.0, %v11747_v63 }
 0x662   :  { %11748 = vpow2.f32 %v7168_v53  ;;  %v7068_v56 = vpop.f32.mrf.mxu1 }
 0x663   :  { %v13587_v54 = vpop.f32.mrf.mxu2  ;;  %v7241_v59 = vmul.f32 1.6732632, %v10712_v34 }
 0x665   :  { %v7112_v28 = vpop.f32.mrf.mxu3  ;;  %v7269_v46 = vsel %vm7129_vm15, %v7108_v24, %v7241_v59  ;;  %vm7928_vm15 = vcmask 7168  }
 0x666   :  { %v7113_v58 = vadd.f32 %v7112_v28, %v7085_v7  ;;  %v7297_v37 = vmul.f32 1.050701, %v7269_v46 }
 0x668   :  { %v11749_v12 = vpop.eup %11748  ;;  %v7176_v22 = vmul.f32 1.442695, %v7113_v58  ;;  %v7607_v42 = vpop.f32.mrf.mxu0  ;;  %vm7137_vm2 = vcmp.gt.f32.partialorder %v7113_v58, 0.0 }
 0x669   :  { %v10716_v44 = vadd.f32 -1.0, %v11749_v12  ;;  %v7608_v0 = vadd.f32 %v13590_v14, %v7607_v42 }
 0x66a   :  { %11750 = vpow2.f32 %v7176_v22  ;;  %v7635_v57 = vpop.f32.mrf.mxu1 }
 0x66b   :  { %v7245_v21 = vmul.f32 1.6732632, %v10716_v44  ;;  %v7096_v62 = vpop.f32.mrf.mxu2  ;;  %v7636_v1 = vadd.f32 %v7635_v57, %v7608_v0 }
 0x66d   :  { %v7273_v39 = vsel %vm7133_vm1, %v7110_v41, %v7245_v21  ;;  %v7114_v45 = vpop.f32.mrf.mxu3 }
 0x66e   :  { %v7301_v5 = vmul.f32 1.050701, %v7273_v39  ;;  %v7115_v61 = vadd.f32 %v7114_v45, %v7087_v4 }
 0x670   :  { %v11751_v11 = vpop.eup %11750  ;;  %v7325_v32 = vpack.c.bf16 %v7301_v5, %v7297_v37  ;;  %v7184_v55 = vmul.f32 1.442695, %v7115_v61  ;;  %v7609_v19 = vpop.f32.mrf.mxu0  ;;  %vm7141_vm3 = vcmp.gt.f32.partialorder %v7115_v61, 0.0 }
 0x671   :  { %v10720_v20 = vadd.f32 -1.0, %v11751_v11  ;;  %v7610_v36 = vadd.f32 %v13590_v14, %v7609_v19 }
 0x672   :  { %11752 = vpow2.f32 %v7184_v55  ;;  %7690 = vmatmul.bf16.vlgmr.msra.gmra.mxu3 %v7325_v32  ;;  %v7637_v23 = vpop.f32.mrf.mxu1 }
 0x673   :  { %v7249_v60 = vmul.f32 1.6732632, %v10720_v20  ;;  %v7638_v24 = vadd.f32 %v7637_v23, %v7610_v36 }
 0x675   :  { %v7117_v10 = vpop.f32.mrf.mxu3  ;;  %v7663_v29 = vpop.f32.mrf.mxu2  ;;  %v7277_v50 = vsel %vm7137_vm2, %v7113_v58, %v7249_v60  ;;  %v7067_v58 = vadd.f32 %v13585_v38, %v7039_v30 }
 0x676   :  { %v7118_v25 = vadd.f32 %v7117_v10, %v7090_v8  ;;  %v13598_v6 = vadd.f32 %v7663_v29, %v7636_v1  ;;  %v7305_v34 = vmul.f32 1.050701, %v7277_v50 }
 0x677   :  { %v7095_v12 = vadd.f32 %v13587_v54, %v7067_v58 }
 0x678   :  { %v11753_v48 = vpop.eup %11752  ;;  %v7192_v33 = vmul.f32 1.442695, %v7118_v25  ;;  %v7612_v15 = vpop.f32.mrf.mxu0  ;;  %vm7145_vm4 = vcmp.gt.f32.partialorder %v7118_v25, 0.0 }
 0x679   :  { %v10724_v43 = vadd.f32 -1.0, %v11753_v48  ;;  %v7613_v63 = vadd.f32 %v13590_v14, %v7612_v15 }
 0x67a   :  { %11754 = vpow2.f32 %v7192_v33  ;;  %v7640_v53 = vpop.f32.mrf.mxu1 }
 0x67b   :  { %v7253_v49 = vmul.f32 1.6732632, %v10724_v43  ;;  %v7641_v35 = vadd.f32 %v7640_v53, %v7613_v63 }
 0x67d   :  { %v7281_v26 = vsel %vm7141_vm3, %v7115_v61, %v7253_v49  ;;  %v7119_v41 = vpop.f32.mrf.mxu3  ;;  %v7665_v3 = vpop.f32.mrf.mxu2 }
 0x67e   :  { %v7309_v13 = vmul.f32 1.050701, %v7281_v26  ;;  %v7120_v7 = vadd.f32 %v7119_v41, %v7092_v31  ;;  %v13605_v56 = vadd.f32 %v7665_v3, %v7638_v24 }
 0x680   :  { %v11755_v28 = vpop.eup %11754  ;;  %v7200_v16 = vmul.f32 1.442695, %v7120_v7  ;;  %v7329_v47 = vpack.c.bf16 %v7309_v13, %v7305_v34  ;;  %v7614_v22 = vpop.f32.mrf.mxu0  ;;  %vm7149_vm5 = vcmp.gt.f32.partialorder %v7120_v7, 0.0 }
 0x681   :  { %v10728_v59 = vadd.f32 -1.0, %v11755_v28  ;;  %v7615_v51 = vadd.f32 %v13590_v14, %v7614_v22 }
 0x682   :  { %11756 = vpow2.f32 %v7200_v16  ;;  %7695 = vmatmul.bf16.gmra.mxu3 %v7329_v47  ;;  %v7642_v18 = vpop.f32.mrf.mxu1  ;;  %v13617_v16 = vld [vmem:[#allocation14] ss:$0 sm:$0xff] }
 0x683   :  { %v7257_v21 = vmul.f32 1.6732632, %v10728_v59  ;;  %v7643_v62 = vadd.f32 %v7642_v18, %v7615_v51 }
 0x685   :  { %v7122_v44 = vpop.f32.mrf.mxu3  ;;  %v7668_v46 = vpop.f32.mrf.mxu2  ;;  %v7285_v38 = vsel %vm7145_vm4, %v7118_v25, %v7257_v21 }
 0x686   :  { %v7123_v52 = vadd.f32 %v7122_v44, %v7095_v12  ;;  %v7669_v4 = vadd.f32 %v7668_v46, %v7641_v35  ;;  %v7313_v61 = vmul.f32 1.050701, %v7285_v38 }
 0x688   :  { %v11757_v42 = vpop.eup %11756  ;;  %v7208_v39 = vmul.f32 1.442695, %v7123_v52  ;;  %v7617_v57 = vpop.f32.mrf.mxu0  ;;  %vm7153_vm6 = vcmp.gt.f32.partialorder %v7123_v52, 0.0 }
 0x689   :  { %v10732_v45 = vadd.f32 -1.0, %v11757_v42  ;;  %v7618_v37 = vadd.f32 %v13590_v14, %v7617_v57 }
 0x68a   :  { %11758 = vpow2.f32 %v7208_v39  ;;  %v7645_v5 = vpop.f32.mrf.mxu1 }
 0x68b   :  { %v7261_v0 = vmul.f32 1.6732632, %v10732_v45  ;;  %v7646_v32 = vadd.f32 %v7645_v5, %v7618_v37 }
 0x68d   :  { %v7289_v54 = vsel %vm7149_vm5, %v7120_v7, %v7261_v0  ;;  %v7124_v9 = vpop.f32.mrf.mxu3  ;;  %v7670_v11 = vpop.f32.mrf.mxu2 }
 0x68e   :  { %v7317_v1 = vmul.f32 1.050701, %v7289_v54  ;;  %v7671_v55 = vadd.f32 %v7670_v11, %v7643_v62 }
 0x690   :  { %v11759_v2 = vpop.eup %11758  ;;  %v7333_v20 = vpack.c.bf16 %v7317_v1, %v7313_v61  ;;  %v7619_v8 = vpop.f32.mrf.mxu0 }
 0x691   :  { %v10736_v40 = vadd.f32 -1.0, %v11759_v2  ;;  %v7620_v10 = vadd.f32 %v13590_v14, %v7619_v8 }
 0x692   :  { %7700 = vmatmul.bf16.gmra.mxu3 %v7333_v20  ;;  %v7647_v36 = vpop.f32.mrf.mxu1 }
 0x693   :  { %v7265_v19 = vmul.f32 1.6732632, %v10736_v40  ;;  %v7648_v27 = vadd.f32 %v7647_v36, %v7620_v10 }
 0x695   :  { %v7673_v23 = vpop.f32.mrf.mxu2  ;;  %v7293_v29 = vsel %vm7153_vm6, %v7123_v52, %v7265_v19 }
 0x696   :  { %v7674_v25 = vadd.f32 %v7673_v23, %v7646_v32  ;;  %v7321_v24 = vmul.f32 1.050701, %v7293_v29 }
 0x698   :  { %v7622_v60 = vpop.f32.mrf.mxu0  ;;  %v7337_v49 = vpack.c.bf16 %v7321_v24, %v7321_v24 }
 0x699   :  { %v7623_v48 = vadd.f32 %v13590_v14, %v7622_v60 }
 0x69a   :  { %v7650_v33 = vpop.f32.mrf.mxu1 }
 0x69b   :  { %v7651_v17 = vadd.f32 %v7650_v33, %v7623_v48 }
 0x69d   :  { %v7675_v43 = vpop.f32.mrf.mxu2 }
 0x69e   :  { %v7676_v50 = vadd.f32 %v7675_v43, %v7648_v27 }
 0x6a0   :  { %v7624_v31 = vpop.f32.mrf.mxu0 }
 0x6a2   :  { %7705 = vmatmul.bf16.gmra.mxu3 %v7337_v49  ;;  %v7652_v15 = vpop.f32.mrf.mxu1 }
 0x6a5   :  { %v7678_v26 = vpop.f32.mrf.mxu2 }
 0x6a6   :  { %v13613_v41 = vadd.f32 %v7678_v26, %v7651_v17 }
 0x6ad   :  { %v7680_v63 = vpop.f32.mrf.mxu2 }
 0x6f5   :  { %v7691_v53 = vpop.f32.mrf.mxu3 }
 0x6f6   :  { %v7692_v30 = vadd.f32 %v7691_v53, %v13598_v6 }
 0x6f8   :  { %v7717_v34 = vmul.f32 1.442695, %v7692_v30  ;;  %vm7710_vm0 = vcmp.gt.f32.partialorder %v7692_v30, 0.0 }
 0x6fa   :  { %11760 = vpow2.f32 %v7717_v34 }
 0x6fd   :  { %v7693_v13 = vpop.f32.mrf.mxu3 }
 0x6fe   :  { %v7694_v14 = vadd.f32 %v7693_v13, %v13605_v56 }
 0x700   :  { %v11761_v7 = vpop.eup %11760  ;;  %v7719_v3 = vmul.f32 1.442695, %v7694_v14  ;;  %vm7711_vm7 = vcmp.gt.f32.partialorder %v7694_v14, 0.0 }
 0x701   :  { %v10865_v35 = vadd.f32 -1.0, %v11761_v7 }
 0x702   :  { %11762 = vpow2.f32 %v7719_v3 }
 0x703   :  { %v7738_v28 = vmul.f32 1.6732632, %v10865_v35 }
 0x705   :  { %v7696_v47 = vpop.f32.mrf.mxu3  ;;  %v7745_v58 = vsel %vm7710_vm0, %v7692_v30, %v7738_v28  ;;  %v13627_v30 = vld [vmem:[#allocation2] ss:$0 sm:$0xff] }
 0x706   :  { %v7697_v59 = vadd.f32 %v7696_v47, %v7669_v4  ;;  %v7752_v12 = vmul.f32 1.050701, %v7745_v58 }
 0x708   :  { %v11763_v22 = vpop.eup %11762  ;;  %v7721_v44 = vmul.f32 1.442695, %v7697_v59  ;;  %v7763_v6 = vmul.f32 %v13617_v16, %v7752_v12  ;;  %vm7712_vm8 = vcmp.gt.f32.partialorder %v7697_v59, 0.0 }
 0x709   :  { %v10866_v51 = vadd.f32 -1.0, %v11763_v22 }
 0x70a   :  { %11764 = vpow2.f32 %v7721_v44  ;;  %7770 = vadd.xlane.f32.xlu0 %v7763_v6 }
 0x70b   :  { %v7739_v56 = vmul.f32 1.6732632, %v10866_v51 }
 0x70d   :  { %v7698_v18 = vpop.f32.mrf.mxu3  ;;  %v7746_v52 = vsel %vm7711_vm7, %v7694_v14, %v7739_v56 }
 0x70e   :  { %v7699_v46 = vadd.f32 %v7698_v18, %v7671_v55  ;;  %v7753_v21 = vmul.f32 1.050701, %v7746_v52 }
 0x710   :  { %v11765_v62 = vpop.eup %11764  ;;  %v7723_v42 = vmul.f32 1.442695, %v7699_v46  ;;  %v7764_v39 = vmul.f32 %v13617_v16, %v7753_v21  ;;  %vm7713_vm9 = vcmp.gt.f32.partialorder %v7699_v46, 0.0 }
 0x711   :  { %v10867_v45 = vadd.f32 -1.0, %v11765_v62 }
 0x712   :  { %11766 = vpow2.f32 %v7723_v42  ;;  %7772 = vadd.xlane.f32.xlu0 %v7764_v39 }
 0x713   :  { %v7740_v4 = vmul.f32 1.6732632, %v10867_v45 }
 0x715   :  { %v7701_v38 = vpop.f32.mrf.mxu3  ;;  %v7747_v0 = vsel %vm7712_vm8, %v7697_v59, %v7740_v4 }
 0x716   :  { %v7702_v57 = vadd.f32 %v7701_v38, %v7674_v25  ;;  %v7754_v54 = vmul.f32 1.050701, %v7747_v0 }
 0x718   :  { %v11767_v9 = vpop.eup %11766  ;;  %v7725_v37 = vmul.f32 1.442695, %v7702_v57  ;;  %v7765_v5 = vmul.f32 %v13617_v16, %v7754_v54  ;;  %vm7714_vm10 = vcmp.gt.f32.partialorder %v7702_v57, 0.0 }
 0x719   :  { %v10868_v61 = vadd.f32 -1.0, %v11767_v9 }
 0x71a   :  { %11768 = vpow2.f32 %v7725_v37  ;;  %7774 = vadd.xlane.f32.xlu1 %v7765_v5 }
 0x71b   :  { %v7741_v1 = vmul.f32 1.6732632, %v10868_v61 }
 0x71d   :  { %v7703_v11 = vpop.f32.mrf.mxu3  ;;  %v7748_v32 = vsel %vm7713_vm9, %v7699_v46, %v7741_v1 }
 0x71e   :  { %v7704_v55 = vadd.f32 %v7703_v11, %v7676_v50  ;;  %v7755_v2 = vmul.f32 1.050701, %v7748_v32 }
 0x720   :  { %v11769_v20 = vpop.eup %11768  ;;  %v7727_v40 = vmul.f32 1.442695, %v7704_v55  ;;  %v7766_v8 = vmul.f32 %v13617_v16, %v7755_v2  ;;  %vm7715_vm11 = vcmp.gt.f32.partialorder %v7704_v55, 0.0 }
 0x721   :  { %v10869_v19 = vadd.f32 -1.0, %v11769_v20 }
 0x722   :  { %11770 = vpow2.f32 %v7727_v40  ;;  %7776 = vadd.xlane.f32.xlu1 %v7766_v8 }
 0x723   :  { %v7742_v10 = vmul.f32 1.6732632, %v10869_v19 }
 0x725   :  { %v7706_v36 = vpop.f32.mrf.mxu3  ;;  %v7749_v23 = vsel %vm7714_vm10, %v7702_v57, %v7742_v10 }
 0x726   :  { %v7707_v27 = vadd.f32 %v7706_v36, %v13613_v41  ;;  %v7756_v25 = vmul.f32 1.050701, %v7749_v23 }
 0x728   :  { %v11771_v29 = vpop.eup %11770  ;;  %v7729_v60 = vmul.f32 1.442695, %v7707_v27  ;;  %v7767_v24 = vmul.f32 %v13617_v16, %v7756_v25  ;;  %vm7716_vm12 = vcmp.gt.f32.partialorder %v7707_v27, 0.0 }
 0x729   :  { %v10870_v48 = vadd.f32 -1.0, %v11771_v29 }
 0x72a   :  { %11772 = vpow2.f32 %v7729_v60  ;;  %7778 = vadd.xlane.f32.xlu2 %v7767_v24 }
 0x72b   :  { %v7743_v33 = vmul.f32 1.6732632, %v10870_v48 }
 0x72d   :  { %v7708_v43 = vpop.f32.mrf.mxu3  ;;  %v7750_v17 = vsel %vm7715_vm11, %v7704_v55, %v7743_v33 }
 0x72e   :  { %v7757_v50 = vmul.f32 1.050701, %v7750_v17 }
 0x730   :  { %v11773_v49 = vpop.eup %11772  ;;  %v7768_v31 = vmul.f32 %v13617_v16, %v7757_v50 }
 0x731   :  { %v10871_v15 = vadd.f32 -1.0, %v11773_v49 }
 0x732   :  { %7780 = vadd.xlane.f32.xlu2 %v7768_v31 }
 0x733   :  { %v7744_v26 = vmul.f32 1.6732632, %v10871_v15 }
 0x735   :  { %v7751_v41 = vsel %vm7716_vm12, %v7707_v27, %v7744_v26 }
 0x736   :  { %v7758_v63 = vmul.f32 1.050701, %v7751_v41 }
 0x738   :  { %v7769_v53 = vmul.f32 %v13617_v16, %v7758_v63 }
 0x73a   :  { %7782 = vadd.xlane.f32.xlu0 %v7769_v53 }
 0x77d   :  { %v7771_v34 = vpop.xlane.xlu0 %7770 }
 0x77e   :  { %v7788_v13 = vadd.f32 %v13627_v30, %v7771_v34 }
 0x780   :  { %v7795_v14 = vsub.f32 0.0, %v7788_v13 }
 0x782   :  { %v7802_v7 = vmul.f32 1.442695, %v7795_v14 }
 0x784   :  { %11774 = vpow2.f32 %v7802_v7 }
 0x785   :  { %v7773_v3 = vpop.xlane.xlu0 %7772 }
 0x786   :  { %v7789_v35 = vadd.f32 %v13627_v30, %v7773_v3 }
 0x788   :  { %v7796_v28 = vsub.f32 0.0, %v7789_v35 }
 0x78a   :  { %v11775_v47 = vpop.eup %11774  ;;  %v7804_v58 = vmul.f32 1.442695, %v7796_v28 }
 0x78b   :  { %v7816_v59 = vadd.f32 1.0, %v11775_v47 }
 0x78c   :  { %11776 = vpow2.f32 %v7804_v58 }
 0x78d   :  { %11778 = vrcp.f32 %v7816_v59  ;;  %v7775_v12 = vpop.xlane.xlu1 %7774  ;;  %v7834_v62 = vand.u32 2147483648, %v7816_v59  ;;  %v7832_v39 = vand.u32 2147483647, %v7816_v59  ;;  %vm7828_vm14 = vweird.f32 %v7816_v59 }
 0x78e   :  { %v7790_v16 = vadd.f32 %v13627_v30, %v7775_v12 }
 0x78f   :  { %v7835_v54 = vor.u32 1.1754944e-38, %v7834_v62  ;;  %vm7833_vm2 = vcmp.eq.f32.partialorder %v7832_v39, 8.507059e+37 }
 0x790   :  { %v7797_v22 = vsub.f32 0.0, %v7790_v16 }
 0x792   :  { %v11777_v44 = vpop.eup %11776  ;;  %v7806_v6 = vmul.f32 1.442695, %v7797_v22 }
 0x793   :  { %v11779_v51 = vpop.eup %11778  ;;  %v7817_v56 = vadd.f32 1.0, %v11777_v44 }
 0x794   :  { %v7824_v18 = vmul.f32 %v11779_v51, %v7816_v59  ;;  %11780 = vpow2.f32 %v7806_v6  ;;  %vm7829_vm13 = vweird.f32 %v11779_v51 }
 0x795   :  { %11782 = vrcp.f32 %v7817_v56  ;;  %v7777_v52 = vpop.xlane.xlu1 %7776  ;;  %vm7830_vm1 = vmor %vm7828_vm14, %vm7829_vm13  ;;  %v7849_v55 = vand.u32 2147483648, %v7817_v56  ;;  %v7847_v20 = vand.u32 2147483647, %v7817_v56  ;;  %vm7843_vm4 = vweird.f32 %v7817_v56 }
 0x796   :  { %v7825_v46 = vsub.f32 1.0, %v7824_v18  ;;  %v7791_v21 = vadd.f32 %v13627_v30, %v7777_v52 }
 0x797   :  { %v7850_v23 = vor.u32 1.1754944e-38, %v7849_v55  ;;  %vm7848_vm6 = vcmp.eq.f32.partialorder %v7847_v20, 8.507059e+37 }
 0x798   :  { %v7826_v42 = vmul.f32 %v11779_v51, %v7825_v46  ;;  %v7798_v45 = vsub.f32 0.0, %v7791_v21 }
 0x79a   :  { %v11781_v4 = vpop.eup %11780  ;;  %v7827_v38 = vadd.f32 %v11779_v51, %v7826_v42  ;;  %v7808_v0 = vmul.f32 1.442695, %v7798_v45 }
 0x79b   :  { %v11783_v57 = vpop.eup %11782  ;;  %v7818_v9 = vadd.f32 1.0, %v11781_v4 }
 0x79c   :  { %v7831_v37 = vsel %vm7830_vm1, %v11779_v51, %v7827_v38  ;;  %v7839_v5 = vmul.f32 %v11783_v57, %v7817_v56  ;;  %11784 = vpow2.f32 %v7808_v0  ;;  %vm7844_vm3 = vweird.f32 %v11783_v57 }
 0x79d   :  { %v7836_v61 = vsel %vm7833_vm2, %v7835_v54, %v7831_v37  ;;  %11786 = vrcp.f32 %v7818_v9  ;;  %v7779_v1 = vpop.xlane.xlu2 %7778  ;;  %vm7845_vm5 = vmor %vm7843_vm4, %vm7844_vm3  ;;  %v7864_v43 = vand.u32 2147483648, %v7818_v9  ;;  %v7862_v50 = vand.u32 2147483647, %v7818_v9 }
 0x79e   :  { %7929 = vst.msk [vmem:[%s13673_s9] sm:$0xff] %vm7928_vm15, %v7836_v61  ;;  %v7840_v11 = vsub.f32 1.0, %v7839_v5  ;;  %v7792_v32 = vadd.f32 %v13627_v30, %v7779_v1  ;;  %vm7858_vm7 = vweird.f32 %v7818_v9 }
 0x79f   :  { %v7865_v63 = vor.u32 1.1754944e-38, %v7864_v43  ;;  %vm7863_vm9 = vcmp.eq.f32.partialorder %v7862_v50, 8.507059e+37 }
 0x7a0   :  { %v7841_v2 = vmul.f32 %v11783_v57, %v7840_v11  ;;  %v7799_v40 = vsub.f32 0.0, %v7792_v32 }
 0x7a2   :  { %v11785_v8 = vpop.eup %11784  ;;  %v7842_v19 = vadd.f32 %v11783_v57, %v7841_v2  ;;  %v7810_v10 = vmul.f32 1.442695, %v7799_v40 }
 0x7a3   :  { %v11787_v36 = vpop.eup %11786  ;;  %v7819_v27 = vadd.f32 1.0, %v11785_v8 }
 0x7a4   :  { %v7846_v25 = vsel %vm7845_vm5, %v11783_v57, %v7842_v19  ;;  %v7854_v29 = vmul.f32 %v11787_v36, %v7818_v9  ;;  %11788 = vpow2.f32 %v7810_v10  ;;  %vm7859_vm0 = vweird.f32 %v11787_v36 }
 0x7a5   :  { %v7851_v60 = vsel %vm7848_vm6, %v7850_v23, %v7846_v25  ;;  %11790 = vrcp.f32 %v7819_v27  ;;  %v7781_v24 = vpop.xlane.xlu2 %7780  ;;  %vm7860_vm8 = vmor %vm7858_vm7, %vm7859_vm0  ;;  %v7879_v28 = vand.u32 2147483648, %v7819_v27  ;;  %v7877_v58 = vand.u32 2147483647, %v7819_v27 }
 0x7a6   :  { %7930 = vst.msk [vmem:[%s13673_s9 + $0x8] sm:$0xff] %vm7928_vm15, %v7851_v60  ;;  %v7855_v48 = vsub.f32 1.0, %v7854_v29  ;;  %v7793_v33 = vadd.f32 %v13627_v30, %v7781_v24  ;;  %vm7873_vm11 = vweird.f32 %v7819_v27 }
 0x7a7   :  { %v7880_v6 = vor.u32 1.1754944e-38, %v7879_v28  ;;  %vm7878_vm13 = vcmp.eq.f32.partialorder %v7877_v58, 8.507059e+37 }
 0x7a8   :  { %v7856_v17 = vmul.f32 %v11787_v36, %v7855_v48  ;;  %v7800_v49 = vsub.f32 0.0, %v7793_v33 }
 0x7aa   :  { %v11789_v31 = vpop.eup %11788  ;;  %v7857_v15 = vadd.f32 %v11787_v36, %v7856_v17  ;;  %v7812_v26 = vmul.f32 1.442695, %v7800_v49 }
 0x7ab   :  { %v11791_v41 = vpop.eup %11790  ;;  %v7820_v53 = vadd.f32 1.0, %v11789_v31 }
 0x7ac   :  { %v7861_v34 = vsel %vm7860_vm8, %v11787_v36, %v7857_v15  ;;  %v7869_v13 = vmul.f32 %v11791_v41, %v7819_v27  ;;  %11792 = vpow2.f32 %v7812_v26  ;;  %vm7874_vm10 = vweird.f32 %v11791_v41 }
 0x7ad   :  { %v7866_v14 = vsel %vm7863_vm9, %v7865_v63, %v7861_v34  ;;  %11794 = vrcp.f32 %v7820_v53  ;;  %v7783_v7 = vpop.xlane.xlu0 %7782  ;;  %vm7875_vm12 = vmor %vm7873_vm11, %vm7874_vm10  ;;  %v7894_v46 = vand.u32 2147483648, %v7820_v53  ;;  %v7892_v62 = vand.u32 2147483647, %v7820_v53 }
 0x7ae   :  { %7931 = vst.msk [vmem:[%s13673_s9 + $0x10] sm:$0xff] %vm7928_vm15, %v7866_v14  ;;  %v7870_v3 = vsub.f32 1.0, %v7869_v13  ;;  %v7794_v35 = vadd.f32 %v13627_v30, %v7783_v7  ;;  %vm7888_vm1 = vweird.f32 %v7820_v53 }
 0x7af   :  { %v7895_v4 = vor.u32 1.1754944e-38, %v7894_v46  ;;  %vm7893_vm3 = vcmp.eq.f32.partialorder %v7892_v62, 8.507059e+37 }
 0x7b0   :  { %v7871_v47 = vmul.f32 %v11791_v41, %v7870_v3  ;;  %v7801_v59 = vsub.f32 0.0, %v7794_v35 }
 0x7b2   :  { %v11793_v12 = vpop.eup %11792  ;;  %v7872_v16 = vadd.f32 %v11791_v41, %v7871_v47  ;;  %v7814_v22 = vmul.f32 1.442695, %v7801_v59 }
 0x7b3   :  { %v11795_v44 = vpop.eup %11794  ;;  %v7821_v51 = vadd.f32 1.0, %v11793_v12 }
 0x7b4   :  { %v7876_v56 = vsel %vm7875_vm12, %v11791_v41, %v7872_v16  ;;  %v7884_v18 = vmul.f32 %v11795_v44, %v7820_v53  ;;  %11796 = vpow2.f32 %v7814_v22  ;;  %vm7889_vm14 = vweird.f32 %v11795_v44 }
 0x7b5   :  { %v7881_v52 = vsel %vm7878_vm13, %v7880_v6, %v7876_v56  ;;  %11798 = vrcp.f32 %v7821_v51  ;;  %vm7890_vm2 = vmor %vm7888_vm1, %vm7889_vm14  ;;  %v7909_v37 = vand.u32 2147483648, %v7821_v51  ;;  %v7907_v61 = vand.u32 2147483647, %v7821_v51 }
 0x7b6   :  { %7932 = vst.msk [vmem:[%s13673_s9 + $0x18] sm:$0xff] %vm7928_vm15, %v7881_v52  ;;  %v7885_v30 = vsub.f32 1.0, %v7884_v18  ;;  %vm7903_vm5 = vweird.f32 %v7821_v51 }
 0x7b7   :  { %v7910_v32 = vor.u32 1.1754944e-38, %v7909_v37  ;;  %vm7908_vm0 = vcmp.eq.f32.partialorder %v7907_v61, 8.507059e+37 }
 0x7b8   :  { %v7886_v21 = vmul.f32 %v11795_v44, %v7885_v30 }
 0x7ba   :  { %v11797_v42 = vpop.eup %11796  ;;  %v7887_v39 = vadd.f32 %v11795_v44, %v7886_v21 }
 0x7bb   :  { %v11799_v45 = vpop.eup %11798  ;;  %v7822_v38 = vadd.f32 1.0, %v11797_v42 }
 0x7bc   :  { %v7891_v0 = vsel %vm7890_vm2, %v11795_v44, %v7887_v39  ;;  %v7899_v57 = vmul.f32 %v11799_v45, %v7821_v51  ;;  %vm7904_vm4 = vweird.f32 %v11799_v45 }
 0x7bd   :  { %v7896_v54 = vsel %vm7893_vm3, %v7895_v4, %v7891_v0  ;;  %11800 = vrcp.f32 %v7822_v38  ;;  %vm7905_vm6 = vmor %vm7903_vm5, %vm7904_vm4  ;;  %v7924_v8 = vand.u32 2147483648, %v7822_v38  ;;  %v7922_v10 = vand.u32 2147483647, %v7822_v38 }
 0x7be   :  { %7933 = vst.msk [vmem:[%s13673_s9 + $0x20] sm:$0xff] %vm7928_vm15, %v7896_v54  ;;  %v7900_v9 = vsub.f32 1.0, %v7899_v57  ;;  %vm7918_vm8 = vweird.f32 %v7822_v38 }
 0x7bf   :  { %v7925_v23 = vor.u32 1.1754944e-38, %v7924_v8  ;;  %vm7923_vm10 = vcmp.eq.f32.partialorder %v7922_v10, 8.507059e+37 }
 0x7c0   :  { %v7901_v5 = vmul.f32 %v11799_v45, %v7900_v9 }
 0x7c2   :  { %v7902_v1 = vadd.f32 %v11799_v45, %v7901_v5 }
 0x7c3   :  { %v11801_v11 = vpop.eup %11800 }
 0x7c4   :  { %v7906_v55 = vsel %vm7905_vm6, %v11799_v45, %v7902_v1  ;;  %v7914_v2 = vmul.f32 %v11801_v11, %v7822_v38  ;;  %vm7919_vm7 = vweird.f32 %v11801_v11 }
 0x7c5   :  { %v7911_v20 = vsel %vm7908_vm0, %v7910_v32, %v7906_v55  ;;  %vm7920_vm9 = vmor %vm7918_vm8, %vm7919_vm7 }
 0x7c6   :  { %7934 = vst.msk [vmem:[%s13673_s9 + $0x28] sm:$0xff] %vm7928_vm15, %v7911_v20  ;;  %v7915_v40 = vsub.f32 1.0, %v7914_v2 }
 0x7c8   :  { %v7916_v19 = vmul.f32 %v11801_v11, %v7915_v40 }
 0x7ca   :  { %v7917_v36 = vadd.f32 %v11801_v11, %v7916_v19 }
 0x7cc   :  { %v7921_v27 = vsel %vm7920_vm9, %v11801_v11, %v7917_v36 }
 0x7cd   :  { %v7926_v25 = vsel %vm7923_vm10, %v7925_v23, %v7921_v27 }
 0x7ce   :  { %7935 = vst.msk [vmem:[%s13673_s9 + $0x30] sm:$0xff] %vm7928_vm15, %v7926_v25 }
 0x7cf   :  { %7940 = vsyncpa [#allocation4], 1 }
 0x7d0   :  { %7941 = vsyncpa [#allocation6], 1 }
 0x7d1   :  { %7942 = vsyncpa [#allocation9], 1 }
 0x7d2   :  { %7943 = vsyncpa [#allocation12], 1 }
 0x7d3   :  { %7944 = vsyncpa [#allocation15], 1 }

</bundles_post_ra>
